<compile_context>
chip_gen: v5e
topology: v5e:2x2
jax: 0.10.0
libtpu: 0.0.40
codegen_flags: <defaults>
</compile_context>

<pallas_src>
import functools

import jax
import jax.numpy as jnp
import numpy as np
from jax import lax
from jax.experimental import pallas as pl
from jax.experimental.pallas import tpu as pltpu


def mpnn_kernel(src_ref, dst_ref, n2g_ref,            # scalar-prefetch (SMEM, int32)
                x_ref, ef_ref,
                w0_ref, b0_ref, we1_ref, be1_ref, we2_ref, be2_ref, bconv_ref,
                wih_ref, bih_ref, whh_ref, bhh_ref,
                wp1_ref, bp1_ref, wp2_ref, bp2_ref,
                out_ref,
                wedge_scr, hrep_scr, prod_scr, msg_scr, h_scr, agg_scr, gf_scr,
                *, D, E, N, G, num_steps):
    f32 = jnp.float32
    bf16 = jnp.bfloat16
    relu = lambda v: jnp.maximum(v, 0.0)

    # ---- constant 0/1 expansion / fold matrices, built in-kernel (no HBM DMA) ----
    # R[d, d*D + k] = 1   (lane-replicates h:  h_rep[n, d*D + k] = h[n, d])
    d_row = lax.broadcasted_iota(jnp.int32, (D, D * D), 0)
    j_col = lax.broadcasted_iota(jnp.int32, (D, D * D), 1)
    r_exp = jnp.where((j_col >= d_row * D) & (j_col < d_row * D + D),
                      1.0, 0.0).astype(bf16)
    # S[d*D + k, k] = 1   (segmented lane reduction over d)
    j_row = lax.broadcasted_iota(jnp.int32, (D * D, D), 0)
    k_col = lax.broadcasted_iota(jnp.int32, (D * D, D), 1)
    if D & (D - 1) == 0:                    # power-of-two D: j % D via bit-mask
        s_msk = jnp.bitwise_and(j_row, D - 1) == k_col
    else:                                   # general D: OR of D shifted equalities
        s_msk = j_row == k_col
        for a in range(1, D):
            s_msk = jnp.logical_or(s_msk, j_row == k_col + a * D)
    s_fold = jnp.where(s_msk, 1.0, 0.0).astype(bf16)

    # ---- 1) node projection: Linear + ReLU ----
    h = relu(jnp.dot(x_ref[...], w0_ref[...], preferred_element_type=f32) + b0_ref[...])

    # ---- 2) edge network: Linear -> ReLU -> Linear, one lane-dense (E, D*D) matmul.
    #         wedge[e, d*D + k] = W_e[d, k]  (d-major, matches torch reshape(-1,D,D)).
    he = relu(jnp.dot(ef_ref[...], we1_ref[...], preferred_element_type=f32) + be1_ref[...])
    wedge_scr[...] = (jnp.dot(he.astype(bf16), we2_ref[...],
                              preferred_element_type=f32) + be2_ref[...])

    # ---- loop-invariant GRU parameters (hoisted out of the unrolled step loop) ----
    wih_r, wih_z, wih_n = wih_ref[0], wih_ref[1], wih_ref[2]     # (D, D) each
    whh_r, whh_z, whh_n = whh_ref[0], whh_ref[1], whh_ref[2]
    bih_r, bih_z, bih_n = bih_ref[0], bih_ref[1], bih_ref[2]     # (1, D) each
    bhh_r, bhh_z, bhh_n = bhh_ref[0], bhh_ref[1], bhh_ref[2]
    bconv = bconv_ref[...]

    # ---- 3) message passing (NNConv, sum aggregation) + GRU, num_steps times ----
    for _ in range(num_steps):
        # lane-replicate h on the MXU once per step (N*D*D work, not E*D*D)
        hrep_scr[...] = jnp.dot(h.astype(bf16), r_exp, preferred_element_type=f32)

        # per-edge gather of the expanded source row + product with edge weights
        def gather_mul(e, carry):
            s = src_ref[e]
            prod_scr[pl.ds(e, 1), :] = (hrep_scr[pl.ds(s, 1), :]
                                        * wedge_scr[pl.ds(e, 1), :])
            return carry
        lax.fori_loop(0, E, gather_mul, 0, unroll=True)

        # segmented lane reduction -> messages m[e, k] = sum_d h[src_e, d] * W_e[d, k]
        msg_scr[...] = jnp.dot(prod_scr[...].astype(bf16), s_fold,
                               preferred_element_type=f32)

        # scatter-add messages onto destination nodes (sequential, index-based)
        agg_scr[...] = jnp.zeros((N, D), f32)
        def scatter_add(e, carry):
            d_node = dst_ref[e]
            agg_scr[pl.ds(d_node, 1), :] = (agg_scr[pl.ds(d_node, 1), :]
                                            + msg_scr[pl.ds(e, 1), :])
            return carry
        lax.fori_loop(0, E, scatter_add, 0)

        xin = relu(agg_scr[...] + bconv)

        # GRU cell (PyTorch gate order r, z, n), lane-aligned per-gate weights, f32
        gi_r = jnp.dot(xin, wih_r, preferred_element_type=f32) + bih_r
        gi_z = jnp.dot(xin, wih_z, preferred_element_type=f32) + bih_z
        gi_n = jnp.dot(xin, wih_n, preferred_element_type=f32) + bih_n
        gh_r = jnp.dot(h, whh_r, preferred_element_type=f32) + bhh_r
        gh_z = jnp.dot(h, whh_z, preferred_element_type=f32) + bhh_z
        gh_n = jnp.dot(h, whh_n, preferred_element_type=f32) + bhh_n
        r = jax.nn.sigmoid(gi_r + gh_r)
        z = jax.nn.sigmoid(gi_z + gh_z)
        n = jnp.tanh(gi_n + r * gh_n)
        h = (1.0 - z) * n + z * h

    # ---- 4) readout: per-graph sum of node features (index-based scatter-add) ----
    h_scr[...] = h
    gf_scr[...] = jnp.zeros((G, D), f32)
    def readout(v, carry):
        g = n2g_ref[v]
        gf_scr[pl.ds(g, 1), :] = gf_scr[pl.ds(g, 1), :] + h_scr[pl.ds(v, 1), :]
        return carry
    lax.fori_loop(0, N, readout, 0)

    # ---- 5) prediction MLP: Linear -> ReLU -> Linear ----
    p = relu(jnp.dot(gf_scr[...], wp1_ref[...], preferred_element_type=f32) + bp1_ref[...])
    out_ref[...] = jnp.dot(p, wp2_ref[...], preferred_element_type=f32) + bp2_ref[...]


def _zero_index_map(*args, ndim):
    return (0,) * ndim


def run_mpnn(src, dst, node2graph, tensor_args, *, D, E, N, G, T, num_steps):
    in_specs = [
        pl.BlockSpec(a.shape, functools.partial(_zero_index_map, ndim=a.ndim))
        for a in tensor_args
    ]
    grid_spec = pltpu.PrefetchScalarGridSpec(
        num_scalar_prefetch=3,                     # src, dst, node2graph -> SMEM
        grid=(1,),
        in_specs=in_specs,
        out_specs=pl.BlockSpec((G, T), functools.partial(_zero_index_map, ndim=2)),
        scratch_shapes=[
            pltpu.VMEM((E, D * D), jnp.float32),   # wedge:  per-edge weight slab
            pltpu.VMEM((N, D * D), jnp.float32),   # hrep:   lane-expanded node feats
            pltpu.VMEM((E, D * D), jnp.float32),   # prod:   gathered hrep * wedge
            pltpu.VMEM((E, D), jnp.float32),       # msg:    per-edge messages
            pltpu.VMEM((N, D), jnp.float32),       # h:      node feats (readout)
            pltpu.VMEM((N, D), jnp.float32),       # agg:    scatter-add accumulator
            pltpu.VMEM((G, D), jnp.float32),       # gf:     per-graph sums
        ],
    )
    kernel = functools.partial(mpnn_kernel, D=D, E=E, N=N, G=G, num_steps=num_steps)
    return pl.pallas_call(
        kernel,
        out_shape=jax.ShapeDtypeStruct((G, T), jnp.float32),
        grid_spec=grid_spec,
        # TODO(synk): add a "parallel" grid axis over padded per-graph / edge-tile
        # blocks at real batch sizes (v7x second TensorCore).
        compiler_params=pltpu.CompilerParams(dimension_semantics=("arbitrary",)),
    )(src, dst, node2graph, *tensor_args)


def reference(x, ef, src, dst, node2graph, N, G, D, num_steps,
              W0, b0, We1, be1, We2, be2, bconv, Wih, bih, Whh, bhh,
              Wp1, bp1, Wp2, bp2):
    relu = jax.nn.relu
    h = relu(x @ W0 + b0)
    he = relu(ef @ We1 + be1)
    wflat = he @ We2 + be2                       # (E, D*D)
    Wedge = wflat.reshape(-1, D, D)              # (E, D, D)
    for _ in range(num_steps):
        hs = h[src]
        m = jnp.einsum('ed,edk->ek', hs, Wedge)
        agg = jax.ops.segment_sum(m, dst, num_segments=N) + bconv
        xin = relu(agg)
        gi = xin @ Wih + bih
        gh = h @ Whh + bhh
        r = jax.nn.sigmoid(gi[:, :D] + gh[:, :D])
        z = jax.nn.sigmoid(gi[:, D:2 * D] + gh[:, D:2 * D])
        n = jnp.tanh(gi[:, 2 * D:] + r * gh[:, 2 * D:])
        h = (1.0 - z) * n + z * h
    gf = jax.ops.segment_sum(h, node2graph, num_segments=G)
    p = relu(gf @ Wp1 + bp1)
    return p @ Wp2 + bp2


if __name__ == "__main__":
    # ---- small config consistent with the module defaults (scaled down) ----
    Fin, Ein = 16, 8          # num_node_features, num_edge_features
    D, H = 32, 32             # node_out_feats, edge_hidden_feats
    T = 1                     # n_tasks
    NUM_STEPS = 3             # num_step_message_passing
    G = 2                     # graphs in the batch
    batch_num_nodes = [5, 7]
    N = sum(batch_num_nodes)  # 12 nodes
    E = 16                    # 8 directed edges per graph

    key = jax.random.PRNGKey(0)
    keys = jax.random.split(key, 24)

    x = jax.random.normal(keys[0], (N, Fin), jnp.float32)
    ef = jax.random.normal(keys[1], (E, Ein), jnp.float32)

    # edges confined to their own graph's node range
    src0 = jax.random.randint(keys[2], (8,), 0, 5)
    dst0 = jax.random.randint(keys[3], (8,), 0, 5)
    src1 = jax.random.randint(keys[4], (8,), 5, 12)
    dst1 = jax.random.randint(keys[5], (8,), 5, 12)
    src = jnp.concatenate([src0, src1]).astype(jnp.int32)
    dst = jnp.concatenate([dst0, dst1]).astype(jnp.int32)
    node2graph = jnp.concatenate(
        [jnp.zeros(batch_num_nodes[0], jnp.int32),
         jnp.ones(batch_num_nodes[1], jnp.int32)])

    # ---- deterministic parameter init (shapes from the module's __init__) ----
    s = 0.1
    W0 = s * jax.random.normal(keys[6], (Fin, D), jnp.float32)
    b0 = s * jax.random.normal(keys[7], (1, D), jnp.float32)
    We1 = s * jax.random.normal(keys[8], (Ein, H), jnp.float32)
    be1 = s * jax.random.normal(keys[9], (1, H), jnp.float32)
    We2 = s * jax.random.normal(keys[10], (H, D * D), jnp.float32)
    be2 = s * jax.random.normal(keys[11], (D * D,), jnp.float32)
    bconv = s * jax.random.normal(keys[12], (1, D), jnp.float32)
    Wih = s * jax.random.normal(keys[13], (D, 3 * D), jnp.float32)
    bih = s * jax.random.normal(keys[14], (1, 3 * D), jnp.float32)
    Whh = s * jax.random.normal(keys[15], (D, 3 * D), jnp.float32)
    bhh = s * jax.random.normal(keys[16], (1, 3 * D), jnp.float32)
    Wp1 = s * jax.random.normal(keys[17], (D, D), jnp.float32)
    bp1 = s * jax.random.normal(keys[18], (1, D), jnp.float32)
    Wp2 = s * jax.random.normal(keys[19], (D, T), jnp.float32)
    bp2 = s * jax.random.normal(keys[20], (1, T), jnp.float32)

    # ---- kernel-side parameter packaging ----
    be2row = be2.reshape(1, D * D)                                          # (1, D*D)
    We2_bf16 = We2.astype(jnp.bfloat16)                                     # bf16 MXU operand
    wih3 = jnp.stack([Wih[:, 0:D], Wih[:, D:2 * D], Wih[:, 2 * D:3 * D]])   # (3, D, D)
    whh3 = jnp.stack([Whh[:, 0:D], Whh[:, D:2 * D], Whh[:, 2 * D:3 * D]])   # (3, D, D)
    bih3 = jnp.stack([bih[:, 0:D], bih[:, D:2 * D], bih[:, 2 * D:3 * D]])   # (3, 1, D)
    bhh3 = jnp.stack([bhh[:, 0:D], bhh[:, D:2 * D], bhh[:, 2 * D:3 * D]])   # (3, 1, D)

    tensor_args = (x, ef, W0, b0, We1, be1, We2_bf16, be2row, bconv,
                   wih3, bih3, whh3, bhh3, Wp1, bp1, Wp2, bp2)

    out = run_mpnn(src, dst, node2graph, tensor_args,
                   D=D, E=E, N=N, G=G, T=T, num_steps=NUM_STEPS)
    out = jax.block_until_ready(out)

    ref = reference(x, ef, src, dst, node2graph, N, G, D, NUM_STEPS,
                    W0, b0, We1, be1, We2, be2, bconv, Wih, bih, Whh, bhh,
                    Wp1, bp1, Wp2, bp2)
    ref = jax.block_until_ready(ref)

    np.testing.assert_allclose(np.asarray(out), np.asarray(ref), rtol=2e-2, atol=2e-2)
    print("KERNEL_OK")
</pallas_src>

<mosaic_0001>
module attributes {stable_mosaic.version = 11 : i64} {
  func.func @mpnn_kernel(%arg0: i32, %arg1: memref<16xi32, #tpu.memory_space<smem>>, %arg2: memref<16xi32, #tpu.memory_space<smem>>, %arg3: memref<12xi32, #tpu.memory_space<smem>>, %arg4: memref<12x16xf32, #tpu.memory_space<vmem>>, %arg5: memref<16x8xf32, #tpu.memory_space<vmem>>, %arg6: memref<16x32xf32, #tpu.memory_space<vmem>>, %arg7: memref<1x32xf32, #tpu.memory_space<vmem>>, %arg8: memref<8x32xf32, #tpu.memory_space<vmem>>, %arg9: memref<1x32xf32, #tpu.memory_space<vmem>>, %arg10: memref<32x1024xbf16, #tpu.memory_space<vmem>>, %arg11: memref<1x1024xf32, #tpu.memory_space<vmem>>, %arg12: memref<1x32xf32, #tpu.memory_space<vmem>>, %arg13: memref<3x32x32xf32, #tpu.memory_space<vmem>>, %arg14: memref<3x1x32xf32, #tpu.memory_space<vmem>>, %arg15: memref<3x32x32xf32, #tpu.memory_space<vmem>>, %arg16: memref<3x1x32xf32, #tpu.memory_space<vmem>>, %arg17: memref<32x32xf32, #tpu.memory_space<vmem>>, %arg18: memref<1x32xf32, #tpu.memory_space<vmem>>, %arg19: memref<32x1xf32, #tpu.memory_space<vmem>>, %arg20: memref<1x1xf32, #tpu.memory_space<vmem>>, %arg21: memref<2x1xf32, #tpu.memory_space<vmem>>, %arg22: memref<16x1024xf32, #tpu.memory_space<vmem>>, %arg23: memref<12x1024xf32, #tpu.memory_space<vmem>>, %arg24: memref<16x1024xf32, #tpu.memory_space<vmem>>, %arg25: memref<16x32xf32, #tpu.memory_space<vmem>>, %arg26: memref<12x32xf32, #tpu.memory_space<vmem>>, %arg27: memref<12x32xf32, #tpu.memory_space<vmem>>, %arg28: memref<2x32xf32, #tpu.memory_space<vmem>>) attributes {dimension_semantics = [#tpu.dimension_semantics<arbitrary>], iteration_bounds = array<i64: 1>, scalar_prefetch = 3 : i64, scratch_operands = 7 : i64, tpu.core_type = #tpu.core_type<tc>, window_params = [{pipeline_mode = #tpu.pipeline_mode<synchronous>, transform_indices = @transform_0, window_bounds = array<i64: 12, 16>}, {pipeline_mode = #tpu.pipeline_mode<synchronous>, transform_indices = @transform_1, window_bounds = array<i64: 16, 8>}, {pipeline_mode = #tpu.pipeline_mode<synchronous>, transform_indices = @transform_2, window_bounds = array<i64: 16, 32>}, {pipeline_mode = #tpu.pipeline_mode<synchronous>, transform_indices = @transform_3, window_bounds = array<i64: 1, 32>}, {pipeline_mode = #tpu.pipeline_mode<synchronous>, transform_indices = @transform_4, window_bounds = array<i64: 8, 32>}, {pipeline_mode = #tpu.pipeline_mode<synchronous>, transform_indices = @transform_5, window_bounds = array<i64: 1, 32>}, {pipeline_mode = #tpu.pipeline_mode<synchronous>, transform_indices = @transform_6, window_bounds = array<i64: 32, 1024>}, {pipeline_mode = #tpu.pipeline_mode<synchronous>, transform_indices = @transform_7, window_bounds = array<i64: 1, 1024>}, {pipeline_mode = #tpu.pipeline_mode<synchronous>, transform_indices = @transform_8, window_bounds = array<i64: 1, 32>}, {pipeline_mode = #tpu.pipeline_mode<synchronous>, transform_indices = @transform_9, window_bounds = array<i64: 3, 32, 32>}, {pipeline_mode = #tpu.pipeline_mode<synchronous>, transform_indices = @transform_10, window_bounds = array<i64: 3, 1, 32>}, {pipeline_mode = #tpu.pipeline_mode<synchronous>, transform_indices = @transform_11, window_bounds = array<i64: 3, 32, 32>}, {pipeline_mode = #tpu.pipeline_mode<synchronous>, transform_indices = @transform_12, window_bounds = array<i64: 3, 1, 32>}, {pipeline_mode = #tpu.pipeline_mode<synchronous>, transform_indices = @transform_13, window_bounds = array<i64: 32, 32>}, {pipeline_mode = #tpu.pipeline_mode<synchronous>, transform_indices = @transform_14, window_bounds = array<i64: 1, 32>}, {pipeline_mode = #tpu.pipeline_mode<synchronous>, transform_indices = @transform_15, window_bounds = array<i64: 32, 1>}, {pipeline_mode = #tpu.pipeline_mode<synchronous>, transform_indices = @transform_16, window_bounds = array<i64: 1, 1>}, {pipeline_mode = #tpu.pipeline_mode<synchronous>, transform_indices = @transform_17, window_bounds = array<i64: 2, 1>}]} {
    %0 = tpu.iota {dimensions = array<i32: 0>} : vector<32x1024xi32>
    %1 = tpu.iota {dimensions = array<i32: 1>} : vector<32x1024xi32>
    %c32_i32 = arith.constant 32 : i32
    %2 = vector.broadcast %c32_i32 : i32 to vector<32x1024xi32>
    %3 = arith.muli %0, %2 : vector<32x1024xi32>
    %4 = arith.cmpi sge, %1, %3 : vector<32x1024xi32>
    %c32_i32_0 = arith.constant 32 : i32
    %5 = vector.broadcast %c32_i32_0 : i32 to vector<32x1024xi32>
    %6 = arith.muli %0, %5 : vector<32x1024xi32>
    %c32_i32_1 = arith.constant 32 : i32
    %7 = vector.broadcast %c32_i32_1 : i32 to vector<32x1024xi32>
    %8 = arith.addi %6, %7 : vector<32x1024xi32>
    %9 = arith.cmpi slt, %1, %8 : vector<32x1024xi32>
    %10 = arith.andi %4, %9 : vector<32x1024xi1>
    %cst = arith.constant 1.000000e+00 : f32
    %cst_2 = arith.constant 0.000000e+00 : f32
    %11 = vector.broadcast %cst : f32 to vector<32x1024xf32>
    %12 = vector.broadcast %cst_2 : f32 to vector<32x1024xf32>
    %13 = arith.select %10, %11, %12 : vector<32x1024xi1>, vector<32x1024xf32>
    %14 = arith.truncf %13 : vector<32x1024xf32> to vector<32x1024xbf16>
    %15 = tpu.iota {dimensions = array<i32: 0>} : vector<1024x32xi32>
    %16 = tpu.iota {dimensions = array<i32: 1>} : vector<1024x32xi32>
    %c31_i32 = arith.constant 31 : i32
    %17 = vector.broadcast %c31_i32 : i32 to vector<1024x32xi32>
    %18 = arith.andi %15, %17 : vector<1024x32xi32>
    %19 = arith.cmpi eq, %18, %16 : vector<1024x32xi32>
    %cst_3 = arith.constant 1.000000e+00 : f32
    %cst_4 = arith.constant 0.000000e+00 : f32
    %20 = vector.broadcast %cst_3 : f32 to vector<1024x32xf32>
    %21 = vector.broadcast %cst_4 : f32 to vector<1024x32xf32>
    %22 = arith.select %19, %20, %21 : vector<1024x32xi1>, vector<1024x32xf32>
    %23 = arith.truncf %22 : vector<1024x32xf32> to vector<1024x32xbf16>
    %c0 = arith.constant 0 : index
    %c0_5 = arith.constant 0 : index
    %24 = vector.load %arg4[%c0, %c0_5] : memref<12x16xf32, #tpu.memory_space<vmem>>, vector<12x16xf32>
    %c0_6 = arith.constant 0 : index
    %c0_7 = arith.constant 0 : index
    %25 = vector.load %arg6[%c0_6, %c0_7] : memref<16x32xf32, #tpu.memory_space<vmem>>, vector<16x32xf32>
    %cst_8 = arith.constant dense<0.000000e+00> : vector<12x32xf32>
    %26 = tpu.matmul %24, %25, %cst_8 {dimension_numbers = #tpu.dot_dimension_numbers<[1], [0], [0], [1], [0, 0, 1, 1], [], []>} : vector<12x16xf32>, vector<16x32xf32>, vector<12x32xf32> -> vector<12x32xf32>
    %c0_9 = arith.constant 0 : index
    %c0_10 = arith.constant 0 : index
    %27 = vector.load %arg7[%c0_9, %c0_10] : memref<1x32xf32, #tpu.memory_space<vmem>>, vector<1x32xf32>
    %28 = vector.broadcast %27 : vector<1x32xf32> to vector<12x32xf32>
    %29 = arith.addf %26, %28 : vector<12x32xf32>
    %cst_11 = arith.constant 0.000000e+00 : f32
    %30 = vector.broadcast %cst_11 : f32 to vector<12x32xf32>
    %31 = arith.maximumf %29, %30 : vector<12x32xf32>
    %c0_12 = arith.constant 0 : index
    %c0_13 = arith.constant 0 : index
    %32 = vector.load %arg5[%c0_12, %c0_13] : memref<16x8xf32, #tpu.memory_space<vmem>>, vector<16x8xf32>
    %c0_14 = arith.constant 0 : index
    %c0_15 = arith.constant 0 : index
    %33 = vector.load %arg8[%c0_14, %c0_15] : memref<8x32xf32, #tpu.memory_space<vmem>>, vector<8x32xf32>
    %cst_16 = arith.constant dense<0.000000e+00> : vector<16x32xf32>
    %34 = tpu.matmul %32, %33, %cst_16 {dimension_numbers = #tpu.dot_dimension_numbers<[1], [0], [0], [1], [0, 0, 1, 1], [], []>} : vector<16x8xf32>, vector<8x32xf32>, vector<16x32xf32> -> vector<16x32xf32>
    %c0_17 = arith.constant 0 : index
    %c0_18 = arith.constant 0 : index
    %35 = vector.load %arg9[%c0_17, %c0_18] : memref<1x32xf32, #tpu.memory_space<vmem>>, vector<1x32xf32>
    %36 = vector.broadcast %35 : vector<1x32xf32> to vector<16x32xf32>
    %37 = arith.addf %34, %36 : vector<16x32xf32>
    %cst_19 = arith.constant 0.000000e+00 : f32
    %38 = vector.broadcast %cst_19 : f32 to vector<16x32xf32>
    %39 = arith.maximumf %37, %38 : vector<16x32xf32>
    %40 = arith.truncf %39 : vector<16x32xf32> to vector<16x32xbf16>
    %c0_20 = arith.constant 0 : index
    %c0_21 = arith.constant 0 : index
    %41 = vector.load %arg10[%c0_20, %c0_21] : memref<32x1024xbf16, #tpu.memory_space<vmem>>, vector<32x1024xbf16>
    %cst_22 = arith.constant dense<0.000000e+00> : vector<16x1024xf32>
    %42 = tpu.matmul %40, %41, %cst_22 {dimension_numbers = #tpu.dot_dimension_numbers<[1], [0], [0], [1], [0, 0, 1, 1], [], []>} : vector<16x32xbf16>, vector<32x1024xbf16>, vector<16x1024xf32> -> vector<16x1024xf32>
    %c0_23 = arith.constant 0 : index
    %c0_24 = arith.constant 0 : index
    %43 = vector.load %arg11[%c0_23, %c0_24] : memref<1x1024xf32, #tpu.memory_space<vmem>>, vector<1x1024xf32>
    %44 = vector.broadcast %43 : vector<1x1024xf32> to vector<16x1024xf32>
    %45 = arith.addf %42, %44 : vector<16x1024xf32>
    %c0_25 = arith.constant 0 : index
    %c0_26 = arith.constant 0 : index
    %46 = vector.load %arg22[%c0_25, %c0_26] : memref<16x1024xf32, #tpu.memory_space<vmem>>, vector<16x1024xf32>
    tpu.vector_store %arg22[%c0_25, %c0_26], %45 {strides = array<i32>} : memref<16x1024xf32, #tpu.memory_space<vmem>>, vector<16x1024xf32>,
    %c0_27 = arith.constant 0 : index
    %c0_28 = arith.constant 0 : index
    %c0_29 = arith.constant 0 : index
    %47 = vector.load %arg13[%c0_27, %c0_28, %c0_29] : memref<3x32x32xf32, #tpu.memory_space<vmem>>, vector<1x32x32xf32>
    %48 = vector.shape_cast %47 : vector<1x32x32xf32> to vector<32x32xf32>
    %c1 = arith.constant 1 : index
    %c0_30 = arith.constant 0 : index
    %c0_31 = arith.constant 0 : index
    %49 = vector.load %arg13[%c1, %c0_30, %c0_31] : memref<3x32x32xf32, #tpu.memory_space<vmem>>, vector<1x32x32xf32>
    %50 = vector.shape_cast %49 : vector<1x32x32xf32> to vector<32x32xf32>
    %c2 = arith.constant 2 : index
    %c0_32 = arith.constant 0 : index
    %c0_33 = arith.constant 0 : index
    %51 = vector.load %arg13[%c2, %c0_32, %c0_33] : memref<3x32x32xf32, #tpu.memory_space<vmem>>, vector<1x32x32xf32>
    %52 = vector.shape_cast %51 : vector<1x32x32xf32> to vector<32x32xf32>
    %c0_34 = arith.constant 0 : index
    %c0_35 = arith.constant 0 : index
    %c0_36 = arith.constant 0 : index
    %53 = vector.load %arg15[%c0_34, %c0_35, %c0_36] : memref<3x32x32xf32, #tpu.memory_space<vmem>>, vector<1x32x32xf32>
    %54 = vector.shape_cast %53 : vector<1x32x32xf32> to vector<32x32xf32>
    %c1_37 = arith.constant 1 : index
    %c0_38 = arith.constant 0 : index
    %c0_39 = arith.constant 0 : index
    %55 = vector.load %arg15[%c1_37, %c0_38, %c0_39] : memref<3x32x32xf32, #tpu.memory_space<vmem>>, vector<1x32x32xf32>
    %56 = vector.shape_cast %55 : vector<1x32x32xf32> to vector<32x32xf32>
    %c2_40 = arith.constant 2 : index
    %c0_41 = arith.constant 0 : index
    %c0_42 = arith.constant 0 : index
    %57 = vector.load %arg15[%c2_40, %c0_41, %c0_42] : memref<3x32x32xf32, #tpu.memory_space<vmem>>, vector<1x32x32xf32>
    %58 = vector.shape_cast %57 : vector<1x32x32xf32> to vector<32x32xf32>
    %c0_43 = arith.constant 0 : index
    %c0_44 = arith.constant 0 : index
    %c0_45 = arith.constant 0 : index
    %59 = vector.load %arg14[%c0_43, %c0_44, %c0_45] : memref<3x1x32xf32, #tpu.memory_space<vmem>>, vector<1x1x32xf32>
    %60 = vector.shape_cast %59 : vector<1x1x32xf32> to vector<1x32xf32>
    %c1_46 = arith.constant 1 : index
    %c0_47 = arith.constant 0 : index
    %c0_48 = arith.constant 0 : index
    %61 = vector.load %arg14[%c1_46, %c0_47, %c0_48] : memref<3x1x32xf32, #tpu.memory_space<vmem>>, vector<1x1x32xf32>
    %62 = vector.shape_cast %61 : vector<1x1x32xf32> to vector<1x32xf32>
    %c2_49 = arith.constant 2 : index
    %c0_50 = arith.constant 0 : index
    %c0_51 = arith.constant 0 : index
    %63 = vector.load %arg14[%c2_49, %c0_50, %c0_51] : memref<3x1x32xf32, #tpu.memory_space<vmem>>, vector<1x1x32xf32>
    %64 = vector.shape_cast %63 : vector<1x1x32xf32> to vector<1x32xf32>
    %c0_52 = arith.constant 0 : index
    %c0_53 = arith.constant 0 : index
    %c0_54 = arith.constant 0 : index
    %65 = vector.load %arg16[%c0_52, %c0_53, %c0_54] : memref<3x1x32xf32, #tpu.memory_space<vmem>>, vector<1x1x32xf32>
    %66 = vector.shape_cast %65 : vector<1x1x32xf32> to vector<1x32xf32>
    %c1_55 = arith.constant 1 : index
    %c0_56 = arith.constant 0 : index
    %c0_57 = arith.constant 0 : index
    %67 = vector.load %arg16[%c1_55, %c0_56, %c0_57] : memref<3x1x32xf32, #tpu.memory_space<vmem>>, vector<1x1x32xf32>
    %68 = vector.shape_cast %67 : vector<1x1x32xf32> to vector<1x32xf32>
    %c2_58 = arith.constant 2 : index
    %c0_59 = arith.constant 0 : index
    %c0_60 = arith.constant 0 : index
    %69 = vector.load %arg16[%c2_58, %c0_59, %c0_60] : memref<3x1x32xf32, #tpu.memory_space<vmem>>, vector<1x1x32xf32>
    %70 = vector.shape_cast %69 : vector<1x1x32xf32> to vector<1x32xf32>
    %c0_61 = arith.constant 0 : index
    %c0_62 = arith.constant 0 : index
    %71 = vector.load %arg12[%c0_61, %c0_62] : memref<1x32xf32, #tpu.memory_space<vmem>>, vector<1x32xf32>
    %72 = arith.truncf %31 : vector<12x32xf32> to vector<12x32xbf16>
    %cst_63 = arith.constant dense<0.000000e+00> : vector<12x1024xf32>
    %73 = tpu.matmul %72, %14, %cst_63 {dimension_numbers = #tpu.dot_dimension_numbers<[1], [0], [0], [1], [0, 0, 1, 1], [], []>} : vector<12x32xbf16>, vector<32x1024xbf16>, vector<12x1024xf32> -> vector<12x1024xf32>
    %c0_64 = arith.constant 0 : index
    %c0_65 = arith.constant 0 : index
    %74 = vector.load %arg23[%c0_64, %c0_65] : memref<12x1024xf32, #tpu.memory_space<vmem>>, vector<12x1024xf32>
    tpu.vector_store %arg23[%c0_64, %c0_65], %73 {strides = array<i32>} : memref<12x1024xf32, #tpu.memory_space<vmem>>, vector<12x1024xf32>,
    %c0_i32 = arith.constant 0 : i32
    %75 = arith.index_cast %c0_i32 : i32 to index
    %76 = memref.load %arg1[%75] : memref<16xi32, #tpu.memory_space<smem>>
    %77 = arith.index_cast %76 : i32 to index
    %c0_66 = arith.constant 0 : index
    %78 = vector.load %arg23[%77, %c0_66] : memref<12x1024xf32, #tpu.memory_space<vmem>>, vector<1x1024xf32>
    %79 = arith.index_cast %c0_i32 : i32 to index
    %c0_67 = arith.constant 0 : index
    %80 = vector.load %arg22[%79, %c0_67] : memref<16x1024xf32, #tpu.memory_space<vmem>>, vector<1x1024xf32>
    %81 = arith.mulf %78, %80 : vector<1x1024xf32>
    %82 = arith.index_cast %c0_i32 : i32 to index
    %c0_68 = arith.constant 0 : index
    %83 = vector.load %arg24[%82, %c0_68] : memref<16x1024xf32, #tpu.memory_space<vmem>>, vector<1x1024xf32>
    tpu.vector_store %arg24[%82, %c0_68], %81 {strides = array<i32>} : memref<16x1024xf32, #tpu.memory_space<vmem>>, vector<1x1024xf32>,
    %c1_i32 = arith.constant 1 : i32
    %84 = arith.index_cast %c1_i32 : i32 to index
    %85 = memref.load %arg1[%84] : memref<16xi32, #tpu.memory_space<smem>>
    %86 = arith.index_cast %85 : i32 to index
    %c0_69 = arith.constant 0 : index
    %87 = vector.load %arg23[%86, %c0_69] : memref<12x1024xf32, #tpu.memory_space<vmem>>, vector<1x1024xf32>
    %88 = arith.index_cast %c1_i32 : i32 to index
    %c0_70 = arith.constant 0 : index
    %89 = vector.load %arg22[%88, %c0_70] : memref<16x1024xf32, #tpu.memory_space<vmem>>, vector<1x1024xf32>
    %90 = arith.mulf %87, %89 : vector<1x1024xf32>
    %91 = arith.index_cast %c1_i32 : i32 to index
    %c0_71 = arith.constant 0 : index
    %92 = vector.load %arg24[%91, %c0_71] : memref<16x1024xf32, #tpu.memory_space<vmem>>, vector<1x1024xf32>
    tpu.vector_store %arg24[%91, %c0_71], %90 {strides = array<i32>} : memref<16x1024xf32, #tpu.memory_space<vmem>>, vector<1x1024xf32>,
    %c2_i32 = arith.constant 2 : i32
    %93 = arith.index_cast %c2_i32 : i32 to index
    %94 = memref.load %arg1[%93] : memref<16xi32, #tpu.memory_space<smem>>
    %95 = arith.index_cast %94 : i32 to index
    %c0_72 = arith.constant 0 : index
    %96 = vector.load %arg23[%95, %c0_72] : memref<12x1024xf32, #tpu.memory_space<vmem>>, vector<1x1024xf32>
    %97 = arith.index_cast %c2_i32 : i32 to index
    %c0_73 = arith.constant 0 : index
    %98 = vector.load %arg22[%97, %c0_73] : memref<16x1024xf32, #tpu.memory_space<vmem>>, vector<1x1024xf32>
    %99 = arith.mulf %96, %98 : vector<1x1024xf32>
    %100 = arith.index_cast %c2_i32 : i32 to index
    %c0_74 = arith.constant 0 : index
    %101 = vector.load %arg24[%100, %c0_74] : memref<16x1024xf32, #tpu.memory_space<vmem>>, vector<1x1024xf32>
    tpu.vector_store %arg24[%100, %c0_74], %99 {strides = array<i32>} : memref<16x1024xf32, #tpu.memory_space<vmem>>, vector<1x1024xf32>,
    %c3_i32 = arith.constant 3 : i32
    %102 = arith.index_cast %c3_i32 : i32 to index
    %103 = memref.load %arg1[%102] : memref<16xi32, #tpu.memory_space<smem>>
    %104 = arith.index_cast %103 : i32 to index
    %c0_75 = arith.constant 0 : index
    %105 = vector.load %arg23[%104, %c0_75] : memref<12x1024xf32, #tpu.memory_space<vmem>>, vector<1x1024xf32>
    %106 = arith.index_cast %c3_i32 : i32 to index
    %c0_76 = arith.constant 0 : index
    %107 = vector.load %arg22[%106, %c0_76] : memref<16x1024xf32, #tpu.memory_space<vmem>>, vector<1x1024xf32>
    %108 = arith.mulf %105, %107 : vector<1x1024xf32>
    %109 = arith.index_cast %c3_i32 : i32 to index
    %c0_77 = arith.constant 0 : index
    %110 = vector.load %arg24[%109, %c0_77] : memref<16x1024xf32, #tpu.memory_space<vmem>>, vector<1x1024xf32>
    tpu.vector_store %arg24[%109, %c0_77], %108 {strides = array<i32>} : memref<16x1024xf32, #tpu.memory_space<vmem>>, vector<1x1024xf32>,
    %c4_i32 = arith.constant 4 : i32
    %111 = arith.index_cast %c4_i32 : i32 to index
    %112 = memref.load %arg1[%111] : memref<16xi32, #tpu.memory_space<smem>>
    %113 = arith.index_cast %112 : i32 to index
    %c0_78 = arith.constant 0 : index
    %114 = vector.load %arg23[%113, %c0_78] : memref<12x1024xf32, #tpu.memory_space<vmem>>, vector<1x1024xf32>
    %115 = arith.index_cast %c4_i32 : i32 to index
    %c0_79 = arith.constant 0 : index
    %116 = vector.load %arg22[%115, %c0_79] : memref<16x1024xf32, #tpu.memory_space<vmem>>, vector<1x1024xf32>
    %117 = arith.mulf %114, %116 : vector<1x1024xf32>
    %118 = arith.index_cast %c4_i32 : i32 to index
    %c0_80 = arith.constant 0 : index
    %119 = vector.load %arg24[%118, %c0_80] : memref<16x1024xf32, #tpu.memory_space<vmem>>, vector<1x1024xf32>
    tpu.vector_store %arg24[%118, %c0_80], %117 {strides = array<i32>} : memref<16x1024xf32, #tpu.memory_space<vmem>>, vector<1x1024xf32>,
    %c5_i32 = arith.constant 5 : i32
    %120 = arith.index_cast %c5_i32 : i32 to index
    %121 = memref.load %arg1[%120] : memref<16xi32, #tpu.memory_space<smem>>
    %122 = arith.index_cast %121 : i32 to index
    %c0_81 = arith.constant 0 : index
    %123 = vector.load %arg23[%122, %c0_81] : memref<12x1024xf32, #tpu.memory_space<vmem>>, vector<1x1024xf32>
    %124 = arith.index_cast %c5_i32 : i32 to index
    %c0_82 = arith.constant 0 : index
    %125 = vector.load %arg22[%124, %c0_82] : memref<16x1024xf32, #tpu.memory_space<vmem>>, vector<1x1024xf32>
    %126 = arith.mulf %123, %125 : vector<1x1024xf32>
    %127 = arith.index_cast %c5_i32 : i32 to index
    %c0_83 = arith.constant 0 : index
    %128 = vector.load %arg24[%127, %c0_83] : memref<16x1024xf32, #tpu.memory_space<vmem>>, vector<1x1024xf32>
    tpu.vector_store %arg24[%127, %c0_83], %126 {strides = array<i32>} : memref<16x1024xf32, #tpu.memory_space<vmem>>, vector<1x1024xf32>,
    %c6_i32 = arith.constant 6 : i32
    %129 = arith.index_cast %c6_i32 : i32 to index
    %130 = memref.load %arg1[%129] : memref<16xi32, #tpu.memory_space<smem>>
    %131 = arith.index_cast %130 : i32 to index
    %c0_84 = arith.constant 0 : index
    %132 = vector.load %arg23[%131, %c0_84] : memref<12x1024xf32, #tpu.memory_space<vmem>>, vector<1x1024xf32>
    %133 = arith.index_cast %c6_i32 : i32 to index
    %c0_85 = arith.constant 0 : index
    %134 = vector.load %arg22[%133, %c0_85] : memref<16x1024xf32, #tpu.memory_space<vmem>>, vector<1x1024xf32>
    %135 = arith.mulf %132, %134 : vector<1x1024xf32>
    %136 = arith.index_cast %c6_i32 : i32 to index
    %c0_86 = arith.constant 0 : index
    %137 = vector.load %arg24[%136, %c0_86] : memref<16x1024xf32, #tpu.memory_space<vmem>>, vector<1x1024xf32>
    tpu.vector_store %arg24[%136, %c0_86], %135 {strides = array<i32>} : memref<16x1024xf32, #tpu.memory_space<vmem>>, vector<1x1024xf32>,
    %c7_i32 = arith.constant 7 : i32
    %138 = arith.index_cast %c7_i32 : i32 to index
    %139 = memref.load %arg1[%138] : memref<16xi32, #tpu.memory_space<smem>>
    %140 = arith.index_cast %139 : i32 to index
    %c0_87 = arith.constant 0 : index
    %141 = vector.load %arg23[%140, %c0_87] : memref<12x1024xf32, #tpu.memory_space<vmem>>, vector<1x1024xf32>
    %142 = arith.index_cast %c7_i32 : i32 to index
    %c0_88 = arith.constant 0 : index
    %143 = vector.load %arg22[%142, %c0_88] : memref<16x1024xf32, #tpu.memory_space<vmem>>, vector<1x1024xf32>
    %144 = arith.mulf %141, %143 : vector<1x1024xf32>
    %145 = arith.index_cast %c7_i32 : i32 to index
    %c0_89 = arith.constant 0 : index
    %146 = vector.load %arg24[%145, %c0_89] : memref<16x1024xf32, #tpu.memory_space<vmem>>, vector<1x1024xf32>
    tpu.vector_store %arg24[%145, %c0_89], %144 {strides = array<i32>} : memref<16x1024xf32, #tpu.memory_space<vmem>>, vector<1x1024xf32>,
    %c8_i32 = arith.constant 8 : i32
    %147 = arith.index_cast %c8_i32 : i32 to index
    %148 = memref.load %arg1[%147] : memref<16xi32, #tpu.memory_space<smem>>
    %149 = arith.index_cast %148 : i32 to index
    %c0_90 = arith.constant 0 : index
    %150 = vector.load %arg23[%149, %c0_90] : memref<12x1024xf32, #tpu.memory_space<vmem>>, vector<1x1024xf32>
    %151 = arith.index_cast %c8_i32 : i32 to index
    %c0_91 = arith.constant 0 : index
    %152 = vector.load %arg22[%151, %c0_91] : memref<16x1024xf32, #tpu.memory_space<vmem>>, vector<1x1024xf32>
    %153 = arith.mulf %150, %152 : vector<1x1024xf32>
    %154 = arith.index_cast %c8_i32 : i32 to index
    %c0_92 = arith.constant 0 : index
    %155 = vector.load %arg24[%154, %c0_92] : memref<16x1024xf32, #tpu.memory_space<vmem>>, vector<1x1024xf32>
    tpu.vector_store %arg24[%154, %c0_92], %153 {strides = array<i32>} : memref<16x1024xf32, #tpu.memory_space<vmem>>, vector<1x1024xf32>,
    %c9_i32 = arith.constant 9 : i32
    %156 = arith.index_cast %c9_i32 : i32 to index
    %157 = memref.load %arg1[%156] : memref<16xi32, #tpu.memory_space<smem>>
    %158 = arith.index_cast %157 : i32 to index
    %c0_93 = arith.constant 0 : index
    %159 = vector.load %arg23[%158, %c0_93] : memref<12x1024xf32, #tpu.memory_space<vmem>>, vector<1x1024xf32>
    %160 = arith.index_cast %c9_i32 : i32 to index
    %c0_94 = arith.constant 0 : index
    %161 = vector.load %arg22[%160, %c0_94] : memref<16x1024xf32, #tpu.memory_space<vmem>>, vector<1x1024xf32>
    %162 = arith.mulf %159, %161 : vector<1x1024xf32>
    %163 = arith.index_cast %c9_i32 : i32 to index
    %c0_95 = arith.constant 0 : index
    %164 = vector.load %arg24[%163, %c0_95] : memref<16x1024xf32, #tpu.memory_space<vmem>>, vector<1x1024xf32>
    tpu.vector_store %arg24[%163, %c0_95], %162 {strides = array<i32>} : memref<16x1024xf32, #tpu.memory_space<vmem>>, vector<1x1024xf32>,
    %c10_i32 = arith.constant 10 : i32
    %165 = arith.index_cast %c10_i32 : i32 to index
    %166 = memref.load %arg1[%165] : memref<16xi32, #tpu.memory_space<smem>>
    %167 = arith.index_cast %166 : i32 to index
    %c0_96 = arith.constant 0 : index
    %168 = vector.load %arg23[%167, %c0_96] : memref<12x1024xf32, #tpu.memory_space<vmem>>, vector<1x1024xf32>
    %169 = arith.index_cast %c10_i32 : i32 to index
    %c0_97 = arith.constant 0 : index
    %170 = vector.load %arg22[%169, %c0_97] : memref<16x1024xf32, #tpu.memory_space<vmem>>, vector<1x1024xf32>
    %171 = arith.mulf %168, %170 : vector<1x1024xf32>
    %172 = arith.index_cast %c10_i32 : i32 to index
    %c0_98 = arith.constant 0 : index
    %173 = vector.load %arg24[%172, %c0_98] : memref<16x1024xf32, #tpu.memory_space<vmem>>, vector<1x1024xf32>
    tpu.vector_store %arg24[%172, %c0_98], %171 {strides = array<i32>} : memref<16x1024xf32, #tpu.memory_space<vmem>>, vector<1x1024xf32>,
    %c11_i32 = arith.constant 11 : i32
    %174 = arith.index_cast %c11_i32 : i32 to index
    %175 = memref.load %arg1[%174] : memref<16xi32, #tpu.memory_space<smem>>
    %176 = arith.index_cast %175 : i32 to index
    %c0_99 = arith.constant 0 : index
    %177 = vector.load %arg23[%176, %c0_99] : memref<12x1024xf32, #tpu.memory_space<vmem>>, vector<1x1024xf32>
    %178 = arith.index_cast %c11_i32 : i32 to index
    %c0_100 = arith.constant 0 : index
    %179 = vector.load %arg22[%178, %c0_100] : memref<16x1024xf32, #tpu.memory_space<vmem>>, vector<1x1024xf32>
    %180 = arith.mulf %177, %179 : vector<1x1024xf32>
    %181 = arith.index_cast %c11_i32 : i32 to index
    %c0_101 = arith.constant 0 : index
    %182 = vector.load %arg24[%181, %c0_101] : memref<16x1024xf32, #tpu.memory_space<vmem>>, vector<1x1024xf32>
    tpu.vector_store %arg24[%181, %c0_101], %180 {strides = array<i32>} : memref<16x1024xf32, #tpu.memory_space<vmem>>, vector<1x1024xf32>,
    %c12_i32 = arith.constant 12 : i32
    %183 = arith.index_cast %c12_i32 : i32 to index
    %184 = memref.load %arg1[%183] : memref<16xi32, #tpu.memory_space<smem>>
    %185 = arith.index_cast %184 : i32 to index
    %c0_102 = arith.constant 0 : index
    %186 = vector.load %arg23[%185, %c0_102] : memref<12x1024xf32, #tpu.memory_space<vmem>>, vector<1x1024xf32>
    %187 = arith.index_cast %c12_i32 : i32 to index
    %c0_103 = arith.constant 0 : index
    %188 = vector.load %arg22[%187, %c0_103] : memref<16x1024xf32, #tpu.memory_space<vmem>>, vector<1x1024xf32>
    %189 = arith.mulf %186, %188 : vector<1x1024xf32>
    %190 = arith.index_cast %c12_i32 : i32 to index
    %c0_104 = arith.constant 0 : index
    %191 = vector.load %arg24[%190, %c0_104] : memref<16x1024xf32, #tpu.memory_space<vmem>>, vector<1x1024xf32>
    tpu.vector_store %arg24[%190, %c0_104], %189 {strides = array<i32>} : memref<16x1024xf32, #tpu.memory_space<vmem>>, vector<1x1024xf32>,
    %c13_i32 = arith.constant 13 : i32
    %192 = arith.index_cast %c13_i32 : i32 to index
    %193 = memref.load %arg1[%192] : memref<16xi32, #tpu.memory_space<smem>>
    %194 = arith.index_cast %193 : i32 to index
    %c0_105 = arith.constant 0 : index
    %195 = vector.load %arg23[%194, %c0_105] : memref<12x1024xf32, #tpu.memory_space<vmem>>, vector<1x1024xf32>
    %196 = arith.index_cast %c13_i32 : i32 to index
    %c0_106 = arith.constant 0 : index
    %197 = vector.load %arg22[%196, %c0_106] : memref<16x1024xf32, #tpu.memory_space<vmem>>, vector<1x1024xf32>
    %198 = arith.mulf %195, %197 : vector<1x1024xf32>
    %199 = arith.index_cast %c13_i32 : i32 to index
    %c0_107 = arith.constant 0 : index
    %200 = vector.load %arg24[%199, %c0_107] : memref<16x1024xf32, #tpu.memory_space<vmem>>, vector<1x1024xf32>
    tpu.vector_store %arg24[%199, %c0_107], %198 {strides = array<i32>} : memref<16x1024xf32, #tpu.memory_space<vmem>>, vector<1x1024xf32>,
    %c14_i32 = arith.constant 14 : i32
    %201 = arith.index_cast %c14_i32 : i32 to index
    %202 = memref.load %arg1[%201] : memref<16xi32, #tpu.memory_space<smem>>
    %203 = arith.index_cast %202 : i32 to index
    %c0_108 = arith.constant 0 : index
    %204 = vector.load %arg23[%203, %c0_108] : memref<12x1024xf32, #tpu.memory_space<vmem>>, vector<1x1024xf32>
    %205 = arith.index_cast %c14_i32 : i32 to index
    %c0_109 = arith.constant 0 : index
    %206 = vector.load %arg22[%205, %c0_109] : memref<16x1024xf32, #tpu.memory_space<vmem>>, vector<1x1024xf32>
    %207 = arith.mulf %204, %206 : vector<1x1024xf32>
    %208 = arith.index_cast %c14_i32 : i32 to index
    %c0_110 = arith.constant 0 : index
    %209 = vector.load %arg24[%208, %c0_110] : memref<16x1024xf32, #tpu.memory_space<vmem>>, vector<1x1024xf32>
    tpu.vector_store %arg24[%208, %c0_110], %207 {strides = array<i32>} : memref<16x1024xf32, #tpu.memory_space<vmem>>, vector<1x1024xf32>,
    %c15_i32 = arith.constant 15 : i32
    %210 = arith.index_cast %c15_i32 : i32 to index
    %211 = memref.load %arg1[%210] : memref<16xi32, #tpu.memory_space<smem>>
    %212 = arith.index_cast %211 : i32 to index
    %c0_111 = arith.constant 0 : index
    %213 = vector.load %arg23[%212, %c0_111] : memref<12x1024xf32, #tpu.memory_space<vmem>>, vector<1x1024xf32>
    %214 = arith.index_cast %c15_i32 : i32 to index
    %c0_112 = arith.constant 0 : index
    %215 = vector.load %arg22[%214, %c0_112] : memref<16x1024xf32, #tpu.memory_space<vmem>>, vector<1x1024xf32>
    %216 = arith.mulf %213, %215 : vector<1x1024xf32>
    %217 = arith.index_cast %c15_i32 : i32 to index
    %c0_113 = arith.constant 0 : index
    %218 = vector.load %arg24[%217, %c0_113] : memref<16x1024xf32, #tpu.memory_space<vmem>>, vector<1x1024xf32>
    tpu.vector_store %arg24[%217, %c0_113], %216 {strides = array<i32>} : memref<16x1024xf32, #tpu.memory_space<vmem>>, vector<1x1024xf32>,
    %c16_i32 = arith.constant 16 : i32
    %c0_114 = arith.constant 0 : index
    %c0_115 = arith.constant 0 : index
    %219 = vector.load %arg24[%c0_114, %c0_115] : memref<16x1024xf32, #tpu.memory_space<vmem>>, vector<16x1024xf32>
    %220 = arith.truncf %219 : vector<16x1024xf32> to vector<16x1024xbf16>
    %cst_116 = arith.constant dense<0.000000e+00> : vector<16x32xf32>
    %221 = tpu.matmul %220, %23, %cst_116 {dimension_numbers = #tpu.dot_dimension_numbers<[1], [0], [0], [1], [0, 0, 1, 1], [], []>} : vector<16x1024xbf16>, vector<1024x32xbf16>, vector<16x32xf32> -> vector<16x32xf32>
    %c0_117 = arith.constant 0 : index
    %c0_118 = arith.constant 0 : index
    %222 = vector.load %arg25[%c0_117, %c0_118] : memref<16x32xf32, #tpu.memory_space<vmem>>, vector<16x32xf32>
    tpu.vector_store %arg25[%c0_117, %c0_118], %221 {strides = array<i32>} : memref<16x32xf32, #tpu.memory_space<vmem>>, vector<16x32xf32>,
    %cst_119 = arith.constant 0.000000e+00 : f32
    %223 = vector.broadcast %cst_119 : f32 to vector<12x32xf32>
    %c0_120 = arith.constant 0 : index
    %c0_121 = arith.constant 0 : index
    %224 = vector.load %arg27[%c0_120, %c0_121] : memref<12x32xf32, #tpu.memory_space<vmem>>, vector<12x32xf32>
    tpu.vector_store %arg27[%c0_120, %c0_121], %223 {strides = array<i32>} : memref<12x32xf32, #tpu.memory_space<vmem>>, vector<12x32xf32>,
    %c0_i32_122 = arith.constant 0 : i32
    %c16_i32_123 = arith.constant 16 : i32
    %225 = arith.addi %c0_i32_122, %c16_i32_123 : i32
    %c1_i32_124 = arith.constant 1 : i32
    scf.for %arg29 = %c0_i32_122 to %225 step %c1_i32_124  : i32 {
      %681 = arith.index_cast %arg29 : i32 to index
      %682 = memref.load %arg2[%681] : memref<16xi32, #tpu.memory_space<smem>>
      %683 = arith.index_cast %682 : i32 to index
      %c0_346 = arith.constant 0 : index
      %684 = vector.load %arg27[%683, %c0_346] : memref<12x32xf32, #tpu.memory_space<vmem>>, vector<1x32xf32>
      %685 = arith.index_cast %arg29 : i32 to index
      %c0_347 = arith.constant 0 : index
      %686 = vector.load %arg25[%685, %c0_347] : memref<16x32xf32, #tpu.memory_space<vmem>>, vector<1x32xf32>
      %687 = arith.addf %684, %686 : vector<1x32xf32>
      %688 = arith.index_cast %682 : i32 to index
      %c0_348 = arith.constant 0 : index
      %689 = vector.load %arg27[%688, %c0_348] : memref<12x32xf32, #tpu.memory_space<vmem>>, vector<1x32xf32>
      tpu.vector_store %arg27[%688, %c0_348], %687 {strides = array<i32>} : memref<12x32xf32, #tpu.memory_space<vmem>>, vector<1x32xf32>,
    }
    %c16_i32_125 = arith.constant 16 : i32
    %c0_126 = arith.constant 0 : index
    %c0_127 = arith.constant 0 : index
    %226 = vector.load %arg27[%c0_126, %c0_127] : memref<12x32xf32, #tpu.memory_space<vmem>>, vector<12x32xf32>
    %227 = vector.broadcast %71 : vector<1x32xf32> to vector<12x32xf32>
    %228 = arith.addf %226, %227 : vector<12x32xf32>
    %cst_128 = arith.constant 0.000000e+00 : f32
    %229 = vector.broadcast %cst_128 : f32 to vector<12x32xf32>
    %230 = arith.maximumf %228, %229 : vector<12x32xf32>
    %cst_129 = arith.constant dense<0.000000e+00> : vector<12x32xf32>
    %231 = tpu.matmul %230, %48, %cst_129 {dimension_numbers = #tpu.dot_dimension_numbers<[1], [0], [0], [1], [0, 0, 1, 1], [], []>} : vector<12x32xf32>, vector<32x32xf32>, vector<12x32xf32> -> vector<12x32xf32>
    %232 = vector.broadcast %60 : vector<1x32xf32> to vector<12x32xf32>
    %233 = arith.addf %231, %232 : vector<12x32xf32>
    %cst_130 = arith.constant dense<0.000000e+00> : vector<12x32xf32>
    %234 = tpu.matmul %230, %50, %cst_130 {dimension_numbers = #tpu.dot_dimension_numbers<[1], [0], [0], [1], [0, 0, 1, 1], [], []>} : vector<12x32xf32>, vector<32x32xf32>, vector<12x32xf32> -> vector<12x32xf32>
    %235 = vector.broadcast %62 : vector<1x32xf32> to vector<12x32xf32>
    %236 = arith.addf %234, %235 : vector<12x32xf32>
    %cst_131 = arith.constant dense<0.000000e+00> : vector<12x32xf32>
    %237 = tpu.matmul %230, %52, %cst_131 {dimension_numbers = #tpu.dot_dimension_numbers<[1], [0], [0], [1], [0, 0, 1, 1], [], []>} : vector<12x32xf32>, vector<32x32xf32>, vector<12x32xf32> -> vector<12x32xf32>
    %238 = vector.broadcast %64 : vector<1x32xf32> to vector<12x32xf32>
    %239 = arith.addf %237, %238 : vector<12x32xf32>
    %cst_132 = arith.constant dense<0.000000e+00> : vector<12x32xf32>
    %240 = tpu.matmul %31, %54, %cst_132 {dimension_numbers = #tpu.dot_dimension_numbers<[1], [0], [0], [1], [0, 0, 1, 1], [], []>} : vector<12x32xf32>, vector<32x32xf32>, vector<12x32xf32> -> vector<12x32xf32>
    %241 = vector.broadcast %66 : vector<1x32xf32> to vector<12x32xf32>
    %242 = arith.addf %240, %241 : vector<12x32xf32>
    %cst_133 = arith.constant dense<0.000000e+00> : vector<12x32xf32>
    %243 = tpu.matmul %31, %56, %cst_133 {dimension_numbers = #tpu.dot_dimension_numbers<[1], [0], [0], [1], [0, 0, 1, 1], [], []>} : vector<12x32xf32>, vector<32x32xf32>, vector<12x32xf32> -> vector<12x32xf32>
    %244 = vector.broadcast %68 : vector<1x32xf32> to vector<12x32xf32>
    %245 = arith.addf %243, %244 : vector<12x32xf32>
    %cst_134 = arith.constant dense<0.000000e+00> : vector<12x32xf32>
    %246 = tpu.matmul %31, %58, %cst_134 {dimension_numbers = #tpu.dot_dimension_numbers<[1], [0], [0], [1], [0, 0, 1, 1], [], []>} : vector<12x32xf32>, vector<32x32xf32>, vector<12x32xf32> -> vector<12x32xf32>
    %247 = vector.broadcast %70 : vector<1x32xf32> to vector<12x32xf32>
    %248 = arith.addf %246, %247 : vector<12x32xf32>
    %249 = arith.addf %233, %242 : vector<12x32xf32>
    %250 = arith.negf %249 : vector<12x32xf32>
    %251 = math.exp %250 : vector<12x32xf32>
    %cst_135 = arith.constant 1.000000e+00 : f32
    %252 = vector.broadcast %cst_135 : f32 to vector<12x32xf32>
    %253 = arith.addf %252, %251 : vector<12x32xf32>
    %254 = arith.divf %252, %253 : vector<12x32xf32>
    %255 = arith.addf %236, %245 : vector<12x32xf32>
    %256 = arith.negf %255 : vector<12x32xf32>
    %257 = math.exp %256 : vector<12x32xf32>
    %cst_136 = arith.constant 1.000000e+00 : f32
    %258 = vector.broadcast %cst_136 : f32 to vector<12x32xf32>
    %259 = arith.addf %258, %257 : vector<12x32xf32>
    %260 = arith.divf %258, %259 : vector<12x32xf32>
    %261 = arith.mulf %254, %248 : vector<12x32xf32>
    %262 = arith.addf %239, %261 : vector<12x32xf32>
    %263 = math.tanh %262 : vector<12x32xf32>
    %cst_137 = arith.constant 1.000000e+00 : f32
    %264 = vector.broadcast %cst_137 : f32 to vector<12x32xf32>
    %265 = arith.subf %264, %260 : vector<12x32xf32>
    %266 = arith.mulf %265, %263 : vector<12x32xf32>
    %267 = arith.mulf %260, %31 : vector<12x32xf32>
    %268 = arith.addf %266, %267 : vector<12x32xf32>
    %269 = arith.truncf %268 : vector<12x32xf32> to vector<12x32xbf16>
    %cst_138 = arith.constant dense<0.000000e+00> : vector<12x1024xf32>
    %270 = tpu.matmul %269, %14, %cst_138 {dimension_numbers = #tpu.dot_dimension_numbers<[1], [0], [0], [1], [0, 0, 1, 1], [], []>} : vector<12x32xbf16>, vector<32x1024xbf16>, vector<12x1024xf32> -> vector<12x1024xf32>
    %c0_139 = arith.constant 0 : index
    %c0_140 = arith.constant 0 : index
    %271 = vector.load %arg23[%c0_139, %c0_140] : memref<12x1024xf32, #tpu.memory_space<vmem>>, vector<12x1024xf32>
    tpu.vector_store %arg23[%c0_139, %c0_140], %270 {strides = array<i32>} : memref<12x1024xf32, #tpu.memory_space<vmem>>, vector<12x1024xf32>,
    %c0_i32_141 = arith.constant 0 : i32
    %272 = arith.index_cast %c0_i32_141 : i32 to index
    %273 = memref.load %arg1[%272] : memref<16xi32, #tpu.memory_space<smem>>
    %274 = arith.index_cast %273 : i32 to index
    %c0_142 = arith.constant 0 : index
    %275 = vector.load %arg23[%274, %c0_142] : memref<12x1024xf32, #tpu.memory_space<vmem>>, vector<1x1024xf32>
    %276 = arith.index_cast %c0_i32_141 : i32 to index
    %c0_143 = arith.constant 0 : index
    %277 = vector.load %arg22[%276, %c0_143] : memref<16x1024xf32, #tpu.memory_space<vmem>>, vector<1x1024xf32>
    %278 = arith.mulf %275, %277 : vector<1x1024xf32>
    %279 = arith.index_cast %c0_i32_141 : i32 to index
    %c0_144 = arith.constant 0 : index
    %280 = vector.load %arg24[%279, %c0_144] : memref<16x1024xf32, #tpu.memory_space<vmem>>, vector<1x1024xf32>
    tpu.vector_store %arg24[%279, %c0_144], %278 {strides = array<i32>} : memref<16x1024xf32, #tpu.memory_space<vmem>>, vector<1x1024xf32>,
    %c1_i32_145 = arith.constant 1 : i32
    %281 = arith.index_cast %c1_i32_145 : i32 to index
    %282 = memref.load %arg1[%281] : memref<16xi32, #tpu.memory_space<smem>>
    %283 = arith.index_cast %282 : i32 to index
    %c0_146 = arith.constant 0 : index
    %284 = vector.load %arg23[%283, %c0_146] : memref<12x1024xf32, #tpu.memory_space<vmem>>, vector<1x1024xf32>
    %285 = arith.index_cast %c1_i32_145 : i32 to index
    %c0_147 = arith.constant 0 : index
    %286 = vector.load %arg22[%285, %c0_147] : memref<16x1024xf32, #tpu.memory_space<vmem>>, vector<1x1024xf32>
    %287 = arith.mulf %284, %286 : vector<1x1024xf32>
    %288 = arith.index_cast %c1_i32_145 : i32 to index
    %c0_148 = arith.constant 0 : index
    %289 = vector.load %arg24[%288, %c0_148] : memref<16x1024xf32, #tpu.memory_space<vmem>>, vector<1x1024xf32>
    tpu.vector_store %arg24[%288, %c0_148], %287 {strides = array<i32>} : memref<16x1024xf32, #tpu.memory_space<vmem>>, vector<1x1024xf32>,
    %c2_i32_149 = arith.constant 2 : i32
    %290 = arith.index_cast %c2_i32_149 : i32 to index
    %291 = memref.load %arg1[%290] : memref<16xi32, #tpu.memory_space<smem>>
    %292 = arith.index_cast %291 : i32 to index
    %c0_150 = arith.constant 0 : index
    %293 = vector.load %arg23[%292, %c0_150] : memref<12x1024xf32, #tpu.memory_space<vmem>>, vector<1x1024xf32>
    %294 = arith.index_cast %c2_i32_149 : i32 to index
    %c0_151 = arith.constant 0 : index
    %295 = vector.load %arg22[%294, %c0_151] : memref<16x1024xf32, #tpu.memory_space<vmem>>, vector<1x1024xf32>
    %296 = arith.mulf %293, %295 : vector<1x1024xf32>
    %297 = arith.index_cast %c2_i32_149 : i32 to index
    %c0_152 = arith.constant 0 : index
    %298 = vector.load %arg24[%297, %c0_152] : memref<16x1024xf32, #tpu.memory_space<vmem>>, vector<1x1024xf32>
    tpu.vector_store %arg24[%297, %c0_152], %296 {strides = array<i32>} : memref<16x1024xf32, #tpu.memory_space<vmem>>, vector<1x1024xf32>,
    %c3_i32_153 = arith.constant 3 : i32
    %299 = arith.index_cast %c3_i32_153 : i32 to index
    %300 = memref.load %arg1[%299] : memref<16xi32, #tpu.memory_space<smem>>
    %301 = arith.index_cast %300 : i32 to index
    %c0_154 = arith.constant 0 : index
    %302 = vector.load %arg23[%301, %c0_154] : memref<12x1024xf32, #tpu.memory_space<vmem>>, vector<1x1024xf32>
    %303 = arith.index_cast %c3_i32_153 : i32 to index
    %c0_155 = arith.constant 0 : index
    %304 = vector.load %arg22[%303, %c0_155] : memref<16x1024xf32, #tpu.memory_space<vmem>>, vector<1x1024xf32>
    %305 = arith.mulf %302, %304 : vector<1x1024xf32>
    %306 = arith.index_cast %c3_i32_153 : i32 to index
    %c0_156 = arith.constant 0 : index
    %307 = vector.load %arg24[%306, %c0_156] : memref<16x1024xf32, #tpu.memory_space<vmem>>, vector<1x1024xf32>
    tpu.vector_store %arg24[%306, %c0_156], %305 {strides = array<i32>} : memref<16x1024xf32, #tpu.memory_space<vmem>>, vector<1x1024xf32>,
    %c4_i32_157 = arith.constant 4 : i32
    %308 = arith.index_cast %c4_i32_157 : i32 to index
    %309 = memref.load %arg1[%308] : memref<16xi32, #tpu.memory_space<smem>>
    %310 = arith.index_cast %309 : i32 to index
    %c0_158 = arith.constant 0 : index
    %311 = vector.load %arg23[%310, %c0_158] : memref<12x1024xf32, #tpu.memory_space<vmem>>, vector<1x1024xf32>
    %312 = arith.index_cast %c4_i32_157 : i32 to index
    %c0_159 = arith.constant 0 : index
    %313 = vector.load %arg22[%312, %c0_159] : memref<16x1024xf32, #tpu.memory_space<vmem>>, vector<1x1024xf32>
    %314 = arith.mulf %311, %313 : vector<1x1024xf32>
    %315 = arith.index_cast %c4_i32_157 : i32 to index
    %c0_160 = arith.constant 0 : index
    %316 = vector.load %arg24[%315, %c0_160] : memref<16x1024xf32, #tpu.memory_space<vmem>>, vector<1x1024xf32>
    tpu.vector_store %arg24[%315, %c0_160], %314 {strides = array<i32>} : memref<16x1024xf32, #tpu.memory_space<vmem>>, vector<1x1024xf32>,
    %c5_i32_161 = arith.constant 5 : i32
    %317 = arith.index_cast %c5_i32_161 : i32 to index
    %318 = memref.load %arg1[%317] : memref<16xi32, #tpu.memory_space<smem>>
    %319 = arith.index_cast %318 : i32 to index
    %c0_162 = arith.constant 0 : index
    %320 = vector.load %arg23[%319, %c0_162] : memref<12x1024xf32, #tpu.memory_space<vmem>>, vector<1x1024xf32>
    %321 = arith.index_cast %c5_i32_161 : i32 to index
    %c0_163 = arith.constant 0 : index
    %322 = vector.load %arg22[%321, %c0_163] : memref<16x1024xf32, #tpu.memory_space<vmem>>, vector<1x1024xf32>
    %323 = arith.mulf %320, %322 : vector<1x1024xf32>
    %324 = arith.index_cast %c5_i32_161 : i32 to index
    %c0_164 = arith.constant 0 : index
    %325 = vector.load %arg24[%324, %c0_164] : memref<16x1024xf32, #tpu.memory_space<vmem>>, vector<1x1024xf32>
    tpu.vector_store %arg24[%324, %c0_164], %323 {strides = array<i32>} : memref<16x1024xf32, #tpu.memory_space<vmem>>, vector<1x1024xf32>,
    %c6_i32_165 = arith.constant 6 : i32
    %326 = arith.index_cast %c6_i32_165 : i32 to index
    %327 = memref.load %arg1[%326] : memref<16xi32, #tpu.memory_space<smem>>
    %328 = arith.index_cast %327 : i32 to index
    %c0_166 = arith.constant 0 : index
    %329 = vector.load %arg23[%328, %c0_166] : memref<12x1024xf32, #tpu.memory_space<vmem>>, vector<1x1024xf32>
    %330 = arith.index_cast %c6_i32_165 : i32 to index
    %c0_167 = arith.constant 0 : index
    %331 = vector.load %arg22[%330, %c0_167] : memref<16x1024xf32, #tpu.memory_space<vmem>>, vector<1x1024xf32>
    %332 = arith.mulf %329, %331 : vector<1x1024xf32>
    %333 = arith.index_cast %c6_i32_165 : i32 to index
    %c0_168 = arith.constant 0 : index
    %334 = vector.load %arg24[%333, %c0_168] : memref<16x1024xf32, #tpu.memory_space<vmem>>, vector<1x1024xf32>
    tpu.vector_store %arg24[%333, %c0_168], %332 {strides = array<i32>} : memref<16x1024xf32, #tpu.memory_space<vmem>>, vector<1x1024xf32>,
    %c7_i32_169 = arith.constant 7 : i32
    %335 = arith.index_cast %c7_i32_169 : i32 to index
    %336 = memref.load %arg1[%335] : memref<16xi32, #tpu.memory_space<smem>>
    %337 = arith.index_cast %336 : i32 to index
    %c0_170 = arith.constant 0 : index
    %338 = vector.load %arg23[%337, %c0_170] : memref<12x1024xf32, #tpu.memory_space<vmem>>, vector<1x1024xf32>
    %339 = arith.index_cast %c7_i32_169 : i32 to index
    %c0_171 = arith.constant 0 : index
    %340 = vector.load %arg22[%339, %c0_171] : memref<16x1024xf32, #tpu.memory_space<vmem>>, vector<1x1024xf32>
    %341 = arith.mulf %338, %340 : vector<1x1024xf32>
    %342 = arith.index_cast %c7_i32_169 : i32 to index
    %c0_172 = arith.constant 0 : index
    %343 = vector.load %arg24[%342, %c0_172] : memref<16x1024xf32, #tpu.memory_space<vmem>>, vector<1x1024xf32>
    tpu.vector_store %arg24[%342, %c0_172], %341 {strides = array<i32>} : memref<16x1024xf32, #tpu.memory_space<vmem>>, vector<1x1024xf32>,
    %c8_i32_173 = arith.constant 8 : i32
    %344 = arith.index_cast %c8_i32_173 : i32 to index
    %345 = memref.load %arg1[%344] : memref<16xi32, #tpu.memory_space<smem>>
    %346 = arith.index_cast %345 : i32 to index
    %c0_174 = arith.constant 0 : index
    %347 = vector.load %arg23[%346, %c0_174] : memref<12x1024xf32, #tpu.memory_space<vmem>>, vector<1x1024xf32>
    %348 = arith.index_cast %c8_i32_173 : i32 to index
    %c0_175 = arith.constant 0 : index
    %349 = vector.load %arg22[%348, %c0_175] : memref<16x1024xf32, #tpu.memory_space<vmem>>, vector<1x1024xf32>
    %350 = arith.mulf %347, %349 : vector<1x1024xf32>
    %351 = arith.index_cast %c8_i32_173 : i32 to index
    %c0_176 = arith.constant 0 : index
    %352 = vector.load %arg24[%351, %c0_176] : memref<16x1024xf32, #tpu.memory_space<vmem>>, vector<1x1024xf32>
    tpu.vector_store %arg24[%351, %c0_176], %350 {strides = array<i32>} : memref<16x1024xf32, #tpu.memory_space<vmem>>, vector<1x1024xf32>,
    %c9_i32_177 = arith.constant 9 : i32
    %353 = arith.index_cast %c9_i32_177 : i32 to index
    %354 = memref.load %arg1[%353] : memref<16xi32, #tpu.memory_space<smem>>
    %355 = arith.index_cast %354 : i32 to index
    %c0_178 = arith.constant 0 : index
    %356 = vector.load %arg23[%355, %c0_178] : memref<12x1024xf32, #tpu.memory_space<vmem>>, vector<1x1024xf32>
    %357 = arith.index_cast %c9_i32_177 : i32 to index
    %c0_179 = arith.constant 0 : index
    %358 = vector.load %arg22[%357, %c0_179] : memref<16x1024xf32, #tpu.memory_space<vmem>>, vector<1x1024xf32>
    %359 = arith.mulf %356, %358 : vector<1x1024xf32>
    %360 = arith.index_cast %c9_i32_177 : i32 to index
    %c0_180 = arith.constant 0 : index
    %361 = vector.load %arg24[%360, %c0_180] : memref<16x1024xf32, #tpu.memory_space<vmem>>, vector<1x1024xf32>
    tpu.vector_store %arg24[%360, %c0_180], %359 {strides = array<i32>} : memref<16x1024xf32, #tpu.memory_space<vmem>>, vector<1x1024xf32>,
    %c10_i32_181 = arith.constant 10 : i32
    %362 = arith.index_cast %c10_i32_181 : i32 to index
    %363 = memref.load %arg1[%362] : memref<16xi32, #tpu.memory_space<smem>>
    %364 = arith.index_cast %363 : i32 to index
    %c0_182 = arith.constant 0 : index
    %365 = vector.load %arg23[%364, %c0_182] : memref<12x1024xf32, #tpu.memory_space<vmem>>, vector<1x1024xf32>
    %366 = arith.index_cast %c10_i32_181 : i32 to index
    %c0_183 = arith.constant 0 : index
    %367 = vector.load %arg22[%366, %c0_183] : memref<16x1024xf32, #tpu.memory_space<vmem>>, vector<1x1024xf32>
    %368 = arith.mulf %365, %367 : vector<1x1024xf32>
    %369 = arith.index_cast %c10_i32_181 : i32 to index
    %c0_184 = arith.constant 0 : index
    %370 = vector.load %arg24[%369, %c0_184] : memref<16x1024xf32, #tpu.memory_space<vmem>>, vector<1x1024xf32>
    tpu.vector_store %arg24[%369, %c0_184], %368 {strides = array<i32>} : memref<16x1024xf32, #tpu.memory_space<vmem>>, vector<1x1024xf32>,
    %c11_i32_185 = arith.constant 11 : i32
    %371 = arith.index_cast %c11_i32_185 : i32 to index
    %372 = memref.load %arg1[%371] : memref<16xi32, #tpu.memory_space<smem>>
    %373 = arith.index_cast %372 : i32 to index
    %c0_186 = arith.constant 0 : index
    %374 = vector.load %arg23[%373, %c0_186] : memref<12x1024xf32, #tpu.memory_space<vmem>>, vector<1x1024xf32>
    %375 = arith.index_cast %c11_i32_185 : i32 to index
    %c0_187 = arith.constant 0 : index
    %376 = vector.load %arg22[%375, %c0_187] : memref<16x1024xf32, #tpu.memory_space<vmem>>, vector<1x1024xf32>
    %377 = arith.mulf %374, %376 : vector<1x1024xf32>
    %378 = arith.index_cast %c11_i32_185 : i32 to index
    %c0_188 = arith.constant 0 : index
    %379 = vector.load %arg24[%378, %c0_188] : memref<16x1024xf32, #tpu.memory_space<vmem>>, vector<1x1024xf32>
    tpu.vector_store %arg24[%378, %c0_188], %377 {strides = array<i32>} : memref<16x1024xf32, #tpu.memory_space<vmem>>, vector<1x1024xf32>,
    %c12_i32_189 = arith.constant 12 : i32
    %380 = arith.index_cast %c12_i32_189 : i32 to index
    %381 = memref.load %arg1[%380] : memref<16xi32, #tpu.memory_space<smem>>
    %382 = arith.index_cast %381 : i32 to index
    %c0_190 = arith.constant 0 : index
    %383 = vector.load %arg23[%382, %c0_190] : memref<12x1024xf32, #tpu.memory_space<vmem>>, vector<1x1024xf32>
    %384 = arith.index_cast %c12_i32_189 : i32 to index
    %c0_191 = arith.constant 0 : index
    %385 = vector.load %arg22[%384, %c0_191] : memref<16x1024xf32, #tpu.memory_space<vmem>>, vector<1x1024xf32>
    %386 = arith.mulf %383, %385 : vector<1x1024xf32>
    %387 = arith.index_cast %c12_i32_189 : i32 to index
    %c0_192 = arith.constant 0 : index
    %388 = vector.load %arg24[%387, %c0_192] : memref<16x1024xf32, #tpu.memory_space<vmem>>, vector<1x1024xf32>
    tpu.vector_store %arg24[%387, %c0_192], %386 {strides = array<i32>} : memref<16x1024xf32, #tpu.memory_space<vmem>>, vector<1x1024xf32>,
    %c13_i32_193 = arith.constant 13 : i32
    %389 = arith.index_cast %c13_i32_193 : i32 to index
    %390 = memref.load %arg1[%389] : memref<16xi32, #tpu.memory_space<smem>>
    %391 = arith.index_cast %390 : i32 to index
    %c0_194 = arith.constant 0 : index
    %392 = vector.load %arg23[%391, %c0_194] : memref<12x1024xf32, #tpu.memory_space<vmem>>, vector<1x1024xf32>
    %393 = arith.index_cast %c13_i32_193 : i32 to index
    %c0_195 = arith.constant 0 : index
    %394 = vector.load %arg22[%393, %c0_195] : memref<16x1024xf32, #tpu.memory_space<vmem>>, vector<1x1024xf32>
    %395 = arith.mulf %392, %394 : vector<1x1024xf32>
    %396 = arith.index_cast %c13_i32_193 : i32 to index
    %c0_196 = arith.constant 0 : index
    %397 = vector.load %arg24[%396, %c0_196] : memref<16x1024xf32, #tpu.memory_space<vmem>>, vector<1x1024xf32>
    tpu.vector_store %arg24[%396, %c0_196], %395 {strides = array<i32>} : memref<16x1024xf32, #tpu.memory_space<vmem>>, vector<1x1024xf32>,
    %c14_i32_197 = arith.constant 14 : i32
    %398 = arith.index_cast %c14_i32_197 : i32 to index
    %399 = memref.load %arg1[%398] : memref<16xi32, #tpu.memory_space<smem>>
    %400 = arith.index_cast %399 : i32 to index
    %c0_198 = arith.constant 0 : index
    %401 = vector.load %arg23[%400, %c0_198] : memref<12x1024xf32, #tpu.memory_space<vmem>>, vector<1x1024xf32>
    %402 = arith.index_cast %c14_i32_197 : i32 to index
    %c0_199 = arith.constant 0 : index
    %403 = vector.load %arg22[%402, %c0_199] : memref<16x1024xf32, #tpu.memory_space<vmem>>, vector<1x1024xf32>
    %404 = arith.mulf %401, %403 : vector<1x1024xf32>
    %405 = arith.index_cast %c14_i32_197 : i32 to index
    %c0_200 = arith.constant 0 : index
    %406 = vector.load %arg24[%405, %c0_200] : memref<16x1024xf32, #tpu.memory_space<vmem>>, vector<1x1024xf32>
    tpu.vector_store %arg24[%405, %c0_200], %404 {strides = array<i32>} : memref<16x1024xf32, #tpu.memory_space<vmem>>, vector<1x1024xf32>,
    %c15_i32_201 = arith.constant 15 : i32
    %407 = arith.index_cast %c15_i32_201 : i32 to index
    %408 = memref.load %arg1[%407] : memref<16xi32, #tpu.memory_space<smem>>
    %409 = arith.index_cast %408 : i32 to index
    %c0_202 = arith.constant 0 : index
    %410 = vector.load %arg23[%409, %c0_202] : memref<12x1024xf32, #tpu.memory_space<vmem>>, vector<1x1024xf32>
    %411 = arith.index_cast %c15_i32_201 : i32 to index
    %c0_203 = arith.constant 0 : index
    %412 = vector.load %arg22[%411, %c0_203] : memref<16x1024xf32, #tpu.memory_space<vmem>>, vector<1x1024xf32>
    %413 = arith.mulf %410, %412 : vector<1x1024xf32>
    %414 = arith.index_cast %c15_i32_201 : i32 to index
    %c0_204 = arith.constant 0 : index
    %415 = vector.load %arg24[%414, %c0_204] : memref<16x1024xf32, #tpu.memory_space<vmem>>, vector<1x1024xf32>
    tpu.vector_store %arg24[%414, %c0_204], %413 {strides = array<i32>} : memref<16x1024xf32, #tpu.memory_space<vmem>>, vector<1x1024xf32>,
    %c16_i32_205 = arith.constant 16 : i32
    %c0_206 = arith.constant 0 : index
    %c0_207 = arith.constant 0 : index
    %416 = vector.load %arg24[%c0_206, %c0_207] : memref<16x1024xf32, #tpu.memory_space<vmem>>, vector<16x1024xf32>
    %417 = arith.truncf %416 : vector<16x1024xf32> to vector<16x1024xbf16>
    %cst_208 = arith.constant dense<0.000000e+00> : vector<16x32xf32>
    %418 = tpu.matmul %417, %23, %cst_208 {dimension_numbers = #tpu.dot_dimension_numbers<[1], [0], [0], [1], [0, 0, 1, 1], [], []>} : vector<16x1024xbf16>, vector<1024x32xbf16>, vector<16x32xf32> -> vector<16x32xf32>
    %c0_209 = arith.constant 0 : index
    %c0_210 = arith.constant 0 : index
    %419 = vector.load %arg25[%c0_209, %c0_210] : memref<16x32xf32, #tpu.memory_space<vmem>>, vector<16x32xf32>
    tpu.vector_store %arg25[%c0_209, %c0_210], %418 {strides = array<i32>} : memref<16x32xf32, #tpu.memory_space<vmem>>, vector<16x32xf32>,
    %cst_211 = arith.constant 0.000000e+00 : f32
    %420 = vector.broadcast %cst_211 : f32 to vector<12x32xf32>
    %c0_212 = arith.constant 0 : index
    %c0_213 = arith.constant 0 : index
    %421 = vector.load %arg27[%c0_212, %c0_213] : memref<12x32xf32, #tpu.memory_space<vmem>>, vector<12x32xf32>
    tpu.vector_store %arg27[%c0_212, %c0_213], %420 {strides = array<i32>} : memref<12x32xf32, #tpu.memory_space<vmem>>, vector<12x32xf32>,
    %c0_i32_214 = arith.constant 0 : i32
    %c16_i32_215 = arith.constant 16 : i32
    %422 = arith.addi %c0_i32_214, %c16_i32_215 : i32
    %c1_i32_216 = arith.constant 1 : i32
    scf.for %arg29 = %c0_i32_214 to %422 step %c1_i32_216  : i32 {
      %681 = arith.index_cast %arg29 : i32 to index
      %682 = memref.load %arg2[%681] : memref<16xi32, #tpu.memory_space<smem>>
      %683 = arith.index_cast %682 : i32 to index
      %c0_346 = arith.constant 0 : index
      %684 = vector.load %arg27[%683, %c0_346] : memref<12x32xf32, #tpu.memory_space<vmem>>, vector<1x32xf32>
      %685 = arith.index_cast %arg29 : i32 to index
      %c0_347 = arith.constant 0 : index
      %686 = vector.load %arg25[%685, %c0_347] : memref<16x32xf32, #tpu.memory_space<vmem>>, vector<1x32xf32>
      %687 = arith.addf %684, %686 : vector<1x32xf32>
      %688 = arith.index_cast %682 : i32 to index
      %c0_348 = arith.constant 0 : index
      %689 = vector.load %arg27[%688, %c0_348] : memref<12x32xf32, #tpu.memory_space<vmem>>, vector<1x32xf32>
      tpu.vector_store %arg27[%688, %c0_348], %687 {strides = array<i32>} : memref<12x32xf32, #tpu.memory_space<vmem>>, vector<1x32xf32>,
    }
    %c16_i32_217 = arith.constant 16 : i32
    %c0_218 = arith.constant 0 : index
    %c0_219 = arith.constant 0 : index
    %423 = vector.load %arg27[%c0_218, %c0_219] : memref<12x32xf32, #tpu.memory_space<vmem>>, vector<12x32xf32>
    %424 = vector.broadcast %71 : vector<1x32xf32> to vector<12x32xf32>
    %425 = arith.addf %423, %424 : vector<12x32xf32>
    %cst_220 = arith.constant 0.000000e+00 : f32
    %426 = vector.broadcast %cst_220 : f32 to vector<12x32xf32>
    %427 = arith.maximumf %425, %426 : vector<12x32xf32>
    %cst_221 = arith.constant dense<0.000000e+00> : vector<12x32xf32>
    %428 = tpu.matmul %427, %48, %cst_221 {dimension_numbers = #tpu.dot_dimension_numbers<[1], [0], [0], [1], [0, 0, 1, 1], [], []>} : vector<12x32xf32>, vector<32x32xf32>, vector<12x32xf32> -> vector<12x32xf32>
    %429 = vector.broadcast %60 : vector<1x32xf32> to vector<12x32xf32>
    %430 = arith.addf %428, %429 : vector<12x32xf32>
    %cst_222 = arith.constant dense<0.000000e+00> : vector<12x32xf32>
    %431 = tpu.matmul %427, %50, %cst_222 {dimension_numbers = #tpu.dot_dimension_numbers<[1], [0], [0], [1], [0, 0, 1, 1], [], []>} : vector<12x32xf32>, vector<32x32xf32>, vector<12x32xf32> -> vector<12x32xf32>
    %432 = vector.broadcast %62 : vector<1x32xf32> to vector<12x32xf32>
    %433 = arith.addf %431, %432 : vector<12x32xf32>
    %cst_223 = arith.constant dense<0.000000e+00> : vector<12x32xf32>
    %434 = tpu.matmul %427, %52, %cst_223 {dimension_numbers = #tpu.dot_dimension_numbers<[1], [0], [0], [1], [0, 0, 1, 1], [], []>} : vector<12x32xf32>, vector<32x32xf32>, vector<12x32xf32> -> vector<12x32xf32>
    %435 = vector.broadcast %64 : vector<1x32xf32> to vector<12x32xf32>
    %436 = arith.addf %434, %435 : vector<12x32xf32>
    %cst_224 = arith.constant dense<0.000000e+00> : vector<12x32xf32>
    %437 = tpu.matmul %268, %54, %cst_224 {dimension_numbers = #tpu.dot_dimension_numbers<[1], [0], [0], [1], [0, 0, 1, 1], [], []>} : vector<12x32xf32>, vector<32x32xf32>, vector<12x32xf32> -> vector<12x32xf32>
    %438 = vector.broadcast %66 : vector<1x32xf32> to vector<12x32xf32>
    %439 = arith.addf %437, %438 : vector<12x32xf32>
    %cst_225 = arith.constant dense<0.000000e+00> : vector<12x32xf32>
    %440 = tpu.matmul %268, %56, %cst_225 {dimension_numbers = #tpu.dot_dimension_numbers<[1], [0], [0], [1], [0, 0, 1, 1], [], []>} : vector<12x32xf32>, vector<32x32xf32>, vector<12x32xf32> -> vector<12x32xf32>
    %441 = vector.broadcast %68 : vector<1x32xf32> to vector<12x32xf32>
    %442 = arith.addf %440, %441 : vector<12x32xf32>
    %cst_226 = arith.constant dense<0.000000e+00> : vector<12x32xf32>
    %443 = tpu.matmul %268, %58, %cst_226 {dimension_numbers = #tpu.dot_dimension_numbers<[1], [0], [0], [1], [0, 0, 1, 1], [], []>} : vector<12x32xf32>, vector<32x32xf32>, vector<12x32xf32> -> vector<12x32xf32>
    %444 = vector.broadcast %70 : vector<1x32xf32> to vector<12x32xf32>
    %445 = arith.addf %443, %444 : vector<12x32xf32>
    %446 = arith.addf %430, %439 : vector<12x32xf32>
    %447 = arith.negf %446 : vector<12x32xf32>
    %448 = math.exp %447 : vector<12x32xf32>
    %cst_227 = arith.constant 1.000000e+00 : f32
    %449 = vector.broadcast %cst_227 : f32 to vector<12x32xf32>
    %450 = arith.addf %449, %448 : vector<12x32xf32>
    %451 = arith.divf %449, %450 : vector<12x32xf32>
    %452 = arith.addf %433, %442 : vector<12x32xf32>
    %453 = arith.negf %452 : vector<12x32xf32>
    %454 = math.exp %453 : vector<12x32xf32>
    %cst_228 = arith.constant 1.000000e+00 : f32
    %455 = vector.broadcast %cst_228 : f32 to vector<12x32xf32>
    %456 = arith.addf %455, %454 : vector<12x32xf32>
    %457 = arith.divf %455, %456 : vector<12x32xf32>
    %458 = arith.mulf %451, %445 : vector<12x32xf32>
    %459 = arith.addf %436, %458 : vector<12x32xf32>
    %460 = math.tanh %459 : vector<12x32xf32>
    %cst_229 = arith.constant 1.000000e+00 : f32
    %461 = vector.broadcast %cst_229 : f32 to vector<12x32xf32>
    %462 = arith.subf %461, %457 : vector<12x32xf32>
    %463 = arith.mulf %462, %460 : vector<12x32xf32>
    %464 = arith.mulf %457, %268 : vector<12x32xf32>
    %465 = arith.addf %463, %464 : vector<12x32xf32>
    %466 = arith.truncf %465 : vector<12x32xf32> to vector<12x32xbf16>
    %cst_230 = arith.constant dense<0.000000e+00> : vector<12x1024xf32>
    %467 = tpu.matmul %466, %14, %cst_230 {dimension_numbers = #tpu.dot_dimension_numbers<[1], [0], [0], [1], [0, 0, 1, 1], [], []>} : vector<12x32xbf16>, vector<32x1024xbf16>, vector<12x1024xf32> -> vector<12x1024xf32>
    %c0_231 = arith.constant 0 : index
    %c0_232 = arith.constant 0 : index
    %468 = vector.load %arg23[%c0_231, %c0_232] : memref<12x1024xf32, #tpu.memory_space<vmem>>, vector<12x1024xf32>
    tpu.vector_store %arg23[%c0_231, %c0_232], %467 {strides = array<i32>} : memref<12x1024xf32, #tpu.memory_space<vmem>>, vector<12x1024xf32>,
    %c0_i32_233 = arith.constant 0 : i32
    %469 = arith.index_cast %c0_i32_233 : i32 to index
    %470 = memref.load %arg1[%469] : memref<16xi32, #tpu.memory_space<smem>>
    %471 = arith.index_cast %470 : i32 to index
    %c0_234 = arith.constant 0 : index
    %472 = vector.load %arg23[%471, %c0_234] : memref<12x1024xf32, #tpu.memory_space<vmem>>, vector<1x1024xf32>
    %473 = arith.index_cast %c0_i32_233 : i32 to index
    %c0_235 = arith.constant 0 : index
    %474 = vector.load %arg22[%473, %c0_235] : memref<16x1024xf32, #tpu.memory_space<vmem>>, vector<1x1024xf32>
    %475 = arith.mulf %472, %474 : vector<1x1024xf32>
    %476 = arith.index_cast %c0_i32_233 : i32 to index
    %c0_236 = arith.constant 0 : index
    %477 = vector.load %arg24[%476, %c0_236] : memref<16x1024xf32, #tpu.memory_space<vmem>>, vector<1x1024xf32>
    tpu.vector_store %arg24[%476, %c0_236], %475 {strides = array<i32>} : memref<16x1024xf32, #tpu.memory_space<vmem>>, vector<1x1024xf32>,
    %c1_i32_237 = arith.constant 1 : i32
    %478 = arith.index_cast %c1_i32_237 : i32 to index
    %479 = memref.load %arg1[%478] : memref<16xi32, #tpu.memory_space<smem>>
    %480 = arith.index_cast %479 : i32 to index
    %c0_238 = arith.constant 0 : index
    %481 = vector.load %arg23[%480, %c0_238] : memref<12x1024xf32, #tpu.memory_space<vmem>>, vector<1x1024xf32>
    %482 = arith.index_cast %c1_i32_237 : i32 to index
    %c0_239 = arith.constant 0 : index
    %483 = vector.load %arg22[%482, %c0_239] : memref<16x1024xf32, #tpu.memory_space<vmem>>, vector<1x1024xf32>
    %484 = arith.mulf %481, %483 : vector<1x1024xf32>
    %485 = arith.index_cast %c1_i32_237 : i32 to index
    %c0_240 = arith.constant 0 : index
    %486 = vector.load %arg24[%485, %c0_240] : memref<16x1024xf32, #tpu.memory_space<vmem>>, vector<1x1024xf32>
    tpu.vector_store %arg24[%485, %c0_240], %484 {strides = array<i32>} : memref<16x1024xf32, #tpu.memory_space<vmem>>, vector<1x1024xf32>,
    %c2_i32_241 = arith.constant 2 : i32
    %487 = arith.index_cast %c2_i32_241 : i32 to index
    %488 = memref.load %arg1[%487] : memref<16xi32, #tpu.memory_space<smem>>
    %489 = arith.index_cast %488 : i32 to index
    %c0_242 = arith.constant 0 : index
    %490 = vector.load %arg23[%489, %c0_242] : memref<12x1024xf32, #tpu.memory_space<vmem>>, vector<1x1024xf32>
    %491 = arith.index_cast %c2_i32_241 : i32 to index
    %c0_243 = arith.constant 0 : index
    %492 = vector.load %arg22[%491, %c0_243] : memref<16x1024xf32, #tpu.memory_space<vmem>>, vector<1x1024xf32>
    %493 = arith.mulf %490, %492 : vector<1x1024xf32>
    %494 = arith.index_cast %c2_i32_241 : i32 to index
    %c0_244 = arith.constant 0 : index
    %495 = vector.load %arg24[%494, %c0_244] : memref<16x1024xf32, #tpu.memory_space<vmem>>, vector<1x1024xf32>
    tpu.vector_store %arg24[%494, %c0_244], %493 {strides = array<i32>} : memref<16x1024xf32, #tpu.memory_space<vmem>>, vector<1x1024xf32>,
    %c3_i32_245 = arith.constant 3 : i32
    %496 = arith.index_cast %c3_i32_245 : i32 to index
    %497 = memref.load %arg1[%496] : memref<16xi32, #tpu.memory_space<smem>>
    %498 = arith.index_cast %497 : i32 to index
    %c0_246 = arith.constant 0 : index
    %499 = vector.load %arg23[%498, %c0_246] : memref<12x1024xf32, #tpu.memory_space<vmem>>, vector<1x1024xf32>
    %500 = arith.index_cast %c3_i32_245 : i32 to index
    %c0_247 = arith.constant 0 : index
    %501 = vector.load %arg22[%500, %c0_247] : memref<16x1024xf32, #tpu.memory_space<vmem>>, vector<1x1024xf32>
    %502 = arith.mulf %499, %501 : vector<1x1024xf32>
    %503 = arith.index_cast %c3_i32_245 : i32 to index
    %c0_248 = arith.constant 0 : index
    %504 = vector.load %arg24[%503, %c0_248] : memref<16x1024xf32, #tpu.memory_space<vmem>>, vector<1x1024xf32>
    tpu.vector_store %arg24[%503, %c0_248], %502 {strides = array<i32>} : memref<16x1024xf32, #tpu.memory_space<vmem>>, vector<1x1024xf32>,
    %c4_i32_249 = arith.constant 4 : i32
    %505 = arith.index_cast %c4_i32_249 : i32 to index
    %506 = memref.load %arg1[%505] : memref<16xi32, #tpu.memory_space<smem>>
    %507 = arith.index_cast %506 : i32 to index
    %c0_250 = arith.constant 0 : index
    %508 = vector.load %arg23[%507, %c0_250] : memref<12x1024xf32, #tpu.memory_space<vmem>>, vector<1x1024xf32>
    %509 = arith.index_cast %c4_i32_249 : i32 to index
    %c0_251 = arith.constant 0 : index
    %510 = vector.load %arg22[%509, %c0_251] : memref<16x1024xf32, #tpu.memory_space<vmem>>, vector<1x1024xf32>
    %511 = arith.mulf %508, %510 : vector<1x1024xf32>
    %512 = arith.index_cast %c4_i32_249 : i32 to index
    %c0_252 = arith.constant 0 : index
    %513 = vector.load %arg24[%512, %c0_252] : memref<16x1024xf32, #tpu.memory_space<vmem>>, vector<1x1024xf32>
    tpu.vector_store %arg24[%512, %c0_252], %511 {strides = array<i32>} : memref<16x1024xf32, #tpu.memory_space<vmem>>, vector<1x1024xf32>,
    %c5_i32_253 = arith.constant 5 : i32
    %514 = arith.index_cast %c5_i32_253 : i32 to index
    %515 = memref.load %arg1[%514] : memref<16xi32, #tpu.memory_space<smem>>
    %516 = arith.index_cast %515 : i32 to index
    %c0_254 = arith.constant 0 : index
    %517 = vector.load %arg23[%516, %c0_254] : memref<12x1024xf32, #tpu.memory_space<vmem>>, vector<1x1024xf32>
    %518 = arith.index_cast %c5_i32_253 : i32 to index
    %c0_255 = arith.constant 0 : index
    %519 = vector.load %arg22[%518, %c0_255] : memref<16x1024xf32, #tpu.memory_space<vmem>>, vector<1x1024xf32>
    %520 = arith.mulf %517, %519 : vector<1x1024xf32>
    %521 = arith.index_cast %c5_i32_253 : i32 to index
    %c0_256 = arith.constant 0 : index
    %522 = vector.load %arg24[%521, %c0_256] : memref<16x1024xf32, #tpu.memory_space<vmem>>, vector<1x1024xf32>
    tpu.vector_store %arg24[%521, %c0_256], %520 {strides = array<i32>} : memref<16x1024xf32, #tpu.memory_space<vmem>>, vector<1x1024xf32>,
    %c6_i32_257 = arith.constant 6 : i32
    %523 = arith.index_cast %c6_i32_257 : i32 to index
    %524 = memref.load %arg1[%523] : memref<16xi32, #tpu.memory_space<smem>>
    %525 = arith.index_cast %524 : i32 to index
    %c0_258 = arith.constant 0 : index
    %526 = vector.load %arg23[%525, %c0_258] : memref<12x1024xf32, #tpu.memory_space<vmem>>, vector<1x1024xf32>
    %527 = arith.index_cast %c6_i32_257 : i32 to index
    %c0_259 = arith.constant 0 : index
    %528 = vector.load %arg22[%527, %c0_259] : memref<16x1024xf32, #tpu.memory_space<vmem>>, vector<1x1024xf32>
    %529 = arith.mulf %526, %528 : vector<1x1024xf32>
    %530 = arith.index_cast %c6_i32_257 : i32 to index
    %c0_260 = arith.constant 0 : index
    %531 = vector.load %arg24[%530, %c0_260] : memref<16x1024xf32, #tpu.memory_space<vmem>>, vector<1x1024xf32>
    tpu.vector_store %arg24[%530, %c0_260], %529 {strides = array<i32>} : memref<16x1024xf32, #tpu.memory_space<vmem>>, vector<1x1024xf32>,
    %c7_i32_261 = arith.constant 7 : i32
    %532 = arith.index_cast %c7_i32_261 : i32 to index
    %533 = memref.load %arg1[%532] : memref<16xi32, #tpu.memory_space<smem>>
    %534 = arith.index_cast %533 : i32 to index
    %c0_262 = arith.constant 0 : index
    %535 = vector.load %arg23[%534, %c0_262] : memref<12x1024xf32, #tpu.memory_space<vmem>>, vector<1x1024xf32>
    %536 = arith.index_cast %c7_i32_261 : i32 to index
    %c0_263 = arith.constant 0 : index
    %537 = vector.load %arg22[%536, %c0_263] : memref<16x1024xf32, #tpu.memory_space<vmem>>, vector<1x1024xf32>
    %538 = arith.mulf %535, %537 : vector<1x1024xf32>
    %539 = arith.index_cast %c7_i32_261 : i32 to index
    %c0_264 = arith.constant 0 : index
    %540 = vector.load %arg24[%539, %c0_264] : memref<16x1024xf32, #tpu.memory_space<vmem>>, vector<1x1024xf32>
    tpu.vector_store %arg24[%539, %c0_264], %538 {strides = array<i32>} : memref<16x1024xf32, #tpu.memory_space<vmem>>, vector<1x1024xf32>,
    %c8_i32_265 = arith.constant 8 : i32
    %541 = arith.index_cast %c8_i32_265 : i32 to index
    %542 = memref.load %arg1[%541] : memref<16xi32, #tpu.memory_space<smem>>
    %543 = arith.index_cast %542 : i32 to index
    %c0_266 = arith.constant 0 : index
    %544 = vector.load %arg23[%543, %c0_266] : memref<12x1024xf32, #tpu.memory_space<vmem>>, vector<1x1024xf32>
    %545 = arith.index_cast %c8_i32_265 : i32 to index
    %c0_267 = arith.constant 0 : index
    %546 = vector.load %arg22[%545, %c0_267] : memref<16x1024xf32, #tpu.memory_space<vmem>>, vector<1x1024xf32>
    %547 = arith.mulf %544, %546 : vector<1x1024xf32>
    %548 = arith.index_cast %c8_i32_265 : i32 to index
    %c0_268 = arith.constant 0 : index
    %549 = vector.load %arg24[%548, %c0_268] : memref<16x1024xf32, #tpu.memory_space<vmem>>, vector<1x1024xf32>
    tpu.vector_store %arg24[%548, %c0_268], %547 {strides = array<i32>} : memref<16x1024xf32, #tpu.memory_space<vmem>>, vector<1x1024xf32>,
    %c9_i32_269 = arith.constant 9 : i32
    %550 = arith.index_cast %c9_i32_269 : i32 to index
    %551 = memref.load %arg1[%550] : memref<16xi32, #tpu.memory_space<smem>>
    %552 = arith.index_cast %551 : i32 to index
    %c0_270 = arith.constant 0 : index
    %553 = vector.load %arg23[%552, %c0_270] : memref<12x1024xf32, #tpu.memory_space<vmem>>, vector<1x1024xf32>
    %554 = arith.index_cast %c9_i32_269 : i32 to index
    %c0_271 = arith.constant 0 : index
    %555 = vector.load %arg22[%554, %c0_271] : memref<16x1024xf32, #tpu.memory_space<vmem>>, vector<1x1024xf32>
    %556 = arith.mulf %553, %555 : vector<1x1024xf32>
    %557 = arith.index_cast %c9_i32_269 : i32 to index
    %c0_272 = arith.constant 0 : index
    %558 = vector.load %arg24[%557, %c0_272] : memref<16x1024xf32, #tpu.memory_space<vmem>>, vector<1x1024xf32>
    tpu.vector_store %arg24[%557, %c0_272], %556 {strides = array<i32>} : memref<16x1024xf32, #tpu.memory_space<vmem>>, vector<1x1024xf32>,
    %c10_i32_273 = arith.constant 10 : i32
    %559 = arith.index_cast %c10_i32_273 : i32 to index
    %560 = memref.load %arg1[%559] : memref<16xi32, #tpu.memory_space<smem>>
    %561 = arith.index_cast %560 : i32 to index
    %c0_274 = arith.constant 0 : index
    %562 = vector.load %arg23[%561, %c0_274] : memref<12x1024xf32, #tpu.memory_space<vmem>>, vector<1x1024xf32>
    %563 = arith.index_cast %c10_i32_273 : i32 to index
    %c0_275 = arith.constant 0 : index
    %564 = vector.load %arg22[%563, %c0_275] : memref<16x1024xf32, #tpu.memory_space<vmem>>, vector<1x1024xf32>
    %565 = arith.mulf %562, %564 : vector<1x1024xf32>
    %566 = arith.index_cast %c10_i32_273 : i32 to index
    %c0_276 = arith.constant 0 : index
    %567 = vector.load %arg24[%566, %c0_276] : memref<16x1024xf32, #tpu.memory_space<vmem>>, vector<1x1024xf32>
    tpu.vector_store %arg24[%566, %c0_276], %565 {strides = array<i32>} : memref<16x1024xf32, #tpu.memory_space<vmem>>, vector<1x1024xf32>,
    %c11_i32_277 = arith.constant 11 : i32
    %568 = arith.index_cast %c11_i32_277 : i32 to index
    %569 = memref.load %arg1[%568] : memref<16xi32, #tpu.memory_space<smem>>
    %570 = arith.index_cast %569 : i32 to index
    %c0_278 = arith.constant 0 : index
    %571 = vector.load %arg23[%570, %c0_278] : memref<12x1024xf32, #tpu.memory_space<vmem>>, vector<1x1024xf32>
    %572 = arith.index_cast %c11_i32_277 : i32 to index
    %c0_279 = arith.constant 0 : index
    %573 = vector.load %arg22[%572, %c0_279] : memref<16x1024xf32, #tpu.memory_space<vmem>>, vector<1x1024xf32>
    %574 = arith.mulf %571, %573 : vector<1x1024xf32>
    %575 = arith.index_cast %c11_i32_277 : i32 to index
    %c0_280 = arith.constant 0 : index
    %576 = vector.load %arg24[%575, %c0_280] : memref<16x1024xf32, #tpu.memory_space<vmem>>, vector<1x1024xf32>
    tpu.vector_store %arg24[%575, %c0_280], %574 {strides = array<i32>} : memref<16x1024xf32, #tpu.memory_space<vmem>>, vector<1x1024xf32>,
    %c12_i32_281 = arith.constant 12 : i32
    %577 = arith.index_cast %c12_i32_281 : i32 to index
    %578 = memref.load %arg1[%577] : memref<16xi32, #tpu.memory_space<smem>>
    %579 = arith.index_cast %578 : i32 to index
    %c0_282 = arith.constant 0 : index
    %580 = vector.load %arg23[%579, %c0_282] : memref<12x1024xf32, #tpu.memory_space<vmem>>, vector<1x1024xf32>
    %581 = arith.index_cast %c12_i32_281 : i32 to index
    %c0_283 = arith.constant 0 : index
    %582 = vector.load %arg22[%581, %c0_283] : memref<16x1024xf32, #tpu.memory_space<vmem>>, vector<1x1024xf32>
    %583 = arith.mulf %580, %582 : vector<1x1024xf32>
    %584 = arith.index_cast %c12_i32_281 : i32 to index
    %c0_284 = arith.constant 0 : index
    %585 = vector.load %arg24[%584, %c0_284] : memref<16x1024xf32, #tpu.memory_space<vmem>>, vector<1x1024xf32>
    tpu.vector_store %arg24[%584, %c0_284], %583 {strides = array<i32>} : memref<16x1024xf32, #tpu.memory_space<vmem>>, vector<1x1024xf32>,
    %c13_i32_285 = arith.constant 13 : i32
    %586 = arith.index_cast %c13_i32_285 : i32 to index
    %587 = memref.load %arg1[%586] : memref<16xi32, #tpu.memory_space<smem>>
    %588 = arith.index_cast %587 : i32 to index
    %c0_286 = arith.constant 0 : index
    %589 = vector.load %arg23[%588, %c0_286] : memref<12x1024xf32, #tpu.memory_space<vmem>>, vector<1x1024xf32>
    %590 = arith.index_cast %c13_i32_285 : i32 to index
    %c0_287 = arith.constant 0 : index
    %591 = vector.load %arg22[%590, %c0_287] : memref<16x1024xf32, #tpu.memory_space<vmem>>, vector<1x1024xf32>
    %592 = arith.mulf %589, %591 : vector<1x1024xf32>
    %593 = arith.index_cast %c13_i32_285 : i32 to index
    %c0_288 = arith.constant 0 : index
    %594 = vector.load %arg24[%593, %c0_288] : memref<16x1024xf32, #tpu.memory_space<vmem>>, vector<1x1024xf32>
    tpu.vector_store %arg24[%593, %c0_288], %592 {strides = array<i32>} : memref<16x1024xf32, #tpu.memory_space<vmem>>, vector<1x1024xf32>,
    %c14_i32_289 = arith.constant 14 : i32
    %595 = arith.index_cast %c14_i32_289 : i32 to index
    %596 = memref.load %arg1[%595] : memref<16xi32, #tpu.memory_space<smem>>
    %597 = arith.index_cast %596 : i32 to index
    %c0_290 = arith.constant 0 : index
    %598 = vector.load %arg23[%597, %c0_290] : memref<12x1024xf32, #tpu.memory_space<vmem>>, vector<1x1024xf32>
    %599 = arith.index_cast %c14_i32_289 : i32 to index
    %c0_291 = arith.constant 0 : index
    %600 = vector.load %arg22[%599, %c0_291] : memref<16x1024xf32, #tpu.memory_space<vmem>>, vector<1x1024xf32>
    %601 = arith.mulf %598, %600 : vector<1x1024xf32>
    %602 = arith.index_cast %c14_i32_289 : i32 to index
    %c0_292 = arith.constant 0 : index
    %603 = vector.load %arg24[%602, %c0_292] : memref<16x1024xf32, #tpu.memory_space<vmem>>, vector<1x1024xf32>
    tpu.vector_store %arg24[%602, %c0_292], %601 {strides = array<i32>} : memref<16x1024xf32, #tpu.memory_space<vmem>>, vector<1x1024xf32>,
    %c15_i32_293 = arith.constant 15 : i32
    %604 = arith.index_cast %c15_i32_293 : i32 to index
    %605 = memref.load %arg1[%604] : memref<16xi32, #tpu.memory_space<smem>>
    %606 = arith.index_cast %605 : i32 to index
    %c0_294 = arith.constant 0 : index
    %607 = vector.load %arg23[%606, %c0_294] : memref<12x1024xf32, #tpu.memory_space<vmem>>, vector<1x1024xf32>
    %608 = arith.index_cast %c15_i32_293 : i32 to index
    %c0_295 = arith.constant 0 : index
    %609 = vector.load %arg22[%608, %c0_295] : memref<16x1024xf32, #tpu.memory_space<vmem>>, vector<1x1024xf32>
    %610 = arith.mulf %607, %609 : vector<1x1024xf32>
    %611 = arith.index_cast %c15_i32_293 : i32 to index
    %c0_296 = arith.constant 0 : index
    %612 = vector.load %arg24[%611, %c0_296] : memref<16x1024xf32, #tpu.memory_space<vmem>>, vector<1x1024xf32>
    tpu.vector_store %arg24[%611, %c0_296], %610 {strides = array<i32>} : memref<16x1024xf32, #tpu.memory_space<vmem>>, vector<1x1024xf32>,
    %c16_i32_297 = arith.constant 16 : i32
    %c0_298 = arith.constant 0 : index
    %c0_299 = arith.constant 0 : index
    %613 = vector.load %arg24[%c0_298, %c0_299] : memref<16x1024xf32, #tpu.memory_space<vmem>>, vector<16x1024xf32>
    %614 = arith.truncf %613 : vector<16x1024xf32> to vector<16x1024xbf16>
    %cst_300 = arith.constant dense<0.000000e+00> : vector<16x32xf32>
    %615 = tpu.matmul %614, %23, %cst_300 {dimension_numbers = #tpu.dot_dimension_numbers<[1], [0], [0], [1], [0, 0, 1, 1], [], []>} : vector<16x1024xbf16>, vector<1024x32xbf16>, vector<16x32xf32> -> vector<16x32xf32>
    %c0_301 = arith.constant 0 : index
    %c0_302 = arith.constant 0 : index
    %616 = vector.load %arg25[%c0_301, %c0_302] : memref<16x32xf32, #tpu.memory_space<vmem>>, vector<16x32xf32>
    tpu.vector_store %arg25[%c0_301, %c0_302], %615 {strides = array<i32>} : memref<16x32xf32, #tpu.memory_space<vmem>>, vector<16x32xf32>,
    %cst_303 = arith.constant 0.000000e+00 : f32
    %617 = vector.broadcast %cst_303 : f32 to vector<12x32xf32>
    %c0_304 = arith.constant 0 : index
    %c0_305 = arith.constant 0 : index
    %618 = vector.load %arg27[%c0_304, %c0_305] : memref<12x32xf32, #tpu.memory_space<vmem>>, vector<12x32xf32>
    tpu.vector_store %arg27[%c0_304, %c0_305], %617 {strides = array<i32>} : memref<12x32xf32, #tpu.memory_space<vmem>>, vector<12x32xf32>,
    %c0_i32_306 = arith.constant 0 : i32
    %c16_i32_307 = arith.constant 16 : i32
    %619 = arith.addi %c0_i32_306, %c16_i32_307 : i32
    %c1_i32_308 = arith.constant 1 : i32
    scf.for %arg29 = %c0_i32_306 to %619 step %c1_i32_308  : i32 {
      %681 = arith.index_cast %arg29 : i32 to index
      %682 = memref.load %arg2[%681] : memref<16xi32, #tpu.memory_space<smem>>
      %683 = arith.index_cast %682 : i32 to index
      %c0_346 = arith.constant 0 : index
      %684 = vector.load %arg27[%683, %c0_346] : memref<12x32xf32, #tpu.memory_space<vmem>>, vector<1x32xf32>
      %685 = arith.index_cast %arg29 : i32 to index
      %c0_347 = arith.constant 0 : index
      %686 = vector.load %arg25[%685, %c0_347] : memref<16x32xf32, #tpu.memory_space<vmem>>, vector<1x32xf32>
      %687 = arith.addf %684, %686 : vector<1x32xf32>
      %688 = arith.index_cast %682 : i32 to index
      %c0_348 = arith.constant 0 : index
      %689 = vector.load %arg27[%688, %c0_348] : memref<12x32xf32, #tpu.memory_space<vmem>>, vector<1x32xf32>
      tpu.vector_store %arg27[%688, %c0_348], %687 {strides = array<i32>} : memref<12x32xf32, #tpu.memory_space<vmem>>, vector<1x32xf32>,
    }
    %c16_i32_309 = arith.constant 16 : i32
    %c0_310 = arith.constant 0 : index
    %c0_311 = arith.constant 0 : index
    %620 = vector.load %arg27[%c0_310, %c0_311] : memref<12x32xf32, #tpu.memory_space<vmem>>, vector<12x32xf32>
    %621 = vector.broadcast %71 : vector<1x32xf32> to vector<12x32xf32>
    %622 = arith.addf %620, %621 : vector<12x32xf32>
    %cst_312 = arith.constant 0.000000e+00 : f32
    %623 = vector.broadcast %cst_312 : f32 to vector<12x32xf32>
    %624 = arith.maximumf %622, %623 : vector<12x32xf32>
    %cst_313 = arith.constant dense<0.000000e+00> : vector<12x32xf32>
    %625 = tpu.matmul %624, %48, %cst_313 {dimension_numbers = #tpu.dot_dimension_numbers<[1], [0], [0], [1], [0, 0, 1, 1], [], []>} : vector<12x32xf32>, vector<32x32xf32>, vector<12x32xf32> -> vector<12x32xf32>
    %626 = vector.broadcast %60 : vector<1x32xf32> to vector<12x32xf32>
    %627 = arith.addf %625, %626 : vector<12x32xf32>
    %cst_314 = arith.constant dense<0.000000e+00> : vector<12x32xf32>
    %628 = tpu.matmul %624, %50, %cst_314 {dimension_numbers = #tpu.dot_dimension_numbers<[1], [0], [0], [1], [0, 0, 1, 1], [], []>} : vector<12x32xf32>, vector<32x32xf32>, vector<12x32xf32> -> vector<12x32xf32>
    %629 = vector.broadcast %62 : vector<1x32xf32> to vector<12x32xf32>
    %630 = arith.addf %628, %629 : vector<12x32xf32>
    %cst_315 = arith.constant dense<0.000000e+00> : vector<12x32xf32>
    %631 = tpu.matmul %624, %52, %cst_315 {dimension_numbers = #tpu.dot_dimension_numbers<[1], [0], [0], [1], [0, 0, 1, 1], [], []>} : vector<12x32xf32>, vector<32x32xf32>, vector<12x32xf32> -> vector<12x32xf32>
    %632 = vector.broadcast %64 : vector<1x32xf32> to vector<12x32xf32>
    %633 = arith.addf %631, %632 : vector<12x32xf32>
    %cst_316 = arith.constant dense<0.000000e+00> : vector<12x32xf32>
    %634 = tpu.matmul %465, %54, %cst_316 {dimension_numbers = #tpu.dot_dimension_numbers<[1], [0], [0], [1], [0, 0, 1, 1], [], []>} : vector<12x32xf32>, vector<32x32xf32>, vector<12x32xf32> -> vector<12x32xf32>
    %635 = vector.broadcast %66 : vector<1x32xf32> to vector<12x32xf32>
    %636 = arith.addf %634, %635 : vector<12x32xf32>
    %cst_317 = arith.constant dense<0.000000e+00> : vector<12x32xf32>
    %637 = tpu.matmul %465, %56, %cst_317 {dimension_numbers = #tpu.dot_dimension_numbers<[1], [0], [0], [1], [0, 0, 1, 1], [], []>} : vector<12x32xf32>, vector<32x32xf32>, vector<12x32xf32> -> vector<12x32xf32>
    %638 = vector.broadcast %68 : vector<1x32xf32> to vector<12x32xf32>
    %639 = arith.addf %637, %638 : vector<12x32xf32>
    %cst_318 = arith.constant dense<0.000000e+00> : vector<12x32xf32>
    %640 = tpu.matmul %465, %58, %cst_318 {dimension_numbers = #tpu.dot_dimension_numbers<[1], [0], [0], [1], [0, 0, 1, 1], [], []>} : vector<12x32xf32>, vector<32x32xf32>, vector<12x32xf32> -> vector<12x32xf32>
    %641 = vector.broadcast %70 : vector<1x32xf32> to vector<12x32xf32>
    %642 = arith.addf %640, %641 : vector<12x32xf32>
    %643 = arith.addf %627, %636 : vector<12x32xf32>
    %644 = arith.negf %643 : vector<12x32xf32>
    %645 = math.exp %644 : vector<12x32xf32>
    %cst_319 = arith.constant 1.000000e+00 : f32
    %646 = vector.broadcast %cst_319 : f32 to vector<12x32xf32>
    %647 = arith.addf %646, %645 : vector<12x32xf32>
    %648 = arith.divf %646, %647 : vector<12x32xf32>
    %649 = arith.addf %630, %639 : vector<12x32xf32>
    %650 = arith.negf %649 : vector<12x32xf32>
    %651 = math.exp %650 : vector<12x32xf32>
    %cst_320 = arith.constant 1.000000e+00 : f32
    %652 = vector.broadcast %cst_320 : f32 to vector<12x32xf32>
    %653 = arith.addf %652, %651 : vector<12x32xf32>
    %654 = arith.divf %652, %653 : vector<12x32xf32>
    %655 = arith.mulf %648, %642 : vector<12x32xf32>
    %656 = arith.addf %633, %655 : vector<12x32xf32>
    %657 = math.tanh %656 : vector<12x32xf32>
    %cst_321 = arith.constant 1.000000e+00 : f32
    %658 = vector.broadcast %cst_321 : f32 to vector<12x32xf32>
    %659 = arith.subf %658, %654 : vector<12x32xf32>
    %660 = arith.mulf %659, %657 : vector<12x32xf32>
    %661 = arith.mulf %654, %465 : vector<12x32xf32>
    %662 = arith.addf %660, %661 : vector<12x32xf32>
    %c0_322 = arith.constant 0 : index
    %c0_323 = arith.constant 0 : index
    %663 = vector.load %arg26[%c0_322, %c0_323] : memref<12x32xf32, #tpu.memory_space<vmem>>, vector<12x32xf32>
    tpu.vector_store %arg26[%c0_322, %c0_323], %662 {strides = array<i32>} : memref<12x32xf32, #tpu.memory_space<vmem>>, vector<12x32xf32>,
    %cst_324 = arith.constant 0.000000e+00 : f32
    %664 = vector.broadcast %cst_324 : f32 to vector<2x32xf32>
    %c0_325 = arith.constant 0 : index
    %c0_326 = arith.constant 0 : index
    %665 = vector.load %arg28[%c0_325, %c0_326] : memref<2x32xf32, #tpu.memory_space<vmem>>, vector<2x32xf32>
    tpu.vector_store %arg28[%c0_325, %c0_326], %664 {strides = array<i32>} : memref<2x32xf32, #tpu.memory_space<vmem>>, vector<2x32xf32>,
    %c0_i32_327 = arith.constant 0 : i32
    %c12_i32_328 = arith.constant 12 : i32
    %666 = arith.addi %c0_i32_327, %c12_i32_328 : i32
    %c1_i32_329 = arith.constant 1 : i32
    scf.for %arg29 = %c0_i32_327 to %666 step %c1_i32_329  : i32 {
      %681 = arith.index_cast %arg29 : i32 to index
      %682 = memref.load %arg3[%681] : memref<12xi32, #tpu.memory_space<smem>>
      %683 = arith.index_cast %682 : i32 to index
      %c0_346 = arith.constant 0 : index
      %684 = vector.load %arg28[%683, %c0_346] : memref<2x32xf32, #tpu.memory_space<vmem>>, vector<1x32xf32>
      %685 = arith.index_cast %arg29 : i32 to index
      %c0_347 = arith.constant 0 : index
      %686 = vector.load %arg26[%685, %c0_347] : memref<12x32xf32, #tpu.memory_space<vmem>>, vector<1x32xf32>
      %687 = arith.addf %684, %686 : vector<1x32xf32>
      %688 = arith.index_cast %682 : i32 to index
      %c0_348 = arith.constant 0 : index
      %689 = vector.load %arg28[%688, %c0_348] : memref<2x32xf32, #tpu.memory_space<vmem>>, vector<1x32xf32>
      tpu.vector_store %arg28[%688, %c0_348], %687 {strides = array<i32>} : memref<2x32xf32, #tpu.memory_space<vmem>>, vector<1x32xf32>,
    }
    %c12_i32_330 = arith.constant 12 : i32
    %c0_331 = arith.constant 0 : index
    %c0_332 = arith.constant 0 : index
    %667 = vector.load %arg28[%c0_331, %c0_332] : memref<2x32xf32, #tpu.memory_space<vmem>>, vector<2x32xf32>
    %c0_333 = arith.constant 0 : index
    %c0_334 = arith.constant 0 : index
    %668 = vector.load %arg17[%c0_333, %c0_334] : memref<32x32xf32, #tpu.memory_space<vmem>>, vector<32x32xf32>
    %cst_335 = arith.constant dense<0.000000e+00> : vector<2x32xf32>
    %669 = tpu.matmul %667, %668, %cst_335 {dimension_numbers = #tpu.dot_dimension_numbers<[1], [0], [0], [1], [0, 0, 1, 1], [], []>} : vector<2x32xf32>, vector<32x32xf32>, vector<2x32xf32> -> vector<2x32xf32>
    %c0_336 = arith.constant 0 : index
    %c0_337 = arith.constant 0 : index
    %670 = vector.load %arg18[%c0_336, %c0_337] : memref<1x32xf32, #tpu.memory_space<vmem>>, vector<1x32xf32>
    %671 = vector.broadcast %670 : vector<1x32xf32> to vector<2x32xf32>
    %672 = arith.addf %669, %671 : vector<2x32xf32>
    %cst_338 = arith.constant 0.000000e+00 : f32
    %673 = vector.broadcast %cst_338 : f32 to vector<2x32xf32>
    %674 = arith.maximumf %672, %673 : vector<2x32xf32>
    %c0_339 = arith.constant 0 : index
    %c0_340 = arith.constant 0 : index
    %675 = vector.load %arg19[%c0_339, %c0_340] : memref<32x1xf32, #tpu.memory_space<vmem>>, vector<32x1xf32>
    %cst_341 = arith.constant dense<0.000000e+00> : vector<2x1xf32>
    %676 = tpu.matmul %674, %675, %cst_341 {dimension_numbers = #tpu.dot_dimension_numbers<[1], [0], [0], [1], [0, 0, 1, 1], [], []>} : vector<2x32xf32>, vector<32x1xf32>, vector<2x1xf32> -> vector<2x1xf32>
    %c0_342 = arith.constant 0 : index
    %c0_343 = arith.constant 0 : index
    %677 = vector.load %arg20[%c0_342, %c0_343] : memref<1x1xf32, #tpu.memory_space<vmem>>, vector<1x1xf32>
    %678 = vector.broadcast %677 : vector<1x1xf32> to vector<2x1xf32>
    %679 = arith.addf %676, %678 : vector<2x1xf32>
    %c0_344 = arith.constant 0 : index
    %c0_345 = arith.constant 0 : index
    %680 = vector.load %arg21[%c0_344, %c0_345] : memref<2x1xf32, #tpu.memory_space<vmem>>, vector<2x1xf32>
    tpu.vector_store %arg21[%c0_344, %c0_345], %679 {strides = array<i32>} : memref<2x1xf32, #tpu.memory_space<vmem>>, vector<2x1xf32>,
    return
  }
  func.func @transform_0(%arg0: i32, %arg1: memref<16xi32, #tpu.memory_space<smem>>, %arg2: memref<16xi32, #tpu.memory_space<smem>>, %arg3: memref<12xi32, #tpu.memory_space<smem>>) -> (i32, i32) {
    %c0_i32 = arith.constant 0 : i32
    %c0_i32_0 = arith.constant 0 : i32
    %c0_i32_1 = arith.constant 0 : i32
    return %c0_i32, %c0_i32_0 : i32, i32
  }
  func.func @transform_1(%arg0: i32, %arg1: memref<16xi32, #tpu.memory_space<smem>>, %arg2: memref<16xi32, #tpu.memory_space<smem>>, %arg3: memref<12xi32, #tpu.memory_space<smem>>) -> (i32, i32) {
    %c0_i32 = arith.constant 0 : i32
    %c0_i32_0 = arith.constant 0 : i32
    %c0_i32_1 = arith.constant 0 : i32
    return %c0_i32, %c0_i32_0 : i32, i32
  }
  func.func @transform_2(%arg0: i32, %arg1: memref<16xi32, #tpu.memory_space<smem>>, %arg2: memref<16xi32, #tpu.memory_space<smem>>, %arg3: memref<12xi32, #tpu.memory_space<smem>>) -> (i32, i32) {
    %c0_i32 = arith.constant 0 : i32
    %c0_i32_0 = arith.constant 0 : i32
    %c0_i32_1 = arith.constant 0 : i32
    return %c0_i32, %c0_i32_0 : i32, i32
  }
  func.func @transform_3(%arg0: i32, %arg1: memref<16xi32, #tpu.memory_space<smem>>, %arg2: memref<16xi32, #tpu.memory_space<smem>>, %arg3: memref<12xi32, #tpu.memory_space<smem>>) -> (i32, i32) {
    %c0_i32 = arith.constant 0 : i32
    %c0_i32_0 = arith.constant 0 : i32
    %c0_i32_1 = arith.constant 0 : i32
    return %c0_i32, %c0_i32_0 : i32, i32
  }
  func.func @transform_4(%arg0: i32, %arg1: memref<16xi32, #tpu.memory_space<smem>>, %arg2: memref<16xi32, #tpu.memory_space<smem>>, %arg3: memref<12xi32, #tpu.memory_space<smem>>) -> (i32, i32) {
    %c0_i32 = arith.constant 0 : i32
    %c0_i32_0 = arith.constant 0 : i32
    %c0_i32_1 = arith.constant 0 : i32
    return %c0_i32, %c0_i32_0 : i32, i32
  }
  func.func @transform_5(%arg0: i32, %arg1: memref<16xi32, #tpu.memory_space<smem>>, %arg2: memref<16xi32, #tpu.memory_space<smem>>, %arg3: memref<12xi32, #tpu.memory_space<smem>>) -> (i32, i32) {
    %c0_i32 = arith.constant 0 : i32
    %c0_i32_0 = arith.constant 0 : i32
    %c0_i32_1 = arith.constant 0 : i32
    return %c0_i32, %c0_i32_0 : i32, i32
  }
  func.func @transform_6(%arg0: i32, %arg1: memref<16xi32, #tpu.memory_space<smem>>, %arg2: memref<16xi32, #tpu.memory_space<smem>>, %arg3: memref<12xi32, #tpu.memory_space<smem>>) -> (i32, i32) {
    %c0_i32 = arith.constant 0 : i32
    %c0_i32_0 = arith.constant 0 : i32
    %c0_i32_1 = arith.constant 0 : i32
    return %c0_i32, %c0_i32_0 : i32, i32
  }
  func.func @transform_7(%arg0: i32, %arg1: memref<16xi32, #tpu.memory_space<smem>>, %arg2: memref<16xi32, #tpu.memory_space<smem>>, %arg3: memref<12xi32, #tpu.memory_space<smem>>) -> (i32, i32) {
    %c0_i32 = arith.constant 0 : i32
    %c0_i32_0 = arith.constant 0 : i32
    %c0_i32_1 = arith.constant 0 : i32
    return %c0_i32, %c0_i32_0 : i32, i32
  }
  func.func @transform_8(%arg0: i32, %arg1: memref<16xi32, #tpu.memory_space<smem>>, %arg2: memref<16xi32, #tpu.memory_space<smem>>, %arg3: memref<12xi32, #tpu.memory_space<smem>>) -> (i32, i32) {
    %c0_i32 = arith.constant 0 : i32
    %c0_i32_0 = arith.constant 0 : i32
    %c0_i32_1 = arith.constant 0 : i32
    return %c0_i32, %c0_i32_0 : i32, i32
  }
  func.func @transform_9(%arg0: i32, %arg1: memref<16xi32, #tpu.memory_space<smem>>, %arg2: memref<16xi32, #tpu.memory_space<smem>>, %arg3: memref<12xi32, #tpu.memory_space<smem>>) -> (i32, i32, i32) {
    %c0_i32 = arith.constant 0 : i32
    %c0_i32_0 = arith.constant 0 : i32
    %c0_i32_1 = arith.constant 0 : i32
    %c0_i32_2 = arith.constant 0 : i32
    return %c0_i32, %c0_i32_0, %c0_i32_1 : i32, i32, i32
  }
  func.func @transform_10(%arg0: i32, %arg1: memref<16xi32, #tpu.memory_space<smem>>, %arg2: memref<16xi32, #tpu.memory_space<smem>>, %arg3: memref<12xi32, #tpu.memory_space<smem>>) -> (i32, i32, i32) {
    %c0_i32 = arith.constant 0 : i32
    %c0_i32_0 = arith.constant 0 : i32
    %c0_i32_1 = arith.constant 0 : i32
    %c0_i32_2 = arith.constant 0 : i32
    return %c0_i32, %c0_i32_0, %c0_i32_1 : i32, i32, i32
  }
  func.func @transform_11(%arg0: i32, %arg1: memref<16xi32, #tpu.memory_space<smem>>, %arg2: memref<16xi32, #tpu.memory_space<smem>>, %arg3: memref<12xi32, #tpu.memory_space<smem>>) -> (i32, i32, i32) {
    %c0_i32 = arith.constant 0 : i32
    %c0_i32_0 = arith.constant 0 : i32
    %c0_i32_1 = arith.constant 0 : i32
    %c0_i32_2 = arith.constant 0 : i32
    return %c0_i32, %c0_i32_0, %c0_i32_1 : i32, i32, i32
  }
  func.func @transform_12(%arg0: i32, %arg1: memref<16xi32, #tpu.memory_space<smem>>, %arg2: memref<16xi32, #tpu.memory_space<smem>>, %arg3: memref<12xi32, #tpu.memory_space<smem>>) -> (i32, i32, i32) {
    %c0_i32 = arith.constant 0 : i32
    %c0_i32_0 = arith.constant 0 : i32
    %c0_i32_1 = arith.constant 0 : i32
    %c0_i32_2 = arith.constant 0 : i32
    return %c0_i32, %c0_i32_0, %c0_i32_1 : i32, i32, i32
  }
  func.func @transform_13(%arg0: i32, %arg1: memref<16xi32, #tpu.memory_space<smem>>, %arg2: memref<16xi32, #tpu.memory_space<smem>>, %arg3: memref<12xi32, #tpu.memory_space<smem>>) -> (i32, i32) {
    %c0_i32 = arith.constant 0 : i32
    %c0_i32_0 = arith.constant 0 : i32
    %c0_i32_1 = arith.constant 0 : i32
    return %c0_i32, %c0_i32_0 : i32, i32
  }
  func.func @transform_14(%arg0: i32, %arg1: memref<16xi32, #tpu.memory_space<smem>>, %arg2: memref<16xi32, #tpu.memory_space<smem>>, %arg3: memref<12xi32, #tpu.memory_space<smem>>) -> (i32, i32) {
    %c0_i32 = arith.constant 0 : i32
    %c0_i32_0 = arith.constant 0 : i32
    %c0_i32_1 = arith.constant 0 : i32
    return %c0_i32, %c0_i32_0 : i32, i32
  }
  func.func @transform_15(%arg0: i32, %arg1: memref<16xi32, #tpu.memory_space<smem>>, %arg2: memref<16xi32, #tpu.memory_space<smem>>, %arg3: memref<12xi32, #tpu.memory_space<smem>>) -> (i32, i32) {
    %c0_i32 = arith.constant 0 : i32
    %c0_i32_0 = arith.constant 0 : i32
    %c0_i32_1 = arith.constant 0 : i32
    return %c0_i32, %c0_i32_0 : i32, i32
  }
  func.func @transform_16(%arg0: i32, %arg1: memref<16xi32, #tpu.memory_space<smem>>, %arg2: memref<16xi32, #tpu.memory_space<smem>>, %arg3: memref<12xi32, #tpu.memory_space<smem>>) -> (i32, i32) {
    %c0_i32 = arith.constant 0 : i32
    %c0_i32_0 = arith.constant 0 : i32
    %c0_i32_1 = arith.constant 0 : i32
    return %c0_i32, %c0_i32_0 : i32, i32
  }
  func.func @transform_17(%arg0: i32, %arg1: memref<16xi32, #tpu.memory_space<smem>>, %arg2: memref<16xi32, #tpu.memory_space<smem>>, %arg3: memref<12xi32, #tpu.memory_space<smem>>) -> (i32, i32) {
    %c0_i32 = arith.constant 0 : i32
    %c0_i32_0 = arith.constant 0 : i32
    %c0_i32_1 = arith.constant 0 : i32
    return %c0_i32, %c0_i32_0 : i32, i32
  }
}

</mosaic_0001>

<bundles_post_ra>
// kernel: tpu_custom_call.1
= control target key start
LH: loop header
LB: loop body
LE: loop exit
PB: predicated region body
PF: predicated region fallthrough
CT: control target
= control target key end

     0   :  { %s5311_s26 = smov [#allocation10]   ;;  %s5312_s27 = smov [#allocation11]   ;;  %s8005_s0 = inlined_call_operand.vmem [shape: s32[16], index: 0, kind: input, shape index: {}]   ;;  %s8006_s3 = inlined_call_operand.vmem [shape: f32[12,16], index: 3, kind: input, shape index: {}]   ;;  %s8007_s4 = inlined_call_operand.vmem [shape: f32[16,8], index: 4, kind: input, shape index: {}]   ;;  %s8008_s5 = inlined_call_operand.vmem [shape: f32[16,32], index: 5, kind: input, shape index: {}]   ;;  %s8009_s6 = inlined_call_operand.hbm [shape: f32[1,32], index: 6, kind: input, shape index: {}]   ;;  %s8010_s7 = inlined_call_operand.hbm [shape: f32[8,32], index: 7, kind: input, shape index: {}]   ;;  %s8011_s8 = inlined_call_operand.hbm [shape: f32[1,32], index: 8, kind: input, shape index: {}]   ;;  %s8012_s9 = inlined_call_operand.hbm [shape: bf16[32,1024], index: 9, kind: input, shape index: {}]   ;;  %s8013_s10 = inlined_call_operand.hbm [shape: f32[1,1024], index: 10, kind: input, shape index: {}]   ;;  %s8014_s11 = inlined_call_operand.hbm [shape: f32[1,32], index: 11, kind: input, shape index: {}]   ;;  %s8015_s12 = inlined_call_operand.hbm [shape: f32[3,32,32], index: 12, kind: input, shape index: {}]   ;;  %s8016_s13 = inlined_call_operand.vmem [shape: f32[3,1,32], index: 13, kind: input, shape index: {}]   ;;  %s8017_s14 = inlined_call_operand.hbm [shape: f32[3,32,32], index: 14, kind: input, shape index: {}]   ;;  %s8018_s15 = inlined_call_operand.vmem [shape: f32[3,1,32], index: 15, kind: input, shape index: {}]   ;;  %s8019_s16 = inlined_call_operand.vmem [shape: f32[32,32], index: 16, kind: input, shape index: {}]   ;;  %s8020_s17 = inlined_call_operand.vmem [shape: f32[1,32], index: 17, kind: input, shape index: {}]   ;;  %s8021_s18 = inlined_call_operand.vmem [shape: f32[32,1], index: 18, kind: input, shape index: {}]   ;;  %s8022_s20 = inlined_call_operand.vmem [shape: f32[2,1], index: 20, kind: output, shape index: {}]   ;;  %s8023_s1 = inlined_call_operand.hbm [shape: s32[16], index: 1, kind: input, shape index: {}]   ;;  %s8024_s19 = inlined_call_operand.<no memory space> [shape: f32[1,1], index: 19, kind: input, shape index: {}]   ;;  %s8025_s2 = inlined_call_operand.hbm [shape: s32[12], index: 2, kind: input, shape index: {}]  }
   0x1   :  { %8197 = sst [smem:[#allocation126_spill]] %s8005_s0  ;;  %s31_s25 = sshll.u32 %s8023_s1, 4  ;;  %v40_v0 = vstv %s8024_s19  ;;  %s32_s25 = int_to_ptr.hbm [resolvable:$true] %s31_s25 }
   0x2   :  { %8198 = sst [smem:[#allocation127_spill]] %s8006_s3  ;;  %41 = vst [vmem:[#allocation13] sm:$0x1] %v40_v0  ;;  %s36_s29 = sshll.u32 %s8025_s2, 4  ;;  %s37_s29 = int_to_ptr.hbm [resolvable:$true] %s36_s29 }
   0x3   :  { %8199 = sst [smem:[#allocation128_spill]] %s8007_s4  ;;  %s5313_s30 = smov [#allocation12]  }
   0x4   :  { %8200 = sst [smem:[#allocation129_spill]] %s8008_s5 }
   0x5   :  { %8201 = sst [smem:[#allocation130_spill]] %s8009_s6 }
   0x6   :  { %8202 = sst [smem:[#allocation131_spill]] %s8019_s16 }
   0x7   :  { %8203 = sst [smem:[#allocation132_spill]] %s8020_s17 }
   0x8   :  { %8204 = sst [smem:[#allocation133_spill]] %s8021_s18 }
   0x9   :  { %8205 = sst [smem:[#allocation134_spill]] %s8022_s20 }
   0xa   :  { %s8206_s23 = sld [smem:[#allocation126_spill]] }
  0x10   :  { %s26_s16 = sshll.u32 %s8206_s23, 4  ;;  %s27_s16 = int_to_ptr.vmem [resolvable:$true] %s26_s16 }
  0x11   :  { %29 = dma.vmem_to_smem %s27_s16, 16, %s5311_s26, [#allocation9] }
  0x12   :  { %34 = dma.hbm_to_smem %s32_s25, 16, %s5312_s27, [#allocation9] }
  0x13   :  { %39 = dma.hbm_to_smem %s37_s29, 16, %s5313_s30, [#allocation9] }
  0x14   :  { %5283 = dma.done.wait [#allocation9], 48 }
  0x15   :  { %5284 = vsyncadd [#allocation9], 4294967248 }
  0x16   :  { %44 = sfence }
  0x17   :  { %45 = vsyncpa [#allocation15], 0 }
  0x18   :  { %46 = vsyncpa [#allocation17], 0 }
  0x19   :  { %47 = vsyncpa [#allocation20], 0 }
  0x1a   :  { %48 = vsyncpa [#allocation23], 0  ;;  %s72_s16 = sshll.u32 %s8010_s7, 4  ;;  %s73_s16 = int_to_ptr.hbm [resolvable:$true] %s72_s16 }
  0x1b   :  { %49 = vsyncpa [#allocation26], 0  ;;  %s5314_s19 = smov [#allocation16]   ;;  %s93_s3 = sshll.u32 %s8012_s9, 4  ;;  %s94_s3 = int_to_ptr.hbm [resolvable:$true] %s93_s3 }
  0x1c   :  { %s74_s0 = sshll.u32 %s5314_s19, 4  ;;  %s5315_s22 = smov [#allocation19]   ;;  %s75_s0 = int_to_ptr.vmem [resolvable:$true] %s74_s0 }
  0x1d   :  { %77 = dma.hbm_to_vmem [thread:$0]  %s73_s16, 128, %s75_s0, [#allocation17]  }
  0x1e   :  { %s95_s23 = sshll.u32 %s5315_s22, 4  ;;  %s5316_s24 = smov 512   ;;  %s96_s23 = int_to_ptr.vmem [resolvable:$true] %s95_s23 }
  0x1f   :  { %s5317_s4 = smov 32   ;;  %s118_s7 = sshll.u32 %s8014_s11, 4  ;;  %s119_s7 = int_to_ptr.hbm [resolvable:$true] %s118_s7 }
  0x20   :  { %101 = dma.hbm_to_vmem [thread:$0]  %s94_s3, 2048, %s96_s23, [#allocation20], %s5316_s24, %s5316_s24, %s5317_s4  }
  0x21   :  { %s5318_s26 = smov [#allocation22]   ;;  %s8207_s29 = sld [smem:[#allocation130_spill]] }
  0x22   :  { %s120_s27 = sshll.u32 %s5318_s26, 4  ;;  %s5319_s30 = smov [#allocation14]   ;;  %s121_s27 = int_to_ptr.vmem [resolvable:$true] %s120_s27 }
  0x23   :  { %123 = dma.hbm_to_vmem [thread:$0]  %s119_s7, 16, %s121_s27, [#allocation23]  }
  0x24   :  { %s63_s1 = sshll.u32 %s5319_s30, 4  ;;  %s83_s19 = sshll.u32 %s8011_s8, 4  ;;  %s64_s1 = int_to_ptr.vmem [resolvable:$true] %s63_s1  ;;  %s84_s19 = int_to_ptr.hbm [resolvable:$true] %s83_s19 }
  0x25   :  { %s107_s2 = sshll.u32 %s8013_s10, 4  ;;  %s5320_s21 = smov [#allocation18]   ;;  %s108_s2 = int_to_ptr.hbm [resolvable:$true] %s107_s2 }
  0x26   :  { %s85_s3 = sshll.u32 %s5320_s21, 4  ;;  %s5321_s22 = smov [#allocation21]   ;;  %s86_s3 = int_to_ptr.vmem [resolvable:$true] %s85_s3 }
  0x27   :  { %s61_s9 = sshll.u32 %s8207_s29, 4  ;;  %s109_s23 = sshll.u32 %s5321_s22, 4  ;;  %s62_s9 = int_to_ptr.hbm [resolvable:$true] %s61_s9  ;;  %s110_s23 = int_to_ptr.vmem [resolvable:$true] %s109_s23 }
  0x28   :  { %66 = dma.hbm_to_vmem [thread:$0]  %s62_s9, 16, %s64_s1, [#allocation15]  }
  0x29   :  { %88 = dma.hbm_to_vmem [thread:$0]  %s84_s19, 16, %s86_s3, [#allocation17]  }
  0x2a   :  { %s128_s25 = sshll.u32 %s8015_s12, 4  ;;  %s5322_s8 = smov [#allocation24]   ;;  %s129_s25 = int_to_ptr.hbm [resolvable:$true] %s128_s25 }
  0x2b   :  { %112 = dma.hbm_to_vmem [thread:$0]  %s108_s2, 128, %s110_s23, [#allocation20]  }
  0x2c   :  { %s130_s5 = sshll.u32 %s5322_s8, 4  ;;  %s143_s10 = sshll.u32 %s8017_s14, 4  ;;  %s131_s5 = int_to_ptr.vmem [resolvable:$true] %s130_s5  ;;  %s144_s10 = int_to_ptr.hbm [resolvable:$true] %s143_s10 }
  0x2d   :  { %s5323_s27 = smov 128   ;;  %s5324_s28 = smov 8  }
  0x2e   :  { %136 = dma.hbm_to_vmem [thread:$0]  %s129_s25, 1536, %s131_s5, [#allocation23], %s5323_s27, %s5323_s27, %s5324_s28  }
  0x2f   :  { %s5325_s6 = smov [#allocation25]  }
  0x30   :  { %s145_s29 = sshll.u32 %s5325_s6, 4  ;;  %s146_s29 = int_to_ptr.vmem [resolvable:$true] %s145_s29 }
  0x31   :  { %151 = dma.hbm_to_vmem [thread:$0]  %s144_s10, 1536, %s146_s29, [#allocation26], %s5323_s27, %s5323_s27, %s5324_s28  }
  0x32   :  { %5285 = dma.done.wait [#allocation15], 16  }
  0x33   :  { %5286 = vsyncadd [#allocation15], 4294967280 }
  0x34   :  { %5287 = dma.done.wait [#allocation17], 144  }
  0x35   :  { %5288 = vsyncadd [#allocation17], 4294967152 }
  0x36   :  { %5289 = dma.done.wait [#allocation20], 2176  }
  0x37   :  { %5290 = vsyncadd [#allocation20], 4294965120 }
  0x38   :  { %5291 = dma.done.wait [#allocation23], 1552  }
  0x39   :  { %5292 = vsyncadd [#allocation23], 4294965744 }
  0x3a   :  { %5293 = dma.done.wait [#allocation26], 1536  }
  0x3b   :  { %5294 = vsyncadd [#allocation26], 4294965760  ;;  %v5469_v1 = vld [vmem:[#allocation24] sm:$0xff]  ;;  %v5471_v2 = vld [vmem:[#allocation24 + $0x8] sm:$0xff]  ;;  %vm980_vm0 = vcmask 64512   ;;  %s8236_s22 = sld [smem:[#allocation128_spill]] }
  0x3c   :  { %8208 = vst [vmem:[#allocation33_spill] sm:$0xff] %v5469_v1  ;;  %v5473_v3 = vld [vmem:[#allocation24 + $0x10] sm:$0xff]  ;;  %v5475_v4 = vld [vmem:[#allocation24 + $0x18] sm:$0xff]  ;;  %v5477_v5 = vld [vmem:[#allocation24 + $0x20] sm:$0xff]  ;;  %s8237_s4 = sld [smem:[#allocation129_spill]]  ;;  %vm941_vm1 = vcmask 130048  }
  0x3d   :  { %8209 = vst [vmem:[#allocation34_spill] sm:$0xff] %v5471_v2  ;;  %v5479_v6 = vld [vmem:[#allocation24 + $0x28] sm:$0xff]  ;;  %v5481_v7 = vld [vmem:[#allocation24 + $0x30] sm:$0xff]  ;;  %v5483_v8 = vld [vmem:[#allocation24 + $0x38] sm:$0xff]  ;;  %s8238_s7 = sld [smem:[#allocation127_spill]]  ;;  %vm8031_vm2 = vcmask 261120  }
  0x3e   :  { %8210 = vst [vmem:[#allocation35_spill] sm:$0xff] %v5473_v3  ;;  %v5485_v9 = vld [vmem:[#allocation24 + $0x40] sm:$0xff]  ;;  %v5487_v10 = vld [vmem:[#allocation24 + $0x48] sm:$0xff]  ;;  %v5489_v11 = vld [vmem:[#allocation24 + $0x50] sm:$0xff]  ;;  %vm8030_vm3 = vcmask 257024   ;;  %v8036_v63 = vmov 0.0  }
  0x3f   :  { %8211 = vst [vmem:[#allocation36_spill] sm:$0xff] %v5477_v5  ;;  %v5491_v12 = vld [vmem:[#allocation24 + $0x58] sm:$0xff]  ;;  %v5493_v13 = vld [vmem:[#allocation25] sm:$0xff]  ;;  %v5495_v14 = vld [vmem:[#allocation25 + $0x8] sm:$0xff]  ;;  %s5899_s6 = sld [smem:[#allocation10]] }
  0x40   :  { %8212 = vst [vmem:[#allocation37_spill] sm:$0xff] %v5479_v6  ;;  %v5497_v15 = vld [vmem:[#allocation25 + $0x10] sm:$0xff]  ;;  %v5499_v16 = vld [vmem:[#allocation25 + $0x18] sm:$0xff]  ;;  %v5501_v17 = vld [vmem:[#allocation25 + $0x20] sm:$0xff]  ;;  %s5909_s29 = sld [smem:[#allocation10 + $0x1]] }
  0x41   :  { %8213 = vst [vmem:[#allocation38_spill] sm:$0xff] %v5481_v7  ;;  %v5503_v18 = vld [vmem:[#allocation25 + $0x28] sm:$0xff]  ;;  %v5505_v19 = vld [vmem:[#allocation25 + $0x30] sm:$0xff]  ;;  %v5507_v20 = vld [vmem:[#allocation25 + $0x38] sm:$0xff]  ;;  %s5912_s12 = sld [smem:[#allocation10 + $0x2]] }
  0x42   :  { %8214 = vst [vmem:[#allocation39_spill] sm:$0xff] %v5483_v8  ;;  %v5509_v21 = vld [vmem:[#allocation25 + $0x40] sm:$0xff]  ;;  %v5511_v22 = vld [vmem:[#allocation25 + $0x48] sm:$0xff]  ;;  %v5513_v23 = vld [vmem:[#allocation25 + $0x50] sm:$0xff]  ;;  %s5928_s9 = sld [smem:[#allocation10 + $0x3]] }
  0x43   :  { %8215 = vst [vmem:[#allocation40_spill] sm:$0xff] %v5485_v9  ;;  %v5515_v24 = vld [vmem:[#allocation25 + $0x58] sm:$0xff]  ;;  %v5520_v25 = vld [vmem:[%s8016_s13] sm:$0x1]  ;;  %v975_v32 = vld [vmem:[#allocation16] sm:$0xff]  ;;  %s5941_s30 = sld [smem:[#allocation10 + $0x4]] }
  0x44   :  { %8216 = vst [vmem:[#allocation41_spill] sm:$0xff] %v5487_v10  ;;  %v5525_v26 = vld [vmem:[%s8016_s13 + $0x1] sm:$0x1]  ;;  %v5530_v27 = vld [vmem:[%s8016_s13 + $0x2] sm:$0x1]  ;;  %1002 = vmatpush.msra.mxu1 %v975_v32  ;;  %v936_v34 = vld [vmem:[%s8237_s4 + $0x8] sm:$0xff] }
  0x45   :  { %8217 = vst [vmem:[#allocation42_spill] sm:$0xff] %v5489_v11  ;;  %v5535_v28 = vld [vmem:[%s8018_s15] sm:$0x1]  ;;  %v5540_v29 = vld [vmem:[%s8018_s15 + $0x1] sm:$0x1]  ;;  %962 = vmatpush.msra.mxu0 %v936_v34  ;;  %v974_v37 = vld [vmem:[%s8236_s22 + $0x8] sm:$0xff] }
  0x46   :  { %8218 = vst [vmem:[#allocation43_spill] sm:$0xff] %v5491_v12  ;;  %v5545_v30 = vld [vmem:[%s8018_s15 + $0x2] sm:$0x1]  ;;  %v5547_v31 = vld [vmem:[#allocation22] sm:$0x1]  ;;  %s1431_s14 = sshra.s32 %s5899_s6, 3 }
  0x47   :  { %8219 = vst [vmem:[#allocation44_spill] sm:$0xff] %v5493_v13  ;;  %v973_v33 = vld [vmem:[%s8236_s22] sm:$0xff]  ;;  %v934_v38 = vld [vmem:[%s8238_s7 + $0x8] sm:$0xf]  ;;  %v4141_v0 = vld [vmem:[#allocation19 + $0x50] sm:$0xf] }
  0x48   :  { %8220 = vst [vmem:[#allocation45_spill] sm:$0xff] %v5495_v14  ;;  %v935_v35 = vld [vmem:[%s8237_s4] sm:$0xff]  ;;  %4089 = vmatmul.msk.f32.vlgmr.msra.gmra.mxu1 %vm980_vm0, %v973_v33  ;;  %v4871_v41 = vld [vmem:[#allocation19 + $0x4c] sm:$0xf]  ;;  %v4876_v32 = vld [vmem:[#allocation19 + $0x6c] sm:$0xf0] }
  0x49   :  { %8221 = vst [vmem:[#allocation46_spill] sm:$0xff] %v5497_v15  ;;  %v933_v36 = vld [vmem:[%s8238_s7] sm:$0xff]  ;;  %963 = vmatpush.msra.mxu0 %v935_v35  ;;  %v4135_v43 = vld [vmem:[#allocation19 + $0x68] sm:$0xf0]  ;;  %v4142_v33 = vor.u32 %v4876_v32, %v4141_v0  ;;  %v4872_v34 = vld [vmem:[#allocation19 + $0x54] sm:$0xf] }
  0x4a   :  { %8222 = vst [vmem:[#allocation47_spill] sm:$0xff] %v5501_v17  ;;  %4087 = vmatmul.msk.f32.vlgmr.msra.gmra.mxu0 %vm941_vm1, %v933_v36  ;;  %v4133_v39 = vld [vmem:[#allocation19 + $0x48] sm:$0xf]  ;;  %v4138_v44 = vor.u32 %v4871_v41, %v4135_v43  ;;  %v4125_v45 = vld [vmem:[#allocation19 + $0x40] sm:$0xf]  ;;  %s1434_s1 = sand.u32 7, %s5899_s6 }
  0x4b   :  { %8223 = vst [vmem:[#allocation48_spill] sm:$0xff] %v5503_v18  ;;  %v4875_v40 = vld [vmem:[#allocation19 + $0x64] sm:$0xf0]  ;;  %v4874_v46 = vld [vmem:[#allocation19 + $0x5c] sm:$0xf0]  ;;  %s4878_s17 = sshll.u32 %s1431_s14, 6 }
  0x4c   :  { %8224 = vst [vmem:[#allocation49_spill] sm:$0xff] %v5505_v19  ;;  %v4134_v42 = vor.u32 %v4875_v40, %v4133_v39  ;;  %v4870_v47 = vld [vmem:[#allocation19 + $0x44] sm:$0xf]  ;;  %v4126_v48 = vor.u32 %v4874_v46, %v4125_v45  ;;  %1179 = vmatpush.bf16.msrb.mxu0 %v4138_v44  ;;  %v4093_v51 = vld [vmem:[#allocation19] sm:$0xf]  ;;  %s1449_s16 = sshra.s32 %s5909_s29, 3  ;;  %s5976_s0 = sadd.s32 %s4878_s17, %s1434_s1 }
  0x4d   :  { %8225 = vst [vmem:[#allocation50_spill] sm:$0xff] %v5507_v20  ;;  %v4127_v49 = vld [vmem:[#allocation19 + $0x60] sm:$0xf0]  ;;  %v4866_v52 = vld [vmem:[#allocation19 + $0x1c] sm:$0xf0]  ;;  %s5965_s19 = sld [smem:[#allocation10 + $0x5]] }
  0x4e   :  { %8226 = vst [vmem:[#allocation51_spill] sm:$0xff] %v5509_v21  ;;  %1165 = vmatpush.bf16.msrb.mxu1 %v4134_v42  ;;  %v4130_v50 = vor.u32 %v4870_v47, %v4127_v49  ;;  %1137 = vmatpush.bf16.msra.mxu2 %v4126_v48  ;;  %v4862_v53 = vld [vmem:[#allocation19 + $0x4] sm:$0xf]  ;;  %v4094_v54 = vor.u32 %v4866_v52, %v4093_v51  ;;  %v4101_v56 = vld [vmem:[#allocation19 + $0x8] sm:$0xf]  ;;  %s1469_s11 = sshra.s32 %s5912_s12, 3 }
  0x4f   :  { %8227 = vst [vmem:[#allocation52_spill] sm:$0xff] %v5511_v22  ;;  %v4095_v55 = vld [vmem:[#allocation19 + $0x20] sm:$0xf0]  ;;  %v4867_v57 = vld [vmem:[#allocation19 + $0x24] sm:$0xf0]  ;;  %s1452_s2 = sand.u32 7, %s5909_s29 }
  0x50   :  { %8228 = vst [vmem:[#allocation53_spill] sm:$0xff] %v5513_v23  ;;  %4090 = vmatmul.msk.f32.gmra.mxu1 %vm980_vm0, %v974_v37  ;;  %1151 = vmatpush.bf16.msra.mxu3 %v4130_v50  ;;  %v4098_v58 = vor.u32 %v4862_v53, %v4095_v55  ;;  %v4102_v59 = vor.u32 %v4867_v57, %v4101_v56  ;;  %v4863_v60 = vld [vmem:[#allocation19 + $0xc] sm:$0xf]  ;;  %v4143_v35 = vld [vmem:[#allocation19 + $0x70] sm:$0xf0]  ;;  %v195_v55 = vlaneseq  ;;  %s4879_s21 = sshll.u32 %s1449_s16, 6 }
  0x51   :  { %8229 = vst [vmem:[#allocation54_spill] sm:$0xff] %v5515_v24  ;;  %v4103_v61 = vld [vmem:[#allocation19 + $0x28] sm:$0xf0]  ;;  %v4146_v36 = vor.u32 %v4872_v34, %v4143_v35  ;;  %v4149_v37 = vld [vmem:[#allocation19 + $0x58] sm:$0xf]  ;;  %s1472_s13 = sand.u32 7, %s5912_s12  ;;  %s6005_s23 = sadd.s32 %s4879_s21, %s1452_s2 }
  0x52   :  { %8230 = vst [vmem:[#allocation55_spill] sm:$0xff] %v5520_v25  ;;  %4088 = vmatmul.msk.f32.gmra.mxu0 %vm941_vm1, %v934_v38  ;;  %1138 = vmatpush.bf16.msra.mxu2 %v4094_v54  ;;  %v4106_v62 = vor.u32 %v4863_v60, %v4103_v61  ;;  %v4877_v38 = vld [vmem:[#allocation19 + $0x74] sm:$0xf0]  ;;  %v4873_v39 = vld [vmem:[#allocation19 + $0x5c] sm:$0xf]  ;;  %v5573_v56 = vshrl.u32 %v195_v55, 7 }
  0x53   :  { %8231 = vst [vmem:[#allocation56_spill] sm:$0xff] %v5525_v26  ;;  %1166 = vmatpush.bf16.msrb.mxu1 %v4102_v59  ;;  %v4150_v40 = vor.u32 %v4877_v38, %v4149_v37  ;;  %v4151_v41 = vld [vmem:[#allocation19 + $0x78] sm:$0xf0]  ;;  %v4109_v42 = vld [vmem:[#allocation19 + $0x10] sm:$0xf]  ;;  %v5581_v60 = vand.u32 127, %v195_v55 }
  0x54   :  { %8232 = vst [vmem:[#allocation57_spill] sm:$0xff] %v5530_v27  ;;  %1152 = vmatpush.bf16.msra.mxu3 %v4098_v58  ;;  %1180 = vmatpush.bf16.msrb.mxu0 %v4106_v62  ;;  %v4868_v43 = vld [vmem:[#allocation19 + $0x2c] sm:$0xf0]  ;;  %v4154_v44 = vor.u32 %v4873_v39, %v4151_v41  ;;  %v4864_v46 = vld [vmem:[#allocation19 + $0x14] sm:$0xf]  ;;  %v5576_v58 = vadd.s32 16, %v5573_v56 }
  0x55   :  { %8233 = vst [vmem:[#allocation58_spill] sm:$0xff] %v5535_v28  ;;  %v4110_v45 = vor.u32 %v4868_v43, %v4109_v42  ;;  %v4111_v47 = vld [vmem:[#allocation19 + $0x30] sm:$0xf0]  ;;  %v4117_v49 = vld [vmem:[#allocation19 + $0x18] sm:$0xf]  ;;  %v5579_v59 = vadd.s32 24, %v5573_v56 }
  0x56   :  { %8234 = vst [vmem:[#allocation59_spill] sm:$0xff] %v5540_v29  ;;  %1193 = vmatpush.bf16.msrb.mxu2 %v4142_v33  ;;  %v4114_v48 = vor.u32 %v4864_v46, %v4111_v47  ;;  %v4869_v50 = vld [vmem:[#allocation19 + $0x34] sm:$0xf0]  ;;  %v4865_v51 = vld [vmem:[#allocation19 + $0x1c] sm:$0xf]  ;;  %v5584_v61 = vmul.u32 32, %v5576_v58 }
  0x57   :  { %8235 = vst [vmem:[#allocation60_spill] sm:$0xff] %v5545_v30  ;;  %1221 = vmatpush.bf16.msra.mxu1 %v4150_v40  ;;  %v4118_v52 = vor.u32 %v4869_v50, %v4117_v49  ;;  %v4119_v53 = vld [vmem:[#allocation19 + $0x38] sm:$0xf0]  ;;  %v5587_v62 = vmul.u32 32, %v5579_v59  ;;  %v5590_v32 = vadd.s32 128, %v5581_v60  ;;  %v5603_v35 = vadd.s32 8, %v5573_v56 }
  0x58   :  { %1886 = vst.msk [vmem:[#allocation7] sm:$0xff] %vm8031_vm2, %v8036_v63  ;;  %1207 = vmatpush.bf16.msrb.mxu3 %v4146_v36  ;;  %1235 = vmatpush.bf16.msra.mxu0 %v4154_v44  ;;  %v4122_v54 = vor.u32 %v4865_v51, %v4119_v53  ;;  %v4975_v0 = vld [vmem:[#allocation18] ss:$0 sm:$0xff]  ;;  %vm229_vm4 = vcmp.ge.s32.totalorder %v5581_v60, %v5584_v61  ;;  %v5595_v33 = vadd.s32 32, %v5584_v61  ;;  %v5608_v36 = vadd.s32 256, %v5581_v60  ;;  %s4880_s3 = sshll.u32 %s1469_s11, 6 }
  0x59   :  { %1888 = vst.msk [vmem:[#allocation7 + $0x8] sm:$0xf] %vm8030_vm3, %v8036_v63  ;;  %vm237_vm5 = vcmp.ge.s32.totalorder %v5581_v60, %v5587_v62  ;;  %v5600_v34 = vadd.s32 32, %v5587_v62  ;;  %vm230_vm9 = vcmp.ge.s32.totalorder %v5590_v32, %v5584_v61  ;;  %vm238_vm12 = vcmp.ge.s32.totalorder %v5590_v32, %v5587_v62  ;;  %s1489_s22 = sshra.s32 %s5928_s9, 3  ;;  %s6014_s24 = sadd.s32 %s4880_s3, %s1472_s13 }
  0x5a   :  { %1194 = vmatpush.bf16.msrb.mxu2 %v4110_v45  ;;  %vm265_vm6 = vcmp.lt.s32.totalorder %v5581_v60, %v5595_v33  ;;  %vm266_vm10 = vcmp.lt.s32.totalorder %v5590_v32, %v5595_v33  ;;  %v5621_v39 = vmul.u32 32, %v5573_v56  ;;  %v8239_v41 = vmov 0  ;;  %s1509_s4 = sshra.s32 %s5941_s30, 3  ;;  %s1492_s25 = sand.u32 7, %s5928_s9 }
  0x5b   :  { %1222 = vmatpush.bf16.msra.mxu1 %v4118_v52  ;;  %vm273_vm7 = vcmp.lt.s32.totalorder %v5581_v60, %v5600_v34  ;;  %vm297_vm8 = vmand %vm229_vm4, %vm265_vm6  ;;  %vm274_vm13 = vcmp.lt.s32.totalorder %v5590_v32, %v5600_v34  ;;  %v5628_v42 = vadd.s32 384, %v5581_v60  ;;  %v5631_v43 = vmul.u32 32, %v5603_v35  ;;  %s4881_s8 = sshll.u32 %s1489_s22, 6  ;;  %s1529_s15 = sshra.s32 %s5965_s19, 3 }
  0x5c   :  { %1208 = vmatpush.bf16.msrb.mxu3 %v4114_v48  ;;  %1236 = vmatpush.bf16.msra.mxu0 %v4122_v54  ;;  %vm305_vm11 = vmand %vm237_vm5, %vm273_vm7  ;;  %vm231_vm0 = vcmp.ge.s32.totalorder %v5608_v36, %v5584_v61  ;;  %vm267_vm1 = vcmp.lt.s32.totalorder %v5608_v36, %v5595_v33  ;;  %vm239_vm5 = vcmp.ge.s32.totalorder %v5608_v36, %v5587_v62  ;;  %v8242_v46 = vmov 0  ;;  %s6028_s5 = sld [smem:[#allocation10 + $0x6]]  ;;  %s1512_s7 = sand.u32 7, %s5941_s30 }
  0x5d   :  { %vm5623_vm14 = vmpackc.low %vm305_vm11, %vm297_vm8  ;;  %vm275_vm6 = vcmp.lt.s32.totalorder %v5608_v36, %v5600_v34  ;;  %v5646_v47 = vadd.s32 32, %v5621_v39  ;;  %v5655_v49 = vadd.s32 32, %v5631_v43  ;;  %v8245_v50 = vmov 0  ;;  %s4882_s26 = sshll.u32 %s1509_s4, 6  ;;  %s6038_s10 = sadd.s32 %s4881_s8, %s1492_s25 }
  0x5e   :  { %v8240_v41 = vsel %vm5623_vm14, 4294967295, %v8239_v41  ;;  %vm298_vm15 = vmand %vm230_vm9, %vm266_vm10  ;;  %vm232_vm9 = vcmp.ge.s32.totalorder %v5628_v42, %v5584_v61  ;;  %vm268_vm10 = vcmp.lt.s32.totalorder %v5628_v42, %v5595_v33  ;;  %v8047_v51 = vmov 1.0|1.0   ;;  %s6040_s27 = sld [smem:[#allocation10 + $0x7]]  ;;  %s1532_s28 = sand.u32 7, %s5965_s19 }
  0x5f   :  { %8241 = vst [vmem:[#allocation61_spill] sm:$0xff] %v8240_v41  ;;  %vm306_vm4 = vmand %vm238_vm12, %vm274_vm13  ;;  %vm240_vm12 = vcmp.ge.s32.totalorder %v5628_v42, %v5587_v62  ;;  %vm276_vm13 = vcmp.lt.s32.totalorder %v5628_v42, %v5600_v34  ;;  %v8248_v52 = vmov 0  ;;  %vm222_vm3 = vcmp.ge.s32.totalorder %v5590_v32, %v5631_v43  ;;  %s4883_s6 = sshll.u32 %s1529_s15, 6  ;;  %s6047_s29 = sadd.s32 %s4882_s26, %s1512_s7 }
  0x60   :  { %vm5641_vm7 = vmpackc.low %vm306_vm4, %vm298_vm15  ;;  %vm249_vm4 = vcmp.lt.s32.totalorder %v5581_v60, %v5646_v47  ;;  %v8251_v53 = vmov 0  ;;  %v8254_v55 = vmov 0  ;;  %v8273_v27 = vmov 0  ;;  %s6049_s12 = sld [smem:[#allocation10 + $0x8]]  ;;  %s6053_s9 = sadd.s32 %s4883_s6, %s1532_s28 }
  0x61   :  { %v8243_v46 = vsel %vm5641_vm7, 4294967295, %v8242_v46  ;;  %vm299_vm8 = vmand %vm231_vm0, %vm267_vm1  ;;  %vm213_vm1 = vcmp.ge.s32.totalorder %v5581_v60, %v5621_v39  ;;  %s6051_s14 = sld [smem:[#allocation10 + $0x9]]  ;;  %v8384_v24 = vmov 0 }
  0x62   :  { %8244 = vst [vmem:[#allocation62_spill] sm:$0xff] %v8243_v46  ;;  %vm307_vm11 = vmand %vm239_vm5, %vm275_vm6  ;;  %vm221_vm6 = vcmp.ge.s32.totalorder %v5581_v60, %v5631_v43  ;;  %s1549_s30 = sshra.s32 %s6028_s5, 3  ;;  %s6074_s17 = sld [smem:[#allocation10 + $0xa]] }
  0x63   :  { %vm5665_vm15 = vmpackc.low %vm307_vm11, %vm299_vm8  ;;  %vm257_vm8 = vcmp.lt.s32.totalorder %v5581_v60, %v5655_v49  ;;  %vm214_vm11 = vcmp.ge.s32.totalorder %v5590_v32, %v5621_v39  ;;  %s1552_s16 = sand.u32 7, %s6028_s5  ;;  %s4884_s19 = sshll.u32 %s1549_s30, 6 }
  0x64   :  { %v8246_v50 = vsel %vm5665_vm15, 4294967295, %v8245_v50  ;;  %vm300_vm0 = vmand %vm232_vm9, %vm268_vm10  ;;  %s1569_s1 = sshra.s32 %s6040_s27, 3  ;;  %s6088_s2 = sld [smem:[#allocation10 + $0xb]] }
  0x65   :  { %8247 = vst [vmem:[#allocation63_spill] sm:$0xff] %v8246_v50  ;;  %vm308_vm5 = vmand %vm240_vm12, %vm276_vm13  ;;  %vm250_vm12 = vcmp.lt.s32.totalorder %v5590_v32, %v5646_v47  ;;  %s1572_s21 = sand.u32 7, %s6040_s27  ;;  %s4885_s13 = sshll.u32 %s1569_s1, 6 }
  0x66   :  { %vm5690_vm9 = vmpackc.low %vm308_vm5, %vm300_vm0  ;;  %vm258_vm0 = vcmp.lt.s32.totalorder %v5590_v32, %v5655_v49  ;;  %v5743_v32 = vadd.s32 640, %v5581_v60  ;;  %s1589_s11 = sshra.s32 %s6049_s12, 3  ;;  %s6107_s3 = sadd.s32 %s4884_s19, %s1552_s16 }
  0x67   :  { %v8249_v52 = vsel %vm5690_vm9, 4294967295, %v8248_v52  ;;  %vm281_vm10 = vmand %vm213_vm1, %vm249_vm4  ;;  %vm215_vm4 = vcmp.ge.s32.totalorder %v5608_v36, %v5621_v39  ;;  %s1609_s22 = sshra.s32 %s6051_s14, 3  ;;  %s1592_s4 = sand.u32 7, %s6049_s12 }
  0x68   :  { %8250 = vst [vmem:[#allocation64_spill] sm:$0xff] %v8249_v52  ;;  %vm289_vm13 = vmand %vm221_vm6, %vm257_vm8  ;;  %vm251_vm6 = vcmp.lt.s32.totalorder %v5608_v36, %v5646_v47  ;;  %s4886_s25 = sshll.u32 %s1589_s11, 6  ;;  %s6127_s8 = sadd.s32 %s4885_s13, %s1572_s21 }
  0x69   :  { %vm5705_vm5 = vmpackc.low %vm289_vm13, %vm281_vm10  ;;  %vm259_vm10 = vcmp.lt.s32.totalorder %v5608_v36, %v5655_v49  ;;  %s1612_s15 = sand.u32 7, %s6051_s14  ;;  %s4887_s5 = sshll.u32 %s1609_s22, 6 }
  0x6a   :  { %v8252_v53 = vsel %vm5705_vm5, 4294967295, %v8251_v53  ;;  %vm282_vm1 = vmand %vm214_vm11, %vm250_vm12  ;;  %vm252_vm12 = vcmp.lt.s32.totalorder %v5628_v42, %v5646_v47  ;;  %s6130_s7 = sld [smem:[#allocation10 + $0xc]]  ;;  %s6132_s26 = sadd.s32 %s4886_s25, %s1592_s4 }
  0x6b   :  { %8253 = vst [vmem:[#allocation65_spill] sm:$0xff] %v8252_v53  ;;  %vm290_vm8 = vmand %vm222_vm3, %vm258_vm0  ;;  %vm216_vm3 = vcmp.ge.s32.totalorder %v5628_v42, %v5621_v39  ;;  %s6134_s27 = sld [smem:[#allocation10 + $0xd]]  ;;  %s6140_s28 = sadd.s32 %s4887_s5, %s1612_s15 }
  0x6c   :  { %vm5720_vm13 = vmpackc.low %vm290_vm8, %vm282_vm1  ;;  %vm224_vm1 = vcmp.ge.s32.totalorder %v5628_v42, %v5631_v43  ;;  %vm260_vm8 = vcmp.lt.s32.totalorder %v5628_v42, %v5655_v49  ;;  %v208_v42 = vadd.s32 896, %v5581_v60  ;;  %s6150_s6 = sld [smem:[#allocation10 + $0xe]]  ;;  %s1629_s12 = sshra.s32 %s6074_s17, 3 }
  0x6d   :  { %v8255_v55 = vsel %vm5720_vm13, 4294967295, %v8254_v55  ;;  %vm283_vm11 = vmand %vm215_vm4, %vm251_vm6  ;;  %s6173_s14 = sld [smem:[#allocation10 + $0xf]]  ;;  %s1632_s30 = sand.u32 7, %s6074_s17 }
  0x6e   :  { %8256 = vst [vmem:[#allocation66_spill] sm:$0xff] %v8255_v55  ;;  %vm284_vm4 = vmand %vm216_vm3, %vm252_vm12  ;;  %vm8263_vm3 = vcmask 261120   ;;  %s1649_s1 = sshra.s32 %s6088_s2, 3  ;;  %s6186_s16 = sshll.u32 %s1629_s12, 6 }
  0x6f   :  { %vm8264_vm12 = vmmov %vm8263_vm3  ;;  %s1652_s11 = sand.u32 7, %s6088_s2  ;;  %s6206_s13 = sshll.u32 %s1649_s1, 6 }
  0x70   :  { %s1669_s19 = sshra.s32 %s6130_s7, 3  ;;  %s1672_s22 = sand.u32 7, %s6130_s7 }
  0x71   :  { %s1689_s21 = sshra.s32 %s6134_s27, 3  ;;  %s6218_s4 = sshll.u32 %s1669_s19, 6 }
  0x72   :  { %s1692_s25 = sand.u32 7, %s6134_s27  ;;  %s4891_s15 = sshll.u32 %s1689_s21, 6 }
  0x73   :  { %s1709_s5 = sshra.s32 %s6150_s6, 3  ;;  %s6241_s12 = sadd.s32 %s6186_s16, %s1632_s30 }
  0x74   :  { %s6250_s1 = sadd.s32 %s6206_s13, %s1652_s11  ;;  %s1729_s19 = sshra.s32 %s6173_s14, 3 }
  0x75   :  { %s6261_s17 = sadd.s32 %s6218_s4, %s1672_s22  ;;  %s6265_s30 = sadd.s32 %s4891_s15, %s1692_s25 }
  0x76   :  { %s1712_s2 = sand.u32 7, %s6150_s6  ;;  %s4892_s16 = sshll.u32 %s1709_s5, 6 }
  0x77   :  { %s1732_s7 = sand.u32 7, %s6173_s14  ;;  %s4893_s27 = sshll.u32 %s1729_s19, 6 }
  0x78   :  { %s6296_s6 = sadd.s32 %s4892_s16, %s1712_s2  ;;  %s6298_s14 = sadd.s32 %s4893_s27, %s1732_s7 }
  0x79   :  { %s1438_s11 = scalar_lea.vmem [#allocation3], %s5976_s0  ;;  %s1456_s21 = scalar_lea.vmem [#allocation3], %s6005_s23 }
  0x7a   :  { %s1476_s0 = scalar_lea.vmem [#allocation3], %s6014_s24  ;;  %s1496_s23 = scalar_lea.vmem [#allocation3], %s6038_s10 }
  0x7b   :  { %s1516_s13 = scalar_lea.vmem [#allocation3], %s6047_s29  ;;  %s1536_s24 = scalar_lea.vmem [#allocation3], %s6053_s9 }
  0x7c   :  { %s1556_s10 = scalar_lea.vmem [#allocation3], %s6107_s3  ;;  %s1576_s29 = scalar_lea.vmem [#allocation3], %s6127_s8 }
  0x7d   :  { %s1596_s9 = scalar_lea.vmem [#allocation3], %s6132_s26  ;;  %s1616_s3 = scalar_lea.vmem [#allocation3], %s6140_s28 }
  0x7e   :  { %s1636_s8 = scalar_lea.vmem [#allocation3], %s6241_s12  ;;  %s1656_s26 = scalar_lea.vmem [#allocation3], %s6250_s1 }
  0x7f   :  { %s1676_s28 = scalar_lea.vmem [#allocation3], %s6261_s17  ;;  %s1696_s22 = scalar_lea.vmem [#allocation3], %s6265_s30 }
  0x80   :  { %s1716_s4 = scalar_lea.vmem [#allocation3], %s6296_s6  ;;  %s1736_s25 = scalar_lea.vmem [#allocation3], %s6298_s14 }
  0x81   :  { %s5295_s15 = smov 0  }
  0xc5   :  { %v1004_v57 = vpop.f32.mrf.mxu1 }
  0xc6   :  { %v1005_v37 = vadd.f32 %v4975_v0, %v1004_v57  ;;  %v5725_v57 = vadd.s32 512, %v5581_v60 }
  0xc7   :  { %v965_v54 = vpop.f32.mrf.mxu0 }
  0xc8   :  { %v1010_v44 = vmax.f32 %v1005_v37, 0.0  ;;  %vm269_vm6 = vcmp.lt.s32.totalorder %v5725_v57, %v5595_v33  ;;  %v5761_v37 = vadd.s32 768, %v5581_v60 }
  0xcd   :  { %v1007_v38 = vpop.f32.mrf.mxu1 }
  0xce   :  { %v1008_v40 = vadd.f32 %v4975_v0, %v1007_v38  ;;  %v8257_v0 = vmov 0  ;;  %v4976_v38 = vld [vmem:[#allocation14] ss:$0 sm:$0xff] }
  0xd0   :  { %v1011_v45 = vmax.f32 %v1008_v40, 0.0  ;;  %v8267_v40 = vmov 0 }
  0xd2   :  { %v5648_v48 = vpack.c.bf16 %v1011_v45, %v1010_v44  ;;  %v968_v44 = vpop.f32.mrf.mxu0  ;;  %v8270_v45 = vmov 0 }
  0xd3   :  { %v969_v63 = vadd.f32 %v4976_v38, %v968_v44 }
  0xd4   :  { %4155 = vmatmul.msk.bf16.vlgmr.msra.gmra.mxu2 %vm8031_vm2, %v5648_v48  ;;  %4156 = vmatmul.msk.bf16.vlgmr.msra.gmra.mxu3 %vm8031_vm2, %v5648_v48 }
  0xd5   :  { %4157 = vmatmul.msk.bf16.vlgmr.msrb.gmra.mxu1 %vm8031_vm2, %v5648_v48  ;;  %4158 = vmatmul.msk.bf16.vlgmr.msrb.gmra.mxu0 %vm8031_vm2, %v5648_v48  ;;  %vm223_vm2 = vcmp.ge.s32.totalorder %v5608_v36, %v5631_v43  ;;  %v8260_v36 = vmov 0 }
  0xd6   :  { %4168 = vmatpush.bf16.msk.msra.mxu2 %vm5623_vm14, %v8047_v51  ;;  %4173 = vmatpush.bf16.msk.msra.mxu3 %vm5641_vm7, %v8047_v51  ;;  %vm291_vm0 = vmand %vm223_vm2, %vm259_vm10  ;;  %vm233_vm2 = vcmp.ge.s32.totalorder %v5725_v57, %v5584_v61 }
  0xd7   :  { %4178 = vmatpush.bf16.msk.msrb.mxu1 %vm5665_vm15, %v8047_v51  ;;  %4183 = vmatpush.bf16.msk.msrb.mxu0 %vm5690_vm9, %v8047_v51  ;;  %vm5738_vm9 = vmpackc.low %vm291_vm0, %vm283_vm11  ;;  %vm241_vm11 = vcmp.ge.s32.totalorder %v5725_v57, %v5587_v62  ;;  %vm277_vm0 = vcmp.lt.s32.totalorder %v5725_v57, %v5600_v34 }
  0xd8   :  { %v8258_v0 = vsel %vm5738_vm9, 4294967295, %v8257_v0  ;;  %vm292_vm10 = vmand %vm224_vm1, %vm260_vm8  ;;  %vm234_vm8 = vcmp.ge.s32.totalorder %v5743_v32, %v5584_v61 }
  0xd9   :  { %8259 = vst [vmem:[#allocation67_spill] sm:$0xff] %v8258_v0  ;;  %vm301_vm1 = vmand %vm233_vm2, %vm269_vm6 }
  0xda   :  { %4170 = vmatpush.bf16.msk.msra.mxu2 %vm5705_vm5, %v8047_v51  ;;  %4175 = vmatpush.bf16.msk.msra.mxu3 %vm5720_vm13, %v8047_v51  ;;  %vm5756_vm13 = vmpackc.low %vm292_vm10, %vm284_vm4 }
  0xdb   :  { %4180 = vmatpush.bf16.msk.msrb.mxu1 %vm5738_vm9, %v8047_v51  ;;  %v8261_v36 = vsel %vm5756_vm13, 4294967295, %v8260_v36  ;;  %vm270_vm9 = vcmp.lt.s32.totalorder %v5743_v32, %v5595_v33  ;;  %vm8265_vm4 = vmmov %vm8263_vm3  ;;  %4185 = vmatpush.bf16.msk.msrb.mxu0 %vm5756_vm13, %v8047_v51  ;;  %vm244_vm13 = vcmp.ge.s32.totalorder %v208_v42, %v5587_v62 }
  0xdc   :  { %8262 = vst [vmem:[#allocation68_spill] sm:$0xff] %v8261_v36  ;;  %vm8266_vm10 = vmmov %vm8263_vm3  ;;  %v8301_v36 = vmov 0 }
  0xdd   :  { %vm309_vm5 = vmand %vm241_vm11, %vm277_vm0  ;;  %vm235_vm11 = vcmp.ge.s32.totalorder %v5761_v37, %v5584_v61  ;;  %vm271_vm0 = vcmp.lt.s32.totalorder %v5761_v37, %v5595_v33 }
  0xde   :  { %vm5782_vm2 = vmpackc.low %vm309_vm5, %vm301_vm1  ;;  %vm243_vm5 = vcmp.ge.s32.totalorder %v5761_v37, %v5587_v62  ;;  %vm279_vm1 = vcmp.lt.s32.totalorder %v5761_v37, %v5600_v34 }
  0xdf   :  { %v8268_v40 = vsel %vm5782_vm2, 4294967295, %v8267_v40  ;;  %vm302_vm6 = vmand %vm234_vm8, %vm270_vm9  ;;  %vm236_vm8 = vcmp.ge.s32.totalorder %v208_v42, %v5584_v61 }
  0xe0   :  { %8269 = vst [vmem:[#allocation69_spill] sm:$0xff] %v8268_v40  ;;  %vm303_vm9 = vmand %vm235_vm11, %vm271_vm0  ;;  %vm217_vm11 = vcmp.ge.s32.totalorder %v5725_v57, %v5621_v39  ;;  %vm253_vm0 = vcmp.lt.s32.totalorder %v5725_v57, %v5646_v47 }
  0xe4   :  { %4159 = vmatmul.msk.bf16.vlgmr.msrb.gmra.mxu2 %vm8263_vm3, %v5648_v48  ;;  %4160 = vmatmul.msk.bf16.vlgmr.msrb.gmra.mxu3 %vm8264_vm12, %v5648_v48  ;;  %vm242_vm3 = vcmp.ge.s32.totalorder %v5743_v32, %v5587_v62  ;;  %vm278_vm12 = vcmp.lt.s32.totalorder %v5743_v32, %v5600_v34  ;;  %v5822_v62 = vmax.f32 %v969_v63, 0.0 }
  0xe5   :  { %4161 = vmatmul.msk.bf16.vlgmr.msra.gmra.mxu1 %vm8265_vm4, %v5648_v48  ;;  %4162 = vmatmul.msk.bf16.vlgmr.msra.gmra.mxu0 %vm8266_vm10, %v5648_v48  ;;  %vm310_vm4 = vmand %vm242_vm3, %vm278_vm12  ;;  %v966_v48 = vadd.f32 %v4976_v38, %v965_v54  ;;  %vm272_vm3 = vcmp.lt.s32.totalorder %v208_v42, %v5595_v33  ;;  %v8278_v33 = vmov 0  ;;  %v8288_v54 = vmov 0 }
  0xe6   :  { %4188 = vmatpush.bf16.msk.msrb.mxu2 %vm5782_vm2, %v8047_v51  ;;  %vm5798_vm10 = vmpackc.low %vm310_vm4, %vm302_vm6  ;;  %vm280_vm2 = vcmp.lt.s32.totalorder %v208_v42, %v5600_v34  ;;  %8277 = vst [vmem:[#allocation73_spill] sm:$0xff] %v5822_v62  ;;  %v8281_v34 = vmov 0 }
  0xe7   :  { %v8271_v45 = vsel %vm5798_vm10, 4294967295, %v8270_v45  ;;  %4193 = vmatpush.bf16.msk.msrb.mxu3 %vm5798_vm10, %v8047_v51  ;;  %vm311_vm12 = vmand %vm243_vm5, %vm279_vm1  ;;  %v5820_v61 = vmax.f32 %v966_v48, 0.0  ;;  %vm225_vm1 = vcmp.ge.s32.totalorder %v5725_v57, %v5631_v43 }
  0xe8   :  { %8272 = vst [vmem:[#allocation70_spill] sm:$0xff] %v8271_v45  ;;  %vm5809_vm6 = vmpackc.low %vm311_vm12, %vm303_vm9  ;;  %vm261_vm9 = vcmp.lt.s32.totalorder %v5725_v57, %v5655_v49  ;;  %v8291_v57 = vmov 0 }
  0xe9   :  { %v8274_v27 = vsel %vm5809_vm6, 4294967295, %v8273_v27  ;;  %4198 = vmatpush.bf16.msk.msra.mxu1 %vm5809_vm6, %v8047_v51  ;;  %vm304_vm4 = vmand %vm236_vm8, %vm272_vm3  ;;  %8276 = vst [vmem:[#allocation72_spill] sm:$0xff] %v5820_v61  ;;  %vm218_vm3 = vcmp.ge.s32.totalorder %v5743_v32, %v5621_v39  ;;  %vm226_vm6 = vcmp.ge.s32.totalorder %v5743_v32, %v5631_v43  ;;  %v1298_v63 = vpack.c.bf16 %v5822_v62, %v5820_v61 }
  0xea   :  { %8275 = vst [vmem:[#allocation71_spill] sm:$0xff] %v8274_v27  ;;  %vm312_vm5 = vmand %vm244_vm13, %vm280_vm2  ;;  %vm254_vm13 = vcmp.lt.s32.totalorder %v5743_v32, %v5646_v47 }
  0xeb   :  { %vm5828_vm12 = vmpackc.low %vm312_vm5, %vm304_vm4  ;;  %vm262_vm4 = vcmp.lt.s32.totalorder %v5743_v32, %v5655_v49  ;;  %v8294_v32 = vmov 0 }
  0xec   :  { %v8279_v33 = vsel %vm5828_vm12, 4294967295, %v8278_v33  ;;  %4203 = vmatpush.bf16.msk.msra.mxu0 %vm5828_vm12, %v8047_v51  ;;  %vm285_vm8 = vmand %vm217_vm11, %vm253_vm0  ;;  %vm219_vm0 = vcmp.ge.s32.totalorder %v5761_v37, %v5621_v39 }
  0xed   :  { %8280 = vst [vmem:[#allocation74_spill] sm:$0xff] %v8279_v33  ;;  %vm293_vm2 = vmand %vm225_vm1, %vm261_vm9  ;;  %vm255_vm1 = vcmp.lt.s32.totalorder %v5761_v37, %v5646_v47  ;;  %vm8284_vm9 = vcmask 261120  }
  0xee   :  { %vm5845_vm5 = vmpackc.low %vm293_vm2, %vm285_vm8  ;;  %vm227_vm8 = vcmp.ge.s32.totalorder %v5761_v37, %v5631_v43  ;;  %vm263_vm2 = vcmp.lt.s32.totalorder %v5761_v37, %v5655_v49 }
  0xef   :  { %v8282_v34 = vsel %vm5845_vm5, 4294967295, %v8281_v34  ;;  %4190 = vmatpush.bf16.msk.msrb.mxu2 %vm5845_vm5, %v8047_v51  ;;  %vm286_vm11 = vmand %vm218_vm3, %vm254_vm13  ;;  %vm228_vm5 = vcmp.ge.s32.totalorder %v208_v42, %v5631_v43 }
  0xf0   :  { %8283 = vst [vmem:[#allocation75_spill] sm:$0xff] %v8282_v34  ;;  %vm8285_vm12 = vmmov %vm8284_vm9 }
  0xf1   :  { %vm294_vm10 = vmand %vm226_vm6, %vm262_vm4  ;;  %vm220_vm6 = vcmp.ge.s32.totalorder %v208_v42, %v5621_v39  ;;  %vm256_vm4 = vcmp.lt.s32.totalorder %v208_v42, %v5646_v47  ;;  %v5893_v39 = vld [vmem:[#allocation21] sm:$0xff] }
  0xf2   :  { %vm8286_vm15 = vmmov %vm8284_vm9  ;;  %v1033_v43 = vperm.slane %v5893_v39, 2  ;;  %v1034_v47 = vperm.slane %v5893_v39, 3  ;;  %v1031_v44 = vperm.slane %v5893_v39, 0  ;;  %v1032_v48 = vperm.slane %v5893_v39, 1 }
  0xf3   :  { %vm8287_vm3 = vmmov %vm8284_vm9 }
  0xf4   :  { %4171 = vmatmul.msk.bf16.vlgmr.msra.gmra.mxu2 %vm8284_vm9, %v1298_v63  ;;  %4176 = vmatmul.msk.bf16.vlgmr.msra.gmra.mxu3 %vm8285_vm12, %v1298_v63  ;;  %vm5864_vm13 = vmpackc.low %vm294_vm10, %vm286_vm11 }
  0xf5   :  { %4181 = vmatmul.msk.bf16.vlgmr.msrb.gmra.mxu1 %vm8286_vm15, %v1298_v63  ;;  %4186 = vmatmul.msk.bf16.vlgmr.msrb.gmra.mxu0 %vm8287_vm3, %v1298_v63  ;;  %v8289_v54 = vsel %vm5864_vm13, 4294967295, %v8288_v54  ;;  %vm287_vm12 = vmand %vm219_vm0, %vm255_vm1  ;;  %vm264_vm15 = vcmp.lt.s32.totalorder %v208_v42, %v5655_v49 }
  0xf6   :  { %8290 = vst [vmem:[#allocation76_spill] sm:$0xff] %v8289_v54  ;;  %4195 = vmatpush.bf16.msk.msrb.mxu3 %vm5864_vm13, %v8047_v51  ;;  %vm295_vm9 = vmand %vm227_vm8, %vm263_vm2 }
  0xf7   :  { %vm5875_vm14 = vmpackc.low %vm295_vm9, %vm287_vm12 }
  0xf8   :  { %v8292_v57 = vsel %vm5875_vm14, 4294967295, %v8291_v57  ;;  %4200 = vmatpush.bf16.msk.msra.mxu1 %vm5875_vm14, %v8047_v51  ;;  %vm288_vm10 = vmand %vm220_vm6, %vm256_vm4 }
  0xf9   :  { %8293 = vst [vmem:[#allocation77_spill] sm:$0xff] %v8292_v57  ;;  %vm296_vm11 = vmand %vm228_vm5, %vm264_vm15 }
  0xfa   :  { %vm5882_vm0 = vmpackc.low %vm296_vm11, %vm288_vm10 }
  0xfb   :  { %v8295_v32 = vsel %vm5882_vm0, 4294967295, %v8294_v32  ;;  %4205 = vmatpush.bf16.msk.msra.mxu0 %vm5882_vm0, %v8047_v51  ;;  %vm8297_vm1 = vmmov %vm8287_vm3 }
  0xfc   :  { %8296 = vst [vmem:[#allocation78_spill] sm:$0xff] %v8295_v32  ;;  %vm8298_vm8 = vmmov %vm8297_vm1 }
  0xfd   :  { %vm8299_vm2 = vmmov %vm8297_vm1 }
  0xfe   :  { %vm8300_vm3 = vmmov %vm8297_vm1 }
 0x104   :  { %4191 = vmatmul.msk.bf16.vlgmr.msrb.gmra.mxu2 %vm8297_vm1, %v1298_v63  ;;  %4196 = vmatmul.msk.bf16.vlgmr.msrb.gmra.mxu3 %vm8298_vm8, %v1298_v63 }
 0x105   :  { %4201 = vmatmul.msk.bf16.vlgmr.msra.gmra.mxu1 %vm8299_vm2, %v1298_v63  ;;  %4206 = vmatmul.msk.bf16.vlgmr.msra.gmra.mxu0 %vm8300_vm3, %v1298_v63 }
 0x152   :  { %v1168_v49 = vpop.f32.mrf.mxu1  ;;  %v1182_v37 = vpop.f32.mrf.mxu0 }
 0x153   :  { %v1169_v38 = vadd.f32 %v1168_v49, %v1033_v43  ;;  %v1183_v42 = vadd.f32 %v1182_v37, %v1034_v47  ;;  %v371_v49 = vadd.s32 112, %v5573_v56  ;;  %v372_v37 = vadd.s32 120, %v5573_v56 }
 0x155   :  { %1245 = vst [vmem:[#allocation2 + $0x10] sm:$0xff] %v1169_v38  ;;  %v387_v38 = vadd.s32 240, %v5573_v56 }
 0x156   :  { %1246 = vst [vmem:[#allocation2 + $0x18] sm:$0xff] %v1183_v42  ;;  %v388_v42 = vadd.s32 248, %v5573_v56 }
 0x157   :  { %v1140_v51 = vpop.f32.mrf.mxu2  ;;  %v1154_v30 = vpop.f32.mrf.mxu3 }
 0x158   :  { %v1141_v29 = vadd.f32 %v1140_v51, %v1031_v44  ;;  %v1155_v63 = vadd.f32 %v1154_v30, %v1032_v48  ;;  %v516_v57 = vand.u32 31, %v388_v42  ;;  %v8059_v42 = vperm.slane %v5893_v39, 5 }
 0x15a   :  { %1243 = vst [vmem:[#allocation2] sm:$0xff] %v1141_v29  ;;  %v1170_v26 = vpop.f32.mrf.mxu1  ;;  %v1184_v25 = vpop.f32.mrf.mxu0  ;;  %vm644_vm9 = vcmp.eq.s32.totalorder %v516_v57, %v5581_v60  ;;  %v8309_v57 = vperm.slane %v5893_v39, 7 }
 0x15b   :  { %1244 = vst [vmem:[#allocation2 + $0x8] sm:$0xff] %v1155_v63  ;;  %v1171_v28 = vadd.f32 %v1170_v26, %v1033_v43  ;;  %v1185_v32 = vadd.f32 %v1184_v25, %v1034_v47  ;;  %v403_v63 = vadd.s32 368, %v5573_v56  ;;  %v404_v25 = vadd.s32 376, %v5573_v56 }
 0x15c   :  { %v419_v43 = vadd.s32 496, %v5573_v56  ;;  %v515_v47 = vand.u32 31, %v387_v38  ;;  %v420_v26 = vadd.s32 504, %v5573_v56 }
 0x15d   :  { %1253 = vst [vmem:[#allocation2 + $0x50] sm:$0xff] %v1171_v28  ;;  %v499_v28 = vand.u32 31, %v371_v49  ;;  %v531_v33 = vand.u32 31, %v403_v63  ;;  %v532_v34 = vand.u32 31, %v404_v25  ;;  %v370_v63 = vadd.s32 104, %v5573_v56 }
 0x15e   :  { %1254 = vst [vmem:[#allocation2 + $0x58] sm:$0xff] %v1185_v32  ;;  %v500_v32 = vand.u32 31, %v372_v37  ;;  %v8058_v37 = vperm.slane %v5893_v39, 4  ;;  %vm643_vm4 = vcmp.eq.s32.totalorder %v515_v47, %v5581_v60  ;;  %v401_v47 = vadd.s32 352, %v5573_v56 }
 0x15f   :  { %v1142_v51 = vpop.f32.mrf.mxu2  ;;  %v1156_v30 = vpop.f32.mrf.mxu3  ;;  %vm627_vm5 = vcmp.eq.s32.totalorder %v499_v28, %v5581_v60  ;;  %vm5933_vm15 = vmpackc.low %vm644_vm9, %vm643_vm4  ;;  %vm659_vm10 = vcmp.eq.s32.totalorder %v531_v33, %v5581_v60  ;;  %vm660_vm11 = vcmp.eq.s32.totalorder %v532_v34, %v5581_v60  ;;  %v547_v33 = vand.u32 31, %v419_v43 }
 0x160   :  { %v1143_v29 = vadd.f32 %v1142_v51, %v1031_v44  ;;  %vm628_vm12 = vcmp.eq.s32.totalorder %v500_v32, %v5581_v60  ;;  %v1157_v49 = vadd.f32 %v1156_v30, %v1032_v48  ;;  %v8304_v44 = vperm.slane %v5893_v39, 6  ;;  %vm5946_vm1 = vmpackc.low %vm660_vm11, %vm659_vm10 }
 0x161   :  { %vm5918_vm6 = vmpackc.low %vm628_vm12, %vm627_vm5  ;;  %v8305_v48 = vmov 1.0|1.0   ;;  %v8306_v51 = vmov 0  ;;  %v8310_v30 = vmov 0  ;;  %v548_v34 = vand.u32 31, %v420_v26 }
 0x162   :  { %v1224_v27 = vpop.f32.mrf.mxu1  ;;  %v1238_v54 = vpop.f32.mrf.mxu0  ;;  %v8302_v36 = vsel %vm5918_vm6, 4294967295, %v8301_v36  ;;  %4255 = vmatpush.bf16.msk.msra.mxu2 %vm5918_vm6, %v8305_v48  ;;  %v8307_v51 = vsel %vm5933_vm15, 4294967295, %v8306_v51  ;;  %4271 = vmatpush.bf16.msk.msra.mxu3 %vm5933_vm15, %v8305_v48  ;;  %v8311_v30 = vsel %vm5946_vm1, 4294967295, %v8310_v30  ;;  %1251 = vst [vmem:[#allocation2 + $0x40] sm:$0xff] %v1143_v29  ;;  %v385_v32 = vadd.s32 224, %v5573_v56 }
 0x163   :  { %8303 = vst [vmem:[#allocation79_spill] sm:$0xff] %v8302_v36  ;;  %v1225_v38 = vadd.f32 %v1224_v27, %v8304_v44  ;;  %v1239_v27 = vadd.f32 %v1238_v54, %v8309_v57  ;;  %4287 = vmatpush.bf16.msk.msrb.mxu1 %vm5946_vm1, %v8305_v48  ;;  %v369_v54 = vadd.s32 96, %v5573_v56  ;;  %v386_v29 = vadd.s32 232, %v5573_v56  ;;  %v6368_v52 = vld [vmem:[#allocation2 + $0x6] ss:$8 sm:$0xf] }
 0x164   :  { %8308 = vst [vmem:[#allocation80_spill] sm:$0xff] %v8307_v51  ;;  %v402_v44 = vadd.s32 360, %v5573_v56  ;;  %vm675_vm8 = vcmp.eq.s32.totalorder %v547_v33, %v5581_v60  ;;  %vm676_vm2 = vcmp.eq.s32.totalorder %v548_v34, %v5581_v60  ;;  %v498_v57 = vand.u32 31, %v370_v63  ;;  %v6370_v53 = vld [vmem:[#allocation2 + $0x7] ss:$8 sm:$0xf] }
 0x165   :  { %8312 = vst [vmem:[#allocation81_spill] sm:$0xff] %v8311_v30  ;;  %vm5970_vm3 = vmpackc.low %vm676_vm2, %vm675_vm8  ;;  %v8316_v63 = vperm.slane %v5893_v39, 6  ;;  %v366_v30 = vadd.s32 72, %v5573_v56 }
 0x166   :  { %1252 = vst [vmem:[#allocation2 + $0x48] sm:$0xff] %v1157_v49  ;;  %v8313_v49 = vmov 0  ;;  %4303 = vmatpush.bf16.msk.msrb.mxu0 %vm5970_vm3, %v8305_v48  ;;  %v530_v34 = vand.u32 31, %v402_v44  ;;  %vm626_vm12 = vcmp.eq.s32.totalorder %v498_v57, %v5581_v60  ;;  %v8329_v57 = vperm.slane %v5893_v39, 7 }
 0x167   :  { %v1196_v25 = vpop.f32.mrf.mxu2  ;;  %v1210_v28 = vpop.f32.mrf.mxu3  ;;  %1249 = vst [vmem:[#allocation2 + $0x30] sm:$0xff] %v1225_v38  ;;  %v8314_v49 = vsel %vm5970_vm3, 4294967295, %v8313_v49  ;;  %v497_v38 = vand.u32 31, %v369_v54  ;;  %v418_v54 = vadd.s32 488, %v5573_v56 }
 0x168   :  { %v1197_v26 = vadd.f32 %v1196_v25, %v8058_v37  ;;  %v1211_v43 = vadd.f32 %v1210_v28, %v8059_v42  ;;  %1250 = vst [vmem:[#allocation2 + $0x38] sm:$0xff] %v1239_v27  ;;  %v513_v25 = vand.u32 31, %v385_v32  ;;  %v514_v37 = vand.u32 31, %v386_v29 }
 0x169   :  { %8315 = vst [vmem:[#allocation82_spill] sm:$0xff] %v8314_v49  ;;  %v529_v27 = vand.u32 31, %v401_v47  ;;  %v417_v42 = vadd.s32 480, %v5573_v56  ;;  %vm625_vm5 = vcmp.eq.s32.totalorder %v497_v38, %v5581_v60  ;;  %v8317_v29 = vmov 0 }
 0x16a   :  { %1247 = vst [vmem:[#allocation2 + $0x20] sm:$0xff] %v1197_v26  ;;  %v1226_v28 = vpop.f32.mrf.mxu1  ;;  %v1240_v33 = vpop.f32.mrf.mxu0  ;;  %vm5989_vm4 = vmpackc.low %vm626_vm12, %vm625_vm5  ;;  %vm641_vm9 = vcmp.eq.s32.totalorder %v513_v25, %v5581_v60  ;;  %vm642_vm10 = vcmp.eq.s32.totalorder %v514_v37, %v5581_v60  ;;  %vm658_vm8 = vcmp.eq.s32.totalorder %v530_v34, %v5581_v60  ;;  %v8320_v47 = vmov 0 }
 0x16b   :  { %1248 = vst [vmem:[#allocation2 + $0x28] sm:$0xff] %v1211_v43  ;;  %v1227_v32 = vadd.f32 %v1226_v28, %v8316_v63  ;;  %v8318_v29 = vsel %vm5989_vm4, 4294967295, %v8317_v29  ;;  %vm657_vm11 = vcmp.eq.s32.totalorder %v529_v27, %v5581_v60  ;;  %4257 = vmatpush.bf16.msk.msra.mxu2 %vm5989_vm4, %v8305_v48  ;;  %vm6001_vm2 = vmpackc.low %vm642_vm10, %vm641_vm9  ;;  %v545_v44 = vand.u32 31, %v417_v42 }
 0x16c   :  { %8319 = vst [vmem:[#allocation83_spill] sm:$0xff] %v8318_v29  ;;  %v8321_v47 = vsel %vm6001_vm2, 4294967295, %v8320_v47  ;;  %v546_v26 = vand.u32 31, %v418_v54  ;;  %4273 = vmatpush.bf16.msk.msra.mxu3 %vm6001_vm2, %v8305_v48  ;;  %vm6010_vm5 = vmpackc.low %vm658_vm8, %vm657_vm11  ;;  %v8323_v37 = vmov 0  ;;  %v8326_v42 = vmov 0 }
 0x16d   :  { %1257 = vst [vmem:[#allocation2 + $0x70] sm:$0xff] %v1227_v32  ;;  %v8324_v37 = vsel %vm6010_vm5, 4294967295, %v8323_v37  ;;  %4289 = vmatpush.bf16.msk.msrb.mxu1 %vm6010_vm5, %v8305_v48  ;;  %vm673_vm12 = vcmp.eq.s32.totalorder %v545_v44, %v5581_v60  ;;  %v1241_v25 = vadd.f32 %v1240_v33, %v8329_v57  ;;  %v367_v34 = vadd.s32 80, %v5573_v56  ;;  %v6372_v50 = vld [vmem:[#allocation2 + $0x40] ss:$8 sm:$0xf] }
 0x16e   :  { %8322 = vst [vmem:[#allocation84_spill] sm:$0xff] %v8321_v47  ;;  %vm674_vm9 = vcmp.eq.s32.totalorder %v546_v26, %v5581_v60  ;;  %v368_v54 = vadd.s32 88, %v5573_v56  ;;  %v8330_v63 = vperm.slane %v5893_v39, 4  ;;  %v8331_v44 = vperm.slane %v5893_v39, 5 }
 0x16f   :  { %8325 = vst [vmem:[#allocation85_spill] sm:$0xff] %v8324_v37  ;;  %v1198_v43 = vpop.f32.mrf.mxu2  ;;  %v1212_v38 = vpop.f32.mrf.mxu3  ;;  %vm6023_vm10 = vmpackc.low %vm674_vm9, %vm673_vm12  ;;  %v495_v33 = vand.u32 31, %v367_v34  ;;  %v384_v39 = vadd.s32 216, %v5573_v56  ;;  %v416_v34 = vadd.s32 472, %v5573_v56 }
 0x170   :  { %v8327_v42 = vsel %vm6023_vm10, 4294967295, %v8326_v42  ;;  %4305 = vmatpush.bf16.msk.msrb.mxu0 %vm6023_vm10, %v8305_v48  ;;  %v1199_v32 = vadd.f32 %v1198_v43, %v8330_v63  ;;  %v1213_v26 = vadd.f32 %v1212_v38, %v8331_v44  ;;  %1258 = vst [vmem:[#allocation2 + $0x78] sm:$0xff] %v1241_v25  ;;  %v496_v57 = vand.u32 31, %v368_v54  ;;  %v6374_v21 = vld [vmem:[#allocation2 + $0x41] ss:$8 sm:$0xf] }
 0x171   :  { %8328 = vst [vmem:[#allocation86_spill] sm:$0xff] %v8327_v42  ;;  %v383_v63 = vadd.s32 208, %v5573_v56  ;;  %v399_v38 = vadd.s32 336, %v5573_v56  ;;  %v400_v44 = vadd.s32 344, %v5573_v56  ;;  %vm623_vm11 = vcmp.eq.s32.totalorder %v495_v33, %v5581_v60 }
 0x172   :  { %v1339_v28 = vpop.f32.mrf.mxu1  ;;  %v1353_v27 = vpop.f32.mrf.mxu0  ;;  %1255 = vst [vmem:[#allocation2 + $0x60] sm:$0xff] %v1199_v32  ;;  %vm624_vm8 = vcmp.eq.s32.totalorder %v496_v57, %v5581_v60  ;;  %v415_v25 = vadd.s32 464, %v5573_v56  ;;  %v8332_v54 = vmov 0  ;;  %v512_v37 = vand.u32 31, %v384_v39 }
 0x173   :  { %1256 = vst [vmem:[#allocation2 + $0x68] sm:$0xff] %v1213_v26  ;;  %vm6064_vm12 = vmpackc.low %vm624_vm8, %vm623_vm11  ;;  %v511_v32 = vand.u32 31, %v383_v63  ;;  %v527_v47 = vand.u32 31, %v399_v38  ;;  %v528_v29 = vand.u32 31, %v400_v44  ;;  %v544_v49 = vand.u32 31, %v416_v34 }
 0x174   :  { %1416 = vst [vmem:[#allocation3 + $0x10] sm:$0xff] %v1339_v28  ;;  %v8333_v54 = vsel %vm6064_vm12, 4294967295, %v8332_v54  ;;  %4259 = vmatpush.bf16.msk.msra.mxu2 %vm6064_vm12, %v8305_v48  ;;  %v543_v57 = vand.u32 31, %v415_v25  ;;  %v365_v28 = vadd.s32 64, %v5573_v56  ;;  %vm640_vm11 = vcmp.eq.s32.totalorder %v512_v37, %v5581_v60 }
 0x175   :  { %8334 = vst [vmem:[#allocation87_spill] sm:$0xff] %v8333_v54  ;;  %vm639_vm9 = vcmp.eq.s32.totalorder %v511_v32, %v5581_v60  ;;  %vm655_vm8 = vcmp.eq.s32.totalorder %v527_v47, %v5581_v60  ;;  %vm656_vm12 = vcmp.eq.s32.totalorder %v528_v29, %v5581_v60  ;;  %vm672_vm2 = vcmp.eq.s32.totalorder %v544_v49, %v5581_v60  ;;  %v6352_v54 = vld [vmem:[#allocation2 + $0x5] ss:$8 sm:$0xf] }
 0x176   :  { %1417 = vst [vmem:[#allocation3 + $0x18] sm:$0xff] %v1353_v27  ;;  %vm6081_vm10 = vmpackc.low %vm640_vm11, %vm639_vm9  ;;  %v8335_v27 = vmov 0  ;;  %vm671_vm5 = vcmp.eq.s32.totalorder %v543_v57, %v5581_v60  ;;  %v494_v63 = vand.u32 31, %v366_v30  ;;  %v8338_v29 = vmov 0 }
 0x177   :  { %v1311_v42 = vpop.f32.mrf.mxu2  ;;  %v1325_v43 = vpop.f32.mrf.mxu3  ;;  %v8336_v27 = vsel %vm6081_vm10, 4294967295, %v8335_v27  ;;  %4275 = vmatpush.bf16.msk.msra.mxu3 %vm6081_vm10, %v8305_v48  ;;  %vm6093_vm4 = vmpackc.low %vm656_vm12, %vm655_vm8  ;;  %v8341_v30 = vmov 0  ;;  %v8344_v37 = vmov 0  ;;  %v382_v39 = vadd.s32 200, %v5573_v56 }
 0x178   :  { %1414 = vst [vmem:[#allocation3] sm:$0xff] %v1311_v42  ;;  %v493_v42 = vand.u32 31, %v365_v28  ;;  %v8339_v29 = vsel %vm6093_vm4, 4294967295, %v8338_v29  ;;  %4291 = vmatpush.bf16.msk.msrb.mxu1 %vm6093_vm4, %v8305_v48  ;;  %vm6101_vm9 = vmpackc.low %vm672_vm2, %vm671_vm5  ;;  %vm622_vm10 = vcmp.eq.s32.totalorder %v494_v63, %v5581_v60  ;;  %v397_v38 = vadd.s32 320, %v5573_v56 }
 0x179   :  { %1415 = vst [vmem:[#allocation3 + $0x8] sm:$0xff] %v1325_v43  ;;  %v8342_v30 = vsel %vm6101_vm9, 4294967295, %v8341_v30  ;;  %4307 = vmatpush.bf16.msk.msrb.mxu0 %vm6101_vm9, %v8305_v48  ;;  %v381_v43 = vadd.s32 192, %v5573_v56  ;;  %v398_v44 = vadd.s32 328, %v5573_v56  ;;  %v413_v25 = vadd.s32 448, %v5573_v56 }
 0x17a   :  { %v1341_v26 = vpop.f32.mrf.mxu1  ;;  %v1355_v33 = vpop.f32.mrf.mxu0  ;;  %8337 = vst [vmem:[#allocation88_spill] sm:$0xff] %v8336_v27  ;;  %vm621_vm11 = vcmp.eq.s32.totalorder %v493_v42, %v5581_v60  ;;  %v414_v34 = vadd.s32 456, %v5573_v56  ;;  %v510_v57 = vand.u32 31, %v382_v39  ;;  %v525_v28 = vand.u32 31, %v397_v38 }
 0x17b   :  { %1424 = vst [vmem:[#allocation3 + $0x50] sm:$0xf] %v1341_v26  ;;  %vm6113_vm12 = vmpackc.low %vm622_vm10, %vm621_vm11  ;;  %v526_v42 = vand.u32 31, %v398_v44  ;;  %v541_v63 = vand.u32 31, %v413_v25  ;;  %v379_v25 = vadd.s32 176, %v5573_v56 }
 0x17c   :  { %8340 = vst [vmem:[#allocation89_spill] sm:$0xff] %v8339_v29  ;;  %v8345_v37 = vsel %vm6113_vm12, 4294967295, %v8344_v37  ;;  %4261 = vmatpush.bf16.msk.msra.mxu2 %vm6113_vm12, %v8305_v48  ;;  %vm638_vm5 = vcmp.eq.s32.totalorder %v510_v57, %v5581_v60  ;;  %v364_v29 = vadd.s32 56, %v5573_v56  ;;  %vm653_vm8 = vcmp.eq.s32.totalorder %v525_v28, %v5581_v60  ;;  %v6350_v27 = vld [vmem:[#allocation2 + $0x4] ss:$8 sm:$0xf] }
 0x17d   :  { %1425 = vst [vmem:[#allocation3 + $0x58] sm:$0xf] %v1355_v33  ;;  %v509_v33 = vand.u32 31, %v381_v43  ;;  %vm654_vm11 = vcmp.eq.s32.totalorder %v526_v42, %v5581_v60  ;;  %vm669_vm12 = vcmp.eq.s32.totalorder %v541_v63, %v5581_v60  ;;  %v8356_v63 = vmov 0 }
 0x17e   :  { %8343 = vst [vmem:[#allocation90_spill] sm:$0xff] %v8342_v30  ;;  %v363_v30 = vadd.s32 48, %v5573_v56  ;;  %vm6155_vm4 = vmpackc.low %vm654_vm11, %vm653_vm8  ;;  %v492_v44 = vand.u32 31, %v364_v29  ;;  %v396_v29 = vadd.s32 312, %v5573_v56 }
 0x17f   :  { %v1313_v49 = vpop.f32.mrf.mxu2  ;;  %v1327_v47 = vpop.f32.mrf.mxu3  ;;  %8346 = vst [vmem:[#allocation91_spill] sm:$0xff] %v8345_v37  ;;  %v542_v37 = vand.u32 31, %v414_v34  ;;  %vm637_vm2 = vcmp.eq.s32.totalorder %v509_v33, %v5581_v60  ;;  %v380_v34 = vadd.s32 184, %v5573_v56  ;;  %4293 = vmatpush.bf16.msk.msrb.mxu1 %vm6155_vm4, %v8305_v48  ;;  %v507_v33 = vand.u32 31, %v379_v25 }
 0x180   :  { %1422 = vst [vmem:[#allocation3 + $0x40] sm:$0xf] %v1313_v49  ;;  %vm6142_vm10 = vmpackc.low %vm638_vm5, %vm637_vm2  ;;  %v8347_v49 = vmov 0  ;;  %v491_v38 = vand.u32 31, %v363_v30  ;;  %v411_v30 = vadd.s32 432, %v5573_v56  ;;  %v8359_v25 = vmov 0 }
 0x181   :  { %1423 = vst [vmem:[#allocation3 + $0x48] sm:$0xf] %v1327_v47  ;;  %v8348_v49 = vsel %vm6142_vm10, 4294967295, %v8347_v49  ;;  %vm670_vm9 = vcmp.eq.s32.totalorder %v542_v37, %v5581_v60  ;;  %4277 = vmatpush.bf16.msk.msra.mxu3 %vm6142_vm10, %v8305_v48  ;;  %v8350_v47 = vmov 0  ;;  %v8353_v37 = vmov 0 }
 0x182   :  { %v1395_v32 = vpop.f32.mrf.mxu1  ;;  %v1409_v26 = vpop.f32.mrf.mxu0  ;;  %8349 = vst [vmem:[#allocation92_spill] sm:$0xff] %v8348_v49  ;;  %v8351_v47 = vsel %vm6155_vm4, 4294967295, %v8350_v47  ;;  %vm6165_vm2 = vmpackc.low %vm670_vm9, %vm669_vm12  ;;  %vm619_vm9 = vcmp.eq.s32.totalorder %v491_v38, %v5581_v60  ;;  %vm620_vm12 = vcmp.eq.s32.totalorder %v492_v44, %v5581_v60  ;;  %v508_v57 = vand.u32 31, %v380_v34  ;;  %v6348_v49 = vld [vmem:[#allocation2 + $0x3] ss:$8 sm:$0xf] }
 0x183   :  { %1420 = vst [vmem:[#allocation3 + $0x30] sm:$0xff] %v1395_v32  ;;  %v8354_v37 = vsel %vm6165_vm2, 4294967295, %v8353_v37  ;;  %v395_v32 = vadd.s32 304, %v5573_v56  ;;  %4309 = vmatpush.bf16.msk.msrb.mxu0 %vm6165_vm2, %v8305_v48  ;;  %vm6182_vm5 = vmpackc.low %vm620_vm12, %vm619_vm9  ;;  %vm635_vm8 = vcmp.eq.s32.totalorder %v507_v33, %v5581_v60  ;;  %v361_v38 = vadd.s32 32, %v5573_v56 }
 0x184   :  { %1421 = vst [vmem:[#allocation3 + $0x38] sm:$0xff] %v1409_v26  ;;  %v412_v26 = vadd.s32 440, %v5573_v56  ;;  %v8357_v63 = vsel %vm6182_vm5, 4294967295, %v8356_v63  ;;  %4263 = vmatpush.bf16.msk.msra.mxu2 %vm6182_vm5, %v8305_v48  ;;  %vm636_vm11 = vcmp.eq.s32.totalorder %v508_v57, %v5581_v60  ;;  %v362_v44 = vadd.s32 40, %v5573_v56 }
 0x185   :  { %8352 = vst [vmem:[#allocation93_spill] sm:$0xff] %v8351_v47  ;;  %v539_v47 = vand.u32 31, %v411_v30  ;;  %vm6198_vm9 = vmpackc.low %vm636_vm11, %vm635_vm8  ;;  %v8362_v34 = vmov 0  ;;  %v8365_v30 = vmov 0  ;;  %v394_v33 = vadd.s32 296, %v5573_v56 }
 0x186   :  { %8355 = vst [vmem:[#allocation94_spill] sm:$0xff] %v8354_v37  ;;  %v524_v37 = vand.u32 31, %v396_v29  ;;  %v8360_v25 = vsel %vm6198_vm9, 4294967295, %v8359_v25  ;;  %4279 = vmatpush.bf16.msk.msra.mxu3 %vm6198_vm9, %v8305_v48  ;;  %v490_v29 = vand.u32 31, %v362_v44  ;;  %v409_v57 = vadd.s32 416, %v5573_v56 }
 0x187   :  { %v1367_v43 = vpop.f32.mrf.mxu2  ;;  %v1381_v39 = vpop.f32.mrf.mxu3  ;;  %8358 = vst [vmem:[#allocation95_spill] sm:$0xff] %v8357_v63  ;;  %vm667_vm2 = vcmp.eq.s32.totalorder %v539_v47, %v5581_v60  ;;  %v378_v47 = vadd.s32 168, %v5573_v56  ;;  %v8368_v44 = vmov 0  ;;  %v6346_v63 = vld [vmem:[#allocation2 + $0x2] ss:$8 sm:$0xf] }
 0x188   :  { %1418 = vst [vmem:[#allocation3 + $0x20] sm:$0xff] %v1367_v43  ;;  %v523_v43 = vand.u32 31, %v395_v32  ;;  %vm652_vm5 = vcmp.eq.s32.totalorder %v524_v37, %v5581_v60  ;;  %v489_v32 = vand.u32 31, %v361_v38  ;;  %v377_v37 = vadd.s32 160, %v5573_v56 }
 0x189   :  { %1419 = vst [vmem:[#allocation3 + $0x28] sm:$0xff] %v1381_v39  ;;  %v540_v39 = vand.u32 31, %v412_v26  ;;  %v393_v26 = vadd.s32 288, %v5573_v56  ;;  %v6354_v51 = vld [vmem:[#allocation2 + $0x42] ss:$8 sm:$0xf0] }
 0x18a   :  { %v1397_v28 = vpop.f32.mrf.mxu1  ;;  %v1411_v42 = vpop.f32.mrf.mxu0  ;;  %8361 = vst [vmem:[#allocation96_spill] sm:$0xff] %v8360_v25  ;;  %vm651_vm12 = vcmp.eq.s32.totalorder %v523_v43, %v5581_v60  ;;  %v506_v43 = vand.u32 31, %v378_v47  ;;  %v537_v25 = vand.u32 31, %v409_v57  ;;  %v488_v47 = vand.u32 31, %v5579_v59 }
 0x18b   :  { %1428 = vst [vmem:[#allocation3 + $0x70] sm:$0xf] %v1397_v28  ;;  %vm668_vm4 = vcmp.eq.s32.totalorder %v540_v39, %v5581_v60  ;;  %vm6212_vm8 = vmpackc.low %vm652_vm5, %vm651_vm12  ;;  %v410_v28 = vadd.s32 424, %v5573_v56  ;;  %v6306_v57 = vld [vmem:[#allocation2 + $0x3] ss:$8 sm:$0xf0] }
 0x18c   :  { %1429 = vst [vmem:[#allocation3 + $0x78] sm:$0xf] %v1411_v42  ;;  %v8363_v34 = vsel %vm6212_vm8, 4294967295, %v8362_v34  ;;  %4295 = vmatpush.bf16.msk.msrb.mxu1 %vm6212_vm8, %v8305_v48  ;;  %vm6224_vm11 = vmpackc.low %vm668_vm4, %vm667_vm2  ;;  %vm617_vm4 = vcmp.eq.s32.totalorder %v489_v32, %v5581_v60  ;;  %vm618_vm2 = vcmp.eq.s32.totalorder %v490_v29, %v5581_v60  ;;  %v505_v42 = vand.u32 31, %v377_v37 }
 0x18d   :  { %8364 = vst [vmem:[#allocation97_spill] sm:$0xff] %v8363_v34  ;;  %v8366_v30 = vsel %vm6224_vm11, 4294967295, %v8365_v30  ;;  %4311 = vmatpush.bf16.msk.msrb.mxu0 %vm6224_vm11, %v8305_v48  ;;  %vm6243_vm5 = vmpackc.low %vm618_vm2, %vm617_vm4  ;;  %v522_v34 = vand.u32 31, %v394_v33  ;;  %v538_v32 = vand.u32 31, %v410_v28  ;;  %vm634_vm4 = vcmp.eq.s32.totalorder %v506_v43, %v5581_v60 }
 0x18e   :  { %8367 = vst [vmem:[#allocation98_spill] sm:$0xff] %v8366_v30  ;;  %v8369_v44 = vsel %vm6243_vm5, 4294967295, %v8368_v44  ;;  %v521_v30 = vand.u32 31, %v393_v26  ;;  %4265 = vmatpush.bf16.msk.msra.mxu2 %vm6243_vm5, %v8305_v48  ;;  %vm633_vm12 = vcmp.eq.s32.totalorder %v505_v42, %v5581_v60  ;;  %v8371_v29 = vmov 0 }
 0x18f   :  { %v1369_v39 = vpop.f32.mrf.mxu2  ;;  %v1383_v38 = vpop.f32.mrf.mxu3  ;;  %8370 = vst [vmem:[#allocation99_spill] sm:$0xff] %v8369_v44  ;;  %vm6267_vm2 = vmpackc.low %vm634_vm4, %vm633_vm12  ;;  %vm650_vm8 = vcmp.eq.s32.totalorder %v522_v34, %v5581_v60  ;;  %vm665_vm5 = vcmp.eq.s32.totalorder %v537_v25, %v5581_v60  ;;  %vm666_vm9 = vcmp.eq.s32.totalorder %v538_v32, %v5581_v60  ;;  %v8374_v37 = vmov 0  ;;  %v6302_v26 = vld [vmem:[#allocation2 + $0x1] ss:$8 sm:$0xf0] }
 0x190   :  { %1426 = vst [vmem:[#allocation3 + $0x60] sm:$0xf] %v1369_v39  ;;  %v8372_v29 = vsel %vm6267_vm2, 4294967295, %v8371_v29  ;;  %vm649_vm11 = vcmp.eq.s32.totalorder %v521_v30, %v5581_v60  ;;  %4281 = vmatpush.bf16.msk.msra.mxu3 %vm6267_vm2, %v8305_v48  ;;  %vm6287_vm12 = vmpackc.low %vm666_vm9, %vm665_vm5  ;;  %v8377_v25 = vmov 0  ;;  %v487_v34 = vand.u32 31, %v5576_v58 }
 0x191   :  { %1427 = vst [vmem:[#allocation3 + $0x68] sm:$0xf] %v1383_v38  ;;  %vm6279_vm10 = vmpackc.low %vm650_vm8, %vm649_vm11  ;;  %v8378_v25 = vsel %vm6287_vm12, 4294967295, %v8377_v25  ;;  %4313 = vmatpush.bf16.msk.msrb.mxu0 %vm6287_vm12, %v8305_v48  ;;  %v6300_v30 = vld [vmem:[#allocation2] ss:$8 sm:$0xf0]  ;;  %vm6318_vm8 = vcmp.eq.s32.totalorder %v488_v47, %v5581_v60 }
 0x192   :  { %8373 = vst [vmem:[#allocation100_spill] sm:$0xff] %v8372_v29  ;;  %v8375_v37 = vsel %vm6279_vm10, 4294967295, %v8374_v37  ;;  %4297 = vmatpush.bf16.msk.msrb.mxu1 %vm6279_vm10, %v8305_v48  ;;  %v6304_v33 = vld [vmem:[#allocation2 + $0x2] ss:$8 sm:$0xf0]  ;;  %vm6313_vm9 = vcmp.eq.s32.totalorder %v487_v34, %v5581_v60  ;;  %v6338_v47 = vadd.s32 152, %v5573_v56 }
 0x193   :  { %8376 = vst [vmem:[#allocation101_spill] sm:$0xff] %v8375_v37  ;;  %v6308_v28 = vld [vmem:[#allocation2 + $0x4] ss:$8 sm:$0xf0]  ;;  %v6335_v37 = vadd.s32 144, %v5573_v56  ;;  %v6341_v29 = vadd.s32 272, %v5573_v56  ;;  %vm6397_vm11 = vmpackc.low %vm6318_vm8, %vm6313_vm9 }
 0x194   :  { %8379 = vst [vmem:[#allocation102_spill] sm:$0xff] %v8378_v25  ;;  %v6310_v42 = vld [vmem:[#allocation2 + $0x5] ss:$8 sm:$0xf0]  ;;  %v6344_v44 = vadd.s32 280, %v5573_v56  ;;  %v8385_v24 = vsel %vm6397_vm11, 4294967295, %v8384_v24  ;;  %4267 = vmatpush.bf16.msk.msra.mxu2 %vm6397_vm11, %v8305_v48 }
 0x195   :  { %v6322_v43 = vld [vmem:[#allocation2] ss:$8 sm:$0xf]  ;;  %v6324_v39 = vld [vmem:[#allocation2 + $0x1] ss:$8 sm:$0xf] }
 0x196   :  { %v6326_v38 = vld [vmem:[#allocation2 + $0x6] ss:$8 sm:$0xf0]  ;;  %v6328_v32 = vld [vmem:[#allocation2 + $0x7] ss:$8 sm:$0xf0]  ;;  %v1444_v5 = vor.u32 %v6300_v30, %v6322_v43  ;;  %v1463_v20 = vor.u32 %v6302_v26, %v6324_v39  ;;  %v1483_v30 = vor.u32 %v6304_v33, %v6346_v63  ;;  %v1503_v26 = vor.u32 %v6306_v57, %v6348_v49 }
 0x197   :  { %v6330_v25 = vld [vmem:[#allocation2 + $0x40] ss:$8 sm:$0xf0]  ;;  %v6332_v34 = vld [vmem:[#allocation2 + $0x41] ss:$8 sm:$0xf0]  ;;  %v1523_v43 = vor.u32 %v6308_v28, %v6350_v27  ;;  %v1543_v39 = vor.u32 %v6310_v42, %v6352_v54  ;;  %v1563_v63 = vor.u32 %v6326_v38, %v6368_v52  ;;  %v1583_v49 = vor.u32 %v6328_v32, %v6370_v53 }
 0x198   :  { %v6356_v36 = vld [vmem:[#allocation2 + $0x43] ss:$8 sm:$0xf0]  ;;  %v6359_v40 = vld [vmem:[%s1438_s11] ss:$8 sm:$0xf]  ;;  %v1603_v27 = vor.u32 %v6330_v25, %v6372_v50  ;;  %v1623_v54 = vor.u32 %v6332_v34, %v6374_v21 }
 0x199   :  { %v6361_v0 = vld [vmem:[%s1438_s11] ss:$8 sm:$0xf0]  ;;  %v6376_v62 = vld [vmem:[#allocation2 + $0x44] ss:$8 sm:$0xf0] }
 0x19a   :  { %v6364_v45 = vld [vmem:[%s1456_s21] ss:$8 sm:$0xf]  ;;  %8386 = vst [vmem:[#allocation103_spill] sm:$0xff] %v8385_v24  ;;  %v1441_v21 = vor.u32 %v6361_v0, %v6359_v40 }
 0x19b   :  { %v6366_v55 = vld [vmem:[%s1456_s21] ss:$8 sm:$0xf0]  ;;  %v6401_v19 = vld [vmem:[#allocation2 + $0x42] ss:$8 sm:$0xf] }
 0x19c   :  { %v6379_v22 = vld [vmem:[%s1476_s0] ss:$8 sm:$0xf]  ;;  %v6403_v9 = vld [vmem:[#allocation2 + $0x43] ss:$8 sm:$0xf]  ;;  %v1643_v52 = vor.u32 %v6354_v51, %v6401_v19  ;;  %v1459_v38 = vor.u32 %v6366_v55, %v6364_v45 }
 0x19d   :  { %v6381_v17 = vld [vmem:[%s1476_s0] ss:$8 sm:$0xf0]  ;;  %v6409_v61 = vld [vmem:[#allocation2 + $0x45] ss:$8 sm:$0xf0]  ;;  %v1663_v53 = vor.u32 %v6356_v36, %v6403_v9 }
 0x19e   :  { %v6384_v41 = vld [vmem:[%s1496_s23] ss:$8 sm:$0xf]  ;;  %v6419_v13 = vld [vmem:[#allocation2 + $0x44] ss:$8 sm:$0xf]  ;;  %v1479_v9 = vor.u32 %v6381_v17, %v6379_v22 }
 0x19f   :  { %v6386_v23 = vld [vmem:[%s1496_s23] ss:$8 sm:$0xf0]  ;;  %v6429_v1 = vld [vmem:[#allocation2 + $0x46] ss:$8 sm:$0xf0]  ;;  %v1683_v34 = vor.u32 %v6376_v62, %v6419_v13 }
 0x1a0   :  { %v6389_v18 = vld [vmem:[%s1516_s13] ss:$8 sm:$0xf]  ;;  %v6432_v6 = vld [vmem:[#allocation2 + $0x45] ss:$8 sm:$0xf]  ;;  %v1499_v36 = vor.u32 %v6386_v23, %v6384_v41 }
 0x1a1   :  { %v6391_v46 = vld [vmem:[%s1516_s13] ss:$8 sm:$0xf0]  ;;  %v6442_v33 = vld [vmem:[#allocation2 + $0x47] ss:$8 sm:$0xf0]  ;;  %v1703_v55 = vor.u32 %v6409_v61, %v6432_v6 }
 0x1a2   :  { %v6412_v58 = vld [vmem:[%s1536_s24] ss:$8 sm:$0xf]  ;;  %v6445_v42 = vld [vmem:[#allocation2 + $0x46] ss:$8 sm:$0xf]  ;;  %v1519_v0 = vor.u32 %v6391_v46, %v6389_v18 }
 0x1a3   :  { %v6414_v59 = vld [vmem:[%s1536_s24] ss:$8 sm:$0xf0]  ;;  %v6456_v32 = vld [vmem:[#allocation2 + $0x47] ss:$8 sm:$0xf]  ;;  %v1723_v17 = vor.u32 %v6429_v1, %v6445_v42 }
 0x1a4   :  { %v1557_v24 = vld [vmem:[%s1556_s10] ss:$8 sm:$0xf]  ;;  %v1539_v13 = vor.u32 %v6414_v59, %v6412_v58  ;;  %v1743_v6 = vor.u32 %v6442_v33, %v6456_v32  ;;  %v1445_v58 = vmul.f32 %v1444_v5, %v1441_v21  ;;  %v6479_v42 = vmul.f32 %v1523_v43, %v1519_v0 }
 0x1a5   :  { %v1558_v10 = vld [vmem:[%s1556_s10] ss:$8 sm:$0xf0]  ;;  %v486_v0 = vand.u32 31, %v5603_v35  ;;  %v8395_v33 = vmov 0 }
 0x1a6   :  { %v1577_v57 = vld [vmem:[%s1576_s29] ss:$8 sm:$0xf]  ;;  %v1559_v62 = vor.u32 %v1558_v10, %v1557_v24  ;;  %v1464_v10 = vmul.f32 %v1463_v20, %v1459_v38  ;;  %1446 = vst [vmem:[#allocation4] ss:$8 sm:$0xf] %v1445_v58 }
 0x1a7   :  { %v1578_v28 = vld [vmem:[%s1576_s29] ss:$8 sm:$0xf0]  ;;  %1447 = vst [vmem:[#allocation4] ss:$8 sm:$0xf0] %v1445_v58 }
 0x1a8   :  { %v1597_v50 = vld [vmem:[%s1596_s9] ss:$8 sm:$0xf]  ;;  %v1579_v14 = vor.u32 %v1578_v28, %v1577_v57  ;;  %v1484_v57 = vmul.f32 %v1483_v30, %v1479_v9  ;;  %v1504_v28 = vmul.f32 %v1503_v26, %v1499_v36  ;;  %1466 = vst [vmem:[#allocation4 + $0x1] ss:$8 sm:$0xf] %v1464_v10 }
 0x1a9   :  { %v1598_v25 = vld [vmem:[%s1596_s9] ss:$8 sm:$0xf0]  ;;  %1467 = vst [vmem:[#allocation4 + $0x1] ss:$8 sm:$0xf0] %v1464_v10 }
 0x1aa   :  { %v1617_v19 = vld [vmem:[%s1616_s3] ss:$8 sm:$0xf]  ;;  %v1599_v18 = vor.u32 %v1598_v25, %v1597_v50  ;;  %1486 = vst [vmem:[#allocation4 + $0x2] ss:$8 sm:$0xf] %v1484_v57 }
 0x1ab   :  { %v1618_v51 = vld [vmem:[%s1616_s3] ss:$8 sm:$0xf0]  ;;  %v8389_v9 = vmov 0  ;;  %v435_v58 = vadd.s32 624, %v5573_v56 }
 0x1ac   :  { %v1637_v40 = vld [vmem:[%s1636_s8] ss:$8 sm:$0xf]  ;;  %v1619_v41 = vor.u32 %v1618_v51, %v1617_v19  ;;  %v6482_v51 = vmul.f32 %v1543_v39, %v1539_v13  ;;  %v6489_v38 = vmul.f32 %v1603_v27, %v1599_v18  ;;  %v519_v27 = vand.u32 31, %v6341_v29 }
 0x1ad   :  { %v1638_v45 = vld [vmem:[%s1636_s8] ss:$8 sm:$0xf0]  ;;  %v485_v29 = vand.u32 31, %v5573_v56  ;;  %v8393_v18 = vmov 0  ;;  %v465_v13 = vadd.s32 864, %v5573_v56 }
 0x1ae   :  { %v1657_v22 = vld [vmem:[%s1656_s26] ss:$8 sm:$0xf]  ;;  %v1639_v46 = vor.u32 %v1638_v45, %v1637_v40  ;;  %v6484_v40 = vmul.f32 %v1563_v63, %v1559_v62  ;;  %v6486_v45 = vmul.f32 %v1583_v49, %v1579_v14  ;;  %v6491_v30 = vmul.f32 %v1623_v54, %v1619_v41  ;;  %1487 = vst [vmem:[#allocation4 + $0x2] ss:$8 sm:$0xf0] %v1484_v57 }
 0x1af   :  { %v1658_v23 = vld [vmem:[%s1656_s26] ss:$8 sm:$0xf0]  ;;  %v503_v63 = vand.u32 31, %v6335_v37  ;;  %v504_v14 = vand.u32 31, %v6338_v47  ;;  %v520_v54 = vand.u32 31, %v6344_v44  ;;  %vm647_vm8 = vcmp.eq.s32.totalorder %v519_v27, %v5581_v60 }
 0x1b0   :  { %v1677_v61 = vld [vmem:[%s1676_s28] ss:$8 sm:$0xf]  ;;  %v1659_v24 = vor.u32 %v1658_v23, %v1657_v22  ;;  %v6493_v26 = vmul.f32 %v1643_v52, %v1639_v46  ;;  %v407_v52 = vadd.s32 400, %v5573_v56  ;;  %v8387_v37 = vmov 0 }
 0x1b1   :  { %v1678_v2 = vld [vmem:[%s1676_s28] ss:$8 sm:$0xf0]  ;;  %vm631_vm5 = vcmp.eq.s32.totalorder %v503_v63, %v5581_v60  ;;  %vm632_vm4 = vcmp.eq.s32.totalorder %v504_v14, %v5581_v60  ;;  %vm648_vm11 = vcmp.eq.s32.totalorder %v520_v54, %v5581_v60  ;;  %v374_v62 = vadd.s32 136, %v5573_v56 }
 0x1b2   :  { %v1697_v59 = vld [vmem:[%s1696_s22] ss:$8 sm:$0xf]  ;;  %v1679_v50 = vor.u32 %v1678_v2, %v1677_v61  ;;  %v6495_v2 = vmul.f32 %v1663_v53, %v1659_v24  ;;  %vm6509_vm9 = vmpackc.low %vm632_vm4, %vm631_vm5  ;;  %v535_v44 = vand.u32 31, %v407_v52  ;;  %vm6532_vm4 = vcmp.eq.s32.totalorder %v485_v29, %v5581_v60 }
 0x1b3   :  { %v1698_v1 = vld [vmem:[%s1696_s22] ss:$8 sm:$0xf0]  ;;  %v8388_v37 = vsel %vm6509_vm9, 4294967295, %v8387_v37  ;;  %4283 = vmatpush.bf16.msk.msra.mxu3 %vm6509_vm9, %v8305_v48  ;;  %vm6521_vm12 = vmpackc.low %vm648_vm11, %vm647_vm8  ;;  %vm614_vm8 = vcmp.eq.s32.totalorder %v486_v0, %v5581_v60  ;;  %v390_v22 = vadd.s32 264, %v5573_v56  ;;  %v502_v41 = vand.u32 31, %v374_v62 }
 0x1b4   :  { %v1717_v25 = vld [vmem:[%s1716_s4] ss:$8 sm:$0xf]  ;;  %v1699_v5 = vor.u32 %v1698_v1, %v1697_v59  ;;  %v6497_v43 = vmul.f32 %v1683_v34, %v1679_v50  ;;  %v408_v34 = vadd.s32 408, %v5573_v56  ;;  %v8390_v9 = vsel %vm6521_vm12, 4294967295, %v8389_v9  ;;  %4299 = vmatpush.bf16.msk.msrb.mxu1 %vm6521_vm12, %v8305_v48  ;;  %vm6557_vm9 = vmpackc.low %vm614_vm8, %vm6532_vm4 }
 0x1b5   :  { %v1718_v19 = vld [vmem:[%s1716_s4] ss:$8 sm:$0xf0]  ;;  %vm663_vm5 = vcmp.eq.s32.totalorder %v535_v44, %v5581_v60  ;;  %1506 = vst [vmem:[#allocation4 + $0x3] ss:$8 sm:$0xf] %v1504_v28  ;;  %4269 = vmatpush.bf16.msk.msra.mxu2 %vm6557_vm9, %v8305_v48 }
 0x1b6   :  { %v1737_v20 = vld [vmem:[%s1736_s25] ss:$8 sm:$0xf]  ;;  %v1719_v39 = vor.u32 %v1718_v19, %v1717_v25  ;;  %v6501_v49 = vmul.f32 %v1703_v55, %v1699_v5  ;;  %v536_v36 = vand.u32 31, %v408_v34  ;;  %v373_v55 = vadd.s32 128, %v5573_v56 }
 0x1b7   :  { %v1738_v21 = vld [vmem:[%s1736_s25] ss:$8 sm:$0xf0]  ;;  %1507 = vst [vmem:[#allocation4 + $0x3] ss:$8 sm:$0xf0] %v1504_v28 }
 0x1b8   :  { %v1739_v53 = vor.u32 %v1738_v21, %v1737_v20  ;;  %v6516_v47 = vmul.f32 %v1723_v17, %v1719_v39  ;;  %v389_v17 = vadd.s32 256, %v5573_v56  ;;  %vm664_vm11 = vcmp.eq.s32.totalorder %v536_v36, %v5581_v60  ;;  %1526 = vst [vmem:[#allocation4 + $0x4] ss:$8 sm:$0xf] %v6479_v42 }
 0x1b9   :  { %v501_v35 = vand.u32 31, %v373_v55  ;;  %vm6546_vm12 = vmpackc.low %vm664_vm11, %vm663_vm5  ;;  %v405_v61 = vadd.s32 384, %v5573_v56  ;;  %v8396_v33 = vsel %vm6557_vm9, 4294967295, %v8395_v33  ;;  %v518_v32 = vand.u32 31, %v390_v22 }
 0x1ba   :  { %v6544_v23 = vmul.f32 %v1743_v6, %v1739_v53  ;;  %v8394_v18 = vsel %vm6546_vm12, 4294967295, %v8393_v18  ;;  %v517_v46 = vand.u32 31, %v389_v17  ;;  %4315 = vmatpush.bf16.msk.msrb.mxu0 %vm6546_vm12, %v8305_v48  ;;  %v406_v6 = vadd.s32 392, %v5573_v56  ;;  %1527 = vst [vmem:[#allocation4 + $0x4] ss:$8 sm:$0xf0] %v6479_v42 }
 0x1bb   :  { %vm629_vm5 = vcmp.eq.s32.totalorder %v501_v35, %v5581_v60  ;;  %vm630_vm11 = vcmp.eq.s32.totalorder %v502_v41, %v5581_v60  ;;  %v533_v10 = vand.u32 31, %v405_v61  ;;  %v436_v24 = vadd.s32 632, %v5573_v56  ;;  %1546 = vst [vmem:[#allocation4 + $0x5] ss:$8 sm:$0xf] %v6482_v51 }
 0x1bc   :  { %vm645_vm4 = vcmp.eq.s32.totalorder %v517_v46, %v5581_v60  ;;  %vm6572_vm8 = vmpackc.low %vm630_vm11, %vm629_vm5  ;;  %v8397_v59 = vmov 0  ;;  %vm646_vm12 = vcmp.eq.s32.totalorder %v518_v32, %v5581_v60  ;;  %v534_v1 = vand.u32 31, %v406_v6  ;;  %1547 = vst [vmem:[#allocation4 + $0x5] ss:$8 sm:$0xf0] %v6482_v51 }
 0x1bd   :  { %v8398_v59 = vsel %vm6572_vm8, 4294967295, %v8397_v59  ;;  %v563_v57 = vand.u32 31, %v435_v58  ;;  %v451_v28 = vadd.s32 752, %v5573_v56  ;;  %4285 = vmatpush.bf16.msk.msra.mxu3 %vm6572_vm8, %v8305_v48  ;;  %vm6582_vm9 = vmpackc.low %vm646_vm12, %vm645_vm4  ;;  %v8399_v42 = vmov 0 }
 0x1be   :  { %v8400_v42 = vsel %vm6582_vm9, 4294967295, %v8399_v42  ;;  %vm661_vm5 = vcmp.eq.s32.totalorder %v533_v10, %v5581_v60  ;;  %v564_v50 = vand.u32 31, %v436_v24  ;;  %v452_v25 = vadd.s32 760, %v5573_v56  ;;  %1566 = vst [vmem:[#allocation4 + $0x6] ss:$8 sm:$0xf] %v6484_v40  ;;  %4301 = vmatpush.bf16.msk.msrb.mxu1 %vm6582_vm9, %v8305_v48 }
 0x1bf   :  { %v467_v19 = vadd.s32 880, %v5573_v56  ;;  %vm662_vm11 = vcmp.eq.s32.totalorder %v534_v1, %v5581_v60  ;;  %vm691_vm12 = vcmp.eq.s32.totalorder %v563_v57, %v5581_v60  ;;  %v579_v51 = vand.u32 31, %v451_v28  ;;  %1567 = vst [vmem:[#allocation4 + $0x6] ss:$8 sm:$0xf0] %v6484_v40 }
 0x1c0   :  { %v468_v5 = vadd.s32 888, %v5573_v56  ;;  %vm6597_vm4 = vmpackc.low %vm662_vm11, %vm661_vm5  ;;  %v8401_v20 = vmov 0  ;;  %vm692_vm8 = vcmp.eq.s32.totalorder %v564_v50, %v5581_v60  ;;  %v580_v21 = vand.u32 31, %v452_v25  ;;  %1586 = vst [vmem:[#allocation4 + $0x7] ss:$8 sm:$0xf] %v6486_v45 }
 0x1c1   :  { %v8402_v20 = vsel %vm6597_vm4, 4294967295, %v8401_v20  ;;  %v595_v39 = vand.u32 31, %v467_v19  ;;  %v483_v63 = vadd.s32 1008, %v5573_v56  ;;  %4317 = vmatpush.bf16.msk.msrb.mxu0 %vm6597_vm4, %v8305_v48  ;;  %vm6607_vm9 = vmpackc.low %vm692_vm8, %vm691_vm12  ;;  %v8403_v14 = vmov 0 }
 0x1c2   :  { %v8404_v14 = vsel %vm6607_vm9, 4294967295, %v8403_v14  ;;  %vm707_vm5 = vcmp.eq.s32.totalorder %v579_v51, %v5581_v60  ;;  %v596_v40 = vand.u32 31, %v468_v5  ;;  %v484_v27 = vadd.s32 1016, %v5573_v56  ;;  %1587 = vst [vmem:[#allocation4 + $0x7] ss:$8 sm:$0xf0] %v6486_v45  ;;  %4319 = vmatpush.bf16.msk.msrb.mxu2 %vm6607_vm9, %v8305_v48 }
 0x1c3   :  { %v433_v54 = vadd.s32 608, %v5573_v56  ;;  %vm708_vm11 = vcmp.eq.s32.totalorder %v580_v21, %v5581_v60  ;;  %vm723_vm8 = vcmp.eq.s32.totalorder %v595_v39, %v5581_v60  ;;  %v611_v52 = vand.u32 31, %v483_v63  ;;  %1606 = vst [vmem:[#allocation4 + $0x40] ss:$8 sm:$0xf] %v6489_v38 }
 0x1c4   :  { %v434_v53 = vadd.s32 616, %v5573_v56  ;;  %vm6622_vm12 = vmpackc.low %vm708_vm11, %vm707_vm5  ;;  %v8405_v34 = vmov 0  ;;  %vm724_vm4 = vcmp.eq.s32.totalorder %v596_v40, %v5581_v60  ;;  %v612_v45 = vand.u32 31, %v484_v27  ;;  %1607 = vst [vmem:[#allocation4 + $0x40] ss:$8 sm:$0xf0] %v6489_v38 }
 0x1c5   :  { %v8406_v34 = vsel %vm6622_vm12, 4294967295, %v8405_v34  ;;  %v561_v44 = vand.u32 31, %v433_v54  ;;  %v449_v29 = vadd.s32 736, %v5573_v56  ;;  %4335 = vmatpush.bf16.msk.msrb.mxu3 %vm6622_vm12, %v8305_v48  ;;  %vm6632_vm9 = vmpackc.low %vm724_vm4, %vm723_vm8  ;;  %v8407_v36 = vmov 0 }
 0x1c6   :  { %v8408_v36 = vsel %vm6632_vm9, 4294967295, %v8407_v36  ;;  %vm739_vm5 = vcmp.eq.s32.totalorder %v611_v52, %v5581_v60  ;;  %v562_v0 = vand.u32 31, %v434_v53  ;;  %v450_v55 = vadd.s32 744, %v5573_v56  ;;  %1626 = vst [vmem:[#allocation4 + $0x41] ss:$8 sm:$0xf] %v6491_v30  ;;  %4351 = vmatpush.bf16.msk.msra.mxu1 %vm6632_vm9, %v8305_v48 }
 0x1c7   :  { %vm740_vm11 = vcmp.eq.s32.totalorder %v612_v45, %v5581_v60  ;;  %vm689_vm4 = vcmp.eq.s32.totalorder %v561_v44, %v5581_v60  ;;  %v577_v38 = vand.u32 31, %v449_v29  ;;  %v466_v62 = vadd.s32 872, %v5573_v56  ;;  %1627 = vst [vmem:[#allocation4 + $0x41] ss:$8 sm:$0xf0] %v6491_v30 }
 0x1c8   :  { %vm6647_vm8 = vmpackc.low %vm740_vm11, %vm739_vm5  ;;  %v8409_v17 = vmov 0  ;;  %vm690_vm12 = vcmp.eq.s32.totalorder %v562_v0, %v5581_v60  ;;  %v578_v35 = vand.u32 31, %v450_v55  ;;  %v593_v22 = vand.u32 31, %v465_v13  ;;  %1646 = vst [vmem:[#allocation4 + $0x42] ss:$8 sm:$0xf] %v6493_v26 }
 0x1c9   :  { %v8410_v17 = vsel %vm6647_vm8, 4294967295, %v8409_v17  ;;  %v481_v41 = vadd.s32 992, %v5573_v56  ;;  %4367 = vmatpush.bf16.msk.msra.mxu0 %vm6647_vm8, %v8305_v48  ;;  %vm6657_vm9 = vmpackc.low %vm690_vm12, %vm689_vm4  ;;  %v8411_v46 = vmov 0  ;;  %vm705_vm5 = vcmp.eq.s32.totalorder %v577_v38, %v5581_v60  ;;  %1647 = vst [vmem:[#allocation4 + $0x42] ss:$8 sm:$0xf0] %v6493_v26 }
 0x1ca   :  { %v8412_v46 = vsel %vm6657_vm9, 4294967295, %v8411_v46  ;;  %v594_v30 = vand.u32 31, %v466_v62  ;;  %v482_v61 = vadd.s32 1000, %v5573_v56  ;;  %v431_v32 = vadd.s32 592, %v5573_v56  ;;  %4321 = vmatpush.bf16.msk.msrb.mxu2 %vm6657_vm9, %v8305_v48 }
 0x1cb   :  { %vm706_vm11 = vcmp.eq.s32.totalorder %v578_v35, %v5581_v60  ;;  %vm721_vm12 = vcmp.eq.s32.totalorder %v593_v22, %v5581_v60  ;;  %v609_v6 = vand.u32 31, %v481_v41  ;;  %v432_v58 = vadd.s32 600, %v5573_v56  ;;  %1666 = vst [vmem:[#allocation4 + $0x43] ss:$8 sm:$0xf] %v6495_v2 }
 0x1cc   :  { %vm6672_vm4 = vmpackc.low %vm706_vm11, %vm705_vm5  ;;  %v8413_v10 = vmov 0  ;;  %vm722_vm8 = vcmp.eq.s32.totalorder %v594_v30, %v5581_v60  ;;  %v610_v26 = vand.u32 31, %v482_v61  ;;  %v559_v24 = vand.u32 31, %v431_v32  ;;  %1667 = vst [vmem:[#allocation4 + $0x43] ss:$8 sm:$0xf0] %v6495_v2 }
 0x1cd   :  { %v8414_v10 = vsel %vm6672_vm4, 4294967295, %v8413_v10  ;;  %v447_v1 = vadd.s32 720, %v5573_v56  ;;  %4337 = vmatpush.bf16.msk.msrb.mxu3 %vm6672_vm4, %v8305_v48  ;;  %vm6682_vm9 = vmpackc.low %vm722_vm8, %vm721_vm12  ;;  %v8415_v57 = vmov 0  ;;  %vm737_vm5 = vcmp.eq.s32.totalorder %v609_v6, %v5581_v60  ;;  %1686 = vst [vmem:[#allocation4 + $0x44] ss:$8 sm:$0xf] %v6497_v43 }
 0x1ce   :  { %v8416_v57 = vsel %vm6682_vm9, 4294967295, %v8415_v57  ;;  %v560_v28 = vand.u32 31, %v432_v58  ;;  %v448_v50 = vadd.s32 728, %v5573_v56  ;;  %v463_v25 = vadd.s32 848, %v5573_v56  ;;  %4353 = vmatpush.bf16.msk.msra.mxu1 %vm6682_vm9, %v8305_v48 }
 0x1cf   :  { %vm738_vm11 = vcmp.eq.s32.totalorder %v610_v26, %v5581_v60  ;;  %vm687_vm8 = vcmp.eq.s32.totalorder %v559_v24, %v5581_v60  ;;  %v575_v2 = vand.u32 31, %v447_v1  ;;  %v464_v19 = vadd.s32 856, %v5573_v56  ;;  %1687 = vst [vmem:[#allocation4 + $0x44] ss:$8 sm:$0xf0] %v6497_v43 }
 0x1d0   :  { %vm6697_vm12 = vmpackc.low %vm738_vm11, %vm737_vm5  ;;  %v8417_v51 = vmov 0  ;;  %vm688_vm4 = vcmp.eq.s32.totalorder %v560_v28, %v5581_v60  ;;  %v576_v5 = vand.u32 31, %v448_v50  ;;  %v591_v21 = vand.u32 31, %v463_v25  ;;  %1706 = vst [vmem:[#allocation4 + $0x45] ss:$8 sm:$0xf] %v6501_v49 }
 0x1d1   :  { %v8418_v51 = vsel %vm6697_vm12, 4294967295, %v8417_v51  ;;  %v479_v39 = vadd.s32 976, %v5573_v56  ;;  %4369 = vmatpush.bf16.msk.msra.mxu0 %vm6697_vm12, %v8305_v48  ;;  %vm6707_vm9 = vmpackc.low %vm688_vm4, %vm687_vm8  ;;  %v8419_v63 = vmov 0  ;;  %vm703_vm5 = vcmp.eq.s32.totalorder %v575_v2, %v5581_v60  ;;  %1707 = vst [vmem:[#allocation4 + $0x45] ss:$8 sm:$0xf0] %v6501_v49 }
 0x1d2   :  { %v8420_v63 = vsel %vm6707_vm9, 4294967295, %v8419_v63  ;;  %v592_v43 = vand.u32 31, %v464_v19  ;;  %v480_v40 = vadd.s32 984, %v5573_v56  ;;  %v429_v27 = vadd.s32 576, %v5573_v56  ;;  %4323 = vmatpush.bf16.msk.msrb.mxu2 %vm6707_vm9, %v8305_v48  ;;  %v1748_v25 = vld [vmem:[#allocation4] sm:$0xff]  ;;  %v1749_v2 = vld [vmem:[#allocation4 + $0x8] sm:$0xff] }
 0x1d3   :  { %vm704_vm11 = vcmp.eq.s32.totalorder %v576_v5, %v5581_v60  ;;  %vm719_vm4 = vcmp.eq.s32.totalorder %v591_v21, %v5581_v60  ;;  %v607_v54 = vand.u32 31, %v479_v39  ;;  %v430_v52 = vadd.s32 584, %v5573_v56  ;;  %1726 = vst [vmem:[#allocation4 + $0x46] ss:$8 sm:$0xf] %v6516_v47  ;;  %v1750_v39 = vld [vmem:[#allocation4 + $0x10] sm:$0xff] }
 0x1d4   :  { %vm6722_vm8 = vmpackc.low %vm704_vm11, %vm703_vm5  ;;  %v8421_v53 = vmov 0  ;;  %vm720_vm12 = vcmp.eq.s32.totalorder %v592_v43, %v5581_v60  ;;  %v608_v49 = vand.u32 31, %v480_v40  ;;  %v557_v45 = vand.u32 31, %v429_v27  ;;  %1727 = vst [vmem:[#allocation4 + $0x46] ss:$8 sm:$0xf0] %v6516_v47 }
 0x1d5   :  { %v8422_v53 = vsel %vm6722_vm8, 4294967295, %v8421_v53  ;;  %v445_v44 = vadd.s32 704, %v5573_v56  ;;  %4339 = vmatpush.bf16.msk.msrb.mxu3 %vm6722_vm8, %v8305_v48  ;;  %vm6732_vm9 = vmpackc.low %vm720_vm12, %vm719_vm4  ;;  %v8423_v29 = vmov 0  ;;  %vm735_vm5 = vcmp.eq.s32.totalorder %v607_v54, %v5581_v60  ;;  %1746 = vst [vmem:[#allocation4 + $0x47] ss:$8 sm:$0xf] %v6544_v23 }
 0x1d6   :  { %v8424_v29 = vsel %vm6732_vm9, 4294967295, %v8423_v29  ;;  %v558_v0 = vand.u32 31, %v430_v52  ;;  %v446_v55 = vadd.s32 712, %v5573_v56  ;;  %v461_v13 = vadd.s32 832, %v5573_v56  ;;  %4355 = vmatpush.bf16.msk.msra.mxu1 %vm6732_vm9, %v8305_v48  ;;  %v1751_v43 = vld [vmem:[#allocation4 + $0x18] sm:$0xff] }
 0x1d7   :  { %vm736_vm11 = vcmp.eq.s32.totalorder %v608_v49, %v5581_v60  ;;  %vm685_vm12 = vcmp.eq.s32.totalorder %v557_v45, %v5581_v60  ;;  %v573_v47 = vand.u32 31, %v445_v44  ;;  %v462_v38 = vadd.s32 840, %v5573_v56  ;;  %1747 = vst [vmem:[#allocation4 + $0x47] ss:$8 sm:$0xf0] %v6544_v23 }
 0x1d8   :  { %vm6747_vm4 = vmpackc.low %vm736_vm11, %vm735_vm5  ;;  %v8425_v62 = vmov 0  ;;  %vm686_vm8 = vcmp.eq.s32.totalorder %v558_v0, %v5581_v60  ;;  %v574_v35 = vand.u32 31, %v446_v55  ;;  %v589_v22 = vand.u32 31, %v461_v13 }
 0x1d9   :  { %v8426_v62 = vsel %vm6747_vm4, 4294967295, %v8425_v62  ;;  %v477_v41 = vadd.s32 960, %v5573_v56  ;;  %4371 = vmatpush.bf16.msk.msra.mxu0 %vm6747_vm4, %v8305_v48  ;;  %vm6756_vm9 = vmpackc.low %vm686_vm8, %vm685_vm12  ;;  %v8427_v30 = vmov 0  ;;  %vm701_vm10 = vcmp.eq.s32.totalorder %v573_v47, %v5581_v60 }
 0x1da   :  { %v8428_v30 = vsel %vm6756_vm9, 4294967295, %v8427_v30  ;;  %v590_v23 = vand.u32 31, %v462_v38  ;;  %v478_v61 = vadd.s32 968, %v5573_v56  ;;  %v427_v32 = vadd.s32 560, %v5573_v56  ;;  %4325 = vmatpush.bf16.msk.msrb.mxu2 %vm6756_vm9, %v8305_v48 }
 0x1db   :  { %vm702_vm5 = vcmp.eq.s32.totalorder %v574_v35, %v5581_v60  ;;  %vm717_vm11 = vcmp.eq.s32.totalorder %v589_v22, %v5581_v60  ;;  %v605_v6 = vand.u32 31, %v477_v41  ;;  %v428_v58 = vadd.s32 568, %v5573_v56 }
 0x1dc   :  { %vm6769_vm8 = vmpackc.low %vm702_vm5, %vm701_vm10  ;;  %v8429_v26 = vmov 0  ;;  %vm718_vm12 = vcmp.eq.s32.totalorder %v590_v23, %v5581_v60  ;;  %v606_v24 = vand.u32 31, %v478_v61  ;;  %v555_v1 = vand.u32 31, %v427_v32  ;;  %v1756_v49 = vld [vmem:[#allocation4 + $0x40] sm:$0xff]  ;;  %v1757_v45 = vld [vmem:[#allocation4 + $0x48] sm:$0xff] }
 0x1dd   :  { %v8430_v26 = vsel %vm6769_vm8, 4294967295, %v8429_v26  ;;  %v443_v28 = vadd.s32 688, %v5573_v56  ;;  %4341 = vmatpush.bf16.msk.msrb.mxu3 %vm6769_vm8, %v8305_v48  ;;  %vm6778_vm9 = vmpackc.low %vm718_vm12, %vm717_vm11  ;;  %v8432_v50 = vmov 0  ;;  %vm733_vm4 = vcmp.eq.s32.totalorder %v605_v6, %v5581_v60  ;;  %v1758_v38 = vld [vmem:[#allocation4 + $0x50] sm:$0xff]  ;;  %v1759_v35 = vld [vmem:[#allocation4 + $0x58] sm:$0xff] }
 0x1de   :  { %8431 = vst [vmem:[#allocation104_spill] sm:$0xff] %v8430_v26  ;;  %v8433_v50 = vsel %vm6778_vm9, 4294967295, %v8432_v50  ;;  %v556_v19 = vand.u32 31, %v428_v58  ;;  %v444_v5 = vadd.s32 696, %v5573_v56  ;;  %v459_v21 = vadd.s32 816, %v5573_v56  ;;  %4357 = vmatpush.bf16.msk.msra.mxu1 %vm6778_vm9, %v8305_v48 }
 0x1df   :  { %8434 = vst [vmem:[#allocation105_spill] sm:$0xff] %v8433_v50  ;;  %vm734_vm10 = vcmp.eq.s32.totalorder %v606_v24, %v5581_v60  ;;  %vm6790_vm5 = vcmp.eq.s32.totalorder %v555_v1, %v5581_v60  ;;  %v571_v27 = vand.u32 31, %v443_v28  ;;  %v460_v54 = vadd.s32 824, %v5573_v56 }
 0x1e0   :  { %vm6795_vm11 = vmpackc.low %vm734_vm10, %vm733_vm4  ;;  %v8437_v52 = vmov 0  ;;  %vm684_vm12 = vcmp.eq.s32.totalorder %v556_v19, %v5581_v60  ;;  %v572_v44 = vand.u32 31, %v444_v5  ;;  %v587_v0 = vand.u32 31, %v459_v21 }
 0x1e1   :  { %v8438_v52 = vsel %vm6795_vm11, 4294967295, %v8437_v52  ;;  %v475_v55 = vadd.s32 944, %v5573_v56  ;;  %4373 = vmatpush.bf16.msk.msra.mxu0 %vm6795_vm11, %v8305_v48  ;;  %v1764_v13 = vpack.c.bf16 %v1756_v49, %v1748_v25  ;;  %v1765_v47 = vpack.c.bf16 %v1757_v45, %v1749_v2  ;;  %vm6806_vm4 = vmpackc.low %vm684_vm12, %vm6790_vm5 }
 0x1e2   :  { %8439 = vst [vmem:[#allocation106_spill] sm:$0xff] %v8438_v52  ;;  %v8440_v22 = vmov 0  ;;  %vm699_vm10 = vcmp.eq.s32.totalorder %v571_v27, %v5581_v60  ;;  %v588_v41 = vand.u32 31, %v460_v54  ;;  %v1766_v23 = vpack.c.bf16 %v1758_v38, %v1750_v39  ;;  %4327 = vmatpush.bf16.msk.msrb.mxu2 %vm6806_vm4, %v8305_v48 }
 0x1e3   :  { %v8441_v22 = vsel %vm6806_vm4, 4294967295, %v8440_v22  ;;  %v1767_v61 = vpack.c.bf16 %v1759_v35, %v1751_v43  ;;  %vm700_vm11 = vcmp.eq.s32.totalorder %v572_v44, %v5581_v60  ;;  %vm715_vm9 = vcmp.eq.s32.totalorder %v587_v0, %v5581_v60  ;;  %1780 = vmatmul.bf16.vlgmr.msra.gmra.mxu2 %v1764_v13  ;;  %1794 = vmatmul.bf16.vlgmr.msra.gmra.mxu3 %v1765_v47 }
 0x1e4   :  { %8442 = vst [vmem:[#allocation107_spill] sm:$0xff] %v8441_v22  ;;  %vm6816_vm8 = vmpackc.low %vm700_vm11, %vm699_vm10  ;;  %v8443_v32 = vmov 0  ;;  %vm716_vm5 = vcmp.eq.s32.totalorder %v588_v41, %v5581_v60  ;;  %v476_v6 = vadd.s32 952, %v5573_v56  ;;  %v603_v58 = vand.u32 31, %v475_v55  ;;  %1808 = vmatmul.bf16.vlgmr.msrb.gmra.mxu1 %v1766_v23 }
 0x1e5   :  { %v8444_v32 = vsel %vm6816_vm8, 4294967295, %v8443_v32  ;;  %v425_v24 = vadd.s32 544, %v5573_v56  ;;  %1822 = vmatmul.bf16.vlgmr.msrb.gmra.mxu0 %v1767_v61  ;;  %vm6823_vm12 = vmpackc.low %vm716_vm5, %vm715_vm9  ;;  %v8446_v1 = vmov 0  ;;  %v426_v28 = vadd.s32 552, %v5573_v56  ;;  %4343 = vmatpush.bf16.msk.msrb.mxu3 %vm6816_vm8, %v8305_v48 }
 0x1e6   :  { %8445 = vst [vmem:[#allocation108_spill] sm:$0xff] %v8444_v32  ;;  %v8447_v1 = vsel %vm6823_vm12, 4294967295, %v8446_v1  ;;  %v441_v25 = vadd.s32 672, %v5573_v56  ;;  %v442_v2 = vadd.s32 680, %v5573_v56  ;;  %v457_v19 = vadd.s32 800, %v5573_v56  ;;  %4359 = vmatpush.bf16.msk.msra.mxu1 %vm6823_vm12, %v8305_v48 }
 0x1e7   :  { %8448 = vst [vmem:[#allocation109_spill] sm:$0xff] %v8447_v1  ;;  %v604_v5 = vand.u32 31, %v476_v6  ;;  %vm731_vm9 = vcmp.eq.s32.totalorder %v603_v58, %v5581_v60  ;;  %v553_v21 = vand.u32 31, %v425_v24  ;;  %v458_v39 = vadd.s32 808, %v5573_v56 }
 0x1e8   :  { %v554_v43 = vand.u32 31, %v426_v28  ;;  %v569_v40 = vand.u32 31, %v441_v25  ;;  %v570_v27 = vand.u32 31, %v442_v2  ;;  %v585_v54 = vand.u32 31, %v457_v19 }
 0x1e9   :  { %vm732_vm11 = vcmp.eq.s32.totalorder %v604_v5, %v5581_v60  ;;  %vm681_vm10 = vcmp.eq.s32.totalorder %v553_v21, %v5581_v60  ;;  %v586_v49 = vand.u32 31, %v458_v39  ;;  %v473_v45 = vadd.s32 928, %v5573_v56 }
 0x1ea   :  { %vm6842_vm5 = vmpackc.low %vm732_vm11, %vm731_vm9  ;;  %v8449_v44 = vmov 0  ;;  %vm682_vm12 = vcmp.eq.s32.totalorder %v554_v43, %v5581_v60  ;;  %vm697_vm8 = vcmp.eq.s32.totalorder %v569_v40, %v5581_v60  ;;  %vm698_vm4 = vcmp.eq.s32.totalorder %v570_v27, %v5581_v60 }
 0x1eb   :  { %v8450_v44 = vsel %vm6842_vm5, 4294967295, %v8449_v44  ;;  %vm713_vm2 = vcmp.eq.s32.totalorder %v585_v54, %v5581_v60  ;;  %4375 = vmatpush.bf16.msk.msra.mxu0 %vm6842_vm5, %v8305_v48  ;;  %vm6853_vm3 = vmpackc.low %vm682_vm12, %vm681_vm10  ;;  %v8452_v0 = vmov 0  ;;  %vm714_vm9 = vcmp.eq.s32.totalorder %v586_v49, %v5581_v60 }
 0x1ec   :  { %8451 = vst [vmem:[#allocation110_spill] sm:$0xff] %v8450_v44  ;;  %v8453_v0 = vsel %vm6853_vm3, 4294967295, %v8452_v0  ;;  %v474_v55 = vadd.s32 936, %v5573_v56  ;;  %v601_v13 = vand.u32 31, %v473_v45  ;;  %v423_v47 = vadd.s32 528, %v5573_v56  ;;  %4329 = vmatpush.bf16.msk.msrb.mxu2 %vm6853_vm3, %v8305_v48  ;;  %vm6863_vm11 = vmpackc.low %vm698_vm4, %vm697_vm8 }
 0x1ed   :  { %8454 = vst [vmem:[#allocation111_spill] sm:$0xff] %v8453_v0  ;;  %v8455_v38 = vmov 0  ;;  %v424_v35 = vadd.s32 536, %v5573_v56  ;;  %v439_v41 = vadd.s32 656, %v5573_v56  ;;  %v440_v23 = vadd.s32 664, %v5573_v56  ;;  %4345 = vmatpush.bf16.msk.msrb.mxu3 %vm6863_vm11, %v8305_v48  ;;  %vm6874_vm12 = vmpackc.low %vm714_vm9, %vm713_vm2 }
 0x1ee   :  { %v8456_v38 = vsel %vm6863_vm11, 4294967295, %v8455_v38  ;;  %v455_v61 = vadd.s32 784, %v5573_v56  ;;  %v8458_v6 = vmov 0  ;;  %v602_v58 = vand.u32 31, %v474_v55  ;;  %4361 = vmatpush.bf16.msk.msra.mxu1 %vm6874_vm12, %v8305_v48 }
 0x1ef   :  { %8457 = vst [vmem:[#allocation112_spill] sm:$0xff] %v8456_v38  ;;  %v8459_v6 = vsel %vm6874_vm12, 4294967295, %v8458_v6  ;;  %vm729_vm8 = vcmp.eq.s32.totalorder %v601_v13, %v5581_v60  ;;  %v551_v24 = vand.u32 31, %v423_v47  ;;  %v456_v28 = vadd.s32 792, %v5573_v56 }
 0x1f0   :  { %8460 = vst [vmem:[#allocation113_spill] sm:$0xff] %v8459_v6  ;;  %v552_v25 = vand.u32 31, %v424_v35  ;;  %v567_v2 = vand.u32 31, %v439_v41  ;;  %v568_v19 = vand.u32 31, %v440_v23  ;;  %v583_v5 = vand.u32 31, %v455_v61 }
 0x1f1   :  { %vm730_vm4 = vcmp.eq.s32.totalorder %v602_v58, %v5581_v60  ;;  %vm679_vm2 = vcmp.eq.s32.totalorder %v551_v24, %v5581_v60  ;;  %v584_v21 = vand.u32 31, %v456_v28  ;;  %v471_v39 = vadd.s32 912, %v5573_v56 }
 0x1f2   :  { %vm6886_vm10 = vmpackc.low %vm730_vm4, %vm729_vm8  ;;  %v8461_v43 = vmov 0  ;;  %vm680_vm9 = vcmp.eq.s32.totalorder %v552_v25, %v5581_v60  ;;  %vm695_vm11 = vcmp.eq.s32.totalorder %v567_v2, %v5581_v60  ;;  %vm696_vm12 = vcmp.eq.s32.totalorder %v568_v19, %v5581_v60 }
 0x1f3   :  { %v8462_v43 = vsel %vm6886_vm10, 4294967295, %v8461_v43  ;;  %vm711_vm3 = vcmp.eq.s32.totalorder %v583_v5, %v5581_v60  ;;  %4377 = vmatpush.bf16.msk.msra.mxu0 %vm6886_vm10, %v8305_v48  ;;  %vm6897_vm5 = vmpackc.low %vm680_vm9, %vm679_vm2  ;;  %v8464_v40 = vmov 0  ;;  %vm712_vm8 = vcmp.eq.s32.totalorder %v584_v21, %v5581_v60 }
 0x1f4   :  { %8463 = vst [vmem:[#allocation114_spill] sm:$0xff] %v8462_v43  ;;  %v8465_v40 = vsel %vm6897_vm5, 4294967295, %v8464_v40  ;;  %v472_v27 = vadd.s32 920, %v5573_v56  ;;  %v599_v54 = vand.u32 31, %v471_v39  ;;  %v421_v49 = vadd.s32 512, %v5573_v56  ;;  %4331 = vmatpush.bf16.msk.msrb.mxu2 %vm6897_vm5, %v8305_v48  ;;  %vm6907_vm4 = vmpackc.low %vm696_vm12, %vm695_vm11 }
 0x1f5   :  { %8466 = vst [vmem:[#allocation115_spill] sm:$0xff] %v8465_v40  ;;  %v8467_v45 = vmov 0  ;;  %v422_v55 = vadd.s32 520, %v5573_v56  ;;  %v437_v13 = vadd.s32 640, %v5573_v56  ;;  %v438_v47 = vadd.s32 648, %v5573_v56  ;;  %4347 = vmatpush.bf16.msk.msrb.mxu3 %vm6907_vm4, %v8305_v48  ;;  %vm6918_vm2 = vmpackc.low %vm712_vm8, %vm711_vm3 }
 0x1f6   :  { %v8468_v45 = vsel %vm6907_vm4, 4294967295, %v8467_v45  ;;  %v453_v35 = vadd.s32 768, %v5573_v56  ;;  %v8470_v41 = vmov 0  ;;  %v600_v23 = vand.u32 31, %v472_v27  ;;  %4363 = vmatpush.bf16.msk.msra.mxu1 %vm6918_vm2, %v8305_v48  ;;  %v1752_v27 = vld [vmem:[#allocation4 + $0x20] sm:$0xff] }
 0x1f7   :  { %8469 = vst [vmem:[#allocation116_spill] sm:$0xff] %v8468_v45  ;;  %v8471_v41 = vsel %vm6918_vm2, 4294967295, %v8470_v41  ;;  %vm727_vm11 = vcmp.eq.s32.totalorder %v599_v54, %v5581_v60  ;;  %v549_v61 = vand.u32 31, %v421_v49  ;;  %v454_v58 = vadd.s32 776, %v5573_v56  ;;  %v1760_v54 = vld [vmem:[#allocation4 + $0x60] sm:$0xff] }
 0x1f8   :  { %8472 = vst [vmem:[#allocation117_spill] sm:$0xff] %v8471_v41  ;;  %v550_v24 = vand.u32 31, %v422_v55  ;;  %v565_v28 = vand.u32 31, %v437_v13  ;;  %v566_v25 = vand.u32 31, %v438_v47  ;;  %v581_v2 = vand.u32 31, %v453_v35  ;;  %v1753_v47 = vld [vmem:[#allocation4 + $0x28] sm:$0xff] }
 0x1f9   :  { %vm728_vm12 = vcmp.eq.s32.totalorder %v600_v23, %v5581_v60  ;;  %vm677_vm3 = vcmp.eq.s32.totalorder %v549_v61, %v5581_v60  ;;  %v582_v19 = vand.u32 31, %v454_v58  ;;  %v469_v5 = vadd.s32 896, %v5573_v56  ;;  %v1761_v35 = vld [vmem:[#allocation4 + $0x68] sm:$0xff]  ;;  %v1754_v61 = vld [vmem:[#allocation4 + $0x30] sm:$0xff] }
 0x1fa   :  { %vm6930_vm9 = vmpackc.low %vm728_vm12, %vm727_vm11  ;;  %v8473_v21 = vmov 0  ;;  %vm678_vm8 = vcmp.eq.s32.totalorder %v550_v24, %v5581_v60  ;;  %vm693_vm4 = vcmp.eq.s32.totalorder %v565_v28, %v5581_v60  ;;  %vm694_vm2 = vcmp.eq.s32.totalorder %v566_v25, %v5581_v60  ;;  %v1762_v58 = vld [vmem:[#allocation4 + $0x70] sm:$0xff] }
 0x1fb   :  { %v8474_v21 = vsel %vm6930_vm9, 4294967295, %v8473_v21  ;;  %vm6938_vm5 = vcmp.eq.s32.totalorder %v581_v2, %v5581_v60  ;;  %4379 = vmatpush.bf16.msk.msra.mxu0 %vm6930_vm9, %v8305_v48  ;;  %vm6945_vm11 = vmpackc.low %vm678_vm8, %vm677_vm3  ;;  %v8478_v49 = vmov 0  ;;  %vm710_vm12 = vcmp.eq.s32.totalorder %v582_v19, %v5581_v60  ;;  %v1755_v19 = vld [vmem:[#allocation4 + $0x38] sm:$0xff] }
 0x1fc   :  { %8475 = vst [vmem:[#allocation118_spill] sm:$0xff] %v8474_v21  ;;  %v8479_v49 = vsel %vm6945_vm11, 4294967295, %v8478_v49  ;;  %v470_v55 = vadd.s32 904, %v5573_v56  ;;  %v597_v13 = vand.u32 31, %v469_v5  ;;  %4333 = vmatpush.bf16.msk.msrb.mxu2 %vm6945_vm11, %v8305_v48  ;;  %vm6954_vm10 = vmpackc.low %vm694_vm2, %vm693_vm4  ;;  %v8481_v23 = vmov 0  ;;  %v1763_v5 = vld [vmem:[#allocation4 + $0x78] sm:$0xff] }
 0x1fd   :  { %8480 = vst [vmem:[#allocation119_spill] sm:$0xff] %v8479_v49  ;;  %v8482_v23 = vsel %vm6954_vm10, 4294967295, %v8481_v23  ;;  %4349 = vmatpush.bf16.msk.msrb.mxu3 %vm6954_vm10, %v8305_v48  ;;  %vm6963_vm3 = vmpackc.low %vm710_vm12, %vm6938_vm5  ;;  %v8484_v56 = vmov 0  ;;  %v1768_v28 = vpack.c.bf16 %v1760_v54, %v1752_v27  ;;  %v1769_v25 = vpack.c.bf16 %v1761_v35, %v1753_v47 }
 0x1fe   :  { %8483 = vst [vmem:[#allocation120_spill] sm:$0xff] %v8482_v23  ;;  %v8485_v56 = vsel %vm6963_vm3, 4294967295, %v8484_v56  ;;  %v598_v24 = vand.u32 31, %v470_v55  ;;  %vm725_vm8 = vcmp.eq.s32.totalorder %v597_v13, %v5581_v60  ;;  %4365 = vmatpush.bf16.msk.msra.mxu1 %vm6963_vm3, %v8305_v48  ;;  %v1770_v2 = vpack.c.bf16 %v1762_v58, %v1754_v61 }
 0x1ff   :  { %8486 = vst [vmem:[#allocation121_spill] sm:$0xff] %v8485_v56  ;;  %1836 = vmatmul.bf16.vlgmr.msrb.gmra.mxu2 %v1768_v28  ;;  %v8487_v39 = vmov 0  ;;  %v1771_v27 = vpack.c.bf16 %v1763_v5, %v1755_v19  ;;  %vm8490_vm5 = vcmask 261120  }
 0x200   :  { %vm726_vm4 = vcmp.eq.s32.totalorder %v598_v24, %v5581_v60  ;;  %1850 = vmatmul.bf16.vlgmr.msrb.gmra.mxu3 %v1769_v25  ;;  %vm8491_vm12 = vmmov %vm8490_vm5 }
 0x201   :  { %vm6972_vm2 = vmpackc.low %vm726_vm4, %vm725_vm8  ;;  %1864 = vmatmul.bf16.vlgmr.msra.gmra.mxu1 %v1770_v2 }
 0x202   :  { %v8488_v39 = vsel %vm6972_vm2, 4294967295, %v8487_v39  ;;  %4381 = vmatpush.bf16.msk.msra.mxu0 %vm6972_vm2, %v8305_v48 }
 0x203   :  { %8489 = vst [vmem:[#allocation122_spill] sm:$0xff] %v8488_v39 }
 0x205   :  { %1878 = vmatmul.bf16.vlgmr.msra.gmra.mxu0 %v1771_v27 }
 0x261   :  { %v1809_v13 = vpop.f32.mrf.mxu1 }
 0x262   :  { %v1823_v60 = vpop.f32.mrf.mxu0 }
 0x266   :  { %v1781_v54 = vpop.f32.mrf.mxu2  ;;  %v1795_v55 = vpop.f32.mrf.mxu3 }
 0x267   :  { %v1796_v35 = vadd.f32 %v1795_v55, %v1781_v54 }
 0x269   :  { %v1811_v58 = vpop.f32.mrf.mxu1  ;;  %v1810_v28 = vadd.f32 %v1809_v13, %v1796_v35 }
 0x26a   :  { %v1825_v24 = vpop.f32.mrf.mxu0 }
 0x26b   :  { %v1824_v23 = vadd.f32 %v1823_v60, %v1810_v28 }
 0x26e   :  { %v1783_v47 = vpop.f32.mrf.mxu2  ;;  %v1797_v61 = vpop.f32.mrf.mxu3 }
 0x26f   :  { %v1798_v56 = vadd.f32 %v1797_v61, %v1783_v47 }
 0x271   :  { %v1812_v48 = vadd.f32 %v1811_v58, %v1798_v56 }
 0x273   :  { %v1826_v41 = vadd.f32 %v1825_v24, %v1812_v48 }
 0x27e   :  { %v1865_v39 = vpop.f32.mrf.mxu1 }
 0x282   :  { %v1837_v25 = vpop.f32.mrf.mxu2  ;;  %v1879_v19 = vpop.f32.mrf.mxu0 }
 0x283   :  { %v1838_v49 = vadd.f32 %v1837_v25, %v1824_v23  ;;  %v1851_v21 = vpop.f32.mrf.mxu3 }
 0x285   :  { %v1852_v2 = vadd.f32 %v1851_v21, %v1838_v49 }
 0x286   :  { %v1867_v43 = vpop.f32.mrf.mxu1 }
 0x287   :  { %v1866_v5 = vadd.f32 %v1865_v39, %v1852_v2 }
 0x289   :  { %v1880_v27 = vadd.f32 %v1879_v19, %v1866_v5 }
 0x28a   :  { %v1839_v45 = vpop.f32.mrf.mxu2  ;;  %v1881_v47 = vpop.f32.mrf.mxu0 }
 0x28b   :  { %1884 = vst.msk [vmem:[#allocation5] sm:$0xff] %vm8490_vm5, %v1880_v27  ;;  %v1840_v54 = vadd.f32 %v1839_v45, %v1826_v41  ;;  %v1853_v55 = vpop.f32.mrf.mxu3 }
 0x28d   :  { %v1854_v40 = vadd.f32 %v1853_v55, %v1840_v54 }
 0x28f   :  { %v1868_v13 = vadd.f32 %v1867_v43, %v1854_v40 }
 0x291   :  { %v1882_v60 = vadd.f32 %v1881_v47, %v1868_v13 }
 0x293   :  { %1885 = vst.msk [vmem:[#allocation5 + $0x8] sm:$0xff] %vm8491_vm12, %v1882_v60 }
 0x294 LB: > { %s1895_s5 = sld [smem:[#allocation11 + %s5297_s15]]  ;;  %s1898_s12 = scalar_lea.vmem [#allocation5], %s5297_s15  ;;  %vm8163_vm8 = vcmask 253952   ;;  %s5297_s15 = sphi %s5295_s15, %s1894_s15  }
 0x295   : > { %s1894_s15 = sadd.s32 1, %s5297_s15  }
 0x296   : > { %p1891_p0 = scmp.ge.s32.totalorder %s1894_s15, 16  }
 0x297   :  { %1933 = vmatpush.msra.mxu2 (%p1891_p0), %v5475_v4  ;;  %2017 = vmatpush.msrb.mxu0 (%p1891_p0), %v5499_v16  ;;  %v6985_v40 = vperm.slane (%p1891_p0), %v5547_v31, 0  ;;  %v8492_v45 = vmov (%p1891_p0), 0.0   ;;  %vm8493_vm4 = vcmask (%p1891_p0), 261120   ;;  %vm8494_vm5 = vcmask (%p1891_p0), 257024   ;;  %v8495_v31 = vld [vmem:[#allocation34_spill] sm:$0xff] (%p1891_p0)  ;;  %v8496_v35 = vld [vmem:[#allocation45_spill] sm:$0xff] (%p1891_p0) }
 0x298   :  { %1959 = vmatpush.msra.mxu3 (%p1891_p0), %v5483_v8  ;;  %1985 = vmatpush.msrb.mxu1 (%p1891_p0), %v5491_v12  ;;  %v8497_v61 = vld [vmem:[#allocation37_spill] sm:$0xff] (%p1891_p0)  ;;  %v8500_v28 = vld [vmem:[#allocation44_spill] sm:$0xff] (%p1891_p0)  ;;  %vm8501_vm12 = vmmov (%p1891_p0), %vm8493_vm4  ;;  %v8510_v13 = vmov (%p1891_p0), 1.0|1.0   ;;  %s2306_s19 = sld [smem:[#allocation10]] (%p1891_p0) }
 0x299   :  { %1934 = vmatpush.msra.mxu2 (%p1891_p0), %v5473_v3  ;;  %2018 = vmatpush.msrb.mxu0 (%p1891_p0), %v5497_v15  ;;  %v8498_v58 = vld [vmem:[#allocation41_spill] sm:$0xff] (%p1891_p0)  ;;  %v8502_v25 = vld [vmem:[#allocation72_spill] sm:$0xff] (%p1891_p0)  ;;  %v8503_v2 = vld [vmem:[#allocation50_spill] sm:$0xff] (%p1891_p0)  ;;  %s4440_s17 = sld [smem:[#allocation10 + $0x1]] (%p1891_p0) }
 0x29a   : > { %v1899_v21 = vld [vmem:[%s1898_s12] sm:$0x1]  ;;  %s1896_s1 = scalar_lea.vmem [#allocation7], %s1895_s5  ;;  %1893 = sbr.rel (!%p1891_p0) target bundleno = 660 (0x294), region = 242  ;;  %1960 = vmatpush.msra.mxu3 (%p1891_p0), %v5481_v7  ;;  %1986 = vmatpush.msrb.mxu1 (%p1891_p0), %v5489_v11  ;;  %v8499_v24 = vld [vmem:[#allocation33_spill] sm:$0xff] (%p1891_p0)  ;;  %v8504_v19 = vld [vmem:[#allocation36_spill] sm:$0xff] (%p1891_p0) }
 0x29b   : > { %v1897_v49 = vld [vmem:[%s1896_s1] sm:$0x1]  ;;  %1935 = vmatpush.msra.mxu2 (%p1891_p0), %v8495_v31  ;;  %2019 = vmatpush.msrb.mxu0 (%p1891_p0), %v8496_v35  ;;  %v8506_v5 = vld [vmem:[#allocation40_spill] sm:$0xff] (%p1891_p0)  ;;  %v8507_v27 = vld [vmem:[#allocation49_spill] sm:$0xff] (%p1891_p0)  ;;  %s4443_s30 = sld [smem:[#allocation10 + $0x2]] (%p1891_p0) }
 0x29c   : > { %v1900_v23 = vadd.f32 %v1899_v21, %v1897_v49  ;;  %1961 = vmatpush.msra.mxu3 (%p1891_p0), %v8497_v61  ;;  %1987 = vmatpush.msrb.mxu1 (%p1891_p0), %v8498_v58  ;;  %v8508_v54 = vld [vmem:[#allocation54_spill] sm:$0xff] (%p1891_p0)  ;;  %v8512_v60 = vld [vmem:[#allocation48_spill] sm:$0xff] (%p1891_p0)  ;;  %v8513_v21 = vld [vmem:[#allocation53_spill] sm:$0xff] (%p1891_p0)  ;;  %s4446_s2 = sld [smem:[#allocation10 + $0x3]] (%p1891_p0) }
 0x29d   :  { %1936 = vmatpush.msra.mxu2 (%p1891_p0), %v8499_v24  ;;  %2020 = vmatpush.msrb.mxu0 (%p1891_p0), %v8500_v28  ;;  %v8514_v49 = vld [vmem:[#allocation61_spill] sm:$0xff] (%p1891_p0)  ;;  %v8528_v35 = vld [vmem:[#allocation66_spill] sm:$0xff] (%p1891_p0)  ;;  %v8533_v58 = vld [vmem:[#allocation67_spill] sm:$0xff] (%p1891_p0)  ;;  %s7325_s7 = sld [smem:[#allocation10 + $0x4]] (%p1891_p0) }
 0x29e   : > { %1902 = vst.msk [vmem:[%s1896_s1] sm:$0x1] %vm8163_vm8, %v1900_v23  ;;  %4388 = vmatmul.msk.f32.vlgmr.msrb.gmra.mxu0 (%p1891_p0), %vm8493_vm4, %v8502_v25  ;;  %1962 = vmatpush.msra.mxu3 (%p1891_p0), %v8504_v19  ;;  %vm8509_vm8 = vmmov (%p1891_p0), %vm8493_vm4  ;;  %v8516_v23 = vld [vmem:[#allocation47_spill] sm:$0xff] (%p1891_p0)  ;;  %v8524_v31 = vld [vmem:[#allocation65_spill] sm:$0xff] (%p1891_p0)  ;;  %s2307_s16 = sshra.s32 (%p1891_p0), %s2306_s19, 3  ;;  %s2310_s27 = sand.u32 (%p1891_p0), 7, %s2306_s19 }
 0x29f   :  { %2043 = vmatpush.msrb.mxu2 %v8503_v2  ;;  %1988 = vmatpush.msrb.mxu1 %v8506_v5  ;;  %v8531_v61 = vld [vmem:[#allocation70_spill] sm:$0xff]  ;;  %v8535_v24 = vld [vmem:[#allocation69_spill] sm:$0xff]  ;;  %v8537_v28 = vld [vmem:[#allocation68_spill] sm:$0xff]  ;;  %s4894_s6 = sshll.u32 %s2307_s16, 6  ;;  %s2325_s14 = sshra.s32 %s4440_s17, 3 }
 0x2a0   :  { %2069 = vmatpush.msrb.mxu3 %v8508_v54  ;;  %4404 = vmatpush.bf16.msk.msra.mxu0 %vm5641_vm7, %v8510_v13  ;;  %vm8523_vm7 = vmmov %vm8493_vm4  ;;  %vm8532_vm3 = vnez %v8531_v61  ;;  %v8541_v2 = vld [vmem:[#allocation71_spill] sm:$0xff]  ;;  %v8545_v5 = vld [vmem:[#allocation74_spill] sm:$0xff]  ;;  %s7327_s11 = sld [smem:[#allocation10 + $0x5]]  ;;  %s7329_s21 = sadd.s32 %s4894_s6, %s2310_s27 }
 0x2a1   :  { %2044 = vmatpush.msrb.mxu2 %v8507_v27  ;;  %v8543_v19 = vld [vmem:[#allocation75_spill] sm:$0xff]  ;;  %v8551_v47 = vld [vmem:[#allocation58_spill] sm:$0xff]  ;;  %v8562_v7 = vld [vmem:[#allocation57_spill] sm:$0xff]  ;;  %s2343_s0 = sshra.s32 %s4443_s30, 3  ;;  %s2328_s23 = sand.u32 7, %s4440_s17 }
 0x2a2   :  { %2070 = vmatpush.msrb.mxu3 %v8513_v21  ;;  %v8553_v21 = vld [vmem:[#allocation55_spill] sm:$0xff]  ;;  %v7112_v15 = vperm.slane %v8562_v7, 0  ;;  %s2361_s13 = sshra.s32 %s4446_s2, 3  ;;  %s4895_s24 = sshll.u32 %s2325_s14, 6 }
 0x2a3   :  { %2045 = vmatpush.msrb.mxu2 %v8512_v60  ;;  %v7082_v60 = vperm.slane %v8551_v47, 0  ;;  %v8557_v27 = vld [vmem:[#allocation59_spill] sm:$0xff]  ;;  %s2346_s10 = sand.u32 7, %s4443_s30  ;;  %s4896_s29 = sshll.u32 %s2343_s0, 6 }
 0x2a4   :  { %v7095_v54 = vperm.slane %v8557_v27, 0  ;;  %s2364_s9 = sand.u32 7, %s4446_s2  ;;  %s4897_s3 = sshll.u32 %s2361_s13, 6 }
 0x2a5   :  { %v1903_v43 = vld [vmem:[#allocation7] sm:$0xff]  ;;  %v1904_v41 = vld [vmem:[#allocation7 + $0x8] sm:$0xf]  ;;  %2046 = vmatpush.msrb.mxu2 %v8516_v23  ;;  %8552 = vst [vmem:[#allocation72_spill] sm:$0xff] %v7082_v60  ;;  %s7331_s8 = sld [smem:[#allocation10 + $0x6]]  ;;  %s2379_s26 = sshra.s32 %s7325_s7, 3 }
 0x2a6   :  { %2732 = vst.msk [vmem:[#allocation7] sm:$0xff] %vm8493_vm4, %v8492_v45  ;;  %v1908_v56 = vadd.f32 %v6985_v40, %v1903_v43  ;;  %v1909_v48 = vadd.f32 %v6985_v40, %v1904_v41  ;;  %v8517_v43 = vld [vmem:[#allocation52_spill] sm:$0xff]  ;;  %v8520_v41 = vld [vmem:[#allocation51_spill] sm:$0xff]  ;;  %s7334_s28 = sadd.s32 %s4895_s24, %s2328_s23  ;;  %s7336_s22 = sadd.s32 %s4896_s29, %s2346_s10 }
 0x2a7   :  { %2733 = vst.msk [vmem:[#allocation7 + $0x8] sm:$0xf] %vm8494_vm5, %v8492_v45  ;;  %vm8505_vm5 = vmmov %vm8493_vm4  ;;  %2071 = vmatpush.msrb.mxu3 %v8517_v43  ;;  %v8518_v45 = vld [vmem:[#allocation73_spill] sm:$0xff]  ;;  %s7338_s4 = sadd.s32 %s4897_s3, %s2364_s9  ;;  %s2397_s25 = sshra.s32 %s7327_s11, 3 }
 0x2a8   :  { %v1910_v39 = vmax.f32 %v1908_v56, 0.0  ;;  %v1911_v55 = vmax.f32 %v1909_v48, 0.0  ;;  %v8521_v56 = vld [vmem:[#allocation63_spill] sm:$0xff]  ;;  %v8555_v48 = vld [vmem:[#allocation56_spill] sm:$0xff]  ;;  %8558 = vst [vmem:[#allocation55_spill] sm:$0xff] %v7095_v54  ;;  %s2382_s15 = sand.u32 7, %s7325_s7 }
 0x2a9   :  { %2072 = vmatpush.msrb.mxu3 %v8520_v41  ;;  %s4898_s5 = sshll.u32 %s2379_s26, 6  ;;  %s2400_s12 = sand.u32 7, %s7327_s11 }
 0x2aa   :  { %4382 = vmatmul.msk.f32.vlgmr.msra.gmra.mxu2 %vm8501_vm12, %v1910_v39  ;;  %4384 = vmatmul.msk.f32.vlgmr.msra.gmra.mxu3 %vm8505_vm5, %v1910_v39  ;;  %vm8515_vm12 = vnez %v8514_v49  ;;  %vm8522_vm5 = vnez %v8521_v56  ;;  %v7085_v49 = vperm.slane %v8553_v21, 0  ;;  %s7343_s1 = sld [smem:[#allocation10 + $0x7]]  ;;  %s4899_s19 = sshll.u32 %s2397_s25, 6 }
 0x2ab   :  { %4386 = vmatmul.msk.f32.vlgmr.msrb.gmra.mxu1 %vm8509_vm8, %v1910_v39  ;;  %vm8519_vm8 = vmmov %vm8493_vm4  ;;  %4409 = vmatpush.bf16.msk.msra.mxu2 %vm8522_vm5, %v8510_v13  ;;  %v8526_v39 = vld [vmem:[#allocation64_spill] sm:$0xff]  ;;  %vm8536_vm5 = vnez %v8535_v24  ;;  %s7345_s17 = sld [smem:[#allocation10 + $0x8]]  ;;  %s7347_s30 = sadd.s32 %s4898_s5, %s2382_s15 }
 0x2ac   :  { %4399 = vmatpush.bf16.msk.msra.mxu1 %vm8515_vm12, %v8510_v13  ;;  %4389 = vmatmul.msk.f32.gmra.mxu0 %vm8519_vm8, %v8518_v45  ;;  %vm8525_vm12 = vnez %v8524_v31  ;;  %vm8527_vm2 = vnez %v8526_v39  ;;  %vm8530_vm8 = vmmov %vm8523_vm7  ;;  %8554 = vst [vmem:[#allocation73_spill] sm:$0xff] %v7085_v49  ;;  %s7349_s2 = sld [smem:[#allocation10 + $0x9]]  ;;  %s2415_s16 = sshra.s32 %s7331_s8, 3 }
 0x2ad   :  { %4414 = vmatpush.bf16.msk.msra.mxu3 %vm8527_vm2, %v8510_v13  ;;  %vm8538_vm2 = vnez %v8537_v28  ;;  %s7352_s27 = sadd.s32 %s4899_s19, %s2400_s12  ;;  %s2418_s7 = sand.u32 7, %s7331_s8 }
 0x2ae   :  { %s4900_s6 = sshll.u32 %s2415_s16, 6  ;;  %s7355_s14 = sld [smem:[#allocation10 + $0xa]] }
 0x2af   :  { %s7358_s0 = sld [smem:[#allocation10 + $0xb]]  ;;  %s7360_s23 = sadd.s32 %s4900_s6, %s2418_s7 }
 0x2b0   :  { %4401 = vmatpush.bf16.msk.msra.mxu1 %vm8525_vm12, %v8510_v13  ;;  %vm8539_vm12 = vmmov %vm8530_vm8  ;;  %s2433_s11 = sshra.s32 %s7343_s1, 3  ;;  %s2436_s24 = sand.u32 7, %s7343_s1 }
 0x2b1   :  { %4416 = vmatpush.bf16.msk.msra.mxu3 %vm8538_vm2, %v8510_v13  ;;  %s2451_s13 = sshra.s32 %s7345_s17, 3  ;;  %s4901_s29 = sshll.u32 %s2433_s11, 6 }
 0x2b2   :  { %4383 = vmatmul.msk.f32.gmra.mxu2 %vm8493_vm4, %v1911_v55  ;;  %4385 = vmatmul.msk.f32.gmra.mxu3 %vm8523_vm7, %v1911_v55  ;;  %vm8529_vm4 = vnez %v8528_v35  ;;  %vm8534_vm7 = vnez %v8533_v58  ;;  %s2469_s10 = sshra.s32 %s7349_s2, 3  ;;  %s2454_s9 = sand.u32 7, %s7345_s17 }
 0x2b3   :  { %4406 = vmatpush.bf16.msk.msra.mxu0 %vm8529_vm4, %v8510_v13  ;;  %4387 = vmatmul.msk.f32.gmra.mxu1 %vm8530_vm8, %v1911_v55  ;;  %vm8544_vm4 = vnez %v8543_v19  ;;  %s4902_s3 = sshll.u32 %s2451_s13, 6  ;;  %s2472_s8 = sand.u32 7, %s7349_s2 }
 0x2b4   :  { %4411 = vmatpush.bf16.msk.msra.mxu2 %vm8534_vm7, %v8510_v13  ;;  %4419 = vmatpush.bf16.msk.msrb.mxu1 %vm8536_vm5, %v8510_v13  ;;  %vm8546_vm7 = vnez %v8545_v5  ;;  %vm8549_vm5 = vmmov %vm8530_vm8  ;;  %s4903_s26 = sshll.u32 %s2469_s10, 6  ;;  %s7367_s25 = sld [smem:[#allocation10 + $0xc]] }
 0x2b5   :  { %vm8550_vm2 = vmmov %vm8549_vm5  ;;  %s7369_s15 = sadd.s32 %s4901_s29, %s2436_s24  ;;  %s7371_s5 = sld [smem:[#allocation10 + $0xd]] }
 0x2b6   :  { %8663 = sst [smem:[#allocation123_spill]] %s7369_s15  ;;  %s7373_s12 = sadd.s32 %s4902_s3, %s2454_s9 }
 0x2b7   :  { %4424 = vmatpush.bf16.msk.msrb.mxu0 %vm8532_vm3, %v8510_v13  ;;  %vm8542_vm3 = vnez %v8541_v2  ;;  %v7092_v2 = vperm.slane %v8555_v48, 0  ;;  %8664 = sst [smem:[#allocation124_spill]] %s7373_s12  ;;  %s7377_s19 = sadd.s32 %s4903_s26, %s2472_s8 }
 0x2b8   :  { %4421 = vmatpush.bf16.msk.msrb.mxu1 %vm8544_vm4, %v8510_v13  ;;  %s7375_s1 = sld [smem:[#allocation10 + $0xe]]  ;;  %s2487_s2 = sshra.s32 %s7355_s14, 3 }
 0x2b9   :  { %8556 = vst [vmem:[#allocation58_spill] sm:$0xff] %v7092_v2  ;;  %8665 = sst [smem:[#allocation125_spill]] %s7377_s19  ;;  %s2505_s16 = sshra.s32 %s7358_s0, 3 }
 0x2ba   :  { %4390 = vmatmul.msk.f32.vlgmr.msrb.gmra.mxu2 %vm8539_vm12, %v8502_v25  ;;  %4392 = vmatmul.msk.f32.vlgmr.msrb.gmra.mxu3 %vm8530_vm8, %v8502_v25  ;;  %s7379_s17 = sld [smem:[#allocation10 + $0xf]]  ;;  %s2490_s7 = sand.u32 7, %s7355_s14 }
 0x2bb   :  { %4426 = vmatpush.bf16.msk.msrb.mxu0 %vm5864_vm13, %v8510_v13  ;;  %4429 = vmatpush.bf16.msk.msrb.mxu2 %vm8542_vm3, %v8510_v13  ;;  %s4904_s6 = sshll.u32 %s2487_s2, 6  ;;  %s2508_s11 = sand.u32 7, %s7358_s0 }
 0x2bc   :  { %4434 = vmatpush.bf16.msk.msrb.mxu3 %vm8546_vm7, %v8510_v13  ;;  %s2523_s13 = sshra.s32 %s7367_s25, 3  ;;  %s4905_s24 = sshll.u32 %s2505_s16, 6 }
 0x2bd   :  { %s2541_s10 = sshra.s32 %s7371_s5, 3  ;;  %s2526_s29 = sand.u32 7, %s7367_s25 }
 0x2be   :  { %s2559_s9 = sshra.s32 %s7375_s1, 3  ;;  %s4906_s3 = sshll.u32 %s2523_s13, 6 }
 0x2bf   :  { %4431 = vmatpush.bf16.msk.msrb.mxu2 %vm5875_vm14, %v8510_v13  ;;  %s2544_s14 = sand.u32 7, %s7371_s5  ;;  %s4907_s26 = sshll.u32 %s2541_s10, 6 }
 0x2c0   :  { %4436 = vmatpush.bf16.msk.msrb.mxu3 %vm5882_vm0, %v8510_v13  ;;  %s2577_s8 = sshra.s32 %s7379_s17, 3  ;;  %s2562_s0 = sand.u32 7, %s7375_s1 }
 0x2c1   :  { %s4908_s2 = sshll.u32 %s2559_s9, 6  ;;  %s2580_s20 = sand.u32 7, %s7379_s17 }
 0x2c2   :  { %4391 = vmatmul.msk.f32.gmra.mxu2 %vm8549_vm5, %v8518_v45  ;;  %4393 = vmatmul.msk.f32.gmra.mxu3 %vm8550_vm2, %v8518_v45  ;;  %s4909_s18 = sshll.u32 %s2577_s8, 6  ;;  %s7393_s19 = sadd.s32 %s4904_s6, %s2490_s7 }
 0x2c3   :  { %s7395_s16 = sadd.s32 %s4905_s24, %s2508_s11  ;;  %s7397_s12 = sadd.s32 %s4906_s3, %s2526_s29 }
 0x2c4   :  { %s7399_s15 = sadd.s32 %s4907_s26, %s2544_s14  ;;  %s7401_s25 = sadd.s32 %s4908_s2, %s2562_s0 }
 0x2c5   :  { %s7403_s5 = sadd.s32 %s4909_s18, %s2580_s20  ;;  %s2314_s1 = scalar_lea.vmem [#allocation3], %s7329_s21 }
 0x2c6   :  { %s2332_s18 = scalar_lea.vmem [#allocation3], %s7334_s28  ;;  %s2350_s20 = scalar_lea.vmem [#allocation3], %s7336_s22 }
 0x2c7   :  { %s2368_s21 = scalar_lea.vmem [#allocation3], %s7338_s4  ;;  %s2386_s28 = scalar_lea.vmem [#allocation3], %s7347_s30 }
 0x2c8   :  { %s2404_s22 = scalar_lea.vmem [#allocation3], %s7352_s27  ;;  %s8666_s4 = sld [smem:[#allocation123_spill]] }
 0x2c9   :  { %s2422_s30 = scalar_lea.vmem [#allocation3], %s7360_s23  ;;  %s8667_s17 = sld [smem:[#allocation124_spill]] }
 0x2ca   :  { %s8668_s7 = sld [smem:[#allocation125_spill]]  ;;  %s2494_s11 = scalar_lea.vmem [#allocation3], %s7393_s19 }
 0x2cb   :  { %s2512_s13 = scalar_lea.vmem [#allocation3], %s7395_s16  ;;  %s2530_s19 = scalar_lea.vmem [#allocation3], %s7397_s12 }
 0x2cc   :  { %s2548_s24 = scalar_lea.vmem [#allocation3], %s7399_s15  ;;  %s2566_s10 = scalar_lea.vmem [#allocation3], %s7401_s25 }
 0x2cd   :  { %s2584_s12 = scalar_lea.vmem [#allocation3], %s7403_s5  ;;  %s5299_s15 = smov 0  }
 0x2ce   :  { %s2440_s27 = scalar_lea.vmem [#allocation3], %s8666_s4 }
 0x2cf   :  { %s2458_s23 = scalar_lea.vmem [#allocation3], %s8667_s17 }
 0x2d0   :  { %s2476_s6 = scalar_lea.vmem [#allocation3], %s8668_s7 }
 0x31b   :  { %v2022_v55 = vpop.f32.mrf.mxu0 }
 0x31c   :  { %v2023_v23 = vadd.f32 %v2022_v55, %v7082_v60 }
 0x329   :  { %v2025_v31 = vpop.f32.mrf.mxu0 }
 0x32a   :  { %v2026_v35 = vadd.f32 %v2025_v31, %v7082_v60 }
 0x32d   :  { %v1938_v43 = vpop.f32.mrf.mxu2  ;;  %v1964_v61 = vpop.f32.mrf.mxu3 }
 0x32e   :  { %v1939_v41 = vadd.f32 %v1938_v43, %v7085_v49  ;;  %v1965_v47 = vadd.f32 %v1964_v61, %v7092_v2 }
 0x330   :  { %v2080_v56 = vadd.f32 %v2023_v23, %v1939_v41 }
 0x332   :  { %v4394_v39 = vmul.f32 -1.442695, %v2080_v56 }
 0x334   :  { %4977 = vpow2.f32 %v4394_v39 }
 0x335   :  { %v1941_v58 = vpop.f32.mrf.mxu2  ;;  %v1967_v43 = vpop.f32.mrf.mxu3 }
 0x336   :  { %v1942_v24 = vadd.f32 %v1941_v58, %v7085_v49  ;;  %v1968_v58 = vadd.f32 %v1967_v43, %v7092_v2  ;;  %v8559_v2 = vld [vmem:[#allocation60_spill] sm:$0xff] }
 0x337   :  { %v7102_v11 = vperm.slane %v8559_v2, 0 }
 0x338   :  { %v2081_v28 = vadd.f32 %v2026_v35, %v1942_v24 }
 0x33a   :  { %v4978_v19 = vpop.eup %4977  ;;  %v4395_v5 = vmul.f32 -1.442695, %v2081_v28 }
 0x33b   :  { %v2088_v55 = vadd.f32 1.0, %v4978_v19 }
 0x33c   :  { %4979 = vpow2.f32 %v4395_v5 }
 0x33d   :  { %4981 = vrcp.f32 %v2088_v55  ;;  %v2048_v21 = vpop.f32.mrf.mxu2  ;;  %v2074_v5 = vpop.f32.mrf.mxu3  ;;  %v2101_v43 = vand.u32 2147483648, %v2088_v55  ;;  %vm2095_vm3 = vweird.f32 %v2088_v55 }
 0x33e   :  { %v2049_v23 = vadd.f32 %v2048_v21, %v7095_v54 }
 0x340   :  { %v2120_v41 = vadd.f32 %v2049_v23, %v1965_v47  ;;  %v1990_v23 = vpop.f32.mrf.mxu1 }
 0x342   :  { %v4980_v56 = vpop.eup %4979  ;;  %v4396_v31 = vmul.f32 -1.442695, %v2120_v41 }
 0x343   :  { %v4982_v39 = vpop.eup %4981  ;;  %v2089_v35 = vadd.f32 1.0, %v4980_v56 }
 0x344   :  { %4983 = vpow2.f32 %v4396_v31  ;;  %v2091_v24 = vmul.f32 %v4982_v39, %v2088_v55  ;;  %vm2096_vm12 = vweird.f32 %v4982_v39 }
 0x345   :  { %4985 = vrcp.f32 %v2089_v35  ;;  %v2051_v28 = vpop.f32.mrf.mxu2  ;;  %vm7104_vm4 = vmor %vm2095_vm3, %vm2096_vm12  ;;  %vm2110_vm7 = vweird.f32 %v2089_v35 }
 0x346   :  { %v2052_v48 = vadd.f32 %v2051_v28, %v7095_v54  ;;  %v2092_v19 = vsub.f32 1.0, %v2091_v24  ;;  %v2099_v24 = vand.u32 2147483647, %v2088_v55  ;;  %v2075_v55 = vadd.f32 %v2074_v5, %v7102_v11 }
 0x348   :  { %v2121_v61 = vadd.f32 %v2052_v48, %v1968_v58  ;;  %v2093_v27 = vmul.f32 %v4982_v39, %v2092_v19  ;;  %v2114_v19 = vand.u32 2147483647, %v2089_v35  ;;  %vm2100_vm5 = vcmp.eq.f32.partialorder %v2099_v24, 8.507059e+37 }
 0x34a   :  { %v4984_v60 = vpop.eup %4983  ;;  %v4397_v21 = vmul.f32 -1.442695, %v2121_v61  ;;  %v2094_v56 = vadd.f32 %v4982_v39, %v2093_v27  ;;  %v2102_v27 = vor.u32 1.1754944e-38, %v2101_v43  ;;  %vm2115_vm12 = vcmp.eq.f32.partialorder %v2114_v19, 8.507059e+37 }
 0x34b   :  { %v4986_v49 = vpop.eup %4985  ;;  %v2128_v47 = vadd.f32 1.0, %v4984_v60  ;;  %v2116_v60 = vand.u32 2147483648, %v2089_v35 }
 0x34c   :  { %4987 = vpow2.f32 %v4397_v21  ;;  %v2106_v41 = vmul.f32 %v4986_v49, %v2089_v35  ;;  %vm2111_vm8 = vweird.f32 %v4986_v49  ;;  %v2098_v48 = vsel %vm7104_vm4, %v4982_v39, %v2094_v56  ;;  %v2077_v21 = vpop.f32.mrf.mxu3  ;;  %v1993_v35 = vpop.f32.mrf.mxu1 }
 0x34d   :  { %4989 = vrcp.f32 %v2128_v47  ;;  %vm2112_vm2 = vmor %vm2110_vm7, %vm2111_vm8  ;;  %v2103_v3 = vsel %vm2100_vm5, %v2102_v27, %v2098_v48  ;;  %v2117_v58 = vor.u32 1.1754944e-38, %v2116_v60  ;;  %v2078_v39 = vadd.f32 %v2077_v21, %v7102_v11 }
 0x34e   :  { %v2107_v31 = vsub.f32 1.0, %v2106_v41  ;;  %v2141_v24 = vand.u32 2147483648, %v2128_v47  ;;  %v1994_v8 = vadd.f32 %v1993_v35, %v7112_v15  ;;  %vm2135_vm4 = vweird.f32 %v2128_v47 }
 0x350   :  { %v2108_v28 = vmul.f32 %v4986_v49, %v2107_v31 }
 0x352   :  { %v4988_v61 = vpop.eup %4987  ;;  %v2109_v41 = vadd.f32 %v4986_v49, %v2108_v28  ;;  %v2160_v28 = vmul.f32 %v2103_v3, %v2075_v55 }
 0x353   :  { %v4990_v2 = vpop.eup %4989  ;;  %v2129_v54 = vadd.f32 1.0, %v4988_v61  ;;  %v1991_v61 = vadd.f32 %v1990_v23, %v7112_v15 }
 0x354   :  { %v2131_v31 = vmul.f32 %v4990_v2, %v2128_v47  ;;  %v2113_v12 = vsel %vm2112_vm2, %v4986_v49, %v2109_v41  ;;  %vm2136_vm3 = vweird.f32 %v4990_v2  ;;  %v2139_v49 = vand.u32 2147483647, %v2128_v47 }
 0x355   :  { %4991 = vrcp.f32 %v2129_v54  ;;  %v2118_v43 = vsel %vm2115_vm12, %v2117_v58, %v2113_v12  ;;  %vm2137_vm8 = vmor %vm2135_vm4, %vm2136_vm3  ;;  %v2162_v27 = vadd.f32 %v2160_v28, %v1991_v61  ;;  %v2142_v41 = vor.u32 1.1754944e-38, %v2141_v24 }
 0x356   :  { %v2132_v56 = vsub.f32 1.0, %v2131_v31  ;;  %v2161_v7 = vmul.f32 %v2118_v43, %v2078_v39  ;;  %vm2140_vm7 = vcmp.eq.f32.partialorder %v2139_v49, 8.507059e+37  ;;  %v2156_v3 = vand.u32 2147483648, %v2129_v54 }
 0x357   :  { %4993 = vtanh.f32 %v2162_v27  ;;  %v2154_v58 = vand.u32 2147483647, %v2129_v54  ;;  %vm2150_vm2 = vweird.f32 %v2129_v54  ;;  %vm8563_vm4 = vcmask 261120   ;;  %v8570_v27 = vld [vmem:[#allocation82_spill] sm:$0xff] }
 0x358   :  { %v2133_v5 = vmul.f32 %v4990_v2, %v2132_v56  ;;  %v2163_v12 = vadd.f32 %v2161_v7, %v1994_v8  ;;  %v2157_v47 = vor.u32 1.1754944e-38, %v2156_v3  ;;  %v8582_v3 = vld [vmem:[#allocation88_spill] sm:$0xff] }
 0x359   :  { %vm2155_vm3 = vcmp.eq.f32.partialorder %v2154_v58, 8.507059e+37  ;;  %v8588_v58 = vld [vmem:[#allocation91_spill] sm:$0xff] }
 0x35a   :  { %v2134_v48 = vadd.f32 %v4990_v2, %v2133_v5  ;;  %4995 = vtanh.f32 %v2163_v12  ;;  %v8578_v12 = vld [vmem:[#allocation86_spill] sm:$0xff] }
 0x35b   :  { %v4992_v60 = vpop.eup %4991 }
 0x35c   :  { %v2146_v21 = vmul.f32 %v4992_v60, %v2129_v54  ;;  %v2138_v19 = vsel %vm2137_vm8, %v4990_v2, %v2134_v48  ;;  %vm2151_vm5 = vweird.f32 %v4992_v60  ;;  %vm8564_vm8 = vmmov %vm8563_vm4 }
 0x35d   :  { %v2143_v23 = vsel %vm2140_vm7, %v2142_v41, %v2138_v19  ;;  %vm2152_vm12 = vmor %vm2150_vm2, %vm2151_vm5  ;;  %v4994_v35 = vpop.eup %4993  ;;  %vm8571_vm2 = vnez %v8570_v27  ;;  %v8574_v19 = vld [vmem:[#allocation84_spill] sm:$0xff]  ;;  %v8576_v41 = vld [vmem:[#allocation85_spill] sm:$0xff] }
 0x35e   :  { %v2147_v31 = vsub.f32 1.0, %v2146_v21  ;;  %v2166_v39 = vsub.f32 1.0, %v2143_v23  ;;  %v2170_v5 = vmul.f32 %v2143_v23, %v8502_v25  ;;  %vm8565_vm7 = vmmov %vm8563_vm4  ;;  %v8572_v21 = vld [vmem:[#allocation83_spill] sm:$0xff]  ;;  %v8584_v23 = vld [vmem:[#allocation89_spill] sm:$0xff] }
 0x35f   :  { %vm8566_vm5 = vmmov %vm8563_vm4  ;;  %v8650_v25 = vld [vmem:[#allocation115_spill] sm:$0xff] }
 0x360   :  { %v2148_v55 = vmul.f32 %v4992_v60, %v2147_v31  ;;  %v2168_v28 = vmul.f32 %v4994_v35, %v2166_v39  ;;  %v4996_v61 = vpop.eup %4995  ;;  %v8580_v31 = vld [vmem:[#allocation87_spill] sm:$0xff]  ;;  %v8590_v39 = vld [vmem:[#allocation92_spill] sm:$0xff] }
 0x361   :  { %v8602_v35 = vld [vmem:[#allocation96_spill] sm:$0xff] }
 0x362   :  { %v2149_v56 = vadd.f32 %v4992_v60, %v2148_v55  ;;  %v7119_v48 = vadd.f32 %v2170_v5, %v2168_v28  ;;  %v8586_v55 = vld [vmem:[#allocation90_spill] sm:$0xff]  ;;  %v8612_v5 = vld [vmem:[#allocation101_spill] sm:$0xff] }
 0x363   :  { %v8606_v28 = vld [vmem:[#allocation98_spill] sm:$0xff] }
 0x364   :  { %v2153_v43 = vsel %vm2152_vm12, %v4992_v60, %v2149_v56  ;;  %vm8573_vm12 = vnez %v8572_v21  ;;  %v8592_v56 = vld [vmem:[#allocation93_spill] sm:$0xff] }
 0x365   :  { %v2158_v2 = vsel %vm2155_vm3, %v2157_v47, %v2153_v43  ;;  %vm8575_vm3 = vnez %v8574_v19  ;;  %v8594_v47 = vld [vmem:[#allocation94_spill] sm:$0xff]  ;;  %v8600_v43 = vld [vmem:[#allocation95_spill] sm:$0xff]  ;;  %v8654_v60 = vld [vmem:[#allocation117_spill] sm:$0xff] }
 0x366   :  { %v2167_v8 = vsub.f32 1.0, %v2158_v2  ;;  %v2171_v7 = vmul.f32 %v2158_v2, %v8518_v45  ;;  %v8604_v2 = vld [vmem:[#allocation97_spill] sm:$0xff]  ;;  %v8652_v45 = vld [vmem:[#allocation116_spill] sm:$0xff] }
 0x367   :  { %v2372_v27 = vld [vmem:[#allocation2 + $0x3] ss:$8 sm:$0xf] }
 0x368   :  { %v2169_v24 = vmul.f32 %v4996_v61, %v2167_v8  ;;  %v8608_v8 = vld [vmem:[#allocation99_spill] sm:$0xff]  ;;  %v8610_v61 = vld [vmem:[#allocation100_spill] sm:$0xff] }
 0x369   :  { %v2373_v21 = vld [vmem:[#allocation2 + $0x3] ss:$8 sm:$0xf0] }
 0x36a   :  { %v7121_v49 = vadd.f32 %v2171_v7, %v2169_v24  ;;  %v8614_v24 = vld [vmem:[#allocation102_spill] sm:$0xff]  ;;  %v8616_v7 = vld [vmem:[#allocation103_spill] sm:$0xff] }
 0x36c   :  { %v2174_v54 = vpack.c.bf16 %v7121_v49, %v7119_v48 }
 0x36e   :  { %4402 = vmatmul.msk.bf16.vlgmr.msra.gmra.mxu1 %vm8563_vm4, %v2174_v54  ;;  %4407 = vmatmul.msk.bf16.vlgmr.msra.gmra.mxu0 %vm8564_vm8, %v2174_v54  ;;  %vm8577_vm4 = vnez %v8576_v41  ;;  %vm8579_vm8 = vnez %v8578_v12  ;;  %v8659_v41 = vld [vmem:[#allocation121_spill] sm:$0xff]  ;;  %v8661_v12 = vld [vmem:[#allocation122_spill] sm:$0xff] }
 0x36f   :  { %4412 = vmatmul.msk.bf16.vlgmr.msra.gmra.mxu2 %vm8565_vm7, %v2174_v54  ;;  %4417 = vmatmul.msk.bf16.vlgmr.msra.gmra.mxu3 %vm8566_vm5, %v2174_v54  ;;  %vm8581_vm7 = vnez %v8580_v31  ;;  %vm8583_vm5 = vnez %v8582_v3 }
 0x370   :  { %4486 = vmatpush.bf16.msk.msra.mxu1 %vm5918_vm6, %v8510_v13  ;;  %4502 = vmatpush.bf16.msk.msra.mxu0 %vm5933_vm15, %v8510_v13 }
 0x371   :  { %4518 = vmatpush.bf16.msk.msra.mxu2 %vm5946_vm1, %v8510_v13  ;;  %4534 = vmatpush.bf16.msk.msra.mxu3 %vm8571_vm2, %v8510_v13  ;;  %vm8585_vm2 = vnez %v8584_v23 }
 0x374   :  { %4488 = vmatpush.bf16.msk.msra.mxu1 %vm8573_vm12, %v8510_v13  ;;  %4504 = vmatpush.bf16.msk.msra.mxu0 %vm8575_vm3, %v8510_v13  ;;  %vm8587_vm12 = vnez %v8586_v55  ;;  %vm8589_vm3 = vnez %v8588_v58 }
 0x375   :  { %4520 = vmatpush.bf16.msk.msra.mxu2 %vm8577_vm4, %v8510_v13  ;;  %4536 = vmatpush.bf16.msk.msra.mxu3 %vm8579_vm8, %v8510_v13  ;;  %vm8591_vm4 = vnez %v8590_v39  ;;  %vm8593_vm8 = vnez %v8592_v56 }
 0x378   :  { %4490 = vmatpush.bf16.msk.msra.mxu1 %vm8581_vm7, %v8510_v13  ;;  %4506 = vmatpush.bf16.msk.msra.mxu0 %vm8583_vm5, %v8510_v13  ;;  %vm8595_vm7 = vnez %v8594_v47  ;;  %vm8596_vm5 = vcmask 261120  }
 0x379   :  { %4522 = vmatpush.bf16.msk.msra.mxu2 %vm8585_vm2, %v8510_v13  ;;  %4538 = vmatpush.bf16.msk.msra.mxu3 %vm8587_vm12, %v8510_v13  ;;  %vm8597_vm2 = vmmov %vm8596_vm5 }
 0x37a   :  { %vm8598_vm12 = vmmov %vm8597_vm2 }
 0x37b   :  { %vm8599_vm1 = vmmov %vm8597_vm2 }
 0x37c   :  { %4492 = vmatpush.bf16.msk.msra.mxu1 %vm8589_vm3, %v8510_v13  ;;  %4508 = vmatpush.bf16.msk.msra.mxu0 %vm8591_vm4, %v8510_v13  ;;  %vm8601_vm3 = vnez %v8600_v43  ;;  %vm8603_vm4 = vnez %v8602_v35 }
 0x37d   :  { %4524 = vmatpush.bf16.msk.msra.mxu2 %vm8593_vm8, %v8510_v13  ;;  %4540 = vmatpush.bf16.msk.msra.mxu3 %vm8595_vm7, %v8510_v13  ;;  %vm8605_vm8 = vnez %v8604_v2  ;;  %vm8607_vm7 = vnez %v8606_v28 }
 0x37e   :  { %4422 = vmatmul.msk.bf16.vlgmr.msrb.gmra.mxu1 %vm8596_vm5, %v2174_v54  ;;  %4427 = vmatmul.msk.bf16.vlgmr.msrb.gmra.mxu0 %vm8597_vm2, %v2174_v54  ;;  %vm8609_vm5 = vnez %v8608_v8  ;;  %vm8613_vm2 = vnez %v8612_v5 }
 0x37f   :  { %4432 = vmatmul.msk.bf16.vlgmr.msrb.gmra.mxu2 %vm8598_vm12, %v2174_v54  ;;  %4437 = vmatmul.msk.bf16.vlgmr.msrb.gmra.mxu3 %vm8599_vm1, %v2174_v54  ;;  %vm8611_vm1 = vnez %v8610_v61  ;;  %vm8615_vm12 = vnez %v8614_v24  ;;  %v8648_v54 = vld [vmem:[#allocation114_spill] sm:$0xff] }
 0x380   :  { %4494 = vmatpush.bf16.msk.msra.mxu1 %vm8601_vm3, %v8510_v13  ;;  %4510 = vmatpush.bf16.msk.msra.mxu0 %vm8603_vm4, %v8510_v13  ;;  %vm8617_vm3 = vnez %v8616_v7  ;;  %vm8618_vm4 = vnez %v8388_v37  ;;  %v2318_v24 = vld [vmem:[#allocation2] ss:$8 sm:$0xf] }
 0x381   :  { %4526 = vmatpush.bf16.msk.msra.mxu2 %vm8605_vm8, %v8510_v13  ;;  %4542 = vmatpush.bf16.msk.msra.mxu3 %vm8607_vm7, %v8510_v13  ;;  %vm8619_vm8 = vnez %v8390_v9  ;;  %vm8620_vm7 = vnez %v8394_v18  ;;  %v2319_v7 = vld [vmem:[#allocation2] ss:$8 sm:$0xf0] }
 0x382   :  { %v2320_v19 = vor.u32 %v2319_v7, %v2318_v24 }
 0x384   :  { %4496 = vmatpush.bf16.msk.msra.mxu1 %vm8609_vm5, %v8510_v13  ;;  %4512 = vmatpush.bf16.msk.msra.mxu0 %vm8611_vm1, %v8510_v13  ;;  %vm8621_vm5 = vnez %v8396_v33  ;;  %vm8622_vm1 = vnez %v8398_v59 }
 0x385   :  { %4528 = vmatpush.bf16.msk.msra.mxu2 %vm8613_vm2, %v8510_v13  ;;  %4544 = vmatpush.bf16.msk.msra.mxu3 %vm8615_vm12, %v8510_v13  ;;  %vm8623_vm2 = vnez %v8400_v42  ;;  %vm8624_vm12 = vnez %v8402_v20 }
 0x388   :  { %4498 = vmatpush.bf16.msk.msra.mxu1 %vm8617_vm3, %v8510_v13  ;;  %4514 = vmatpush.bf16.msk.msra.mxu0 %vm8618_vm4, %v8510_v13  ;;  %vm8625_vm3 = vnez %v8404_v14  ;;  %vm8626_vm4 = vnez %v8406_v34 }
 0x389   :  { %4530 = vmatpush.bf16.msk.msra.mxu2 %vm8619_vm8, %v8510_v13  ;;  %4546 = vmatpush.bf16.msk.msra.mxu3 %vm8620_vm7, %v8510_v13  ;;  %vm8627_vm8 = vnez %v8408_v36  ;;  %vm8628_vm7 = vnez %v8410_v17 }
 0x38c   :  { %4500 = vmatpush.bf16.msk.msra.mxu1 %vm8621_vm5, %v8510_v13  ;;  %4516 = vmatpush.bf16.msk.msra.mxu0 %vm8622_vm1, %v8510_v13  ;;  %vm8629_vm5 = vnez %v8412_v46  ;;  %vm8630_vm1 = vnez %v8414_v10 }
 0x38d   :  { %4532 = vmatpush.bf16.msk.msra.mxu2 %vm8623_vm2, %v8510_v13  ;;  %4548 = vmatpush.bf16.msk.msra.mxu3 %vm8624_vm12, %v8510_v13  ;;  %vm8631_vm2 = vnez %v8416_v57  ;;  %vm8632_vm12 = vnez %v8418_v51 }
 0x390   :  { %4550 = vmatpush.bf16.msk.msrb.mxu1 %vm8625_vm3, %v8510_v13  ;;  %4566 = vmatpush.bf16.msk.msrb.mxu0 %vm8626_vm4, %v8510_v13  ;;  %vm8633_vm3 = vnez %v8420_v63  ;;  %vm8634_vm4 = vnez %v8422_v53 }
 0x391   :  { %4582 = vmatpush.bf16.msk.msrb.mxu2 %vm8627_vm8, %v8510_v13  ;;  %4598 = vmatpush.bf16.msk.msrb.mxu3 %vm8628_vm7, %v8510_v13  ;;  %vm8635_vm8 = vnez %v8424_v29  ;;  %vm8636_vm7 = vnez %v8426_v62 }
 0x394   :  { %4552 = vmatpush.bf16.msk.msrb.mxu1 %vm8629_vm5, %v8510_v13  ;;  %4568 = vmatpush.bf16.msk.msrb.mxu0 %vm8630_vm1, %v8510_v13  ;;  %vm8637_vm5 = vnez %v8428_v30  ;;  %vm8638_vm1 = vnez %v8430_v26 }
 0x395   :  { %4584 = vmatpush.bf16.msk.msrb.mxu2 %vm8631_vm2, %v8510_v13  ;;  %4600 = vmatpush.bf16.msk.msrb.mxu3 %vm8632_vm12, %v8510_v13  ;;  %vm8639_vm2 = vnez %v8433_v50  ;;  %vm8640_vm12 = vnez %v8438_v52 }
 0x398   :  { %4554 = vmatpush.bf16.msk.msrb.mxu1 %vm8633_vm3, %v8510_v13  ;;  %4570 = vmatpush.bf16.msk.msrb.mxu0 %vm8634_vm4, %v8510_v13  ;;  %vm8641_vm3 = vnez %v8441_v22  ;;  %vm8642_vm4 = vnez %v8444_v32 }
 0x399   :  { %4586 = vmatpush.bf16.msk.msrb.mxu2 %vm8635_vm8, %v8510_v13  ;;  %4602 = vmatpush.bf16.msk.msrb.mxu3 %vm8636_vm7, %v8510_v13  ;;  %vm8643_vm8 = vnez %v8447_v1  ;;  %vm8644_vm7 = vnez %v8450_v44  ;;  %v2552_v44 = vld [vmem:[#allocation2 + $0x45] ss:$8 sm:$0xf] }
 0x39a   :  { %v2553_v1 = vld [vmem:[#allocation2 + $0x45] ss:$8 sm:$0xf0] }
 0x39c   :  { %4556 = vmatpush.bf16.msk.msrb.mxu1 %vm8637_vm5, %v8510_v13  ;;  %4572 = vmatpush.bf16.msk.msrb.mxu0 %vm8638_vm1, %v8510_v13  ;;  %vm8645_vm5 = vnez %v8453_v0  ;;  %vm8646_vm1 = vnez %v8456_v38 }
 0x39d   :  { %4588 = vmatpush.bf16.msk.msrb.mxu2 %vm8639_vm2, %v8510_v13  ;;  %4604 = vmatpush.bf16.msk.msrb.mxu3 %vm8640_vm12, %v8510_v13  ;;  %vm8647_vm2 = vnez %v8459_v6  ;;  %vm8649_vm12 = vnez %v8648_v54  ;;  %v2336_v54 = vld [vmem:[#allocation2 + $0x1] ss:$8 sm:$0xf] }
 0x3a0   :  { %4558 = vmatpush.bf16.msk.msrb.mxu1 %vm8641_vm3, %v8510_v13  ;;  %4574 = vmatpush.bf16.msk.msrb.mxu0 %vm8642_vm4, %v8510_v13  ;;  %vm8651_vm3 = vnez %v8650_v25  ;;  %vm8653_vm4 = vnez %v8652_v45  ;;  %v2337_v25 = vld [vmem:[#allocation2 + $0x1] ss:$8 sm:$0xf0]  ;;  %v2354_v45 = vld [vmem:[#allocation2 + $0x2] ss:$8 sm:$0xf] }
 0x3a1   :  { %4590 = vmatpush.bf16.msk.msrb.mxu2 %vm8643_vm8, %v8510_v13  ;;  %4606 = vmatpush.bf16.msk.msrb.mxu3 %vm8644_vm7, %v8510_v13  ;;  %vm8655_vm8 = vnez %v8654_v60  ;;  %vm8660_vm7 = vnez %v8659_v41  ;;  %v2355_v60 = vld [vmem:[#allocation2 + $0x2] ss:$8 sm:$0xf0]  ;;  %v2390_v41 = vld [vmem:[#allocation2 + $0x4] ss:$8 sm:$0xf] }
 0x3a4   :  { %4560 = vmatpush.bf16.msk.msrb.mxu1 %vm8645_vm5, %v8510_v13  ;;  %4576 = vmatpush.bf16.msk.msrb.mxu0 %vm8646_vm1, %v8510_v13  ;;  %vm8662_vm5 = vnez %v8661_v12  ;;  %v2391_v12 = vld [vmem:[#allocation2 + $0x4] ss:$8 sm:$0xf0]  ;;  %vm8669_vm1 = vcmask 261120  }
 0x3a5   :  { %4592 = vmatpush.bf16.msk.msrb.mxu2 %vm8647_vm2, %v8510_v13  ;;  %4608 = vmatpush.bf16.msk.msrb.mxu3 %vm8649_vm12, %v8510_v13  ;;  %vm8670_vm2 = vmmov %vm8669_vm1 }
 0x3a8   :  { %4562 = vmatpush.bf16.msk.msrb.mxu1 %vm8651_vm3, %v8510_v13  ;;  %4578 = vmatpush.bf16.msk.msrb.mxu0 %vm8653_vm4, %v8510_v13 }
 0x3a9   :  { %4594 = vmatpush.bf16.msk.msrb.mxu2 %vm8655_vm8, %v8510_v13  ;;  %4610 = vmatpush.bf16.msk.msrb.mxu3 %vm6930_vm9, %v8510_v13 }
 0x3ac   :  { %4564 = vmatpush.bf16.msk.msrb.mxu1 %vm6945_vm11, %v8510_v13  ;;  %4580 = vmatpush.bf16.msk.msrb.mxu0 %vm6954_vm10, %v8510_v13 }
 0x3ad   :  { %4596 = vmatpush.bf16.msk.msrb.mxu2 %vm8660_vm7, %v8510_v13  ;;  %4612 = vmatpush.bf16.msk.msrb.mxu3 %vm8662_vm5, %v8510_v13 }
 0x3eb   :  { %v2187_v13 = vpop.f32.mrf.mxu1  ;;  %v2201_v31 = vpop.f32.mrf.mxu0 }
 0x3ec   :  { %2290 = vst [vmem:[#allocation3] sm:$0xff] %v2187_v13 }
 0x3ed   :  { %2291 = vst [vmem:[#allocation3 + $0x8] sm:$0xff] %v2201_v31 }
 0x3f2   :  { %v2215_v3 = vpop.f32.mrf.mxu2  ;;  %v2229_v23 = vpop.f32.mrf.mxu3 }
 0x3f3   :  { %2292 = vst [vmem:[#allocation3 + $0x10] sm:$0xff] %v2215_v3  ;;  %v2189_v55 = vpop.f32.mrf.mxu1  ;;  %v2203_v58 = vpop.f32.mrf.mxu0  ;;  %v2338_v3 = vor.u32 %v2337_v25, %v2336_v54  ;;  %v2392_v25 = vor.u32 %v2391_v12, %v2390_v41 }
 0x3f4   :  { %2293 = vst [vmem:[#allocation3 + $0x18] sm:$0xff] %v2229_v23  ;;  %v2408_v23 = vld [vmem:[#allocation2 + $0x5] ss:$8 sm:$0xf] }
 0x3f5   :  { %2298 = vst [vmem:[#allocation3 + $0x40] sm:$0xf] %v2189_v55  ;;  %v2409_v55 = vld [vmem:[#allocation2 + $0x5] ss:$8 sm:$0xf0] }
 0x3f6   :  { %2299 = vst [vmem:[#allocation3 + $0x48] sm:$0xf] %v2203_v58 }
 0x3fa   :  { %v2217_v39 = vpop.f32.mrf.mxu2  ;;  %v2231_v56 = vpop.f32.mrf.mxu3 }
 0x3fb   :  { %2300 = vst [vmem:[#allocation3 + $0x50] sm:$0xf] %v2217_v39  ;;  %v2243_v47 = vpop.f32.mrf.mxu1  ;;  %v2257_v43 = vpop.f32.mrf.mxu0 }
 0x3fc   :  { %2301 = vst [vmem:[#allocation3 + $0x58] sm:$0xf] %v2231_v56 }
 0x3fd   :  { %2294 = vst [vmem:[#allocation3 + $0x20] sm:$0xff] %v2243_v47  ;;  %v2356_v47 = vor.u32 %v2355_v60, %v2354_v45 }
 0x3fe   :  { %2295 = vst [vmem:[#allocation3 + $0x28] sm:$0xff] %v2257_v43 }
 0x402   :  { %v2271_v35 = vpop.f32.mrf.mxu2  ;;  %v2285_v2 = vpop.f32.mrf.mxu3 }
 0x403   :  { %2296 = vst [vmem:[#allocation3 + $0x30] sm:$0xff] %v2271_v35  ;;  %v2245_v28 = vpop.f32.mrf.mxu1  ;;  %v2259_v8 = vpop.f32.mrf.mxu0 }
 0x404   :  { %2297 = vst [vmem:[#allocation3 + $0x38] sm:$0xff] %v2285_v2 }
 0x405   :  { %2302 = vst [vmem:[#allocation3 + $0x60] sm:$0xf] %v2245_v28  ;;  %v2374_v28 = vor.u32 %v2373_v21, %v2372_v27 }
 0x406   :  { %2303 = vst [vmem:[#allocation3 + $0x68] sm:$0xf] %v2259_v8  ;;  %v2426_v8 = vld [vmem:[#allocation2 + $0x6] ss:$8 sm:$0xf] }
 0x40a   :  { %v2273_v61 = vpop.f32.mrf.mxu2  ;;  %v2287_v5 = vpop.f32.mrf.mxu3 }
 0x40b   :  { %2304 = vst [vmem:[#allocation3 + $0x70] sm:$0xf] %v2273_v61  ;;  %v2427_v61 = vld [vmem:[#allocation2 + $0x6] ss:$8 sm:$0xf0] }
 0x40c   :  { %2305 = vst [vmem:[#allocation3 + $0x78] sm:$0xf] %v2287_v5 }
 0x413   :  { %v2315_v13 = vld [vmem:[%s2314_s1] ss:$8 sm:$0xf] }
 0x414   :  { %v2316_v31 = vld [vmem:[%s2314_s1] ss:$8 sm:$0xf0] }
 0x415   :  { %v2317_v58 = vor.u32 %v2316_v31, %v2315_v13  ;;  %v2333_v39 = vld [vmem:[%s2332_s18] ss:$8 sm:$0xf] }
 0x416   :  { %v2334_v56 = vld [vmem:[%s2332_s18] ss:$8 sm:$0xf0] }
 0x417   :  { %v2335_v43 = vor.u32 %v2334_v56, %v2333_v39  ;;  %v2351_v35 = vld [vmem:[%s2350_s20] ss:$8 sm:$0xf]  ;;  %v7408_v5 = vmul.f32 %v2320_v19, %v2317_v58  ;;  %v2444_v39 = vld [vmem:[#allocation2 + $0x7] ss:$8 sm:$0xf]  ;;  %v2410_v58 = vor.u32 %v2409_v55, %v2408_v23 }
 0x418   :  { %v2352_v2 = vld [vmem:[%s2350_s20] ss:$8 sm:$0xf0]  ;;  %v2445_v56 = vld [vmem:[#allocation2 + $0x7] ss:$8 sm:$0xf0] }
 0x419   :  { %v2353_v24 = vor.u32 %v2352_v2, %v2351_v35  ;;  %v2369_v7 = vld [vmem:[%s2368_s21] ss:$8 sm:$0xf]  ;;  %v7411_v13 = vmul.f32 %v2338_v3, %v2335_v43  ;;  %2322 = vst [vmem:[#allocation4] ss:$8 sm:$0xf] %v7408_v5 }
 0x41a   :  { %v2370_v54 = vld [vmem:[%s2368_s21] ss:$8 sm:$0xf0]  ;;  %v2480_v3 = vld [vmem:[#allocation2 + $0x41] ss:$8 sm:$0xf] }
 0x41b   :  { %v2371_v31 = vor.u32 %v2370_v54, %v2369_v7  ;;  %v2387_v45 = vld [vmem:[%s2386_s28] ss:$8 sm:$0xf]  ;;  %v7415_v27 = vmul.f32 %v2356_v47, %v2353_v24  ;;  %2340 = vst [vmem:[#allocation4 + $0x1] ss:$8 sm:$0xf] %v7411_v13  ;;  %v2428_v54 = vor.u32 %v2427_v61, %v2426_v8 }
 0x41c   :  { %v2388_v60 = vld [vmem:[%s2386_s28] ss:$8 sm:$0xf0]  ;;  %v2481_v43 = vld [vmem:[#allocation2 + $0x41] ss:$8 sm:$0xf0] }
 0x41d   :  { %v2389_v21 = vor.u32 %v2388_v60, %v2387_v45  ;;  %v2405_v19 = vld [vmem:[%s2404_s22] ss:$8 sm:$0xf]  ;;  %v7419_v41 = vmul.f32 %v2374_v28, %v2371_v31  ;;  %2358 = vst [vmem:[#allocation4 + $0x2] ss:$8 sm:$0xf] %v7415_v27 }
 0x41e   :  { %v2462_v35 = vld [vmem:[#allocation2 + $0x40] ss:$8 sm:$0xf]  ;;  %v2498_v55 = vld [vmem:[#allocation2 + $0x42] ss:$8 sm:$0xf] }
 0x41f   :  { %v2463_v2 = vld [vmem:[#allocation2 + $0x40] ss:$8 sm:$0xf0]  ;;  %v7422_v7 = vmul.f32 %v2392_v25, %v2389_v21  ;;  %2376 = vst [vmem:[#allocation4 + $0x3] ss:$8 sm:$0xf] %v7419_v41  ;;  %v2446_v25 = vor.u32 %v2445_v56, %v2444_v39 }
 0x420   :  { %v2406_v12 = vld [vmem:[%s2404_s22] ss:$8 sm:$0xf0]  ;;  %v2499_v45 = vld [vmem:[#allocation2 + $0x42] ss:$8 sm:$0xf0]  ;;  %v2464_v8 = vor.u32 %v2463_v2, %v2462_v35 }
 0x421   :  { %v2407_v47 = vor.u32 %v2406_v12, %v2405_v19  ;;  %v2423_v24 = vld [vmem:[%s2422_s30] ss:$8 sm:$0xf]  ;;  %2394 = vst [vmem:[#allocation4 + $0x4] ss:$8 sm:$0xf] %v7422_v7 }
 0x422   :  { %v2424_v23 = vld [vmem:[%s2422_s30] ss:$8 sm:$0xf0]  ;;  %v2516_v21 = vld [vmem:[#allocation2 + $0x43] ss:$8 sm:$0xf] }
 0x423   :  { %v7427_v28 = vmul.f32 %v2410_v58, %v2407_v47  ;;  %v2425_v31 = vor.u32 %v2424_v23, %v2423_v24  ;;  %v2441_v60 = vld [vmem:[%s2440_s27] ss:$8 sm:$0xf]  ;;  %v2517_v19 = vld [vmem:[#allocation2 + $0x43] ss:$8 sm:$0xf0]  ;;  %v2482_v58 = vor.u32 %v2481_v43, %v2480_v3 }
 0x424   :  { %v2442_v12 = vld [vmem:[%s2440_s27] ss:$8 sm:$0xf0]  ;;  %v2534_v47 = vld [vmem:[#allocation2 + $0x44] ss:$8 sm:$0xf] }
 0x425   :  { %v2459_v6 = vld [vmem:[%s2458_s23] ss:$8 sm:$0xf]  ;;  %2412 = vst [vmem:[#allocation4 + $0x5] ss:$8 sm:$0xf] %v7427_v28  ;;  %v7432_v61 = vmul.f32 %v2428_v54, %v2425_v31  ;;  %v2443_v38 = vor.u32 %v2442_v12, %v2441_v60  ;;  %v2500_v31 = vor.u32 %v2499_v45, %v2498_v55 }
 0x426   :  { %v2460_v0 = vld [vmem:[%s2458_s23] ss:$8 sm:$0xf0]  ;;  %v2535_v24 = vld [vmem:[#allocation2 + $0x44] ss:$8 sm:$0xf0] }
 0x427   :  { %v2461_v23 = vor.u32 %v2460_v0, %v2459_v6  ;;  %v2477_v39 = vld [vmem:[%s2476_s6] ss:$8 sm:$0xf]  ;;  %2430 = vst [vmem:[#allocation4 + $0x6] ss:$8 sm:$0xf] %v7432_v61  ;;  %v7436_v35 = vmul.f32 %v2446_v25, %v2443_v38  ;;  %v2518_v0 = vor.u32 %v2517_v19, %v2516_v21  ;;  %v2554_v19 = vor.u32 %v2553_v1, %v2552_v44 }
 0x428   :  { %v2478_v56 = vld [vmem:[%s2476_s6] ss:$8 sm:$0xf0]  ;;  %v2570_v6 = vld [vmem:[#allocation2 + $0x46] ss:$8 sm:$0xf] }
 0x429   :  { %v2479_v2 = vor.u32 %v2478_v56, %v2477_v39  ;;  %v2495_v54 = vld [vmem:[%s2494_s11] ss:$8 sm:$0xf]  ;;  %v7439_v60 = vmul.f32 %v2464_v8, %v2461_v23  ;;  %v2571_v12 = vld [vmem:[#allocation2 + $0x46] ss:$8 sm:$0xf0]  ;;  %v2536_v8 = vor.u32 %v2535_v24, %v2534_v47 }
 0x42a   :  { %v2496_v3 = vld [vmem:[%s2494_s11] ss:$8 sm:$0xf0]  ;;  %2448 = vst [vmem:[#allocation4 + $0x7] ss:$8 sm:$0xf] %v7436_v35  ;;  %v2572_v50 = vor.u32 %v2571_v12, %v2570_v6 }
 0x42b   :  { %v2513_v43 = vld [vmem:[%s2512_s13] ss:$8 sm:$0xf]  ;;  %v2483_v32 = vmul.f32 %v2482_v58, %v2479_v2  ;;  %v2497_v22 = vor.u32 %v2496_v3, %v2495_v54  ;;  %v2588_v25 = vld [vmem:[#allocation2 + $0x47] ss:$8 sm:$0xf] }
 0x42c   :  { %v2514_v38 = vld [vmem:[%s2512_s13] ss:$8 sm:$0xf0]  ;;  %v2589_v39 = vld [vmem:[#allocation2 + $0x47] ss:$8 sm:$0xf0] }
 0x42d   :  { %2466 = vst [vmem:[#allocation4 + $0x40] ss:$8 sm:$0xf] %v7439_v60  ;;  %v2515_v55 = vor.u32 %v2514_v38, %v2513_v43  ;;  %v2531_v45 = vld [vmem:[%s2530_s19] ss:$8 sm:$0xf]  ;;  %v2501_v23 = vmul.f32 %v2500_v31, %v2497_v22  ;;  %v2590_v26 = vor.u32 %v2589_v39, %v2588_v25 }
 0x42e   :  { %2484 = vst [vmem:[#allocation4 + $0x41] ss:$8 sm:$0xf] %v2483_v32  ;;  %v2532_v21 = vld [vmem:[%s2530_s19] ss:$8 sm:$0xf0] }
 0x42f   :  { %v2519_v56 = vmul.f32 %v2518_v0, %v2515_v55  ;;  %v2533_v52 = vor.u32 %v2532_v21, %v2531_v45  ;;  %v2549_v58 = vld [vmem:[%s2548_s24] ss:$8 sm:$0xf]  ;;  %2502 = vst [vmem:[#allocation4 + $0x42] ss:$8 sm:$0xf] %v2501_v23 }
 0x430   :  { %v2550_v2 = vld [vmem:[%s2548_s24] ss:$8 sm:$0xf0]  ;;  %2323 = vst [vmem:[#allocation4] ss:$8 sm:$0xf0] %v7408_v5 }
 0x431   :  { %v2551_v54 = vor.u32 %v2550_v2, %v2549_v58  ;;  %v2567_v3 = vld [vmem:[%s2566_s10] ss:$8 sm:$0xf]  ;;  %2520 = vst [vmem:[#allocation4 + $0x43] ss:$8 sm:$0xf] %v2519_v56  ;;  %v2537_v43 = vmul.f32 %v2536_v8, %v2533_v52 }
 0x432   :  { %v2568_v38 = vld [vmem:[%s2566_s10] ss:$8 sm:$0xf0]  ;;  %2341 = vst [vmem:[#allocation4 + $0x1] ss:$8 sm:$0xf0] %v7411_v13 }
 0x433   :  { %v2555_v47 = vmul.f32 %v2554_v19, %v2551_v54  ;;  %v2569_v24 = vor.u32 %v2568_v38, %v2567_v3  ;;  %v2585_v22 = vld [vmem:[%s2584_s12] ss:$8 sm:$0xf]  ;;  %2538 = vst [vmem:[#allocation4 + $0x44] ss:$8 sm:$0xf] %v2537_v43 }
 0x434   :  { %v2586_v1 = vld [vmem:[%s2584_s12] ss:$8 sm:$0xf0]  ;;  %2359 = vst [vmem:[#allocation4 + $0x2] ss:$8 sm:$0xf0] %v7415_v27 }
 0x435   :  { %v2587_v44 = vor.u32 %v2586_v1, %v2585_v22  ;;  %2556 = vst [vmem:[#allocation4 + $0x45] ss:$8 sm:$0xf] %v2555_v47  ;;  %v2573_v31 = vmul.f32 %v2572_v50, %v2569_v24  ;;  %v2594_v52 = vld [vmem:[#allocation4] sm:$0xff]  ;;  %v2595_v6 = vld [vmem:[#allocation4 + $0x8] sm:$0xff]  ;;  %v2596_v12 = vld [vmem:[#allocation4 + $0x10] sm:$0xff] }
 0x436   :  { %2377 = vst [vmem:[#allocation4 + $0x3] ss:$8 sm:$0xf0] %v7419_v41 }
 0x437   :  { %v2591_v0 = vmul.f32 %v2590_v26, %v2587_v44  ;;  %2574 = vst [vmem:[#allocation4 + $0x46] ss:$8 sm:$0xf] %v2573_v31  ;;  %v2597_v26 = vld [vmem:[#allocation4 + $0x18] sm:$0xff] }
 0x438   :  { %2395 = vst [vmem:[#allocation4 + $0x4] ss:$8 sm:$0xf0] %v7422_v7 }
 0x439   :  { %2592 = vst [vmem:[#allocation4 + $0x47] ss:$8 sm:$0xf] %v2591_v0 }
 0x43a   :  { %2413 = vst [vmem:[#allocation4 + $0x5] ss:$8 sm:$0xf0] %v7427_v28 }
 0x43b   :  { %2431 = vst [vmem:[#allocation4 + $0x6] ss:$8 sm:$0xf0] %v7432_v61 }
 0x43c   :  { %2449 = vst [vmem:[#allocation4 + $0x7] ss:$8 sm:$0xf0] %v7436_v35 }
 0x43d   :  { %2467 = vst [vmem:[#allocation4 + $0x40] ss:$8 sm:$0xf0] %v7439_v60 }
 0x43e   :  { %2485 = vst [vmem:[#allocation4 + $0x41] ss:$8 sm:$0xf0] %v2483_v32 }
 0x43f   :  { %2503 = vst [vmem:[#allocation4 + $0x42] ss:$8 sm:$0xf0] %v2501_v23 }
 0x440   :  { %v2602_v50 = vld [vmem:[#allocation4 + $0x40] sm:$0xff]  ;;  %v2603_v5 = vld [vmem:[#allocation4 + $0x48] sm:$0xff]  ;;  %v2604_v25 = vld [vmem:[#allocation4 + $0x50] sm:$0xff]  ;;  %2521 = vst [vmem:[#allocation4 + $0x43] ss:$8 sm:$0xf0] %v2519_v56 }
 0x441   :  { %v2610_v13 = vpack.c.bf16 %v2602_v50, %v2594_v52  ;;  %v2611_v27 = vpack.c.bf16 %v2603_v5, %v2595_v6  ;;  %v2612_v41 = vpack.c.bf16 %v2604_v25, %v2596_v12  ;;  %v2605_v39 = vld [vmem:[#allocation4 + $0x58] sm:$0xff]  ;;  %2539 = vst [vmem:[#allocation4 + $0x44] ss:$8 sm:$0xf0] %v2537_v43 }
 0x442   :  { %v2613_v7 = vpack.c.bf16 %v2605_v39, %v2597_v26  ;;  %2557 = vst [vmem:[#allocation4 + $0x45] ss:$8 sm:$0xf0] %v2555_v47 }
 0x443   :  { %2626 = vmatmul.bf16.vlgmr.msra.gmra.mxu1 %v2610_v13  ;;  %2640 = vmatmul.bf16.vlgmr.msra.gmra.mxu0 %v2611_v27  ;;  %2575 = vst [vmem:[#allocation4 + $0x46] ss:$8 sm:$0xf0] %v2573_v31  ;;  %v2598_v28 = vld [vmem:[#allocation4 + $0x20] sm:$0xff]  ;;  %v2599_v61 = vld [vmem:[#allocation4 + $0x28] sm:$0xff]  ;;  %v2600_v35 = vld [vmem:[#allocation4 + $0x30] sm:$0xff] }
 0x444   :  { %2654 = vmatmul.bf16.vlgmr.msra.gmra.mxu2 %v2612_v41  ;;  %2668 = vmatmul.bf16.vlgmr.msra.gmra.mxu3 %v2613_v7  ;;  %2593 = vst [vmem:[#allocation4 + $0x47] ss:$8 sm:$0xf0] %v2591_v0  ;;  %v2601_v55 = vld [vmem:[#allocation4 + $0x38] sm:$0xff] }
 0x44b   :  { %v2606_v60 = vld [vmem:[#allocation4 + $0x60] sm:$0xff]  ;;  %v2607_v45 = vld [vmem:[#allocation4 + $0x68] sm:$0xff]  ;;  %v2608_v8 = vld [vmem:[#allocation4 + $0x70] sm:$0xff] }
 0x44c   :  { %v2609_v21 = vld [vmem:[#allocation4 + $0x78] sm:$0xff]  ;;  %v2614_v32 = vpack.c.bf16 %v2606_v60, %v2598_v28  ;;  %v2615_v19 = vpack.c.bf16 %v2607_v45, %v2599_v61  ;;  %v2616_v58 = vpack.c.bf16 %v2608_v8, %v2600_v35 }
 0x44d   :  { %v2617_v23 = vpack.c.bf16 %v2609_v21, %v2601_v55 }
 0x453   :  { %2682 = vmatmul.bf16.vlgmr.msrb.gmra.mxu1 %v2614_v32  ;;  %2696 = vmatmul.bf16.vlgmr.msrb.gmra.mxu0 %v2615_v19 }
 0x454   :  { %2710 = vmatmul.bf16.vlgmr.msrb.gmra.mxu2 %v2616_v58  ;;  %2724 = vmatmul.bf16.vlgmr.msrb.gmra.mxu3 %v2617_v23 }
 0x4c0   :  { %v2627_v56 = vpop.f32.mrf.mxu1  ;;  %v2641_v2 = vpop.f32.mrf.mxu0 }
 0x4c1   :  { %v2642_v47 = vadd.f32 %v2641_v2, %v2627_v56 }
 0x4c7   :  { %v2655_v54 = vpop.f32.mrf.mxu2  ;;  %v2669_v3 = vpop.f32.mrf.mxu3 }
 0x4c8   :  { %v2629_v43 = vpop.f32.mrf.mxu1  ;;  %v2643_v38 = vpop.f32.mrf.mxu0  ;;  %v2656_v24 = vadd.f32 %v2655_v54, %v2642_v47 }
 0x4c9   :  { %v2644_v0 = vadd.f32 %v2643_v38, %v2629_v43 }
 0x4ca   :  { %v2670_v44 = vadd.f32 %v2669_v3, %v2656_v24 }
 0x4cf   :  { %v2657_v22 = vpop.f32.mrf.mxu2  ;;  %v2671_v1 = vpop.f32.mrf.mxu3 }
 0x4d0   :  { %v2683_v31 = vpop.f32.mrf.mxu1  ;;  %v2697_v6 = vpop.f32.mrf.mxu0  ;;  %v2658_v12 = vadd.f32 %v2657_v22, %v2644_v0 }
 0x4d1   :  { %v2684_v52 = vadd.f32 %v2683_v31, %v2670_v44 }
 0x4d2   :  { %v2672_v25 = vadd.f32 %v2671_v1, %v2658_v12 }
 0x4d3   :  { %v2698_v26 = vadd.f32 %v2697_v6, %v2684_v52 }
 0x4d7   :  { %v2711_v50 = vpop.f32.mrf.mxu2  ;;  %v2725_v5 = vpop.f32.mrf.mxu3 }
 0x4d8   :  { %v2712_v13 = vadd.f32 %v2711_v50, %v2698_v26  ;;  %v2685_v27 = vpop.f32.mrf.mxu1  ;;  %v2699_v7 = vpop.f32.mrf.mxu0 }
 0x4d9   :  { %v2686_v39 = vadd.f32 %v2685_v27, %v2672_v25 }
 0x4da   :  { %v2726_v41 = vadd.f32 %v2725_v5, %v2712_v13 }
 0x4db   :  { %v2700_v28 = vadd.f32 %v2699_v7, %v2686_v39 }
 0x4dc   :  { %2730 = vst.msk [vmem:[#allocation5] sm:$0xff] %vm8669_vm1, %v2726_v41 }
 0x4df   :  { %v2713_v61 = vpop.f32.mrf.mxu2  ;;  %v2727_v55 = vpop.f32.mrf.mxu3 }
 0x4e0   :  { %v2714_v35 = vadd.f32 %v2713_v61, %v2700_v28 }
 0x4e2   :  { %v2728_v60 = vadd.f32 %v2727_v55, %v2714_v35 }
 0x4e4   :  { %2731 = vst.msk [vmem:[#allocation5 + $0x8] sm:$0xff] %vm8670_vm2, %v2728_v60 }
 0x4e5 LB: > { %s2740_s29 = sld [smem:[#allocation11 + %s5301_s15]]  ;;  %s2743_s9 = scalar_lea.vmem [#allocation5], %s5301_s15  ;;  %vm8671_vm12 = vcmask 253952   ;;  %s5301_s15 = sphi %s5299_s15, %s2739_s15  }
 0x4e6   : > { %s2739_s15 = sadd.s32 1, %s5301_s15  }
 0x4e7   : > { %p2736_p1 = scmp.ge.s32.totalorder %s2739_s15, 16  }
 0x4e8   :  { %2772 = vmatpush.msra.mxu1 (%p2736_p1), %v5475_v4  ;;  %2847 = vmatpush.msra.mxu3 (%p2736_p1), %v5499_v16  ;;  %v8672_v58 = vmov (%p2736_p1), 0.0   ;;  %vm8673_vm3 = vcmask (%p2736_p1), 261120   ;;  %v8674_v56 = vld [vmem:[#allocation39_spill] sm:$0xff] (%p2736_p1)  ;;  %v8677_v3 = vld [vmem:[#allocation46_spill] sm:$0xff] (%p2736_p1)  ;;  %vm8678_vm4 = vcmask (%p2736_p1), 257024   ;;  %v8682_v22 = vld [vmem:[#allocation45_spill] sm:$0xff] (%p2736_p1) }
 0x4e9   :  { %2795 = vmatpush.msra.mxu0 (%p2736_p1), %v8674_v56  ;;  %v8675_v2 = vld [vmem:[#allocation43_spill] sm:$0xff] (%p2736_p1)  ;;  %v8679_v38 = vld [vmem:[#allocation38_spill] sm:$0xff] (%p2736_p1)  ;;  %v8683_v1 = vld [vmem:[#allocation37_spill] sm:$0xff] (%p2736_p1)  ;;  %v8696_v13 = vmov (%p2736_p1), 1.0|1.0   ;;  %s3130_s8 = sld [smem:[#allocation10]] (%p2736_p1) }
 0x4ea   :  { %2818 = vmatpush.msra.mxu2 (%p2736_p1), %v8675_v2  ;;  %v8676_v54 = vld [vmem:[#allocation35_spill] sm:$0xff] (%p2736_p1)  ;;  %2848 = vmatpush.msra.mxu3 (%p2736_p1), %v8677_v3  ;;  %v8680_v47 = vld [vmem:[#allocation42_spill] sm:$0xff] (%p2736_p1)  ;;  %v8684_v44 = vld [vmem:[#allocation41_spill] sm:$0xff] (%p2736_p1)  ;;  %s4671_s14 = sld [smem:[#allocation10 + $0x1]] (%p2736_p1) }
 0x4eb   : > { %v2744_v45 = vld [vmem:[%s2743_s9] sm:$0x1]  ;;  %s2741_s3 = scalar_lea.vmem [#allocation7], %s2740_s29  ;;  %2738 = sbr.rel (!%p2736_p1) target bundleno = 1253 (0x4e5), region = 253  ;;  %2773 = vmatpush.msra.mxu1 (%p2736_p1), %v8676_v54  ;;  %2796 = vmatpush.msra.mxu0 (%p2736_p1), %v8679_v38  ;;  %v8681_v24 = vld [vmem:[#allocation34_spill] sm:$0xff] (%p2736_p1)  ;;  %v8685_v31 = vld [vmem:[#allocation33_spill] sm:$0xff] (%p2736_p1) }
 0x4ec   : > { %v2742_v8 = vld [vmem:[%s2741_s3] sm:$0x1]  ;;  %2819 = vmatpush.msra.mxu2 (%p2736_p1), %v8680_v47  ;;  %2849 = vmatpush.msra.mxu3 (%p2736_p1), %v8682_v22  ;;  %v8686_v0 = vld [vmem:[#allocation44_spill] sm:$0xff] (%p2736_p1)  ;;  %vm8687_vm8 = vmmov (%p2736_p1), %vm8673_vm3  ;;  %s4674_s26 = sld [smem:[#allocation10 + $0x2]] (%p2736_p1) }
 0x4ed   : > { %v2745_v21 = vadd.f32 %v2744_v45, %v2742_v8  ;;  %2774 = vmatpush.msra.mxu1 (%p2736_p1), %v8681_v24  ;;  %2797 = vmatpush.msra.mxu0 (%p2736_p1), %v8683_v1  ;;  %vm8688_vm7 = vmmov (%p2736_p1), %vm8673_vm3  ;;  %v8689_v6 = vld [vmem:[#allocation50_spill] sm:$0xff] (%p2736_p1)  ;;  %v8690_v12 = vld [vmem:[#allocation36_spill] sm:$0xff] (%p2736_p1)  ;;  %s4677_s0 = sld [smem:[#allocation10 + $0x3]] (%p2736_p1) }
 0x4ee   :  { %2820 = vmatpush.msra.mxu2 (%p2736_p1), %v8684_v44  ;;  %2850 = vmatpush.msra.mxu3 (%p2736_p1), %v8686_v0  ;;  %vm8691_vm5 = vmmov (%p2736_p1), %vm8673_vm3  ;;  %v8692_v26 = vld [vmem:[#allocation40_spill] sm:$0xff] (%p2736_p1)  ;;  %v8693_v50 = vld [vmem:[#allocation49_spill] sm:$0xff] (%p2736_p1)  ;;  %s7776_s16 = sld [smem:[#allocation10 + $0x4]] (%p2736_p1) }
 0x4ef   : > { %2747 = vst.msk [vmem:[%s2741_s3] sm:$0x1] %vm8671_vm12, %v2745_v21  ;;  %2775 = vmatpush.msra.mxu1 (%p2736_p1), %v8685_v31  ;;  %4619 = vmatmul.msk.f32.vlgmr.msra.gmra.mxu3 (%p2736_p1), %vm8688_vm7, %v7119_v48  ;;  %v8694_v5 = vld [vmem:[#allocation54_spill] sm:$0xff] (%p2736_p1)  ;;  %vm8695_vm1 = vmmov (%p2736_p1), %vm8673_vm3  ;;  %v8699_v41 = vld [vmem:[#allocation48_spill] sm:$0xff] (%p2736_p1)  ;;  %s3131_s2 = sshra.s32 (%p2736_p1), %s3130_s8, 3  ;;  %s3134_s25 = sand.u32 (%p2736_p1), 7, %s3130_s8 }
 0x4f0   :  { %2798 = vmatpush.msra.mxu0 %v8690_v12  ;;  %2821 = vmatpush.msra.mxu2 %v8692_v26  ;;  %v8697_v27 = vld [vmem:[#allocation62_spill] sm:$0xff]  ;;  %v8700_v39 = vld [vmem:[#allocation53_spill] sm:$0xff]  ;;  %v8703_v28 = vld [vmem:[#allocation47_spill] sm:$0xff]  ;;  %s4910_s5 = sshll.u32 %s3131_s2, 6  ;;  %s3149_s1 = sshra.s32 %s4671_s14, 3 }
 0x4f1   :  { %2870 = vmatpush.msrb.mxu1 %v8689_v6  ;;  %vm8698_vm2 = vnez %v8697_v27  ;;  %v8701_v7 = vld [vmem:[#allocation61_spill] sm:$0xff]  ;;  %v8704_v61 = vld [vmem:[#allocation52_spill] sm:$0xff]  ;;  %v8707_v35 = vld [vmem:[#allocation51_spill] sm:$0xff]  ;;  %s7778_s18 = sld [smem:[#allocation10 + $0x5]]  ;;  %s7780_s20 = sadd.s32 %s4910_s5, %s3134_s25 }
 0x4f2   :  { %2893 = vmatpush.msrb.mxu0 %v8694_v5  ;;  %4635 = vmatpush.bf16.msk.msrb.mxu3 %vm8698_vm2, %v8696_v13  ;;  %vm8702_vm12 = vnez %v8701_v7  ;;  %v8708_v55 = vld [vmem:[#allocation63_spill] sm:$0xff]  ;;  %vm8710_vm7 = vmmov %vm8695_vm1  ;;  %v8711_v60 = vld [vmem:[#allocation65_spill] sm:$0xff]  ;;  %s3167_s21 = sshra.s32 %s4674_s26, 3  ;;  %s3152_s28 = sand.u32 7, %s4671_s14 }
 0x4f3   :  { %2871 = vmatpush.msrb.mxu1 %v8693_v50  ;;  %4630 = vmatpush.bf16.msk.msrb.mxu2 %vm8702_vm12, %v8696_v13  ;;  %v8713_v45 = vld [vmem:[#allocation64_spill] sm:$0xff]  ;;  %v8715_v8 = vld [vmem:[#allocation66_spill] sm:$0xff]  ;;  %v8728_v56 = vld [vmem:[#allocation71_spill] sm:$0xff]  ;;  %s3185_s22 = sshra.s32 %s4677_s0, 3  ;;  %s4911_s4 = sshll.u32 %s3149_s1, 6 }
 0x4f4   :  { %2894 = vmatpush.msrb.mxu0 %v8700_v39  ;;  %vm8716_vm2 = vnez %v8715_v8  ;;  %v8718_v21 = vld [vmem:[#allocation70_spill] sm:$0xff]  ;;  %v8730_v2 = vld [vmem:[#allocation75_spill] sm:$0xff]  ;;  %v8739_v24 = vld [vmem:[#allocation73_spill] sm:$0xff]  ;;  %s3170_s30 = sand.u32 7, %s4674_s26  ;;  %s4912_s17 = sshll.u32 %s3167_s21, 6 }
 0x4f5   :  { %2872 = vmatpush.msrb.mxu1 %v8699_v41  ;;  %v8733_v54 = vld [vmem:[#allocation74_spill] sm:$0xff]  ;;  %v8740_v1 = vld [vmem:[#allocation72_spill] sm:$0xff]  ;;  %v8742_v39 = vld [vmem:[#allocation55_spill] sm:$0xff]  ;;  %s3188_s27 = sand.u32 7, %s4677_s0  ;;  %s4913_s7 = sshll.u32 %s3185_s22, 6 }
 0x4f6   :  { %v2748_v32 = vld [vmem:[#allocation7] sm:$0xff]  ;;  %v2749_v23 = vld [vmem:[#allocation7 + $0x8] sm:$0xf]  ;;  %2895 = vmatpush.msrb.mxu0 %v8704_v61  ;;  %4637 = vmatpush.bf16.msk.msrb.mxu3 %vm8716_vm2, %v8696_v13  ;;  %vm8731_vm2 = vnez %v8730_v2  ;;  %v8741_v5 = vld [vmem:[#allocation58_spill] sm:$0xff]  ;;  %s7782_s23 = sld [smem:[#allocation10 + $0x6]]  ;;  %s3203_s6 = sshra.s32 %s7776_s16, 3 }
 0x4f7   :  { %v2750_v19 = vadd.f32 %v2748_v32, %v6985_v40  ;;  %3556 = vst.msk [vmem:[#allocation7] sm:$0xff] %vm8673_vm3, %v8672_v58  ;;  %v2751_v52 = vadd.f32 %v2749_v23, %v6985_v40  ;;  %2873 = vmatpush.msrb.mxu1 %v8703_v28  ;;  %vm8705_vm3 = vmmov %vm8695_vm1  ;;  %v8720_v32 = vld [vmem:[#allocation67_spill] sm:$0xff]  ;;  %s7785_s11 = sadd.s32 %s4911_s4, %s3152_s28  ;;  %s7787_s13 = sadd.s32 %s4912_s17, %s3170_s30 }
 0x4f8   :  { %3557 = vst.msk [vmem:[#allocation7 + $0x8] sm:$0xf] %vm8678_vm4, %v8672_v58  ;;  %vm8706_vm4 = vmmov %vm8695_vm1  ;;  %2896 = vmatpush.msrb.mxu0 %v8707_v35  ;;  %v8724_v58 = vld [vmem:[#allocation68_spill] sm:$0xff]  ;;  %s7789_s19 = sadd.s32 %s4913_s7, %s3188_s27  ;;  %s3221_s24 = sshra.s32 %s7778_s18, 3 }
 0x4f9   :  { %v2752_v43 = vmax.f32 %v2750_v19, 0.0  ;;  %v2753_v25 = vmax.f32 %v2751_v52, 0.0  ;;  %4620 = vmatmul.msk.f32.gmra.mxu3 %vm8706_vm4, %v7121_v49  ;;  %vm8717_vm12 = vmmov %vm8705_vm3  ;;  %vm8721_vm4 = vnez %v8720_v32  ;;  %v8722_v19 = vld [vmem:[#allocation69_spill] sm:$0xff]  ;;  %s3206_s10 = sand.u32 7, %s7776_s16  ;;  %s4914_s12 = sshll.u32 %s3203_s6, 6 }
 0x4fa   :  { %s3224_s15 = sand.u32 7, %s7778_s18  ;;  %s7794_s29 = sld [smem:[#allocation10 + $0x7]] }
 0x4fb   :  { %4613 = vmatmul.msk.f32.vlgmr.msra.gmra.mxu1 %vm8687_vm8, %v2752_v43  ;;  %4615 = vmatmul.msk.f32.vlgmr.msra.gmra.mxu0 %vm8691_vm5, %v2752_v43  ;;  %vm8709_vm8 = vnez %v8708_v55  ;;  %vm8712_vm5 = vnez %v8711_v60  ;;  %s4915_s9 = sshll.u32 %s3221_s24, 6  ;;  %s7796_s3 = sld [smem:[#allocation10 + $0x8]] }
 0x4fc   :  { %4617 = vmatmul.msk.f32.vlgmr.msra.gmra.mxu2 %vm8695_vm1, %v2752_v43  ;;  %4640 = vmatpush.bf16.msk.msra.mxu1 %vm8709_vm8, %v8696_v13  ;;  %vm8714_vm1 = vnez %v8713_v45  ;;  %vm8723_vm8 = vnez %v8722_v19  ;;  %s7798_s8 = sadd.s32 %s4914_s12, %s3206_s10  ;;  %s7800_s14 = sld [smem:[#allocation10 + $0x9]] }
 0x4fd   :  { %4632 = vmatpush.bf16.msk.msrb.mxu2 %vm8712_vm5, %v8696_v13  ;;  %4645 = vmatpush.bf16.msk.msra.mxu0 %vm8714_vm1, %v8696_v13  ;;  %vm8726_vm5 = vmmov %vm8717_vm12  ;;  %vm8729_vm1 = vnez %v8728_v56  ;;  %s3239_s26 = sshra.s32 %s7782_s23, 3  ;;  %s7803_s0 = sadd.s32 %s4915_s9, %s3224_s15 }
 0x4fe   :  { %s3242_s2 = sand.u32 7, %s7782_s23  ;;  %s4916_s16 = sshll.u32 %s3239_s26, 6 }
 0x4ff   :  { %s7806_s25 = sld [smem:[#allocation10 + $0xa]]  ;;  %s7811_s18 = sadd.s32 %s4916_s16, %s3242_s2 }
 0x500   :  { %4642 = vmatpush.bf16.msk.msra.mxu1 %vm8721_vm4, %v8696_v13  ;;  %vm8738_vm4 = vmmov %vm8726_vm5  ;;  %s3257_s5 = sshra.s32 %s7794_s29, 3  ;;  %s7809_s1 = sld [smem:[#allocation10 + $0xb]] }
 0x501   :  { %4650 = vmatpush.bf16.msk.msra.mxu2 %vm8723_vm8, %v8696_v13  ;;  %s3275_s21 = sshra.s32 %s7796_s3, 3  ;;  %s3260_s28 = sand.u32 7, %s7794_s29 }
 0x502   :  { %s3293_s22 = sshra.s32 %s7800_s14, 3  ;;  %s4917_s4 = sshll.u32 %s3257_s5, 6 }
 0x503   :  { %4614 = vmatmul.msk.f32.gmra.mxu1 %vm8705_vm3, %v2753_v25  ;;  %4616 = vmatmul.msk.f32.gmra.mxu0 %vm8710_vm7, %v2753_v25  ;;  %vm8719_vm3 = vnez %v8718_v21  ;;  %vm8725_vm7 = vnez %v8724_v58  ;;  %s3278_s30 = sand.u32 7, %s7796_s3  ;;  %s4918_s17 = sshll.u32 %s3275_s21, 6 }
 0x504   :  { %4618 = vmatmul.msk.f32.gmra.mxu2 %vm8717_vm12, %v2753_v25  ;;  %4655 = vmatpush.bf16.msk.msra.mxu3 %vm8719_vm3, %v8696_v13  ;;  %vm8732_vm12 = vmmov %vm8726_vm5  ;;  %vm8734_vm3 = vnez %v8733_v54  ;;  %s3296_s27 = sand.u32 7, %s7800_s14  ;;  %s4919_s7 = sshll.u32 %s3293_s22, 6 }
 0x505   :  { %4647 = vmatpush.bf16.msk.msra.mxu0 %vm8725_vm7, %v8696_v13  ;;  %4652 = vmatpush.bf16.msk.msra.mxu2 %vm8731_vm2, %v8696_v13  ;;  %s7818_s23 = sld [smem:[#allocation10 + $0xc]]  ;;  %s7820_s6 = sadd.s32 %s4917_s4, %s3260_s28 }
 0x506   :  { %s7822_s24 = sld [smem:[#allocation10 + $0xd]]  ;;  %s7824_s10 = sadd.s32 %s4918_s17, %s3278_s30 }
 0x507   :  { %8854 = sst [smem:[#allocation123_spill]] %s7824_s10  ;;  %s7828_s15 = sadd.s32 %s4919_s7, %s3296_s27 }
 0x508   :  { %4657 = vmatpush.bf16.msk.msra.mxu3 %vm5864_vm13, %v8696_v13  ;;  %vm8737_vm13 = vmmov %vm8726_vm5  ;;  %s7826_s12 = sld [smem:[#allocation10 + $0xe]]  ;;  %s3311_s9 = sshra.s32 %s7806_s25, 3 }
 0x509   :  { %8855 = sst [smem:[#allocation124_spill]] %s7828_s15  ;;  %s3329_s3 = sshra.s32 %s7809_s1, 3 }
 0x50a   :  { %s7830_s29 = sld [smem:[#allocation10 + $0xf]]  ;;  %s3314_s14 = sand.u32 7, %s7806_s25 }
 0x50b   :  { %4621 = vmatmul.msk.f32.vlgmr.msrb.gmra.mxu1 %vm8726_vm5, %v7119_v48  ;;  %4623 = vmatmul.msk.f32.vlgmr.msrb.gmra.mxu0 %vm8732_vm12, %v7119_v48  ;;  %s4920_s26 = sshll.u32 %s3311_s9, 6  ;;  %s3332_s2 = sand.u32 7, %s7809_s1 }
 0x50c   :  { %4660 = vmatpush.bf16.msk.msrb.mxu1 %vm8729_vm1, %v8696_v13  ;;  %4665 = vmatpush.bf16.msk.msrb.mxu0 %vm8734_vm3, %v8696_v13  ;;  %s3347_s16 = sshra.s32 %s7818_s23, 3  ;;  %s4921_s5 = sshll.u32 %s3329_s3, 6 }
 0x50d   :  { %s3365_s21 = sshra.s32 %s7822_s24, 3  ;;  %s3350_s28 = sand.u32 7, %s7818_s23 }
 0x50e   :  { %s3383_s22 = sshra.s32 %s7826_s12, 3  ;;  %s4922_s4 = sshll.u32 %s3347_s16, 6 }
 0x50f   :  { %s3368_s17 = sand.u32 7, %s7822_s24  ;;  %s4923_s25 = sshll.u32 %s3365_s21, 6 }
 0x510   :  { %4662 = vmatpush.bf16.msk.msrb.mxu1 %vm5875_vm14, %v8696_v13  ;;  %4667 = vmatpush.bf16.msk.msrb.mxu0 %vm5882_vm0, %v8696_v13  ;;  %s3401_s30 = sshra.s32 %s7830_s29, 3  ;;  %s3386_s27 = sand.u32 7, %s7826_s12 }
 0x511   :  { %s4924_s1 = sshll.u32 %s3383_s22, 6  ;;  %s3404_s7 = sand.u32 7, %s7830_s29 }
 0x512   :  { %s4925_s9 = sshll.u32 %s3401_s30, 6  ;;  %s7844_s15 = sadd.s32 %s4920_s26, %s3314_s14 }
 0x513   :  { %4622 = vmatmul.msk.f32.gmra.mxu1 %vm8737_vm13, %v7121_v49  ;;  %4624 = vmatmul.msk.f32.gmra.mxu0 %vm8738_vm4, %v7121_v49  ;;  %s7846_s3 = sadd.s32 %s4921_s5, %s3332_s2  ;;  %s7848_s10 = sadd.s32 %s4922_s4, %s3350_s28 }
 0x514   :  { %s7850_s23 = sadd.s32 %s4923_s25, %s3368_s17  ;;  %s7852_s16 = sadd.s32 %s4924_s1, %s3386_s27 }
 0x515   :  { %s7854_s24 = sadd.s32 %s4925_s9, %s3404_s7  ;;  %s3138_s12 = scalar_lea.vmem [#allocation3], %s7780_s20 }
 0x516   :  { %s3156_s29 = scalar_lea.vmem [#allocation3], %s7785_s11  ;;  %s3174_s14 = scalar_lea.vmem [#allocation3], %s7787_s13 }
 0x517   :  { %s3192_s20 = scalar_lea.vmem [#allocation3], %s7789_s19  ;;  %s3210_s11 = scalar_lea.vmem [#allocation3], %s7798_s8 }
 0x518   :  { %s3228_s13 = scalar_lea.vmem [#allocation3], %s7803_s0  ;;  %s3246_s19 = scalar_lea.vmem [#allocation3], %s7811_s18 }
 0x519   :  { %s8856_s8 = sld [smem:[#allocation123_spill]]  ;;  %s3264_s0 = scalar_lea.vmem [#allocation3], %s7820_s6 }
 0x51a   :  { %s8857_s26 = sld [smem:[#allocation124_spill]]  ;;  %s3318_s2 = scalar_lea.vmem [#allocation3], %s7844_s15 }
 0x51b   :  { %s3336_s5 = scalar_lea.vmem [#allocation3], %s7846_s3  ;;  %s3354_s15 = scalar_lea.vmem [#allocation3], %s7848_s10 }
 0x51c   :  { %s3372_s21 = scalar_lea.vmem [#allocation3], %s7850_s23  ;;  %s3390_s28 = scalar_lea.vmem [#allocation3], %s7852_s16 }
 0x51d   :  { %s3408_s10 = scalar_lea.vmem [#allocation3], %s7854_s24  ;;  %s5303_s22 = smov 0  }
 0x51f   :  { %s3282_s18 = scalar_lea.vmem [#allocation3], %s8856_s8 }
 0x520   :  { %s3300_s6 = scalar_lea.vmem [#allocation3], %s8857_s26 }
 0x572   :  { %v2852_v47 = vpop.f32.mrf.mxu3 }
 0x573   :  { %v2853_v44 = vadd.f32 %v2852_v47, %v8740_v1 }
 0x578   :  { %v2777_v38 = vpop.f32.mrf.mxu1  ;;  %v2800_v52 = vpop.f32.mrf.mxu0 }
 0x579   :  { %v2778_v22 = vadd.f32 %v2777_v38, %v8739_v24  ;;  %v2801_v25 = vadd.f32 %v2800_v52, %v8741_v5 }
 0x57b   :  { %v2904_v0 = vadd.f32 %v2853_v44, %v2778_v22 }
 0x57c   :  { %v2855_v12 = vpop.f32.mrf.mxu3 }
 0x57d   :  { %v4625_v6 = vmul.f32 -1.442695, %v2904_v0  ;;  %v2856_v50 = vadd.f32 %v2855_v12, %v8740_v1 }
 0x57f   :  { %4997 = vpow2.f32 %v4625_v6  ;;  %v2823_v38 = vpop.f32.mrf.mxu2 }
 0x580   :  { %v2780_v31 = vpop.f32.mrf.mxu1  ;;  %v2803_v60 = vpop.f32.mrf.mxu0 }
 0x581   :  { %v2781_v26 = vadd.f32 %v2780_v31, %v8739_v24  ;;  %v2804_v8 = vadd.f32 %v2803_v60, %v8741_v5 }
 0x583   :  { %v2905_v41 = vadd.f32 %v2856_v50, %v2781_v26 }
 0x585   :  { %v4998_v28 = vpop.eup %4997  ;;  %v4626_v61 = vmul.f32 -1.442695, %v2905_v41 }
 0x586   :  { %v2912_v55 = vadd.f32 1.0, %v4998_v28 }
 0x587   :  { %4999 = vpow2.f32 %v4626_v61  ;;  %v2826_v28 = vpop.f32.mrf.mxu2 }
 0x588   :  { %v2875_v27 = vpop.f32.mrf.mxu1  ;;  %5001 = vrcp.f32 %v2912_v55  ;;  %v2898_v3 = vpop.f32.mrf.mxu0  ;;  %v2925_v22 = vand.u32 2147483648, %v2912_v55  ;;  %v2923_v44 = vand.u32 2147483647, %v2912_v55  ;;  %vm2919_vm0 = vweird.f32 %v2912_v55 }
 0x589   :  { %v2876_v7 = vadd.f32 %v2875_v27, %v8742_v39  ;;  %v2899_v52 = vadd.f32 %v2898_v3, %v7102_v11 }
 0x58a   :  { %v2926_v6 = vor.u32 1.1754944e-38, %v2925_v22  ;;  %vm2924_vm7 = vcmp.eq.f32.partialorder %v2923_v44, 8.507059e+37 }
 0x58b   :  { %v2944_v35 = vadd.f32 %v2876_v7, %v2801_v25 }
 0x58d   :  { %v4627_v45 = vmul.f32 -1.442695, %v2944_v35  ;;  %v5000_v19 = vpop.eup %4999  ;;  %v2824_v35 = vadd.f32 %v2823_v38, %v7112_v15 }
 0x58e   :  { %v5002_v23 = vpop.eup %5001  ;;  %v2913_v56 = vadd.f32 1.0, %v5000_v19 }
 0x58f   :  { %5003 = vpow2.f32 %v4627_v45  ;;  %v2915_v43 = vmul.f32 %v5002_v23, %v2912_v55  ;;  %vm2920_vm14 = vweird.f32 %v5002_v23 }
 0x590   :  { %v2878_v21 = vpop.f32.mrf.mxu1  ;;  %5005 = vrcp.f32 %v2913_v56  ;;  %vm2921_vm8 = vmor %vm2919_vm0, %vm2920_vm14  ;;  %v2940_v55 = vand.u32 2147483648, %v2913_v56  ;;  %vm2934_vm2 = vweird.f32 %v2913_v56 }
 0x591   :  { %v2879_v32 = vadd.f32 %v2878_v21, %v8742_v39  ;;  %v2916_v24 = vsub.f32 1.0, %v2915_v43  ;;  %v2901_v39 = vpop.f32.mrf.mxu0 }
 0x592   :  { %v2902_v21 = vadd.f32 %v2901_v39, %v7102_v11 }
 0x593   :  { %v2945_v58 = vadd.f32 %v2879_v32, %v2804_v8  ;;  %v2917_v1 = vmul.f32 %v5002_v23, %v2916_v24  ;;  %v2938_v8 = vand.u32 2147483647, %v2913_v56  ;;  %v2827_v32 = vadd.f32 %v2826_v28, %v7112_v15 }
 0x595   :  { %v5004_v2 = vpop.eup %5003  ;;  %v4628_v54 = vmul.f32 -1.442695, %v2945_v58  ;;  %v2918_v31 = vadd.f32 %v5002_v23, %v2917_v1  ;;  %vm2939_vm13 = vcmp.eq.f32.partialorder %v2938_v8, 8.507059e+37 }
 0x596   :  { %v2952_v47 = vadd.f32 1.0, %v5004_v2  ;;  %v5006_v0 = vpop.eup %5005 }
 0x597   :  { %5007 = vpow2.f32 %v4628_v54  ;;  %v2922_v26 = vsel %vm2921_vm8, %v5002_v23, %v2918_v31  ;;  %v2930_v50 = vmul.f32 %v5006_v0, %v2913_v56  ;;  %vm2935_vm5 = vweird.f32 %v5006_v0 }
 0x598   :  { %5009 = vrcp.f32 %v2952_v47  ;;  %v2927_v27 = vsel %vm2924_vm7, %v2926_v6, %v2922_v26  ;;  %vm2959_vm12 = vweird.f32 %v2952_v47  ;;  %v2965_v23 = vand.u32 2147483648, %v2952_v47  ;;  %vm2936_vm3 = vmor %vm2934_vm2, %vm2935_vm5 }
 0x599   :  { %v2931_v7 = vsub.f32 1.0, %v2930_v50  ;;  %v2984_v61 = vmul.f32 %v2927_v27, %v2899_v52  ;;  %v2941_v54 = vor.u32 1.1754944e-38, %v2940_v55  ;;  %v2963_v43 = vand.u32 2147483647, %v2952_v47 }
 0x59a   :  { %v2966_v52 = vor.u32 1.1754944e-38, %v2965_v23  ;;  %v8755_v23 = vld [vmem:[#allocation84_spill] sm:$0xff] }
 0x59b   :  { %v2932_v45 = vmul.f32 %v5006_v0, %v2931_v7  ;;  %v2986_v2 = vadd.f32 %v2984_v61, %v2824_v35  ;;  %vm2964_vm14 = vcmp.eq.f32.partialorder %v2963_v43, 8.507059e+37  ;;  %v8763_v43 = vld [vmem:[#allocation88_spill] sm:$0xff] }
 0x59d   :  { %v5008_v12 = vpop.eup %5007  ;;  %v2933_v58 = vadd.f32 %v5006_v0, %v2932_v45 }
 0x59e   :  { %v5010_v5 = vpop.eup %5009  ;;  %v2953_v25 = vadd.f32 1.0, %v5008_v12 }
 0x59f   :  { %v2955_v41 = vmul.f32 %v5010_v5, %v2952_v47  ;;  %vm2960_vm1 = vweird.f32 %v5010_v5  ;;  %v2937_v38 = vsel %vm2936_vm3, %v5006_v0, %v2933_v58  ;;  %v8753_v58 = vld [vmem:[#allocation83_spill] sm:$0xff] }
 0x5a0   :  { %5011 = vrcp.f32 %v2953_v25  ;;  %vm2961_vm4 = vmor %vm2959_vm12, %vm2960_vm1  ;;  %v2942_v22 = vsel %vm2939_vm13, %v2941_v54, %v2937_v38  ;;  %v2980_v12 = vand.u32 2147483648, %v2953_v25  ;;  %v2978_v27 = vand.u32 2147483647, %v2953_v25  ;;  %v8759_v54 = vld [vmem:[#allocation86_spill] sm:$0xff]  ;;  %v8765_v38 = vld [vmem:[#allocation89_spill] sm:$0xff] }
 0x5a1   :  { %v2956_v60 = vsub.f32 1.0, %v2955_v41  ;;  %v2985_v31 = vmul.f32 %v2942_v22, %v2902_v21  ;;  %5013 = vtanh.f32 %v2986_v2  ;;  %vm2974_vm8 = vweird.f32 %v2953_v25  ;;  %v8757_v2 = vld [vmem:[#allocation85_spill] sm:$0xff]  ;;  %v8769_v22 = vld [vmem:[#allocation91_spill] sm:$0xff] }
 0x5a2   :  { %v2981_v39 = vor.u32 1.1754944e-38, %v2980_v12  ;;  %vm2979_vm5 = vcmp.eq.f32.partialorder %v2978_v27, 8.507059e+37  ;;  %vm8743_vm1 = vcmask 261120   ;;  %v8787_v12 = vld [vmem:[#allocation98_spill] sm:$0xff]  ;;  %v8793_v27 = vld [vmem:[#allocation101_spill] sm:$0xff] }
 0x5a3   :  { %v2957_v19 = vmul.f32 %v5010_v5, %v2956_v60  ;;  %v2987_v56 = vadd.f32 %v2985_v31, %v2827_v32  ;;  %vm8744_vm2 = vmmov %vm8743_vm1  ;;  %v8749_v32 = vld [vmem:[#allocation81_spill] sm:$0xff]  ;;  %v8775_v31 = vld [vmem:[#allocation94_spill] sm:$0xff] }
 0x5a4   :  { %vm8745_vm12 = vmmov %vm8743_vm1  ;;  %vm8750_vm13 = vnez %v8749_v32 }
 0x5a5   :  { %v2958_v3 = vadd.f32 %v5010_v5, %v2957_v19  ;;  %5015 = vtanh.f32 %v2987_v56  ;;  %vm8746_vm3 = vmmov %vm8743_vm1  ;;  %v8751_v19 = vld [vmem:[#allocation82_spill] sm:$0xff]  ;;  %v8785_v56 = vld [vmem:[#allocation97_spill] sm:$0xff] }
 0x5a6   :  { %v5012_v24 = vpop.eup %5011 }
 0x5a7   :  { %v2970_v1 = vmul.f32 %v5012_v24, %v2953_v25  ;;  %v2962_v44 = vsel %vm2961_vm4, %v5010_v5, %v2958_v3  ;;  %vm2975_vm0 = vweird.f32 %v5012_v24  ;;  %v5014_v41 = vpop.eup %5013  ;;  %vm8752_vm4 = vnez %v8751_v19  ;;  %v8761_v3 = vld [vmem:[#allocation87_spill] sm:$0xff] }
 0x5a8   :  { %v2967_v26 = vsel %vm2964_vm14, %v2966_v52, %v2962_v44  ;;  %vm2976_vm7 = vmor %vm2974_vm8, %vm2975_vm0  ;;  %vm8754_vm14 = vnez %v8753_v58  ;;  %vm8756_vm0 = vnez %v8755_v23  ;;  %vm8762_vm8 = vnez %v8761_v3  ;;  %v8773_v44 = vld [vmem:[#allocation93_spill] sm:$0xff]  ;;  %v8781_v52 = vld [vmem:[#allocation95_spill] sm:$0xff] }
 0x5a9   :  { %v2971_v6 = vsub.f32 1.0, %v2970_v1  ;;  %v2990_v47 = vsub.f32 1.0, %v2967_v26  ;;  %v2994_v55 = vmul.f32 %v2967_v26, %v7119_v48  ;;  %v8771_v1 = vld [vmem:[#allocation92_spill] sm:$0xff]  ;;  %v8789_v26 = vld [vmem:[#allocation99_spill] sm:$0xff] }
 0x5aa   :  { %v3142_v19 = vld [vmem:[#allocation2] ss:$8 sm:$0xf]  ;;  %v3160_v23 = vld [vmem:[#allocation2 + $0x1] ss:$8 sm:$0xf] }
 0x5ab   :  { %v2972_v50 = vmul.f32 %v5012_v24, %v2971_v6  ;;  %v5016_v28 = vpop.eup %5015  ;;  %v2992_v61 = vmul.f32 %v5014_v41, %v2990_v47  ;;  %v8783_v6 = vld [vmem:[#allocation96_spill] sm:$0xff]  ;;  %v8795_v47 = vld [vmem:[#allocation102_spill] sm:$0xff] }
 0x5ac   :  { %v3143_v58 = vld [vmem:[#allocation2] ss:$8 sm:$0xf0]  ;;  %v3179_v3 = vld [vmem:[#allocation2 + $0x2] ss:$8 sm:$0xf0] }
 0x5ad   :  { %v2973_v0 = vadd.f32 %v5012_v24, %v2972_v50  ;;  %v7570_v8 = vadd.f32 %v2994_v55, %v2992_v61  ;;  %v8791_v50 = vld [vmem:[#allocation100_spill] sm:$0xff] }
 0x5af   :  { %v2977_v7 = vsel %vm2976_vm7, %v5012_v24, %v2973_v0  ;;  %vm8764_vm7 = vnez %v8763_v43  ;;  %v8767_v24 = vld [vmem:[#allocation90_spill] sm:$0xff]  ;;  %v8797_v0 = vld [vmem:[#allocation103_spill] sm:$0xff] }
 0x5b0   :  { %v2982_v5 = vsel %vm2979_vm5, %v2981_v39, %v2977_v7  ;;  %vm8766_vm5 = vnez %v8765_v38  ;;  %v3196_v43 = vld [vmem:[#allocation2 + $0x3] ss:$8 sm:$0xf] }
 0x5b1   :  { %v2991_v35 = vsub.f32 1.0, %v2982_v5  ;;  %v2995_v45 = vmul.f32 %v2982_v5, %v7121_v49  ;;  %v3197_v38 = vld [vmem:[#allocation2 + $0x3] ss:$8 sm:$0xf0] }
 0x5b3   :  { %v2993_v60 = vmul.f32 %v5016_v28, %v2991_v35 }
 0x5b5   :  { %v7572_v21 = vadd.f32 %v2995_v45, %v2993_v60 }
 0x5b7   :  { %v2998_v25 = vpack.c.bf16 %v7572_v21, %v7570_v8 }
 0x5b9   :  { %4633 = vmatmul.msk.bf16.vlgmr.msrb.gmra.mxu2 %vm8743_vm1, %v2998_v25  ;;  %4638 = vmatmul.msk.bf16.vlgmr.msrb.gmra.mxu3 %vm8744_vm2, %v2998_v25  ;;  %vm8768_vm1 = vnez %v8767_v24  ;;  %vm8770_vm2 = vnez %v8769_v22  ;;  %v3144_v24 = vor.u32 %v3143_v58, %v3142_v19  ;;  %v3214_v22 = vld [vmem:[#allocation2 + $0x4] ss:$8 sm:$0xf]  ;;  %v3340_v58 = vld [vmem:[#allocation2 + $0x43] ss:$8 sm:$0xf] }
 0x5ba   :  { %4643 = vmatmul.msk.bf16.vlgmr.msra.gmra.mxu1 %vm8745_vm12, %v2998_v25  ;;  %4648 = vmatmul.msk.bf16.vlgmr.msra.gmra.mxu0 %vm8746_vm3, %v2998_v25  ;;  %vm8772_vm12 = vnez %v8771_v1  ;;  %vm8774_vm3 = vnez %v8773_v44  ;;  %v3215_v1 = vld [vmem:[#allocation2 + $0x4] ss:$8 sm:$0xf0] }
 0x5bb   :  { %4717 = vmatpush.bf16.msk.msrb.mxu2 %vm5918_vm6, %v8696_v13  ;;  %4733 = vmatpush.bf16.msk.msrb.mxu3 %vm5933_vm15, %v8696_v13  ;;  %vm8758_vm6 = vnez %v8757_v2  ;;  %vm8760_vm15 = vnez %v8759_v54  ;;  %v3161_v2 = vld [vmem:[#allocation2 + $0x1] ss:$8 sm:$0xf0]  ;;  %v3178_v54 = vld [vmem:[#allocation2 + $0x2] ss:$8 sm:$0xf] }
 0x5bc   :  { %4749 = vmatpush.bf16.msk.msra.mxu1 %vm8750_vm13, %v8696_v13  ;;  %4765 = vmatpush.bf16.msk.msra.mxu0 %vm8752_vm4, %v8696_v13  ;;  %vm8776_vm13 = vnez %v8775_v31  ;;  %vm8777_vm4 = vcmask 261120  }
 0x5bf   :  { %4719 = vmatpush.bf16.msk.msrb.mxu2 %vm8754_vm14, %v8696_v13  ;;  %4735 = vmatpush.bf16.msk.msrb.mxu3 %vm8756_vm0, %v8696_v13  ;;  %vm8778_vm14 = vmmov %vm8777_vm4 }
 0x5c0   :  { %4751 = vmatpush.bf16.msk.msra.mxu1 %vm8758_vm6, %v8696_v13  ;;  %4767 = vmatpush.bf16.msk.msra.mxu0 %vm8760_vm15, %v8696_v13  ;;  %vm8779_vm0 = vmmov %vm8777_vm4  ;;  %vm8782_vm15 = vnez %v8781_v52  ;;  %v3162_v52 = vor.u32 %v3161_v2, %v3160_v23  ;;  %v3341_v23 = vld [vmem:[#allocation2 + $0x43] ss:$8 sm:$0xf0] }
 0x5c1   :  { %vm8780_vm6 = vmmov %vm8779_vm0 }
 0x5c3   :  { %4721 = vmatpush.bf16.msk.msrb.mxu2 %vm8762_vm8, %v8696_v13  ;;  %4737 = vmatpush.bf16.msk.msrb.mxu3 %vm8764_vm7, %v8696_v13  ;;  %vm8784_vm8 = vnez %v8783_v6  ;;  %vm8786_vm7 = vnez %v8785_v56  ;;  %v3232_v6 = vld [vmem:[#allocation2 + $0x5] ss:$8 sm:$0xf] }
 0x5c4   :  { %4753 = vmatpush.bf16.msk.msra.mxu1 %vm8766_vm5, %v8696_v13  ;;  %4769 = vmatpush.bf16.msk.msra.mxu0 %vm8768_vm1, %v8696_v13  ;;  %vm8788_vm5 = vnez %v8787_v12  ;;  %vm8790_vm1 = vnez %v8789_v26  ;;  %v3233_v56 = vld [vmem:[#allocation2 + $0x5] ss:$8 sm:$0xf0] }
 0x5c7   :  { %4723 = vmatpush.bf16.msk.msrb.mxu2 %vm8770_vm2, %v8696_v13  ;;  %4739 = vmatpush.bf16.msk.msrb.mxu3 %vm8772_vm12, %v8696_v13  ;;  %vm8792_vm2 = vnez %v8791_v50  ;;  %vm8794_vm12 = vnez %v8793_v27  ;;  %v3180_v27 = vor.u32 %v3179_v3, %v3178_v54 }
 0x5c8   :  { %4755 = vmatpush.bf16.msk.msra.mxu1 %vm8774_vm3, %v8696_v13  ;;  %4771 = vmatpush.bf16.msk.msra.mxu0 %vm8776_vm13, %v8696_v13  ;;  %vm8796_vm3 = vnez %v8795_v47  ;;  %vm8798_vm13 = vnez %v8797_v0 }
 0x5c9   :  { %4653 = vmatmul.msk.bf16.vlgmr.msra.gmra.mxu2 %vm8777_vm4, %v2998_v25  ;;  %4658 = vmatmul.msk.bf16.vlgmr.msra.gmra.mxu3 %vm8778_vm14, %v2998_v25  ;;  %vm8799_vm4 = vnez %v8388_v37  ;;  %vm8800_vm14 = vnez %v8390_v9  ;;  %v8819_v37 = vld [vmem:[#allocation104_spill] sm:$0xff]  ;;  %v8821_v9 = vld [vmem:[#allocation105_spill] sm:$0xff] }
 0x5ca   :  { %4663 = vmatmul.msk.bf16.vlgmr.msrb.gmra.mxu1 %vm8779_vm0, %v2998_v25  ;;  %4668 = vmatmul.msk.bf16.vlgmr.msrb.gmra.mxu0 %vm8780_vm6, %v2998_v25  ;;  %vm8801_vm0 = vnez %v8394_v18  ;;  %vm8802_vm6 = vnez %v8396_v33  ;;  %v8823_v18 = vld [vmem:[#allocation106_spill] sm:$0xff]  ;;  %v8825_v33 = vld [vmem:[#allocation107_spill] sm:$0xff] }
 0x5cb   :  { %4725 = vmatpush.bf16.msk.msrb.mxu2 %vm8782_vm15, %v8696_v13  ;;  %4741 = vmatpush.bf16.msk.msrb.mxu3 %vm8784_vm8, %v8696_v13  ;;  %vm8803_vm15 = vnez %v8398_v59  ;;  %vm8804_vm8 = vnez %v8400_v42  ;;  %v8827_v59 = vld [vmem:[#allocation108_spill] sm:$0xff]  ;;  %v8829_v42 = vld [vmem:[#allocation109_spill] sm:$0xff] }
 0x5cc   :  { %4757 = vmatpush.bf16.msk.msra.mxu1 %vm8786_vm7, %v8696_v13  ;;  %4773 = vmatpush.bf16.msk.msra.mxu0 %vm8788_vm5, %v8696_v13  ;;  %vm8805_vm7 = vnez %v8402_v20  ;;  %vm8806_vm5 = vnez %v8404_v14  ;;  %v8831_v20 = vld [vmem:[#allocation110_spill] sm:$0xff]  ;;  %v8833_v14 = vld [vmem:[#allocation111_spill] sm:$0xff] }
 0x5cf   :  { %4727 = vmatpush.bf16.msk.msrb.mxu2 %vm8790_vm1, %v8696_v13  ;;  %4743 = vmatpush.bf16.msk.msrb.mxu3 %vm8792_vm2, %v8696_v13  ;;  %vm8807_vm1 = vnez %v8406_v34  ;;  %vm8808_vm2 = vnez %v8408_v36  ;;  %v8835_v34 = vld [vmem:[#allocation112_spill] sm:$0xff]  ;;  %v8837_v36 = vld [vmem:[#allocation113_spill] sm:$0xff] }
 0x5d0   :  { %4759 = vmatpush.bf16.msk.msra.mxu1 %vm8794_vm12, %v8696_v13  ;;  %4775 = vmatpush.bf16.msk.msra.mxu0 %vm8796_vm3, %v8696_v13  ;;  %vm8809_vm12 = vnez %v8410_v17  ;;  %vm8810_vm3 = vnez %v8412_v46  ;;  %v8839_v17 = vld [vmem:[#allocation114_spill] sm:$0xff]  ;;  %v8841_v46 = vld [vmem:[#allocation115_spill] sm:$0xff] }
 0x5d3   :  { %4729 = vmatpush.bf16.msk.msrb.mxu2 %vm8798_vm13, %v8696_v13  ;;  %4745 = vmatpush.bf16.msk.msrb.mxu3 %vm8799_vm4, %v8696_v13  ;;  %vm8811_vm13 = vnez %v8414_v10  ;;  %vm8812_vm4 = vnez %v8416_v57  ;;  %v8843_v10 = vld [vmem:[#allocation116_spill] sm:$0xff]  ;;  %v8845_v57 = vld [vmem:[#allocation117_spill] sm:$0xff] }
 0x5d4   :  { %4761 = vmatpush.bf16.msk.msra.mxu1 %vm8800_vm14, %v8696_v13  ;;  %4777 = vmatpush.bf16.msk.msra.mxu0 %vm8801_vm0, %v8696_v13  ;;  %vm8813_vm14 = vnez %v8418_v51  ;;  %vm8814_vm0 = vnez %v8420_v63  ;;  %v3269_v51 = vld [vmem:[#allocation2 + $0x7] ss:$8 sm:$0xf0] }
 0x5d7   :  { %4731 = vmatpush.bf16.msk.msrb.mxu2 %vm8802_vm6, %v8696_v13  ;;  %4747 = vmatpush.bf16.msk.msrb.mxu3 %vm8803_vm15, %v8696_v13  ;;  %vm8815_vm6 = vnez %v8422_v53  ;;  %vm8816_vm15 = vnez %v8424_v29  ;;  %v8850_v29 = vld [vmem:[#allocation121_spill] sm:$0xff] }
 0x5d8   :  { %4763 = vmatpush.bf16.msk.msra.mxu1 %vm8804_vm8, %v8696_v13  ;;  %4779 = vmatpush.bf16.msk.msra.mxu0 %vm8805_vm7, %v8696_v13  ;;  %vm8817_vm8 = vnez %v8426_v62  ;;  %vm8818_vm7 = vnez %v8428_v30  ;;  %v8852_v62 = vld [vmem:[#allocation122_spill] sm:$0xff] }
 0x5db   :  { %4781 = vmatpush.bf16.msk.msra.mxu2 %vm8806_vm5, %v8696_v13  ;;  %4797 = vmatpush.bf16.msk.msra.mxu3 %vm8807_vm1, %v8696_v13  ;;  %vm8820_vm5 = vnez %v8819_v37  ;;  %vm8822_vm1 = vnez %v8821_v9  ;;  %v3198_v9 = vor.u32 %v3197_v38, %v3196_v43 }
 0x5dc   :  { %4813 = vmatpush.bf16.msk.msrb.mxu1 %vm8808_vm2, %v8696_v13  ;;  %4829 = vmatpush.bf16.msk.msrb.mxu0 %vm8809_vm12, %v8696_v13  ;;  %vm8824_vm2 = vnez %v8823_v18  ;;  %vm8826_vm12 = vnez %v8825_v33  ;;  %v3250_v18 = vld [vmem:[#allocation2 + $0x6] ss:$8 sm:$0xf] }
 0x5dd   :  { %v3251_v33 = vld [vmem:[#allocation2 + $0x6] ss:$8 sm:$0xf0] }
 0x5df   :  { %4783 = vmatpush.bf16.msk.msra.mxu2 %vm8810_vm3, %v8696_v13  ;;  %4799 = vmatpush.bf16.msk.msra.mxu3 %vm8811_vm13, %v8696_v13  ;;  %vm8828_vm3 = vnez %v8827_v59  ;;  %vm8830_vm13 = vnez %v8829_v42 }
 0x5e0   :  { %4815 = vmatpush.bf16.msk.msrb.mxu1 %vm8812_vm4, %v8696_v13  ;;  %4831 = vmatpush.bf16.msk.msrb.mxu0 %vm8813_vm14, %v8696_v13  ;;  %vm8832_vm4 = vnez %v8831_v20  ;;  %vm8834_vm14 = vnez %v8833_v14 }
 0x5e3   :  { %4785 = vmatpush.bf16.msk.msra.mxu2 %vm8814_vm0, %v8696_v13  ;;  %4801 = vmatpush.bf16.msk.msra.mxu3 %vm8815_vm6, %v8696_v13  ;;  %vm8836_vm0 = vnez %v8835_v34  ;;  %vm8838_vm6 = vnez %v8837_v36  ;;  %v3216_v34 = vor.u32 %v3215_v1, %v3214_v22  ;;  %v3358_v1 = vld [vmem:[#allocation2 + $0x44] ss:$8 sm:$0xf] }
 0x5e4   :  { %4817 = vmatpush.bf16.msk.msrb.mxu1 %vm8816_vm15, %v8696_v13  ;;  %4833 = vmatpush.bf16.msk.msrb.mxu0 %vm8817_vm8, %v8696_v13  ;;  %vm8840_vm15 = vnez %v8839_v17  ;;  %vm8842_vm8 = vnez %v8841_v46 }
 0x5e7   :  { %4787 = vmatpush.bf16.msk.msra.mxu2 %vm8818_vm7, %v8696_v13  ;;  %4803 = vmatpush.bf16.msk.msra.mxu3 %vm8820_vm5, %v8696_v13  ;;  %vm8844_vm7 = vnez %v8843_v10  ;;  %vm8846_vm5 = vnez %v8845_v57  ;;  %v3268_v57 = vld [vmem:[#allocation2 + $0x7] ss:$8 sm:$0xf] }
 0x5e8   :  { %4819 = vmatpush.bf16.msk.msrb.mxu1 %vm8822_vm1, %v8696_v13  ;;  %4835 = vmatpush.bf16.msk.msrb.mxu0 %vm8824_vm2, %v8696_v13  ;;  %vm8851_vm1 = vnez %v8850_v29  ;;  %vm8853_vm2 = vnez %v8852_v62  ;;  %v3234_v62 = vor.u32 %v3233_v56, %v3232_v6  ;;  %v3270_v19 = vor.u32 %v3269_v51, %v3268_v57  ;;  %v3376_v56 = vld [vmem:[#allocation2 + $0x45] ss:$8 sm:$0xf] }
 0x5eb   :  { %4789 = vmatpush.bf16.msk.msra.mxu2 %vm8826_vm12, %v8696_v13  ;;  %4805 = vmatpush.bf16.msk.msra.mxu3 %vm8828_vm3, %v8696_v13 }
 0x5ec   :  { %4821 = vmatpush.bf16.msk.msrb.mxu1 %vm8830_vm13, %v8696_v13  ;;  %4837 = vmatpush.bf16.msk.msrb.mxu0 %vm8832_vm4, %v8696_v13 }
 0x5ef   :  { %4791 = vmatpush.bf16.msk.msra.mxu2 %vm8834_vm14, %v8696_v13  ;;  %4807 = vmatpush.bf16.msk.msra.mxu3 %vm8836_vm0, %v8696_v13 }
 0x5f0   :  { %4823 = vmatpush.bf16.msk.msrb.mxu1 %vm8838_vm6, %v8696_v13  ;;  %4839 = vmatpush.bf16.msk.msrb.mxu0 %vm8840_vm15, %v8696_v13 }
 0x5f3   :  { %4793 = vmatpush.bf16.msk.msra.mxu2 %vm8842_vm8, %v8696_v13  ;;  %4809 = vmatpush.bf16.msk.msra.mxu3 %vm8844_vm7, %v8696_v13 }
 0x5f4   :  { %4825 = vmatpush.bf16.msk.msrb.mxu1 %vm8846_vm5, %v8696_v13  ;;  %4841 = vmatpush.bf16.msk.msrb.mxu0 %vm6930_vm9, %v8696_v13 }
 0x5f7   :  { %4795 = vmatpush.bf16.msk.msra.mxu2 %vm6945_vm11, %v8696_v13  ;;  %4811 = vmatpush.bf16.msk.msra.mxu3 %vm6954_vm10, %v8696_v13  ;;  %vm8858_vm10 = vcmask 261120  }
 0x5f8   :  { %4827 = vmatpush.bf16.msk.msrb.mxu1 %vm8851_vm1, %v8696_v13  ;;  %4843 = vmatpush.bf16.msk.msrb.mxu0 %vm8853_vm2, %v8696_v13  ;;  %vm8859_vm9 = vmmov %vm8858_vm10 }
 0x637   :  { %v3039_v30 = vpop.f32.mrf.mxu1  ;;  %v3053_v13 = vpop.f32.mrf.mxu0 }
 0x638   :  { %3116 = vst [vmem:[#allocation3 + $0x10] sm:$0xff] %v3039_v30  ;;  %v3286_v30 = vld [vmem:[#allocation2 + $0x40] ss:$8 sm:$0xf] }
 0x639   :  { %3117 = vst [vmem:[#allocation3 + $0x18] sm:$0xff] %v3053_v13  ;;  %v3287_v13 = vld [vmem:[#allocation2 + $0x40] ss:$8 sm:$0xf0] }
 0x63a   :  { %v3288_v3 = vor.u32 %v3287_v13, %v3286_v30 }
 0x63c   :  { %v3011_v41 = vpop.f32.mrf.mxu2  ;;  %v3025_v39 = vpop.f32.mrf.mxu3 }
 0x63d   :  { %3114 = vst [vmem:[#allocation3] sm:$0xff] %v3011_v41 }
 0x63e   :  { %3115 = vst [vmem:[#allocation3 + $0x8] sm:$0xff] %v3025_v39 }
 0x63f   :  { %v3041_v7 = vpop.f32.mrf.mxu1  ;;  %v3055_v5 = vpop.f32.mrf.mxu0 }
 0x640   :  { %3124 = vst [vmem:[#allocation3 + $0x50] sm:$0xf] %v3041_v7  ;;  %v3304_v7 = vld [vmem:[#allocation2 + $0x41] ss:$8 sm:$0xf] }
 0x641   :  { %3125 = vst [vmem:[#allocation3 + $0x58] sm:$0xf] %v3055_v5  ;;  %v3305_v5 = vld [vmem:[#allocation2 + $0x41] ss:$8 sm:$0xf0] }
 0x642   :  { %v3306_v22 = vor.u32 %v3305_v5, %v3304_v7 }
 0x644   :  { %v3013_v28 = vpop.f32.mrf.mxu2  ;;  %v3027_v61 = vpop.f32.mrf.mxu3 }
 0x645   :  { %3122 = vst [vmem:[#allocation3 + $0x40] sm:$0xf] %v3013_v28 }
 0x646   :  { %3123 = vst [vmem:[#allocation3 + $0x48] sm:$0xf] %v3027_v61 }
 0x647   :  { %v3095_v35 = vpop.f32.mrf.mxu1  ;;  %v3109_v55 = vpop.f32.mrf.mxu0 }
 0x648   :  { %3120 = vst [vmem:[#allocation3 + $0x30] sm:$0xff] %v3095_v35 }
 0x649   :  { %3121 = vst [vmem:[#allocation3 + $0x38] sm:$0xff] %v3109_v55  ;;  %v3252_v55 = vor.u32 %v3251_v33, %v3250_v18  ;;  %v3342_v18 = vor.u32 %v3341_v23, %v3340_v58  ;;  %v3394_v33 = vld [vmem:[#allocation2 + $0x46] ss:$8 sm:$0xf] }
 0x64c   :  { %v3067_v60 = vpop.f32.mrf.mxu2  ;;  %v3081_v45 = vpop.f32.mrf.mxu3 }
 0x64d   :  { %3118 = vst [vmem:[#allocation3 + $0x20] sm:$0xff] %v3067_v60 }
 0x64e   :  { %3119 = vst [vmem:[#allocation3 + $0x28] sm:$0xff] %v3081_v45  ;;  %v3322_v45 = vld [vmem:[#allocation2 + $0x42] ss:$8 sm:$0xf] }
 0x64f   :  { %v3097_v25 = vpop.f32.mrf.mxu1  ;;  %v3111_v48 = vpop.f32.mrf.mxu0 }
 0x650   :  { %3128 = vst [vmem:[#allocation3 + $0x70] sm:$0xf] %v3097_v25  ;;  %v3323_v25 = vld [vmem:[#allocation2 + $0x42] ss:$8 sm:$0xf0] }
 0x651   :  { %3129 = vst [vmem:[#allocation3 + $0x78] sm:$0xf] %v3111_v48 }
 0x654   :  { %v3069_v49 = vpop.f32.mrf.mxu2  ;;  %v3083_v32 = vpop.f32.mrf.mxu3 }
 0x655   :  { %3126 = vst [vmem:[#allocation3 + $0x60] sm:$0xf] %v3069_v49 }
 0x656   :  { %3127 = vst [vmem:[#allocation3 + $0x68] sm:$0xf] %v3083_v32 }
 0x65d   :  { %v3139_v44 = vld [vmem:[%s3138_s12] ss:$8 sm:$0xf] }
 0x65e   :  { %v3140_v31 = vld [vmem:[%s3138_s12] ss:$8 sm:$0xf0] }
 0x65f   :  { %v3141_v12 = vor.u32 %v3140_v31, %v3139_v44  ;;  %v3157_v26 = vld [vmem:[%s3156_s29] ss:$8 sm:$0xf]  ;;  %v3359_v44 = vld [vmem:[#allocation2 + $0x44] ss:$8 sm:$0xf0] }
 0x660   :  { %v3158_v50 = vld [vmem:[%s3156_s29] ss:$8 sm:$0xf0]  ;;  %v3360_v51 = vor.u32 %v3359_v44, %v3358_v1 }
 0x661   :  { %v3159_v47 = vor.u32 %v3158_v50, %v3157_v26  ;;  %v3175_v0 = vld [vmem:[%s3174_s14] ss:$8 sm:$0xf]  ;;  %v7859_v59 = vmul.f32 %v3144_v24, %v3141_v12  ;;  %v3377_v12 = vld [vmem:[#allocation2 + $0x45] ss:$8 sm:$0xf0] }
 0x662   :  { %v3176_v37 = vld [vmem:[%s3174_s14] ss:$8 sm:$0xf0] }
 0x663   :  { %v3177_v42 = vor.u32 %v3176_v37, %v3175_v0  ;;  %v3193_v20 = vld [vmem:[%s3192_s20] ss:$8 sm:$0xf]  ;;  %v7862_v36 = vmul.f32 %v3162_v52, %v3159_v47  ;;  %3146 = vst [vmem:[#allocation4] ss:$8 sm:$0xf] %v7859_v59  ;;  %v3324_v47 = vor.u32 %v3323_v25, %v3322_v45 }
 0x664   :  { %v3194_v14 = vld [vmem:[%s3192_s20] ss:$8 sm:$0xf0]  ;;  %3147 = vst [vmem:[#allocation4] ss:$8 sm:$0xf0] %v7859_v59 }
 0x665   :  { %v3195_v17 = vor.u32 %v3194_v14, %v3193_v20  ;;  %v3211_v46 = vld [vmem:[%s3210_s11] ss:$8 sm:$0xf]  ;;  %v7866_v63 = vmul.f32 %v3180_v27, %v3177_v42  ;;  %3164 = vst [vmem:[#allocation4 + $0x1] ss:$8 sm:$0xf] %v7862_v36 }
 0x666   :  { %v3212_v10 = vld [vmem:[%s3210_s11] ss:$8 sm:$0xf0]  ;;  %v3395_v42 = vld [vmem:[#allocation2 + $0x46] ss:$8 sm:$0xf0] }
 0x667   :  { %v3213_v53 = vor.u32 %v3212_v10, %v3211_v46  ;;  %v3229_v29 = vld [vmem:[%s3228_s13] ss:$8 sm:$0xf]  ;;  %v7870_v41 = vmul.f32 %v3198_v9, %v3195_v17  ;;  %3182 = vst [vmem:[#allocation4 + $0x2] ss:$8 sm:$0xf] %v7866_v63 }
 0x668   :  { %v3230_v39 = vld [vmem:[%s3228_s13] ss:$8 sm:$0xf0]  ;;  %v3412_v17 = vld [vmem:[#allocation2 + $0x47] ss:$8 sm:$0xf] }
 0x669   :  { %v7873_v28 = vmul.f32 %v3216_v34, %v3213_v53  ;;  %v3231_v61 = vor.u32 %v3230_v39, %v3229_v29  ;;  %v3247_v35 = vld [vmem:[%s3246_s19] ss:$8 sm:$0xf]  ;;  %3200 = vst [vmem:[#allocation4 + $0x3] ss:$8 sm:$0xf] %v7870_v41 }
 0x66a   :  { %v3248_v60 = vld [vmem:[%s3246_s19] ss:$8 sm:$0xf0]  ;;  %v3413_v46 = vld [vmem:[#allocation2 + $0x47] ss:$8 sm:$0xf0] }
 0x66b   :  { %3218 = vst [vmem:[#allocation4 + $0x4] ss:$8 sm:$0xf] %v7873_v28  ;;  %v7878_v48 = vmul.f32 %v3234_v62, %v3231_v61  ;;  %v3249_v49 = vor.u32 %v3248_v60, %v3247_v35  ;;  %v3265_v32 = vld [vmem:[%s3264_s0] ss:$8 sm:$0xf]  ;;  %v3378_v62 = vor.u32 %v3377_v12, %v3376_v56  ;;  %v3396_v35 = vor.u32 %v3395_v42, %v3394_v33 }
 0x66c   :  { %v3266_v2 = vld [vmem:[%s3264_s0] ss:$8 sm:$0xf0]  ;;  %v3414_v45 = vor.u32 %v3413_v46, %v3412_v17  ;;  %3165 = vst [vmem:[#allocation4 + $0x1] ss:$8 sm:$0xf0] %v7862_v36 }
 0x66d   :  { %v3283_v54 = vld [vmem:[%s3282_s18] ss:$8 sm:$0xf]  ;;  %3236 = vst [vmem:[#allocation4 + $0x5] ss:$8 sm:$0xf] %v7878_v48  ;;  %v7883_v43 = vmul.f32 %v3252_v55, %v3249_v49  ;;  %v3267_v38 = vor.u32 %v3266_v2, %v3265_v32 }
 0x66e   :  { %v3284_v24 = vld [vmem:[%s3282_s18] ss:$8 sm:$0xf0]  ;;  %3183 = vst [vmem:[#allocation4 + $0x2] ss:$8 sm:$0xf0] %v7866_v63 }
 0x66f   :  { %v3285_v31 = vor.u32 %v3284_v24, %v3283_v54  ;;  %v3301_v52 = vld [vmem:[%s3300_s6] ss:$8 sm:$0xf]  ;;  %3254 = vst [vmem:[#allocation4 + $0x6] ss:$8 sm:$0xf] %v7883_v43  ;;  %v7887_v26 = vmul.f32 %v3270_v19, %v3267_v38 }
 0x670   :  { %v3302_v6 = vld [vmem:[%s3300_s6] ss:$8 sm:$0xf0]  ;;  %3201 = vst [vmem:[#allocation4 + $0x3] ss:$8 sm:$0xf0] %v7870_v41 }
 0x671   :  { %v3303_v50 = vor.u32 %v3302_v6, %v3301_v52  ;;  %v3319_v27 = vld [vmem:[%s3318_s2] ss:$8 sm:$0xf]  ;;  %v7890_v0 = vmul.f32 %v3288_v3, %v3285_v31  ;;  %3272 = vst [vmem:[#allocation4 + $0x7] ss:$8 sm:$0xf] %v7887_v26 }
 0x672   :  { %v3320_v37 = vld [vmem:[%s3318_s2] ss:$8 sm:$0xf0]  ;;  %3219 = vst [vmem:[#allocation4 + $0x4] ss:$8 sm:$0xf0] %v7873_v28 }
 0x673   :  { %v3337_v9 = vld [vmem:[%s3336_s5] ss:$8 sm:$0xf]  ;;  %v3307_v20 = vmul.f32 %v3306_v22, %v3303_v50  ;;  %v3321_v14 = vor.u32 %v3320_v37, %v3319_v27  ;;  %3290 = vst [vmem:[#allocation4 + $0x40] ss:$8 sm:$0xf] %v7890_v0 }
 0x674   :  { %v3338_v34 = vld [vmem:[%s3336_s5] ss:$8 sm:$0xf0]  ;;  %3237 = vst [vmem:[#allocation4 + $0x5] ss:$8 sm:$0xf0] %v7878_v48 }
 0x675   :  { %v3339_v10 = vor.u32 %v3338_v34, %v3337_v9  ;;  %v3355_v57 = vld [vmem:[%s3354_s15] ss:$8 sm:$0xf]  ;;  %3308 = vst [vmem:[#allocation4 + $0x41] ss:$8 sm:$0xf] %v3307_v20  ;;  %v3325_v53 = vmul.f32 %v3324_v47, %v3321_v14 }
 0x676   :  { %v3356_v29 = vld [vmem:[%s3354_s15] ss:$8 sm:$0xf0]  ;;  %3255 = vst [vmem:[#allocation4 + $0x6] ss:$8 sm:$0xf0] %v7883_v43 }
 0x677   :  { %v3343_v30 = vmul.f32 %v3342_v18, %v3339_v10  ;;  %v3357_v13 = vor.u32 %v3356_v29, %v3355_v57  ;;  %v3373_v39 = vld [vmem:[%s3372_s21] ss:$8 sm:$0xf]  ;;  %3326 = vst [vmem:[#allocation4 + $0x42] ss:$8 sm:$0xf] %v3325_v53 }
 0x678   :  { %v3374_v7 = vld [vmem:[%s3372_s21] ss:$8 sm:$0xf0]  ;;  %3273 = vst [vmem:[#allocation4 + $0x7] ss:$8 sm:$0xf0] %v7887_v26 }
 0x679   :  { %v3375_v5 = vor.u32 %v3374_v7, %v3373_v39  ;;  %v3391_v61 = vld [vmem:[%s3390_s28] ss:$8 sm:$0xf]  ;;  %3344 = vst [vmem:[#allocation4 + $0x43] ss:$8 sm:$0xf] %v3343_v30  ;;  %v3361_v55 = vmul.f32 %v3360_v51, %v3357_v13 }
 0x67a   :  { %v3392_v60 = vld [vmem:[%s3390_s28] ss:$8 sm:$0xf0]  ;;  %3291 = vst [vmem:[#allocation4 + $0x40] ss:$8 sm:$0xf0] %v7890_v0 }
 0x67b   :  { %v3379_v25 = vmul.f32 %v3378_v62, %v3375_v5  ;;  %v3393_v49 = vor.u32 %v3392_v60, %v3391_v61  ;;  %v3409_v32 = vld [vmem:[%s3408_s10] ss:$8 sm:$0xf]  ;;  %3362 = vst [vmem:[#allocation4 + $0x44] ss:$8 sm:$0xf] %v3361_v55 }
 0x67c   :  { %v3410_v19 = vld [vmem:[%s3408_s10] ss:$8 sm:$0xf0]  ;;  %3309 = vst [vmem:[#allocation4 + $0x41] ss:$8 sm:$0xf0] %v3307_v20 }
 0x67d   :  { %v3411_v58 = vor.u32 %v3410_v19, %v3409_v32  ;;  %3380 = vst [vmem:[#allocation4 + $0x45] ss:$8 sm:$0xf] %v3379_v25  ;;  %v3397_v23 = vmul.f32 %v3396_v35, %v3393_v49  ;;  %v3418_v54 = vld [vmem:[#allocation4] sm:$0xff]  ;;  %v3419_v3 = vld [vmem:[#allocation4 + $0x8] sm:$0xff]  ;;  %v3420_v38 = vld [vmem:[#allocation4 + $0x10] sm:$0xff] }
 0x67e   :  { %v3421_v24 = vld [vmem:[#allocation4 + $0x18] sm:$0xff]  ;;  %3327 = vst [vmem:[#allocation4 + $0x42] ss:$8 sm:$0xf0] %v3325_v53 }
 0x67f   :  { %v3415_v2 = vmul.f32 %v3414_v45, %v3411_v58  ;;  %3398 = vst [vmem:[#allocation4 + $0x46] ss:$8 sm:$0xf] %v3397_v23  ;;  %v3422_v48 = vld [vmem:[#allocation4 + $0x20] sm:$0xff]  ;;  %v3423_v43 = vld [vmem:[#allocation4 + $0x28] sm:$0xff]  ;;  %v3424_v31 = vld [vmem:[#allocation4 + $0x30] sm:$0xff] }
 0x680   :  { %3345 = vst [vmem:[#allocation4 + $0x43] ss:$8 sm:$0xf0] %v3343_v30  ;;  %v3425_v52 = vld [vmem:[#allocation4 + $0x38] sm:$0xff] }
 0x681   :  { %3416 = vst [vmem:[#allocation4 + $0x47] ss:$8 sm:$0xf] %v3415_v2 }
 0x682   :  { %3363 = vst [vmem:[#allocation4 + $0x44] ss:$8 sm:$0xf0] %v3361_v55 }
 0x683   :  { %3381 = vst [vmem:[#allocation4 + $0x45] ss:$8 sm:$0xf0] %v3379_v25 }
 0x684   :  { %3399 = vst [vmem:[#allocation4 + $0x46] ss:$8 sm:$0xf0] %v3397_v23 }
 0x685   :  { %3417 = vst [vmem:[#allocation4 + $0x47] ss:$8 sm:$0xf0] %v3415_v2 }
 0x688   :  { %v3426_v22 = vld [vmem:[#allocation4 + $0x40] sm:$0xff]  ;;  %v3427_v59 = vld [vmem:[#allocation4 + $0x48] sm:$0xff]  ;;  %v3428_v1 = vld [vmem:[#allocation4 + $0x50] sm:$0xff] }
 0x689   :  { %v3434_v36 = vpack.c.bf16 %v3426_v22, %v3418_v54  ;;  %v3435_v63 = vpack.c.bf16 %v3427_v59, %v3419_v3  ;;  %v3436_v41 = vpack.c.bf16 %v3428_v1, %v3420_v38  ;;  %v3429_v44 = vld [vmem:[#allocation4 + $0x58] sm:$0xff] }
 0x68a   :  { %v3437_v28 = vpack.c.bf16 %v3429_v44, %v3421_v24 }
 0x68b   :  { %3450 = vmatmul.bf16.vlgmr.msrb.gmra.mxu2 %v3434_v36  ;;  %3464 = vmatmul.bf16.vlgmr.msrb.gmra.mxu3 %v3435_v63 }
 0x68c   :  { %3478 = vmatmul.bf16.vlgmr.msra.gmra.mxu1 %v3436_v41  ;;  %3492 = vmatmul.bf16.vlgmr.msra.gmra.mxu0 %v3437_v28  ;;  %v3430_v6 = vld [vmem:[#allocation4 + $0x60] sm:$0xff]  ;;  %v3431_v56 = vld [vmem:[#allocation4 + $0x68] sm:$0xff]  ;;  %v3432_v12 = vld [vmem:[#allocation4 + $0x70] sm:$0xff] }
 0x68d   :  { %v3433_v26 = vld [vmem:[#allocation4 + $0x78] sm:$0xff]  ;;  %v3438_v50 = vpack.c.bf16 %v3430_v6, %v3422_v48  ;;  %v3439_v27 = vpack.c.bf16 %v3431_v56, %v3423_v43  ;;  %v3440_v47 = vpack.c.bf16 %v3432_v12, %v3424_v31 }
 0x68e   :  { %v3441_v0 = vpack.c.bf16 %v3433_v26, %v3425_v52 }
 0x69b   :  { %3506 = vmatmul.bf16.vlgmr.msra.gmra.mxu2 %v3438_v50  ;;  %3520 = vmatmul.bf16.vlgmr.msra.gmra.mxu3 %v3439_v27 }
 0x69c   :  { %3534 = vmatmul.bf16.vlgmr.msrb.gmra.mxu1 %v3440_v47  ;;  %3548 = vmatmul.bf16.vlgmr.msrb.gmra.mxu0 %v3441_v0 }
 0x709   :  { %v3479_v37 = vpop.f32.mrf.mxu1  ;;  %v3493_v9 = vpop.f32.mrf.mxu0 }
 0x70e   :  { %v3451_v18 = vpop.f32.mrf.mxu2  ;;  %v3465_v33 = vpop.f32.mrf.mxu3 }
 0x70f   :  { %v3466_v42 = vadd.f32 %v3465_v33, %v3451_v18 }
 0x711   :  { %v3481_v20 = vpop.f32.mrf.mxu1  ;;  %v3495_v17 = vpop.f32.mrf.mxu0  ;;  %v3480_v46 = vadd.f32 %v3479_v37, %v3466_v42 }
 0x713   :  { %v3494_v57 = vadd.f32 %v3493_v9, %v3480_v46 }
 0x716   :  { %v3453_v14 = vpop.f32.mrf.mxu2  ;;  %v3467_v34 = vpop.f32.mrf.mxu3 }
 0x717   :  { %v3468_v10 = vadd.f32 %v3467_v34, %v3453_v14 }
 0x719   :  { %v3535_v62 = vpop.f32.mrf.mxu1  ;;  %v3482_v30 = vadd.f32 %v3481_v20, %v3468_v10  ;;  %v3549_v39 = vpop.f32.mrf.mxu0 }
 0x71b   :  { %v3496_v61 = vadd.f32 %v3495_v17, %v3482_v30 }
 0x71e   :  { %v3507_v51 = vpop.f32.mrf.mxu2  ;;  %v3521_v53 = vpop.f32.mrf.mxu3 }
 0x71f   :  { %v3508_v29 = vadd.f32 %v3507_v51, %v3494_v57 }
 0x721   :  { %v3522_v13 = vadd.f32 %v3521_v53, %v3508_v29  ;;  %v3537_v25 = vpop.f32.mrf.mxu1  ;;  %v3551_v32 = vpop.f32.mrf.mxu0 }
 0x723   :  { %v3536_v7 = vadd.f32 %v3535_v62, %v3522_v13 }
 0x725   :  { %v3550_v5 = vadd.f32 %v3549_v39, %v3536_v7 }
 0x726   :  { %v3509_v35 = vpop.f32.mrf.mxu2  ;;  %v3523_v60 = vpop.f32.mrf.mxu3 }
 0x727   :  { %3554 = vst.msk [vmem:[#allocation5] sm:$0xff] %vm8858_vm10, %v3550_v5  ;;  %v3510_v55 = vadd.f32 %v3509_v35, %v3496_v61 }
 0x729   :  { %v3524_v45 = vadd.f32 %v3523_v60, %v3510_v55 }
 0x72b   :  { %v3538_v49 = vadd.f32 %v3537_v25, %v3524_v45 }
 0x72d   :  { %v3552_v19 = vadd.f32 %v3551_v32, %v3538_v49 }
 0x72f   :  { %3555 = vst.msk [vmem:[#allocation5 + $0x8] sm:$0xff] %vm8859_vm9, %v3552_v19 }
 0x730 LB: > { %s3564_s4 = sld [smem:[#allocation11 + %s5305_s22]]  ;;  %s3567_s30 = scalar_lea.vmem [#allocation5], %s5305_s22  ;;  %vm8860_vm11 = vcmask 253952   ;;  %s5305_s22 = sphi %s5303_s22, %s3563_s22  }
 0x731   : > { %s3563_s22 = sadd.s32 1, %s5305_s22  }
 0x732   : > { %p3560_p2 = scmp.ge.s32.totalorder %s3563_s22, 16  }
 0x733   :  { %3596 = vmatpush.msrb.mxu2 (%p3560_p2), %v5475_v4  ;;  %3671 = vmatpush.msra.mxu0 (%p3560_p2), %v5499_v16  ;;  %v8861_v38 = vld [vmem:[#allocation39_spill] sm:$0xff] (%p3560_p2)  ;;  %v8864_v59 = vld [vmem:[#allocation46_spill] sm:$0xff] (%p3560_p2)  ;;  %v8868_v4 = vld [vmem:[#allocation45_spill] sm:$0xff] (%p3560_p2)  ;;  %vm8873_vm12 = vcmask (%p3560_p2), 261120   ;;  %s5307_s25 = smov (%p3560_p2), 0  }
 0x734   :  { %3619 = vmatpush.msrb.mxu3 (%p3560_p2), %v8861_v38  ;;  %v8862_v24 = vld [vmem:[#allocation43_spill] sm:$0xff] (%p3560_p2)  ;;  %v8865_v36 = vld [vmem:[#allocation38_spill] sm:$0xff] (%p3560_p2)  ;;  %v8869_v44 = vld [vmem:[#allocation37_spill] sm:$0xff] (%p3560_p2) }
 0x735   :  { %3642 = vmatpush.msra.mxu1 (%p3560_p2), %v8862_v24  ;;  %v8863_v22 = vld [vmem:[#allocation35_spill] sm:$0xff] (%p3560_p2)  ;;  %3672 = vmatpush.msra.mxu0 (%p3560_p2), %v8864_v59  ;;  %v8866_v63 = vld [vmem:[#allocation42_spill] sm:$0xff] (%p3560_p2)  ;;  %v8870_v28 = vld [vmem:[#allocation41_spill] sm:$0xff] (%p3560_p2) }
 0x736   : > { %v3568_v58 = vld [vmem:[%s3567_s30] sm:$0x1]  ;;  %s3565_s17 = scalar_lea.vmem [#allocation7], %s3564_s4  ;;  %3562 = sbr.rel (!%p3560_p2) target bundleno = 1840 (0x730), region = 264  ;;  %3597 = vmatpush.msrb.mxu2 (%p3560_p2), %v8863_v22  ;;  %3620 = vmatpush.msrb.mxu3 (%p3560_p2), %v8865_v36  ;;  %v8867_v41 = vld [vmem:[#allocation34_spill] sm:$0xff] (%p3560_p2)  ;;  %v8871_v48 = vld [vmem:[#allocation33_spill] sm:$0xff] (%p3560_p2) }
 0x737   : > { %v3566_v23 = vld [vmem:[%s3565_s17] sm:$0x1]  ;;  %3643 = vmatpush.msra.mxu1 (%p3560_p2), %v8866_v63  ;;  %3673 = vmatpush.msra.mxu0 (%p3560_p2), %v8868_v4  ;;  %v8872_v43 = vld [vmem:[#allocation44_spill] sm:$0xff] (%p3560_p2)  ;;  %vm8874_vm3 = vmmov (%p3560_p2), %vm8873_vm12 }
 0x738   : > { %v3569_v2 = vadd.f32 %v3568_v58, %v3566_v23  ;;  %3598 = vmatpush.msrb.mxu2 (%p3560_p2), %v8867_v41  ;;  %3621 = vmatpush.msrb.mxu3 (%p3560_p2), %v8869_v44  ;;  %v8875_v52 = vld [vmem:[#allocation50_spill] sm:$0xff] (%p3560_p2)  ;;  %v8876_v6 = vld [vmem:[#allocation36_spill] sm:$0xff] (%p3560_p2)  ;;  %vm8877_vm13 = vmmov (%p3560_p2), %vm8874_vm3 }
 0x739   :  { %3644 = vmatpush.msra.mxu1 (%p3560_p2), %v8870_v28  ;;  %3674 = vmatpush.msra.mxu0 (%p3560_p2), %v8872_v43  ;;  %v8878_v56 = vld [vmem:[#allocation40_spill] sm:$0xff] (%p3560_p2)  ;;  %v8879_v12 = vld [vmem:[#allocation49_spill] sm:$0xff] (%p3560_p2)  ;;  %v8880_v26 = vld [vmem:[#allocation54_spill] sm:$0xff] (%p3560_p2) }
 0x73a   : > { %3571 = vst.msk [vmem:[%s3565_s17] sm:$0x1] %vm8860_vm11, %v3569_v2  ;;  %3599 = vmatpush.msrb.mxu2 (%p3560_p2), %v8871_v48  ;;  %4850 = vmatmul.msk.f32.vlgmr.msra.gmra.mxu0 (%p3560_p2), %vm8874_vm3, %v7570_v8  ;;  %vm8881_vm4 = vmmov (%p3560_p2), %vm8874_vm3  ;;  %v8882_v27 = vld [vmem:[#allocation48_spill] sm:$0xff] (%p3560_p2)  ;;  %v8883_v47 = vld [vmem:[#allocation53_spill] sm:$0xff] (%p3560_p2) }
 0x73b   :  { %3622 = vmatpush.msrb.mxu3 %v8876_v6  ;;  %3645 = vmatpush.msra.mxu1 %v8878_v56  ;;  %v8885_v0 = vld [vmem:[#allocation52_spill] sm:$0xff]  ;;  %vm8886_vm14 = vmmov %vm8874_vm3  ;;  %v8888_v37 = vld [vmem:[#allocation51_spill] sm:$0xff]  ;;  %v8899_v6 = vmov 0.0  }
 0x73c   :  { %3694 = vmatpush.msra.mxu2 %v8875_v52  ;;  %vm8887_vm0 = vmmov %vm8874_vm3  ;;  %v8895_v18 = vld [vmem:[#allocation72_spill] sm:$0xff]  ;;  %v8896_v20 = vld [vmem:[#allocation73_spill] sm:$0xff] }
 0x73d   :  { %3717 = vmatpush.msra.mxu3 %v8880_v26  ;;  %vm8889_vm6 = vmmov %vm8887_vm0  ;;  %v8897_v39 = vld [vmem:[#allocation58_spill] sm:$0xff]  ;;  %v8898_v61 = vld [vmem:[#allocation55_spill] sm:$0xff] }
 0x73e   :  { %3695 = vmatpush.msra.mxu2 %v8879_v12  ;;  %vm8890_vm15 = vmmov %vm8887_vm0 }
 0x73f   :  { %3718 = vmatpush.msra.mxu3 %v8883_v47  ;;  %vm8891_vm8 = vmmov %vm8887_vm0 }
 0x740   :  { %3696 = vmatpush.msra.mxu2 %v8882_v27  ;;  %vm8892_vm7 = vmmov %vm8887_vm0 }
 0x741   :  { %v3572_v54 = vld [vmem:[#allocation7] sm:$0xff]  ;;  %v3573_v16 = vld [vmem:[#allocation7 + $0x8] sm:$0xf]  ;;  %3719 = vmatpush.msra.mxu3 %v8885_v0  ;;  %vm8893_vm5 = vmmov %vm8887_vm0 }
 0x742   :  { %v3574_v3 = vadd.f32 %v3572_v54, %v6985_v40  ;;  %v3575_v31 = vadd.f32 %v3573_v16, %v6985_v40  ;;  %v8884_v40 = vld [vmem:[#allocation47_spill] sm:$0xff]  ;;  %4851 = vmatmul.msk.f32.gmra.mxu0 %vm8887_vm0, %v7572_v21  ;;  %vm8894_vm1 = vmmov %vm8887_vm0 }
 0x743   :  { %3697 = vmatpush.msra.mxu2 %v8884_v40  ;;  %3720 = vmatpush.msra.mxu3 %v8888_v37 }
 0x744   :  { %v3576_v1 = vmax.f32 %v3574_v3, 0.0  ;;  %v3577_v50 = vmax.f32 %v3575_v31, 0.0 }
 0x746   :  { %4844 = vmatmul.msk.f32.vlgmr.msrb.gmra.mxu2 %vm8873_vm12, %v3576_v1  ;;  %4846 = vmatmul.msk.f32.vlgmr.msrb.gmra.mxu3 %vm8877_vm13, %v3576_v1  ;;  %vm3824_vm12 = vcmask 254976  }
 0x747   :  { %4848 = vmatmul.msk.f32.vlgmr.msra.gmra.mxu1 %vm8881_vm4, %v3576_v1  ;;  %3825 = vst.msk [vmem:[#allocation8] sm:$0x3] %vm3824_vm12, %v8899_v6 }
 0x74e   :  { %4845 = vmatmul.msk.f32.gmra.mxu2 %vm8886_vm14, %v3577_v50  ;;  %4847 = vmatmul.msk.f32.gmra.mxu3 %vm8889_vm6, %v3577_v50 }
 0x74f   :  { %4849 = vmatmul.msk.f32.gmra.mxu1 %vm8890_vm15, %v3577_v50 }
 0x756   :  { %4852 = vmatmul.msk.f32.vlgmr.msra.gmra.mxu2 %vm8891_vm8, %v7570_v8  ;;  %4854 = vmatmul.msk.f32.vlgmr.msra.gmra.mxu3 %vm8892_vm7, %v7570_v8 }
 0x75e   :  { %4853 = vmatmul.msk.f32.gmra.mxu2 %vm8893_vm5, %v7572_v21  ;;  %4855 = vmatmul.msk.f32.gmra.mxu3 %vm8894_vm1, %v7572_v21 }
 0x7b7   :  { %v3676_v9 = vpop.f32.mrf.mxu0 }
 0x7b8   :  { %v3677_v33 = vadd.f32 %v3676_v9, %v8895_v18 }
 0x7bf   :  { %v3679_v17 = vpop.f32.mrf.mxu0 }
 0x7c0   :  { %v3680_v10 = vadd.f32 %v3679_v17, %v8895_v18 }
 0x7c4   :  { %v3647_v28 = vpop.f32.mrf.mxu1 }
 0x7c5   :  { %v3648_v50 = vadd.f32 %v3647_v28, %v7112_v15 }
 0x7c9   :  { %v3601_v42 = vpop.f32.mrf.mxu2  ;;  %v3624_v57 = vpop.f32.mrf.mxu3 }
 0x7ca   :  { %v3602_v14 = vadd.f32 %v3601_v42, %v8896_v20  ;;  %v3625_v7 = vadd.f32 %v3624_v57, %v8897_v39 }
 0x7cc   :  { %v3728_v34 = vadd.f32 %v3677_v33, %v3602_v14 }
 0x7ce   :  { %v4856_v46 = vmul.f32 -1.442695, %v3728_v34 }
 0x7d0   :  { %5017 = vpow2.f32 %v4856_v46  ;;  %v3650_v46 = vpop.f32.mrf.mxu1 }
 0x7d1   :  { %v3604_v51 = vpop.f32.mrf.mxu2  ;;  %v3627_v55 = vpop.f32.mrf.mxu3 }
 0x7d2   :  { %v3605_v53 = vadd.f32 %v3604_v51, %v8896_v20  ;;  %v3628_v19 = vadd.f32 %v3627_v55, %v8897_v39 }
 0x7d4   :  { %v3729_v29 = vadd.f32 %v3680_v10, %v3605_v53 }
 0x7d6   :  { %v5018_v62 = vpop.eup %5017  ;;  %v4857_v30 = vmul.f32 -1.442695, %v3729_v29  ;;  %v3651_v29 = vadd.f32 %v3650_v46, %v7112_v15 }
 0x7d7   :  { %v3736_v13 = vadd.f32 1.0, %v5018_v62 }
 0x7d8   :  { %5019 = vpow2.f32 %v4857_v30 }
 0x7d9   :  { %5021 = vrcp.f32 %v3736_v13  ;;  %v3699_v5 = vpop.f32.mrf.mxu2  ;;  %v3722_v38 = vpop.f32.mrf.mxu3  ;;  %v3749_v22 = vand.u32 2147483648, %v3736_v13  ;;  %v3747_v59 = vand.u32 2147483647, %v3736_v13  ;;  %vm3743_vm10 = vweird.f32 %v3736_v13 }
 0x7da   :  { %v3700_v35 = vadd.f32 %v3699_v5, %v8898_v61  ;;  %v3723_v43 = vadd.f32 %v3722_v38, %v7102_v11 }
 0x7db   :  { %v3750_v44 = vor.u32 1.1754944e-38, %v3749_v22  ;;  %vm3748_vm11 = vcmp.eq.f32.partialorder %v3747_v59, 8.507059e+37 }
 0x7dc   :  { %v3768_v60 = vadd.f32 %v3700_v35, %v3625_v7 }
 0x7de   :  { %v5020_v45 = vpop.eup %5019  ;;  %v4858_v25 = vmul.f32 -1.442695, %v3768_v60 }
 0x7df   :  { %v5022_v49 = vpop.eup %5021  ;;  %v3737_v32 = vadd.f32 1.0, %v5020_v45 }
 0x7e0   :  { %5023 = vpow2.f32 %v4858_v25  ;;  %v3739_v58 = vmul.f32 %v5022_v49, %v3736_v13  ;;  %vm3744_vm2 = vweird.f32 %v5022_v49 }
 0x7e1   :  { %5025 = vrcp.f32 %v3737_v32  ;;  %v3702_v23 = vpop.f32.mrf.mxu2  ;;  %vm3745_vm9 = vmor %vm3743_vm10, %vm3744_vm2  ;;  %v3764_v12 = vand.u32 2147483648, %v3737_v32  ;;  %v3762_v27 = vand.u32 2147483647, %v3737_v32  ;;  %v3725_v40 = vpop.f32.mrf.mxu3  ;;  %vm3758_vm13 = vweird.f32 %v3737_v32 }
 0x7e2   :  { %v3703_v2 = vadd.f32 %v3702_v23, %v8898_v61  ;;  %v3740_v54 = vsub.f32 1.0, %v3739_v58  ;;  %v3726_v14 = vadd.f32 %v3725_v40, %v7102_v11  ;;  %vm8900_vm2 = vcmask 261120  }
 0x7e3   :  { %v3765_v42 = vor.u32 1.1754944e-38, %v3764_v12  ;;  %vm3763_vm14 = vcmp.eq.f32.partialorder %v3762_v27, 8.507059e+37 }
 0x7e4   :  { %v3769_v3 = vadd.f32 %v3703_v2, %v3628_v19  ;;  %v3741_v24 = vmul.f32 %v5022_v49, %v3740_v54 }
 0x7e6   :  { %v5024_v1 = vpop.eup %5023  ;;  %v4859_v36 = vmul.f32 -1.442695, %v3769_v3  ;;  %v3742_v63 = vadd.f32 %v5022_v49, %v3741_v24 }
 0x7e7   :  { %v5026_v41 = vpop.eup %5025  ;;  %v3776_v4 = vadd.f32 1.0, %v5024_v1 }
 0x7e8   :  { %5027 = vpow2.f32 %v4859_v36  ;;  %v3746_v16 = vsel %vm3745_vm9, %v5022_v49, %v3742_v63  ;;  %v3754_v48 = vmul.f32 %v5026_v41, %v3737_v32  ;;  %vm3759_vm3 = vweird.f32 %v5026_v41 }
 0x7e9   :  { %5029 = vrcp.f32 %v3776_v4  ;;  %v3751_v31 = vsel %vm3748_vm11, %v3750_v44, %v3746_v16  ;;  %vm3760_vm4 = vmor %vm3758_vm13, %vm3759_vm3  ;;  %v3789_v10 = vand.u32 2147483648, %v3776_v4  ;;  %v3787_v51 = vand.u32 2147483647, %v3776_v4 }
 0x7ea   :  { %v3755_v52 = vsub.f32 1.0, %v3754_v48  ;;  %v3808_v26 = vmul.f32 %v3751_v31, %v3723_v43  ;;  %vm3783_vm6 = vweird.f32 %v3776_v4  ;;  %vm8901_vm9 = vcmask 257024  }
 0x7eb   :  { %v3790_v13 = vor.u32 1.1754944e-38, %v3789_v10  ;;  %vm3788_vm8 = vcmp.eq.f32.partialorder %v3787_v51, 8.507059e+37 }
 0x7ec   :  { %v3756_v56 = vmul.f32 %v5026_v41, %v3755_v52  ;;  %v3810_v20 = vadd.f32 %v3808_v26, %v3648_v50 }
 0x7ee   :  { %v5028_v47 = vpop.eup %5027  ;;  %v3757_v0 = vadd.f32 %v5026_v41, %v3756_v56 }
 0x7ef   :  { %v5030_v37 = vpop.eup %5029  ;;  %v3777_v9 = vadd.f32 1.0, %v5028_v47 }
 0x7f0   :  { %v3779_v18 = vmul.f32 %v5030_v37, %v3776_v4  ;;  %v3761_v33 = vsel %vm3760_vm4, %v5026_v41, %v3757_v0  ;;  %vm3784_vm0 = vweird.f32 %v5030_v37 }
 0x7f1   :  { %5031 = vrcp.f32 %v3777_v9  ;;  %v3766_v17 = vsel %vm3763_vm14, %v3765_v42, %v3761_v33  ;;  %vm3785_vm15 = vmor %vm3783_vm6, %vm3784_vm0  ;;  %v3804_v60 = vand.u32 2147483648, %v3777_v9  ;;  %v3802_v45 = vand.u32 2147483647, %v3777_v9 }
 0x7f2   :  { %v3780_v34 = vsub.f32 1.0, %v3779_v18  ;;  %5033 = vtanh.f32 %v3810_v20  ;;  %v3809_v53 = vmul.f32 %v3766_v17, %v3726_v14  ;;  %vm3798_vm5 = vweird.f32 %v3777_v9 }
 0x7f3   :  { %v3805_v58 = vor.u32 1.1754944e-38, %v3804_v60  ;;  %vm3803_vm10 = vcmp.eq.f32.partialorder %v3802_v45, 8.507059e+37 }
 0x7f4   :  { %v3781_v57 = vmul.f32 %v5030_v37, %v3780_v34  ;;  %v3811_v5 = vadd.f32 %v3809_v53, %v3651_v29 }
 0x7f6   :  { %v3782_v62 = vadd.f32 %v5030_v37, %v3781_v57  ;;  %5035 = vtanh.f32 %v3811_v5 }
 0x7f7   :  { %v5032_v30 = vpop.eup %5031 }
 0x7f8   :  { %v3794_v39 = vmul.f32 %v5032_v30, %v3777_v9  ;;  %v3786_v7 = vsel %vm3785_vm15, %v5030_v37, %v3782_v62  ;;  %v5034_v55 = vpop.eup %5033  ;;  %vm3799_vm7 = vweird.f32 %v5032_v30 }
 0x7f9   :  { %v3791_v11 = vsel %vm3788_vm8, %v3790_v13, %v3786_v7  ;;  %vm3800_vm1 = vmor %vm3798_vm5, %vm3799_vm7 }
 0x7fa   :  { %v3795_v61 = vsub.f32 1.0, %v3794_v39  ;;  %v3814_v35 = vsub.f32 1.0, %v3791_v11  ;;  %v3818_v32 = vmul.f32 %v3791_v11, %v7570_v8 }
 0x7fc   :  { %v3796_v25 = vmul.f32 %v5032_v30, %v3795_v61  ;;  %v3816_v49 = vmul.f32 %v5034_v55, %v3814_v35  ;;  %v5036_v3 = vpop.eup %5035 }
 0x7fe   :  { %v3820_v15 = vadd.f32 %v3818_v32, %v3816_v49  ;;  %v3797_v19 = vadd.f32 %v5032_v30, %v3796_v25 }
 0x800   :  { %3822 = vst.msk [vmem:[#allocation6] sm:$0xff] %vm8900_vm2, %v3820_v15  ;;  %v3801_v23 = vsel %vm3800_vm1, %v5032_v30, %v3797_v19 }
 0x801   :  { %v3806_v2 = vsel %vm3803_vm10, %v3805_v58, %v3801_v23 }
 0x802   :  { %v3815_v54 = vsub.f32 1.0, %v3806_v2  ;;  %v3819_v24 = vmul.f32 %v3806_v2, %v7572_v21 }
 0x804   :  { %v3817_v38 = vmul.f32 %v5036_v3, %v3815_v54 }
 0x806   :  { %v3821_v22 = vadd.f32 %v3819_v24, %v3817_v38 }
 0x808   :  { %3823 = vst.msk [vmem:[#allocation6 + $0x8] sm:$0xf] %vm8901_vm9, %v3821_v22 }
 0x809 LB: > { %s3832_s27 = sld [smem:[#allocation12 + %s5309_s25]]  ;;  %s3835_s1 = scalar_lea.vmem [#allocation6], %s5309_s25  ;;  %vm8902_vm11 = vcmask 253952   ;;  %s5309_s25 = sphi %s5307_s25, %s3831_s25  }
 0x80a   : > { %s3831_s25 = sadd.s32 1, %s5309_s25  }
 0x80b   : > { %p3828_p3 = scmp.ge.s32.totalorder %s3831_s25, 12  }
 0x80c   :  { %s8903_s23 = sld [smem:[#allocation131_spill]] (%p3828_p3)  ;;  %vm8905_vm12 = vcmask (%p3828_p3), 261120   ;;  %v5038_v56 = vld [vmem:[#allocation13] ss:$0 sm:$0xff] (%p3828_p3)  ;;  %vm3904_vm13 = vcmask (%p3828_p3), 1024  }
 0x80d   :  { %s8904_s14 = sld [smem:[#allocation133_spill]] (%p3828_p3)  ;;  %vm8907_vm3 = vmmov (%p3828_p3), %vm8905_vm12 }
 0x80e   :  { %s8906_s21 = sld [smem:[#allocation132_spill]] (%p3828_p3) }
 0x80f   : > { %v3836_v8 = vld [vmem:[%s3835_s1] sm:$0x1]  ;;  %s3833_s7 = scalar_lea.vmem [#allocation8], %s3832_s27  ;;  %3830 = sbr.rel (!%p3828_p3) target bundleno = 2057 (0x809), region = 275 }
 0x810   : > { %v3834_v59 = vld [vmem:[%s3833_s7] sm:$0x1]  ;;  %s8908_s22 = sld [smem:[#allocation134_spill]] (%p3828_p3) }
 0x811   : > { %v3837_v1 = vadd.f32 %v3836_v8, %v3834_v59 }
 0x812   :  { %v3844_v21 = vld [vmem:[%s8903_s23 + $0x18] sm:$0xff] (%p3828_p3)  ;;  %v3843_v36 = vld [vmem:[%s8903_s23 + $0x10] sm:$0xff] (%p3828_p3)  ;;  %v3842_v41 = vld [vmem:[%s8903_s23 + $0x8] sm:$0xff] (%p3828_p3) }
 0x813   : > { %3839 = vst.msk [vmem:[%s3833_s7] sm:$0x1] %vm8902_vm11, %v3837_v1  ;;  %3864 = vmatpush.msrb.mxu1 (%p3828_p3), %v3844_v21  ;;  %v3876_v63 = vld [vmem:[%s8904_s14 + $0x18] sm:$0xff] (%p3828_p3)  ;;  %v3841_v4 = vld [vmem:[%s8903_s23] sm:$0xff] (%p3828_p3)  ;;  %v3875_v44 = vld [vmem:[%s8904_s14 + $0x10] sm:$0xff] (%p3828_p3) }
 0x814   :  { %3896 = vmatpush.msrb.mxu0 %v3876_v63  ;;  %v3874_v28 = vld [vmem:[%s8904_s14 + $0x8] sm:$0xff]  ;;  %v3873_v48 = vld [vmem:[%s8904_s14] sm:$0xff] }
 0x815   :  { %3865 = vmatpush.msrb.mxu1 %v3843_v36  ;;  %v5037_v43 = vld [vmem:[%s8906_s21] ss:$0 sm:$0xff] }
 0x816   :  { %3897 = vmatpush.msrb.mxu0 %v3875_v44 }
 0x817   :  { %3866 = vmatpush.msrb.mxu1 %v3842_v41 }
 0x818   :  { %3898 = vmatpush.msrb.mxu0 %v3874_v28 }
 0x819   :  { %3867 = vmatpush.msrb.mxu1 %v3841_v4 }
 0x81a   :  { %v3840_v16 = vld [vmem:[#allocation8] sm:$0x3]  ;;  %3899 = vmatpush.msrb.mxu0 %v3873_v48 }
 0x81b   :  { %4860 = vmatmul.msk.f32.vlgmr.msrb.gmra.mxu1 %vm8905_vm12, %v3840_v16 }
 0x898   :  { %v3869_v31 = vpop.f32.mrf.mxu1 }
 0x899   :  { %v3870_v52 = vadd.f32 %v5037_v43, %v3869_v31 }
 0x89b   :  { %v3872_v6 = vmax.f32 %v3870_v52, 0.0 }
 0x89d   :  { %4861 = vmatmul.msk.f32.vlgmr.msrb.gmra.mxu0 %vm8907_vm3, %v3872_v6 }
 0x91a   :  { %v3901_v12 = vpop.f32.mrf.mxu0 }
 0x91b   :  { %v3902_v26 = vadd.f32 %v5038_v56, %v3901_v12 }
 0x91d   :  { %3905 = vst.msk [vmem:[%s8908_s22] sm:$0x3] %vm3904_vm13, %v3902_v26 }
 0x91e   :  { %3910 = vsyncpa [#allocation15], 1 }
 0x91f   :  { %3911 = vsyncpa [#allocation17], 1 }
 0x920   :  { %3912 = vsyncpa [#allocation20], 1 }
 0x921   :  { %3913 = vsyncpa [#allocation23], 1 }
 0x922   :  { %3914 = vsyncpa [#allocation26], 1 }

</bundles_post_ra>
